<compile_context>
chip_gen: v5e
topology: v5e:2x2
jax: 0.10.0
libtpu: 0.0.40
codegen_flags: <defaults>
</compile_context>

<pallas_src>
import functools
import numpy as np
import jax
import jax.numpy as jnp
from jax.experimental import pallas as pl
from jax.experimental.pallas import tpu as pltpu

B = 8            # batch
OBS_DIM = 16
ACT_DIM = 4
HIDDEN = 32      # hidden_sizes = [32, 32]
TED = 32         # time_embed_dim
DIN = HIDDEN + ACT_DIM + TED   # diffusion MLP input dim = 68
T_STEPS = 10     # num_diffusion_steps
MIX_P = 0.9
BETA_START = 1e-4
BETA_END = 0.02
LN_EPS = 1e-5
OUT_W = 128      # lane-dense packed output: actions (4) + logp (1) + pad

# ---- parameter-slab row layout (all 8-row aligned blocks) ----
ROW_VEC = 0                      # 16 rows of (1,*) vectors
ROW_TEMB = 16                    # 10 rows: temb @ wg_temb   (padded block of 16)
ROW_EW1 = 32                     # (OBS_DIM, HIDDEN)
ROW_EW2 = 48                     # (HIDDEN, HIDDEN)
ROW_WGFEAT = 80                  # (HIDDEN, HIDDEN)   gamma-scaled d_w1, feat rows
ROW_WGACT = 112                  # (ACT_DIM, HIDDEN)  gamma-scaled d_w1, action rows
ROW_DW2 = 120                    # (HIDDEN, HIDDEN)
ROW_DWO = 152                    # (HIDDEN, ACT_DIM)
P_ROWS = 184

# ---- data-slab row layout ----
DROW_OBS = 0                     # (B, OBS_DIM)
DROW_XY0 = 8                     # (2B, ACT_DIM)  [x0; y0]
DROW_NOISE = 24                  # (T_STEPS*2B, ACT_DIM) flattened per-step noise
D_ROWS = DROW_NOISE + T_STEPS * 2 * B   # 184

# ---- diffusion schedule (baked statically, float32) ----
_betas = np.linspace(BETA_START, BETA_END, T_STEPS, dtype=np.float32)
_alphas = (1.0 - _betas).astype(np.float32)
_alphas_cumprod = np.cumprod(_alphas).astype(np.float32)
_sqrt_one_minus_ac = np.sqrt(1.0 - _alphas_cumprod).astype(np.float32)
# sum over t=1..9 of 0.5 * A * log(2*pi*beta_t)  (per-chain log-normalizer total)
_LOG_NORM_TOTAL = float(0.5 * ACT_DIM * np.sum(np.log(2.0 * np.pi * _betas[1:])))

# ---- sinusoidal time-embedding table for the 10 static timesteps (baked) ----
_half = TED // 2
_emb_scale = np.float32(np.log(10000.0) / (_half - 1))
_freqs = np.exp(-_emb_scale * np.arange(_half, dtype=np.float32)).astype(np.float32)
_ang = np.arange(T_STEPS, dtype=np.float32)[:, None] * _freqs[None, :]
_temb_table = np.concatenate([np.sin(_ang), np.cos(_ang)], axis=-1).astype(np.float32)  # (T, TED)
_temb_sum = _temb_table.sum(axis=-1).astype(np.float32)                 # (T,)
_temb_sq = (_temb_table * _temb_table).sum(axis=-1).astype(np.float32)  # (T,)


def _ln(x, g, b, inv_n):
    """Single-pass LayerNorm: two independent reduces, var = E[x^2] - mu^2."""
    s = jnp.sum(x, axis=-1, keepdims=True)
    s2 = jnp.sum(x * x, axis=-1, keepdims=True)
    mu = s * inv_n
    var = s2 * inv_n - mu * mu
    return (x - mu) * jax.lax.rsqrt(var + LN_EPS) * g + b


def _relu(x):
    return jnp.maximum(x, 0.0)


def _mm(x, w):
    # f32 operands, f32 accumulation; MXU is <1% utilized at these shapes, so bf16
    # operands buy nothing and only add dependent converts.
    return jnp.dot(x, w, preferred_element_type=jnp.float32)


def diffusion_policy_kernel(param_ref, data_ref, out_ref, *, deterministic: bool):
    f32 = jnp.float32

    # ---- unpack parameter slab (static slices, done once) ----
    e_ln0_g = param_ref[0:1, :OBS_DIM]
    e_ln0_b = param_ref[1:2, :OBS_DIM]
    e_b1    = param_ref[2:3, :HIDDEN]
    e_ln1_g = param_ref[3:4, :HIDDEN]
    e_ln1_b = param_ref[4:5, :HIDDEN]
    e_b2    = param_ref[5:6, :HIDDEN]
    e_ln2_g = param_ref[6:7, :HIDDEN]
    e_ln2_b = param_ref[7:8, :HIDDEN]
    b_eff     = param_ref[8:9, :HIDDEN]        # d_lni_b @ d_w1 + d_b1
    wg_colsum = param_ref[9:10, :HIDDEN]       # column sums of (gamma * d_w1)
    d_ln1_g = param_ref[10:11, :HIDDEN]
    d_ln1_b = param_ref[11:12, :HIDDEN]
    d_b2    = param_ref[12:13, :HIDDEN]
    d_ln2_g = param_ref[13:14, :HIDDEN]
    d_ln2_b = param_ref[14:15, :HIDDEN]
    d_bo    = param_ref[15:16, :ACT_DIM]

    temb_proj = param_ref[ROW_TEMB:ROW_TEMB + T_STEPS, :HIDDEN]     # (T, HIDDEN)
    e_w1    = param_ref[ROW_EW1:ROW_EW1 + OBS_DIM, :HIDDEN]         # (16, 32)
    e_w2    = param_ref[ROW_EW2:ROW_EW2 + HIDDEN, :HIDDEN]          # (32, 32)
    wg_feat = param_ref[ROW_WGFEAT:ROW_WGFEAT + HIDDEN, :HIDDEN]    # (32, 32)
    wg_act  = param_ref[ROW_WGACT:ROW_WGACT + ACT_DIM, :HIDDEN]     # (4, 32)
    d_w2    = param_ref[ROW_DW2:ROW_DW2 + HIDDEN, :HIDDEN]          # (32, 32)
    d_wo    = param_ref[ROW_DWO:ROW_DWO + HIDDEN, :ACT_DIM]         # (32, 4)

    obs = data_ref[DROW_OBS:DROW_OBS + B, :OBS_DIM]                 # (B, 16)
    xy0 = data_ref[DROW_XY0:DROW_XY0 + 2 * B, :ACT_DIM]             # (2B, 4): [x; y]

    # ---------------- obs encoder (MLPBase) ----------------
    h = _ln(obs, e_ln0_g, e_ln0_b, 1.0 / OBS_DIM)
    h = _relu(_mm(h, e_w1) + e_b1)
    h = _ln(h, e_ln1_g, e_ln1_b, 1.0 / HIDDEN)
    h = _relu(_mm(h, e_w2) + e_b2)
    feat = _ln(h, e_ln2_g, e_ln2_b, 1.0 / HIDDEN)                   # (B, HIDDEN)

    # ---- loop-invariant pieces of the folded input-LN + first Linear ----
    feat2 = jnp.concatenate([feat, feat], axis=0)                   # (2B, HIDDEN)
    feat_proj = _mm(feat2, wg_feat)                                 # (2B, HIDDEN)
    feat_sum = jnp.sum(feat2, axis=-1, keepdims=True)               # (2B, 1)
    feat_sq = jnp.sum(feat2 * feat2, axis=-1, keepdims=True)

    # hoist every feat/temb-dependent term for all 10 steps (off the dependence chain)
    proj_base, s1_base, s2_base = [], [], []
    for t in range(T_STEPS):
        proj_base.append(feat_proj + temb_proj[t:t + 1, :])
        s1_base.append(feat_sum + float(_temb_sum[t]))
        s2_base.append(feat_sq + float(_temb_sq[t]))

    # pre-broadcast the 4 action rows of the gamma-scaled first weight (K=4 contraction
    # done on the VPU instead of an MXU round-trip per step)
    wg_act_rows = [jnp.broadcast_to(wg_act[k:k + 1, :], (2 * B, HIDDEN))
                   for k in range(ACT_DIM)]

    inv_din = 1.0 / DIN
    xy = xy0

    # ---------------- reverse diffusion loop (static unroll, 10 steps) ----------------
    for t in reversed(range(T_STEPS)):
        beta_t = float(_betas[t])
        coef = float(_betas[t] / _sqrt_one_minus_ac[t])
        inv_sqrt_alpha = float(1.0 / np.sqrt(float(_alphas[t])))
        sqrt_beta = float(np.sqrt(beta_t))

        # folded input-LayerNorm + Linear1 of DiffusionMLP (only action-dependent work)
        a_sum = jnp.sum(xy, axis=-1, keepdims=True)
        a_sq = jnp.sum(xy * xy, axis=-1, keepdims=True)
        mu = (s1_base[t] + a_sum) * inv_din
        var = (s2_base[t] + a_sq) * inv_din - mu * mu
        inv_std = jax.lax.rsqrt(var + LN_EPS)
        proj = proj_base[t]
        for k in range(ACT_DIM):
            proj = proj + xy[:, k:k + 1] * wg_act_rows[k]
        z = inv_std * (proj - mu * wg_colsum) + b_eff
        z = _relu(z)
        z = _ln(z, d_ln1_g, d_ln1_b, 1.0 / HIDDEN)
        z = _relu(_mm(z, d_w2) + d_b2)
        z = _ln(z, d_ln2_g, d_ln2_b, 1.0 / HIDDEN)
        pred = _mm(z, d_wo) + d_bo                      # (2B, ACT_DIM) predicted noise

        mean_xy = (xy - coef * pred) * inv_sqrt_alpha
        if t > 0 and not deterministic:
            r0 = DROW_NOISE + t * 2 * B
            noise_t = data_ref[r0:r0 + 2 * B, :ACT_DIM]
            xy_tilde = mean_xy + sqrt_beta * noise_t
        else:
            xy_tilde = mean_xy

        # coupled mixing: swap x/y halves with a single XLU sublane rotate
        xy = MIX_P * xy_tilde + (1.0 - MIX_P) * pltpu.roll(xy_tilde, shift=B, axis=0)

    actions = 0.5 * (xy[:B] + xy[B:])                   # (B, ACT_DIM)

    # ---------------- log-probabilities (independent of the diffusion chain) ----------------
    isq = jnp.sum(xy0 * xy0, axis=-1, keepdims=True)    # (2B, 1)
    total_lp = (-0.5 * (isq[:B] + isq[B:])
                - float(ACT_DIM * np.log(2.0 * np.pi))      # initial Gaussian logpdf
                - float(ACT_DIM * np.log(2.0)))              # jacobian correction
    if not deterministic:
        nsq = jnp.zeros((2 * B, ACT_DIM), f32)
        for t in range(1, T_STEPS):
            r0 = DROW_NOISE + t * 2 * B
            nt = data_ref[r0:r0 + 2 * B, :ACT_DIM]
            nsq = nsq + nt * nt
        ssq = jnp.sum(nsq, axis=-1, keepdims=True)      # (2B, 1)
        total_lp = total_lp - 0.5 * (ssq[:B] + ssq[B:]) - 2.0 * _LOG_NORM_TOTAL

    out_ref[...] = jnp.concatenate(
        [actions, total_lp, jnp.zeros((B, OUT_W - ACT_DIM - 1), f32)], axis=-1)


def init_params(key):
    """Deterministic synthetic parameter init (natural shapes, like the nn.Module)."""
    ks = jax.random.split(key, 6)

    def lin(k, fan_in, fan_out):
        w = jax.random.normal(k, (fan_in, fan_out), jnp.float32) / np.sqrt(fan_in)
        b = jnp.zeros((1, fan_out), jnp.float32)
        return w, b

    def ln(dim):
        return jnp.ones((1, dim), jnp.float32), jnp.zeros((1, dim), jnp.float32)

    p = {}
    p["e_ln0_g"], p["e_ln0_b"] = ln(OBS_DIM)
    p["e_w1"], p["e_b1"] = lin(ks[0], OBS_DIM, HIDDEN)
    p["e_ln1_g"], p["e_ln1_b"] = ln(HIDDEN)
    p["e_w2"], p["e_b2"] = lin(ks[1], HIDDEN, HIDDEN)
    p["e_ln2_g"], p["e_ln2_b"] = ln(HIDDEN)
    p["d_lni_g"], p["d_lni_b"] = ln(DIN)
    p["d_w1"], p["d_b1"] = lin(ks[2], DIN, HIDDEN)
    p["d_ln1_g"], p["d_ln1_b"] = ln(HIDDEN)
    p["d_w2"], p["d_b2"] = lin(ks[3], HIDDEN, HIDDEN)
    p["d_ln2_g"], p["d_ln2_b"] = ln(HIDDEN)
    p["d_wo"], p["d_bo"] = lin(ks[4], HIDDEN, ACT_DIM)
    return p


def pack_params(params):
    """Pack all parameters (plus folded input-LN precomputes) into ONE (P_ROWS, 128)
    float32 slab.  Runs once per parameter update on the host -- hoisted out of the
    per-call path entirely."""
    np_p = {k: np.asarray(v, np.float32) for k, v in params.items()}
    w1 = np_p["d_w1"]                                   # (DIN, HIDDEN)
    wg = np_p["d_lni_g"].reshape(DIN, 1) * w1           # gamma-scaled rows
    wg_colsum = wg.sum(axis=0, keepdims=True)           # (1, HIDDEN)
    b_eff = np_p["d_lni_b"] @ w1 + np_p["d_b1"]         # (1, HIDDEN)
    wg_feat = wg[:HIDDEN]
    wg_act = wg[HIDDEN:HIDDEN + ACT_DIM]
    wg_temb = wg[HIDDEN + ACT_DIM:]
    temb_proj = _temb_table @ wg_temb                   # (T_STEPS, HIDDEN)

    slab = np.zeros((P_ROWS, 128), np.float32)
    vec_rows = [
        np_p["e_ln0_g"], np_p["e_ln0_b"],
        np_p["e_b1"], np_p["e_ln1_g"], np_p["e_ln1_b"],
        np_p["e_b2"], np_p["e_ln2_g"], np_p["e_ln2_b"],
        b_eff, wg_colsum,
        np_p["d_ln1_g"], np_p["d_ln1_b"],
        np_p["d_b2"],
        np_p["d_ln2_g"], np_p["d_ln2_b"],
        np_p["d_bo"],
    ]
    for r, v in enumerate(vec_rows):
        flat = v.reshape(-1)
        slab[ROW_VEC + r, :flat.shape[0]] = flat
    slab[ROW_TEMB:ROW_TEMB + T_STEPS, :HIDDEN] = temb_proj
    slab[ROW_EW1:ROW_EW1 + OBS_DIM, :HIDDEN] = np_p["e_w1"]
    slab[ROW_EW2:ROW_EW2 + HIDDEN, :HIDDEN] = np_p["e_w2"]
    slab[ROW_WGFEAT:ROW_WGFEAT + HIDDEN, :HIDDEN] = wg_feat
    slab[ROW_WGACT:ROW_WGACT + ACT_DIM, :HIDDEN] = wg_act
    slab[ROW_DW2:ROW_DW2 + HIDDEN, :HIDDEN] = np_p["d_w2"]
    slab[ROW_DWO:ROW_DWO + HIDDEN, :ACT_DIM] = np_p["d_wo"]
    return jnp.asarray(slab)


def _pack_data(obs, xy0, noise_flat):
    """Merge the per-call tensors into a single (D_ROWS, 128) f32 slab -> one DMA."""
    def pad(m):
        return jnp.pad(m.astype(jnp.float32), ((0, 0), (0, 128 - m.shape[1])))
    return jnp.concatenate([pad(obs), pad(xy0), pad(noise_flat)], axis=0)


@functools.partial(jax.jit, static_argnames=("deterministic",))
def diffusion_policy_forward(param_slab, obs, rnn_states, masks,
                             x0, y0, noise_x, noise_y, *, deterministic):
    """Mirrors DiffusionPolicy.forward -> (actions, action_log_probs, rnn_states)."""
    del masks  # use_recurrent_policy = False: masks unused, rnn_states pass through
    xy0 = jnp.concatenate([x0, y0], axis=0)                       # (2B, ACT_DIM)
    noise = jnp.concatenate([noise_x, noise_y], axis=1)           # (T, 2B, ACT_DIM)
    noise_flat = noise.reshape(T_STEPS * 2 * B, ACT_DIM)
    data_slab = _pack_data(obs, xy0, noise_flat)                  # (D_ROWS, 128)

    kernel = functools.partial(diffusion_policy_kernel, deterministic=bool(deterministic))
    out = pl.pallas_call(
        kernel,
        out_shape=jax.ShapeDtypeStruct((B, OUT_W), jnp.float32),
        in_specs=[pl.BlockSpec(memory_space=pltpu.MemorySpace.VMEM),
                  pl.BlockSpec(memory_space=pltpu.MemorySpace.VMEM)],
        out_specs=pl.BlockSpec(memory_space=pltpu.MemorySpace.VMEM),
    )(param_slab, data_slab)

    actions = out[:, :ACT_DIM]
    logp = out[:, ACT_DIM:ACT_DIM + 1]
    return actions, logp, rnn_states


def reference_forward(params, obs, x0, y0, noise_x, noise_y, deterministic):
    """Pure-JAX f32 reference mirroring the PyTorch module (for correctness check)."""
    hp = jax.lax.Precision.HIGHEST

    def dot(a, b):
        return jnp.dot(a, b, precision=hp)

    def ln(x, g, b):
        mu = jnp.mean(x, axis=-1, keepdims=True)
        var = jnp.mean((x - mu) ** 2, axis=-1, keepdims=True)
        return (x - mu) * jax.lax.rsqrt(var + LN_EPS) * g + b

    h = ln(obs, params["e_ln0_g"], params["e_ln0_b"])
    h = jnp.maximum(dot(h, params["e_w1"]) + params["e_b1"], 0.0)
    h = ln(h, params["e_ln1_g"], params["e_ln1_b"])
    h = jnp.maximum(dot(h, params["e_w2"]) + params["e_b2"], 0.0)
    feat = ln(h, params["e_ln2_g"], params["e_ln2_b"])

    temb_table = jnp.asarray(_temb_table)

    def net(action, t):
        temb = jnp.broadcast_to(temb_table[t][None, :], (action.shape[0], TED))
        xc = jnp.concatenate([feat, action, temb], axis=-1)
        z = ln(xc, params["d_lni_g"], params["d_lni_b"])
        z = jnp.maximum(dot(z, params["d_w1"]) + params["d_b1"], 0.0)
        z = ln(z, params["d_ln1_g"], params["d_ln1_b"])
        z = jnp.maximum(dot(z, params["d_w2"]) + params["d_b2"], 0.0)
        z = ln(z, params["d_ln2_g"], params["d_ln2_b"])
        return dot(z, params["d_wo"]) + params["d_bo"]

    x, y = x0, y0
    lp = jnp.zeros((x0.shape[0], 1), jnp.float32)
    for t in reversed(range(T_STEPS)):
        beta_t = float(_betas[t])
        alpha_t = float(_alphas[t])
        s1mac = float(_sqrt_one_minus_ac[t])
        px = net(x, t)
        py = net(y, t)
        mean_x = (x - beta_t / s1mac * px) / np.sqrt(alpha_t)
        mean_y = (y - beta_t / s1mac * py) / np.sqrt(alpha_t)
        if t > 0 and not deterministic:
            nx, ny = noise_x[t], noise_y[t]
            log_norm = float(0.5 * ACT_DIM * np.log(2.0 * np.pi * beta_t))
            lp = (lp - 0.5 * jnp.sum(nx * nx, -1, keepdims=True) - log_norm
                     - 0.5 * jnp.sum(ny * ny, -1, keepdims=True) - log_norm)
            x_t = mean_x + np.sqrt(beta_t) * nx
            y_t = mean_y + np.sqrt(beta_t) * ny
        else:
            x_t, y_t = mean_x, mean_y
        x = MIX_P * x_t + (1.0 - MIX_P) * y_t
        y = MIX_P * y_t + (1.0 - MIX_P) * x_t
    actions = 0.5 * (x + y)
    init_lp = (-0.5 * jnp.sum(x0 * x0 + y0 * y0, -1, keepdims=True)
               - float(ACT_DIM * np.log(2.0 * np.pi)))
    total = init_lp + lp - float(ACT_DIM * np.log(2.0))
    return actions, total


if __name__ == "__main__":
    key = jax.random.PRNGKey(0)
    kp, ko, kx, ky, knx, kny = jax.random.split(key, 6)

    params = init_params(kp)
    param_slab = pack_params(params)    # packed once, NOT in the per-call path

    obs = jax.random.normal(ko, (B, OBS_DIM), jnp.float32)
    rnn_states = jnp.zeros((B, 1, HIDDEN), jnp.float32)   # recurrent_n = 1 (pass-through)
    masks = jnp.ones((B, 1), jnp.float32)

    # deterministic path: x0 = y0 = 0, no per-step noise / noise log-prob terms
    zeros_a = jnp.zeros((B, ACT_DIM), jnp.float32)
    zeros_n = jnp.zeros((T_STEPS, B, ACT_DIM), jnp.float32)
    act_d, lp_d, rnn_out = diffusion_policy_forward(
        param_slab, obs, rnn_states, masks, zeros_a, zeros_a, zeros_n, zeros_n,
        deterministic=True)

    # stochastic path (noise drawn with JAX PRNG instead of torch.randn)
    x0 = jax.random.normal(kx, (B, ACT_DIM), jnp.float32)
    y0 = jax.random.normal(ky, (B, ACT_DIM), jnp.float32)
    nx = jax.random.normal(knx, (T_STEPS, B, ACT_DIM), jnp.float32)
    ny = jax.random.normal(kny, (T_STEPS, B, ACT_DIM), jnp.float32)
    act_s, lp_s, _ = diffusion_policy_forward(
        param_slab, obs, rnn_states, masks, x0, y0, nx, ny, deterministic=False)

    jax.block_until_ready((act_d, lp_d, act_s, lp_s, rnn_out))

    # correctness check against a pure-JAX f32 reference (all-f32 kernel -> tight tol)
    ref_act_d, ref_lp_d = reference_forward(params, obs, zeros_a, zeros_a, zeros_n, zeros_n, True)
    ref_act_s, ref_lp_s = reference_forward(params, obs, x0, y0, nx, ny, False)

    assert act_d.shape == (B, ACT_DIM) and lp_d.shape == (B, 1)
    assert act_s.shape == (B, ACT_DIM) and lp_s.shape == (B, 1)
    np.testing.assert_allclose(np.asarray(act_d), np.asarray(ref_act_d), atol=1e-2, rtol=1e-2)
    np.testing.assert_allclose(np.asarray(act_s), np.asarray(ref_act_s), atol=1e-2, rtol=1e-2)
    np.testing.assert_allclose(np.asarray(lp_d), np.asarray(ref_lp_d), atol=1e-2, rtol=1e-4)
    np.testing.assert_allclose(np.asarray(lp_s), np.asarray(ref_lp_s), atol=1e-2, rtol=1e-4)
    assert bool(jnp.all(jnp.isfinite(act_s))) and bool(jnp.all(jnp.isfinite(lp_s)))
    print("KERNEL_OK")
</pallas_src>

<mosaic_0001>
module attributes {stable_mosaic.version = 11 : i64} {
  func.func @diffusion_policy_kernel(%arg0: memref<184x128xf32, #tpu.memory_space<vmem>>, %arg1: memref<184x128xf32, #tpu.memory_space<vmem>>, %arg2: memref<8x128xf32, #tpu.memory_space<vmem>>) attributes {dimension_semantics = [], scalar_prefetch = 0 : i64, scratch_operands = 0 : i64, tpu.core_type = #tpu.core_type<tc>} {
    %c0 = arith.constant 0 : index
    %c0_0 = arith.constant 0 : index
    %0 = vector.load %arg0[%c0, %c0_0] : memref<184x128xf32, #tpu.memory_space<vmem>>, vector<1x16xf32>
    %c1 = arith.constant 1 : index
    %c0_1 = arith.constant 0 : index
    %1 = vector.load %arg0[%c1, %c0_1] : memref<184x128xf32, #tpu.memory_space<vmem>>, vector<1x16xf32>
    %c2 = arith.constant 2 : index
    %c0_2 = arith.constant 0 : index
    %2 = vector.load %arg0[%c2, %c0_2] : memref<184x128xf32, #tpu.memory_space<vmem>>, vector<1x32xf32>
    %c3 = arith.constant 3 : index
    %c0_3 = arith.constant 0 : index
    %3 = vector.load %arg0[%c3, %c0_3] : memref<184x128xf32, #tpu.memory_space<vmem>>, vector<1x32xf32>
    %c4 = arith.constant 4 : index
    %c0_4 = arith.constant 0 : index
    %4 = vector.load %arg0[%c4, %c0_4] : memref<184x128xf32, #tpu.memory_space<vmem>>, vector<1x32xf32>
    %c5 = arith.constant 5 : index
    %c0_5 = arith.constant 0 : index
    %5 = vector.load %arg0[%c5, %c0_5] : memref<184x128xf32, #tpu.memory_space<vmem>>, vector<1x32xf32>
    %c6 = arith.constant 6 : index
    %c0_6 = arith.constant 0 : index
    %6 = vector.load %arg0[%c6, %c0_6] : memref<184x128xf32, #tpu.memory_space<vmem>>, vector<1x32xf32>
    %c7 = arith.constant 7 : index
    %c0_7 = arith.constant 0 : index
    %7 = vector.load %arg0[%c7, %c0_7] : memref<184x128xf32, #tpu.memory_space<vmem>>, vector<1x32xf32>
    %c8 = arith.constant 8 : index
    %c0_8 = arith.constant 0 : index
    %8 = vector.load %arg0[%c8, %c0_8] : memref<184x128xf32, #tpu.memory_space<vmem>>, vector<1x32xf32>
    %c9 = arith.constant 9 : index
    %c0_9 = arith.constant 0 : index
    %9 = vector.load %arg0[%c9, %c0_9] : memref<184x128xf32, #tpu.memory_space<vmem>>, vector<1x32xf32>
    %c10 = arith.constant 10 : index
    %c0_10 = arith.constant 0 : index
    %10 = vector.load %arg0[%c10, %c0_10] : memref<184x128xf32, #tpu.memory_space<vmem>>, vector<1x32xf32>
    %c11 = arith.constant 11 : index
    %c0_11 = arith.constant 0 : index
    %11 = vector.load %arg0[%c11, %c0_11] : memref<184x128xf32, #tpu.memory_space<vmem>>, vector<1x32xf32>
    %c12 = arith.constant 12 : index
    %c0_12 = arith.constant 0 : index
    %12 = vector.load %arg0[%c12, %c0_12] : memref<184x128xf32, #tpu.memory_space<vmem>>, vector<1x32xf32>
    %c13 = arith.constant 13 : index
    %c0_13 = arith.constant 0 : index
    %13 = vector.load %arg0[%c13, %c0_13] : memref<184x128xf32, #tpu.memory_space<vmem>>, vector<1x32xf32>
    %c14 = arith.constant 14 : index
    %c0_14 = arith.constant 0 : index
    %14 = vector.load %arg0[%c14, %c0_14] : memref<184x128xf32, #tpu.memory_space<vmem>>, vector<1x32xf32>
    %c15 = arith.constant 15 : index
    %c0_15 = arith.constant 0 : index
    %15 = vector.load %arg0[%c15, %c0_15] : memref<184x128xf32, #tpu.memory_space<vmem>>, vector<1x4xf32>
    %c16 = arith.constant 16 : index
    %c0_16 = arith.constant 0 : index
    %16 = vector.load %arg0[%c16, %c0_16] : memref<184x128xf32, #tpu.memory_space<vmem>>, vector<10x32xf32>
    %c32 = arith.constant 32 : index
    %c0_17 = arith.constant 0 : index
    %17 = vector.load %arg0[%c32, %c0_17] : memref<184x128xf32, #tpu.memory_space<vmem>>, vector<16x32xf32>
    %c48 = arith.constant 48 : index
    %c0_18 = arith.constant 0 : index
    %18 = vector.load %arg0[%c48, %c0_18] : memref<184x128xf32, #tpu.memory_space<vmem>>, vector<32x32xf32>
    %c80 = arith.constant 80 : index
    %c0_19 = arith.constant 0 : index
    %19 = vector.load %arg0[%c80, %c0_19] : memref<184x128xf32, #tpu.memory_space<vmem>>, vector<32x32xf32>
    %c112 = arith.constant 112 : index
    %c0_20 = arith.constant 0 : index
    %20 = vector.load %arg0[%c112, %c0_20] : memref<184x128xf32, #tpu.memory_space<vmem>>, vector<4x32xf32>
    %c120 = arith.constant 120 : index
    %c0_21 = arith.constant 0 : index
    %21 = vector.load %arg0[%c120, %c0_21] : memref<184x128xf32, #tpu.memory_space<vmem>>, vector<32x32xf32>
    %c152 = arith.constant 152 : index
    %c0_22 = arith.constant 0 : index
    %22 = vector.load %arg0[%c152, %c0_22] : memref<184x128xf32, #tpu.memory_space<vmem>>, vector<32x4xf32>
    %c0_23 = arith.constant 0 : index
    %c0_24 = arith.constant 0 : index
    %23 = vector.load %arg1[%c0_23, %c0_24] : memref<184x128xf32, #tpu.memory_space<vmem>>, vector<8x16xf32>
    %c8_25 = arith.constant 8 : index
    %c0_26 = arith.constant 0 : index
    %24 = vector.load %arg1[%c8_25, %c0_26] : memref<184x128xf32, #tpu.memory_space<vmem>>, vector<16x4xf32>
    %cst = arith.constant dense<0.000000e+00> : vector<8xf32>
    %25 = vector.multi_reduction <add>, %23, %cst [1] : vector<8x16xf32> to vector<8xf32>
    %26 = vector.shape_cast %25 : vector<8xf32> to vector<8x1xf32>
    %27 = arith.mulf %23, %23 : vector<8x16xf32>
    %cst_27 = arith.constant dense<0.000000e+00> : vector<8xf32>
    %28 = vector.multi_reduction <add>, %27, %cst_27 [1] : vector<8x16xf32> to vector<8xf32>
    %29 = vector.shape_cast %28 : vector<8xf32> to vector<8x1xf32>
    %cst_28 = arith.constant 6.250000e-02 : f32
    %30 = vector.broadcast %cst_28 : f32 to vector<8x1xf32>
    %31 = arith.mulf %26, %30 : vector<8x1xf32>
    %cst_29 = arith.constant 6.250000e-02 : f32
    %32 = vector.broadcast %cst_29 : f32 to vector<8x1xf32>
    %33 = arith.mulf %29, %32 : vector<8x1xf32>
    %34 = arith.mulf %31, %31 : vector<8x1xf32>
    %35 = arith.subf %33, %34 : vector<8x1xf32>
    %36 = vector.broadcast %31 : vector<8x1xf32> to vector<8x16xf32>
    %37 = arith.subf %23, %36 : vector<8x16xf32>
    %cst_30 = arith.constant 9.99999974E-6 : f32
    %38 = vector.broadcast %cst_30 : f32 to vector<8x1xf32>
    %39 = arith.addf %35, %38 : vector<8x1xf32>
    %40 = math.rsqrt %39 : vector<8x1xf32>
    %41 = vector.broadcast %40 : vector<8x1xf32> to vector<8x16xf32>
    %42 = arith.mulf %37, %41 : vector<8x16xf32>
    %43 = vector.broadcast %0 : vector<1x16xf32> to vector<8x16xf32>
    %44 = arith.mulf %42, %43 : vector<8x16xf32>
    %45 = vector.broadcast %1 : vector<1x16xf32> to vector<8x16xf32>
    %46 = arith.addf %44, %45 : vector<8x16xf32>
    %cst_31 = arith.constant dense<0.000000e+00> : vector<8x32xf32>
    %47 = tpu.matmul %46, %17, %cst_31 {dimension_numbers = #tpu.dot_dimension_numbers<[1], [0], [0], [1], [0, 0, 1, 1], [], []>} : vector<8x16xf32>, vector<16x32xf32>, vector<8x32xf32> -> vector<8x32xf32>
    %48 = vector.broadcast %2 : vector<1x32xf32> to vector<8x32xf32>
    %49 = arith.addf %47, %48 : vector<8x32xf32>
    %cst_32 = arith.constant 0.000000e+00 : f32
    %50 = vector.broadcast %cst_32 : f32 to vector<8x32xf32>
    %51 = arith.maximumf %49, %50 : vector<8x32xf32>
    %cst_33 = arith.constant dense<0.000000e+00> : vector<8xf32>
    %52 = vector.multi_reduction <add>, %51, %cst_33 [1] : vector<8x32xf32> to vector<8xf32>
    %53 = vector.shape_cast %52 : vector<8xf32> to vector<8x1xf32>
    %54 = arith.mulf %51, %51 : vector<8x32xf32>
    %cst_34 = arith.constant dense<0.000000e+00> : vector<8xf32>
    %55 = vector.multi_reduction <add>, %54, %cst_34 [1] : vector<8x32xf32> to vector<8xf32>
    %56 = vector.shape_cast %55 : vector<8xf32> to vector<8x1xf32>
    %cst_35 = arith.constant 3.125000e-02 : f32
    %57 = vector.broadcast %cst_35 : f32 to vector<8x1xf32>
    %58 = arith.mulf %53, %57 : vector<8x1xf32>
    %cst_36 = arith.constant 3.125000e-02 : f32
    %59 = vector.broadcast %cst_36 : f32 to vector<8x1xf32>
    %60 = arith.mulf %56, %59 : vector<8x1xf32>
    %61 = arith.mulf %58, %58 : vector<8x1xf32>
    %62 = arith.subf %60, %61 : vector<8x1xf32>
    %63 = vector.broadcast %58 : vector<8x1xf32> to vector<8x32xf32>
    %64 = arith.subf %51, %63 : vector<8x32xf32>
    %cst_37 = arith.constant 9.99999974E-6 : f32
    %65 = vector.broadcast %cst_37 : f32 to vector<8x1xf32>
    %66 = arith.addf %62, %65 : vector<8x1xf32>
    %67 = math.rsqrt %66 : vector<8x1xf32>
    %68 = vector.broadcast %67 : vector<8x1xf32> to vector<8x32xf32>
    %69 = arith.mulf %64, %68 : vector<8x32xf32>
    %70 = vector.broadcast %3 : vector<1x32xf32> to vector<8x32xf32>
    %71 = arith.mulf %69, %70 : vector<8x32xf32>
    %72 = vector.broadcast %4 : vector<1x32xf32> to vector<8x32xf32>
    %73 = arith.addf %71, %72 : vector<8x32xf32>
    %cst_38 = arith.constant dense<0.000000e+00> : vector<8x32xf32>
    %74 = tpu.matmul %73, %18, %cst_38 {dimension_numbers = #tpu.dot_dimension_numbers<[1], [0], [0], [1], [0, 0, 1, 1], [], []>} : vector<8x32xf32>, vector<32x32xf32>, vector<8x32xf32> -> vector<8x32xf32>
    %75 = vector.broadcast %5 : vector<1x32xf32> to vector<8x32xf32>
    %76 = arith.addf %74, %75 : vector<8x32xf32>
    %cst_39 = arith.constant 0.000000e+00 : f32
    %77 = vector.broadcast %cst_39 : f32 to vector<8x32xf32>
    %78 = arith.maximumf %76, %77 : vector<8x32xf32>
    %cst_40 = arith.constant dense<0.000000e+00> : vector<8xf32>
    %79 = vector.multi_reduction <add>, %78, %cst_40 [1] : vector<8x32xf32> to vector<8xf32>
    %80 = vector.shape_cast %79 : vector<8xf32> to vector<8x1xf32>
    %81 = arith.mulf %78, %78 : vector<8x32xf32>
    %cst_41 = arith.constant dense<0.000000e+00> : vector<8xf32>
    %82 = vector.multi_reduction <add>, %81, %cst_41 [1] : vector<8x32xf32> to vector<8xf32>
    %83 = vector.shape_cast %82 : vector<8xf32> to vector<8x1xf32>
    %cst_42 = arith.constant 3.125000e-02 : f32
    %84 = vector.broadcast %cst_42 : f32 to vector<8x1xf32>
    %85 = arith.mulf %80, %84 : vector<8x1xf32>
    %cst_43 = arith.constant 3.125000e-02 : f32
    %86 = vector.broadcast %cst_43 : f32 to vector<8x1xf32>
    %87 = arith.mulf %83, %86 : vector<8x1xf32>
    %88 = arith.mulf %85, %85 : vector<8x1xf32>
    %89 = arith.subf %87, %88 : vector<8x1xf32>
    %90 = vector.broadcast %85 : vector<8x1xf32> to vector<8x32xf32>
    %91 = arith.subf %78, %90 : vector<8x32xf32>
    %cst_44 = arith.constant 9.99999974E-6 : f32
    %92 = vector.broadcast %cst_44 : f32 to vector<8x1xf32>
    %93 = arith.addf %89, %92 : vector<8x1xf32>
    %94 = math.rsqrt %93 : vector<8x1xf32>
    %95 = vector.broadcast %94 : vector<8x1xf32> to vector<8x32xf32>
    %96 = arith.mulf %91, %95 : vector<8x32xf32>
    %97 = vector.broadcast %6 : vector<1x32xf32> to vector<8x32xf32>
    %98 = arith.mulf %96, %97 : vector<8x32xf32>
    %99 = vector.broadcast %7 : vector<1x32xf32> to vector<8x32xf32>
    %100 = arith.addf %98, %99 : vector<8x32xf32>
    %101 = tpu.concatenate %100, %100 in 0 : vector<8x32xf32>, vector<8x32xf32> -> vector<16x32xf32>
    %cst_45 = arith.constant dense<0.000000e+00> : vector<16x32xf32>
    %102 = tpu.matmul %101, %19, %cst_45 {dimension_numbers = #tpu.dot_dimension_numbers<[1], [0], [0], [1], [0, 0, 1, 1], [], []>} : vector<16x32xf32>, vector<32x32xf32>, vector<16x32xf32> -> vector<16x32xf32>
    %cst_46 = arith.constant dense<0.000000e+00> : vector<16xf32>
    %103 = vector.multi_reduction <add>, %101, %cst_46 [1] : vector<16x32xf32> to vector<16xf32>
    %104 = vector.shape_cast %103 : vector<16xf32> to vector<16x1xf32>
    %105 = arith.mulf %101, %101 : vector<16x32xf32>
    %cst_47 = arith.constant dense<0.000000e+00> : vector<16xf32>
    %106 = vector.multi_reduction <add>, %105, %cst_47 [1] : vector<16x32xf32> to vector<16xf32>
    %107 = vector.shape_cast %106 : vector<16xf32> to vector<16x1xf32>
    %108 = vector.extract_strided_slice %16 {offsets = [0, 0], sizes = [1, 32], strides = [1, 1]} : vector<10x32xf32> to vector<1x32xf32>
    %109 = vector.broadcast %108 : vector<1x32xf32> to vector<16x32xf32>
    %110 = arith.addf %102, %109 : vector<16x32xf32>
    %cst_48 = arith.constant 1.600000e+01 : f32
    %111 = vector.broadcast %cst_48 : f32 to vector<16x1xf32>
    %112 = arith.addf %104, %111 : vector<16x1xf32>
    %cst_49 = arith.constant 1.600000e+01 : f32
    %113 = vector.broadcast %cst_49 : f32 to vector<16x1xf32>
    %114 = arith.addf %107, %113 : vector<16x1xf32>
    %115 = vector.extract_strided_slice %16 {offsets = [1, 0], sizes = [1, 32], strides = [1, 1]} : vector<10x32xf32> to vector<1x32xf32>
    %116 = vector.broadcast %115 : vector<1x32xf32> to vector<16x32xf32>
    %117 = arith.addf %102, %116 : vector<16x32xf32>
    %cst_50 = arith.constant 17.3269196 : f32
    %118 = vector.broadcast %cst_50 : f32 to vector<16x1xf32>
    %119 = arith.addf %104, %118 : vector<16x1xf32>
    %cst_51 = arith.constant 1.600000e+01 : f32
    %120 = vector.broadcast %cst_51 : f32 to vector<16x1xf32>
    %121 = arith.addf %107, %120 : vector<16x1xf32>
    %122 = vector.extract_strided_slice %16 {offsets = [2, 0], sizes = [1, 32], strides = [1, 1]} : vector<10x32xf32> to vector<1x32xf32>
    %123 = vector.broadcast %122 : vector<1x32xf32> to vector<16x32xf32>
    %124 = arith.addf %102, %123 : vector<16x32xf32>
    %cst_52 = arith.constant 16.8453293 : f32
    %125 = vector.broadcast %cst_52 : f32 to vector<16x1xf32>
    %126 = arith.addf %104, %125 : vector<16x1xf32>
    %cst_53 = arith.constant 1.600000e+01 : f32
    %127 = vector.broadcast %cst_53 : f32 to vector<16x1xf32>
    %128 = arith.addf %107, %127 : vector<16x1xf32>
    %129 = vector.extract_strided_slice %16 {offsets = [3, 0], sizes = [1, 32], strides = [1, 1]} : vector<10x32xf32> to vector<1x32xf32>
    %130 = vector.broadcast %129 : vector<1x32xf32> to vector<16x32xf32>
    %131 = arith.addf %102, %130 : vector<16x32xf32>
    %cst_54 = arith.constant 15.362421 : f32
    %132 = vector.broadcast %cst_54 : f32 to vector<16x1xf32>
    %133 = arith.addf %104, %132 : vector<16x1xf32>
    %cst_55 = arith.constant 1.600000e+01 : f32
    %134 = vector.broadcast %cst_55 : f32 to vector<16x1xf32>
    %135 = arith.addf %107, %134 : vector<16x1xf32>
    %136 = vector.extract_strided_slice %16 {offsets = [4, 0], sizes = [1, 32], strides = [1, 1]} : vector<10x32xf32> to vector<1x32xf32>
    %137 = vector.broadcast %136 : vector<1x32xf32> to vector<16x32xf32>
    %138 = arith.addf %102, %137 : vector<16x32xf32>
    %cst_56 = arith.constant 1.422360e+01 : f32
    %139 = vector.broadcast %cst_56 : f32 to vector<16x1xf32>
    %140 = arith.addf %104, %139 : vector<16x1xf32>
    %cst_57 = arith.constant 1.600000e+01 : f32
    %141 = vector.broadcast %cst_57 : f32 to vector<16x1xf32>
    %142 = arith.addf %107, %141 : vector<16x1xf32>
    %143 = vector.extract_strided_slice %16 {offsets = [5, 0], sizes = [1, 32], strides = [1, 1]} : vector<10x32xf32> to vector<1x32xf32>
    %144 = vector.broadcast %143 : vector<1x32xf32> to vector<16x32xf32>
    %145 = arith.addf %102, %144 : vector<16x32xf32>
    %cst_58 = arith.constant 14.1451206 : f32
    %146 = vector.broadcast %cst_58 : f32 to vector<16x1xf32>
    %147 = arith.addf %104, %146 : vector<16x1xf32>
    %cst_59 = arith.constant 1.600000e+01 : f32
    %148 = vector.broadcast %cst_59 : f32 to vector<16x1xf32>
    %149 = arith.addf %107, %148 : vector<16x1xf32>
    %150 = vector.extract_strided_slice %16 {offsets = [6, 0], sizes = [1, 32], strides = [1, 1]} : vector<10x32xf32> to vector<1x32xf32>
    %151 = vector.broadcast %150 : vector<1x32xf32> to vector<16x32xf32>
    %152 = arith.addf %102, %151 : vector<16x32xf32>
    %cst_60 = arith.constant 14.6834373 : f32
    %153 = vector.broadcast %cst_60 : f32 to vector<16x1xf32>
    %154 = arith.addf %104, %153 : vector<16x1xf32>
    %cst_61 = arith.constant 1.600000e+01 : f32
    %155 = vector.broadcast %cst_61 : f32 to vector<16x1xf32>
    %156 = arith.addf %107, %155 : vector<16x1xf32>
    %157 = vector.extract_strided_slice %16 {offsets = [7, 0], sizes = [1, 32], strides = [1, 1]} : vector<10x32xf32> to vector<1x32xf32>
    %158 = vector.broadcast %157 : vector<1x32xf32> to vector<16x32xf32>
    %159 = arith.addf %102, %158 : vector<16x32xf32>
    %cst_62 = arith.constant 14.7935991 : f32
    %160 = vector.broadcast %cst_62 : f32 to vector<16x1xf32>
    %161 = arith.addf %104, %160 : vector<16x1xf32>
    %cst_63 = arith.constant 1.600000e+01 : f32
    %162 = vector.broadcast %cst_63 : f32 to vector<16x1xf32>
    %163 = arith.addf %107, %162 : vector<16x1xf32>
    %164 = vector.extract_strided_slice %16 {offsets = [8, 0], sizes = [1, 32], strides = [1, 1]} : vector<10x32xf32> to vector<1x32xf32>
    %165 = vector.broadcast %164 : vector<1x32xf32> to vector<16x32xf32>
    %166 = arith.addf %102, %165 : vector<16x32xf32>
    %cst_64 = arith.constant 13.9230099 : f32
    %167 = vector.broadcast %cst_64 : f32 to vector<16x1xf32>
    %168 = arith.addf %104, %167 : vector<16x1xf32>
    %cst_65 = arith.constant 1.600000e+01 : f32
    %169 = vector.broadcast %cst_65 : f32 to vector<16x1xf32>
    %170 = arith.addf %107, %169 : vector<16x1xf32>
    %171 = vector.extract_strided_slice %16 {offsets = [9, 0], sizes = [1, 32], strides = [1, 1]} : vector<10x32xf32> to vector<1x32xf32>
    %172 = vector.broadcast %171 : vector<1x32xf32> to vector<16x32xf32>
    %173 = arith.addf %102, %172 : vector<16x32xf32>
    %cst_66 = arith.constant 12.6013031 : f32
    %174 = vector.broadcast %cst_66 : f32 to vector<16x1xf32>
    %175 = arith.addf %104, %174 : vector<16x1xf32>
    %cst_67 = arith.constant 1.600000e+01 : f32
    %176 = vector.broadcast %cst_67 : f32 to vector<16x1xf32>
    %177 = arith.addf %107, %176 : vector<16x1xf32>
    %178 = vector.extract_strided_slice %20 {offsets = [0, 0], sizes = [1, 32], strides = [1, 1]} : vector<4x32xf32> to vector<1x32xf32>
    %179 = vector.shape_cast %178 : vector<1x32xf32> to vector<1x32xf32>
    %180 = vector.broadcast %179 : vector<1x32xf32> to vector<16x32xf32>
    %181 = vector.extract_strided_slice %20 {offsets = [1, 0], sizes = [1, 32], strides = [1, 1]} : vector<4x32xf32> to vector<1x32xf32>
    %182 = vector.shape_cast %181 : vector<1x32xf32> to vector<1x32xf32>
    %183 = vector.broadcast %182 : vector<1x32xf32> to vector<16x32xf32>
    %184 = vector.extract_strided_slice %20 {offsets = [2, 0], sizes = [1, 32], strides = [1, 1]} : vector<4x32xf32> to vector<1x32xf32>
    %185 = vector.shape_cast %184 : vector<1x32xf32> to vector<1x32xf32>
    %186 = vector.broadcast %185 : vector<1x32xf32> to vector<16x32xf32>
    %187 = vector.extract_strided_slice %20 {offsets = [3, 0], sizes = [1, 32], strides = [1, 1]} : vector<4x32xf32> to vector<1x32xf32>
    %188 = vector.shape_cast %187 : vector<1x32xf32> to vector<1x32xf32>
    %189 = vector.broadcast %188 : vector<1x32xf32> to vector<16x32xf32>
    %cst_68 = arith.constant dense<0.000000e+00> : vector<16xf32>
    %190 = vector.multi_reduction <add>, %24, %cst_68 [1] : vector<16x4xf32> to vector<16xf32>
    %191 = vector.shape_cast %190 : vector<16xf32> to vector<16x1xf32>
    %192 = arith.mulf %24, %24 : vector<16x4xf32>
    %cst_69 = arith.constant dense<0.000000e+00> : vector<16xf32>
    %193 = vector.multi_reduction <add>, %192, %cst_69 [1] : vector<16x4xf32> to vector<16xf32>
    %194 = vector.shape_cast %193 : vector<16xf32> to vector<16x1xf32>
    %195 = arith.addf %175, %191 : vector<16x1xf32>
    %cst_70 = arith.constant 0.0147058824 : f32
    %196 = vector.broadcast %cst_70 : f32 to vector<16x1xf32>
    %197 = arith.mulf %195, %196 : vector<16x1xf32>
    %198 = arith.addf %177, %194 : vector<16x1xf32>
    %cst_71 = arith.constant 0.0147058824 : f32
    %199 = vector.broadcast %cst_71 : f32 to vector<16x1xf32>
    %200 = arith.mulf %198, %199 : vector<16x1xf32>
    %201 = arith.mulf %197, %197 : vector<16x1xf32>
    %202 = arith.subf %200, %201 : vector<16x1xf32>
    %cst_72 = arith.constant 9.99999974E-6 : f32
    %203 = vector.broadcast %cst_72 : f32 to vector<16x1xf32>
    %204 = arith.addf %202, %203 : vector<16x1xf32>
    %205 = math.rsqrt %204 : vector<16x1xf32>
    %206 = vector.extract_strided_slice %24 {offsets = [0, 0], sizes = [16, 1], strides = [1, 1]} : vector<16x4xf32> to vector<16x1xf32>
    %207 = vector.broadcast %206 : vector<16x1xf32> to vector<16x32xf32>
    %208 = arith.mulf %207, %180 : vector<16x32xf32>
    %209 = arith.addf %173, %208 : vector<16x32xf32>
    %210 = vector.extract_strided_slice %24 {offsets = [0, 1], sizes = [16, 1], strides = [1, 1]} : vector<16x4xf32> to vector<16x1xf32>
    %211 = vector.broadcast %210 : vector<16x1xf32> to vector<16x32xf32>
    %212 = arith.mulf %211, %183 : vector<16x32xf32>
    %213 = arith.addf %209, %212 : vector<16x32xf32>
    %214 = vector.extract_strided_slice %24 {offsets = [0, 2], sizes = [16, 1], strides = [1, 1]} : vector<16x4xf32> to vector<16x1xf32>
    %215 = vector.broadcast %214 : vector<16x1xf32> to vector<16x32xf32>
    %216 = arith.mulf %215, %186 : vector<16x32xf32>
    %217 = arith.addf %213, %216 : vector<16x32xf32>
    %218 = vector.extract_strided_slice %24 {offsets = [0, 3], sizes = [16, 1], strides = [1, 1]} : vector<16x4xf32> to vector<16x1xf32>
    %219 = vector.broadcast %218 : vector<16x1xf32> to vector<16x32xf32>
    %220 = arith.mulf %219, %189 : vector<16x32xf32>
    %221 = arith.addf %217, %220 : vector<16x32xf32>
    %222 = vector.broadcast %197 : vector<16x1xf32> to vector<16x32xf32>
    %223 = vector.broadcast %9 : vector<1x32xf32> to vector<16x32xf32>
    %224 = arith.mulf %222, %223 : vector<16x32xf32>
    %225 = arith.subf %221, %224 : vector<16x32xf32>
    %226 = vector.broadcast %205 : vector<16x1xf32> to vector<16x32xf32>
    %227 = arith.mulf %226, %225 : vector<16x32xf32>
    %228 = vector.broadcast %8 : vector<1x32xf32> to vector<16x32xf32>
    %229 = arith.addf %227, %228 : vector<16x32xf32>
    %cst_73 = arith.constant 0.000000e+00 : f32
    %230 = vector.broadcast %cst_73 : f32 to vector<16x32xf32>
    %231 = arith.maximumf %229, %230 : vector<16x32xf32>
    %cst_74 = arith.constant dense<0.000000e+00> : vector<16xf32>
    %232 = vector.multi_reduction <add>, %231, %cst_74 [1] : vector<16x32xf32> to vector<16xf32>
    %233 = vector.shape_cast %232 : vector<16xf32> to vector<16x1xf32>
    %234 = arith.mulf %231, %231 : vector<16x32xf32>
    %cst_75 = arith.constant dense<0.000000e+00> : vector<16xf32>
    %235 = vector.multi_reduction <add>, %234, %cst_75 [1] : vector<16x32xf32> to vector<16xf32>
    %236 = vector.shape_cast %235 : vector<16xf32> to vector<16x1xf32>
    %cst_76 = arith.constant 3.125000e-02 : f32
    %237 = vector.broadcast %cst_76 : f32 to vector<16x1xf32>
    %238 = arith.mulf %233, %237 : vector<16x1xf32>
    %cst_77 = arith.constant 3.125000e-02 : f32
    %239 = vector.broadcast %cst_77 : f32 to vector<16x1xf32>
    %240 = arith.mulf %236, %239 : vector<16x1xf32>
    %241 = arith.mulf %238, %238 : vector<16x1xf32>
    %242 = arith.subf %240, %241 : vector<16x1xf32>
    %243 = vector.broadcast %238 : vector<16x1xf32> to vector<16x32xf32>
    %244 = arith.subf %231, %243 : vector<16x32xf32>
    %cst_78 = arith.constant 9.99999974E-6 : f32
    %245 = vector.broadcast %cst_78 : f32 to vector<16x1xf32>
    %246 = arith.addf %242, %245 : vector<16x1xf32>
    %247 = math.rsqrt %246 : vector<16x1xf32>
    %248 = vector.broadcast %247 : vector<16x1xf32> to vector<16x32xf32>
    %249 = arith.mulf %244, %248 : vector<16x32xf32>
    %250 = vector.broadcast %10 : vector<1x32xf32> to vector<16x32xf32>
    %251 = arith.mulf %249, %250 : vector<16x32xf32>
    %252 = vector.broadcast %11 : vector<1x32xf32> to vector<16x32xf32>
    %253 = arith.addf %251, %252 : vector<16x32xf32>
    %cst_79 = arith.constant dense<0.000000e+00> : vector<16x32xf32>
    %254 = tpu.matmul %253, %21, %cst_79 {dimension_numbers = #tpu.dot_dimension_numbers<[1], [0], [0], [1], [0, 0, 1, 1], [], []>} : vector<16x32xf32>, vector<32x32xf32>, vector<16x32xf32> -> vector<16x32xf32>
    %255 = vector.broadcast %12 : vector<1x32xf32> to vector<16x32xf32>
    %256 = arith.addf %254, %255 : vector<16x32xf32>
    %cst_80 = arith.constant 0.000000e+00 : f32
    %257 = vector.broadcast %cst_80 : f32 to vector<16x32xf32>
    %258 = arith.maximumf %256, %257 : vector<16x32xf32>
    %cst_81 = arith.constant dense<0.000000e+00> : vector<16xf32>
    %259 = vector.multi_reduction <add>, %258, %cst_81 [1] : vector<16x32xf32> to vector<16xf32>
    %260 = vector.shape_cast %259 : vector<16xf32> to vector<16x1xf32>
    %261 = arith.mulf %258, %258 : vector<16x32xf32>
    %cst_82 = arith.constant dense<0.000000e+00> : vector<16xf32>
    %262 = vector.multi_reduction <add>, %261, %cst_82 [1] : vector<16x32xf32> to vector<16xf32>
    %263 = vector.shape_cast %262 : vector<16xf32> to vector<16x1xf32>
    %cst_83 = arith.constant 3.125000e-02 : f32
    %264 = vector.broadcast %cst_83 : f32 to vector<16x1xf32>
    %265 = arith.mulf %260, %264 : vector<16x1xf32>
    %cst_84 = arith.constant 3.125000e-02 : f32
    %266 = vector.broadcast %cst_84 : f32 to vector<16x1xf32>
    %267 = arith.mulf %263, %266 : vector<16x1xf32>
    %268 = arith.mulf %265, %265 : vector<16x1xf32>
    %269 = arith.subf %267, %268 : vector<16x1xf32>
    %270 = vector.broadcast %265 : vector<16x1xf32> to vector<16x32xf32>
    %271 = arith.subf %258, %270 : vector<16x32xf32>
    %cst_85 = arith.constant 9.99999974E-6 : f32
    %272 = vector.broadcast %cst_85 : f32 to vector<16x1xf32>
    %273 = arith.addf %269, %272 : vector<16x1xf32>
    %274 = math.rsqrt %273 : vector<16x1xf32>
    %275 = vector.broadcast %274 : vector<16x1xf32> to vector<16x32xf32>
    %276 = arith.mulf %271, %275 : vector<16x32xf32>
    %277 = vector.broadcast %13 : vector<1x32xf32> to vector<16x32xf32>
    %278 = arith.mulf %276, %277 : vector<16x32xf32>
    %279 = vector.broadcast %14 : vector<1x32xf32> to vector<16x32xf32>
    %280 = arith.addf %278, %279 : vector<16x32xf32>
    %cst_86 = arith.constant dense<0.000000e+00> : vector<16x4xf32>
    %281 = tpu.matmul %280, %22, %cst_86 {dimension_numbers = #tpu.dot_dimension_numbers<[1], [0], [0], [1], [0, 0, 1, 1], [], []>} : vector<16x32xf32>, vector<32x4xf32>, vector<16x4xf32> -> vector<16x4xf32>
    %282 = vector.broadcast %15 : vector<1x4xf32> to vector<16x4xf32>
    %283 = arith.addf %281, %282 : vector<16x4xf32>
    %cst_87 = arith.constant 0.0644623041 : f32
    %284 = vector.broadcast %cst_87 : f32 to vector<16x4xf32>
    %285 = arith.mulf %284, %283 : vector<16x4xf32>
    %286 = arith.subf %24, %285 : vector<16x4xf32>
    %cst_88 = arith.constant 1.01015258 : f32
    %287 = vector.broadcast %cst_88 : f32 to vector<16x4xf32>
    %288 = arith.mulf %286, %287 : vector<16x4xf32>
    %cst_89 = arith.constant 0.899999976 : f32
    %289 = vector.broadcast %cst_89 : f32 to vector<16x4xf32>
    %290 = arith.mulf %289, %288 : vector<16x4xf32>
    %c8_i32 = arith.constant 8 : i32
    %291 = tpu.dynamic_rotate %288 by %c8_i32 dim 0 : vector<16x4xf32>, i32 -> vector<16x4xf32>
    %cst_90 = arith.constant 1.000000e-01 : f32
    %292 = vector.broadcast %cst_90 : f32 to vector<16x4xf32>
    %293 = arith.mulf %292, %291 : vector<16x4xf32>
    %294 = arith.addf %290, %293 : vector<16x4xf32>
    %cst_91 = arith.constant dense<0.000000e+00> : vector<16xf32>
    %295 = vector.multi_reduction <add>, %294, %cst_91 [1] : vector<16x4xf32> to vector<16xf32>
    %296 = vector.shape_cast %295 : vector<16xf32> to vector<16x1xf32>
    %297 = arith.mulf %294, %294 : vector<16x4xf32>
    %cst_92 = arith.constant dense<0.000000e+00> : vector<16xf32>
    %298 = vector.multi_reduction <add>, %297, %cst_92 [1] : vector<16x4xf32> to vector<16xf32>
    %299 = vector.shape_cast %298 : vector<16xf32> to vector<16x1xf32>
    %300 = arith.addf %168, %296 : vector<16x1xf32>
    %cst_93 = arith.constant 0.0147058824 : f32
    %301 = vector.broadcast %cst_93 : f32 to vector<16x1xf32>
    %302 = arith.mulf %300, %301 : vector<16x1xf32>
    %303 = arith.addf %170, %299 : vector<16x1xf32>
    %cst_94 = arith.constant 0.0147058824 : f32
    %304 = vector.broadcast %cst_94 : f32 to vector<16x1xf32>
    %305 = arith.mulf %303, %304 : vector<16x1xf32>
    %306 = arith.mulf %302, %302 : vector<16x1xf32>
    %307 = arith.subf %305, %306 : vector<16x1xf32>
    %cst_95 = arith.constant 9.99999974E-6 : f32
    %308 = vector.broadcast %cst_95 : f32 to vector<16x1xf32>
    %309 = arith.addf %307, %308 : vector<16x1xf32>
    %310 = math.rsqrt %309 : vector<16x1xf32>
    %311 = vector.extract_strided_slice %294 {offsets = [0, 0], sizes = [16, 1], strides = [1, 1]} : vector<16x4xf32> to vector<16x1xf32>
    %312 = vector.broadcast %311 : vector<16x1xf32> to vector<16x32xf32>
    %313 = arith.mulf %312, %180 : vector<16x32xf32>
    %314 = arith.addf %166, %313 : vector<16x32xf32>
    %315 = vector.extract_strided_slice %294 {offsets = [0, 1], sizes = [16, 1], strides = [1, 1]} : vector<16x4xf32> to vector<16x1xf32>
    %316 = vector.broadcast %315 : vector<16x1xf32> to vector<16x32xf32>
    %317 = arith.mulf %316, %183 : vector<16x32xf32>
    %318 = arith.addf %314, %317 : vector<16x32xf32>
    %319 = vector.extract_strided_slice %294 {offsets = [0, 2], sizes = [16, 1], strides = [1, 1]} : vector<16x4xf32> to vector<16x1xf32>
    %320 = vector.broadcast %319 : vector<16x1xf32> to vector<16x32xf32>
    %321 = arith.mulf %320, %186 : vector<16x32xf32>
    %322 = arith.addf %318, %321 : vector<16x32xf32>
    %323 = vector.extract_strided_slice %294 {offsets = [0, 3], sizes = [16, 1], strides = [1, 1]} : vector<16x4xf32> to vector<16x1xf32>
    %324 = vector.broadcast %323 : vector<16x1xf32> to vector<16x32xf32>
    %325 = arith.mulf %324, %189 : vector<16x32xf32>
    %326 = arith.addf %322, %325 : vector<16x32xf32>
    %327 = vector.broadcast %302 : vector<16x1xf32> to vector<16x32xf32>
    %328 = vector.broadcast %9 : vector<1x32xf32> to vector<16x32xf32>
    %329 = arith.mulf %327, %328 : vector<16x32xf32>
    %330 = arith.subf %326, %329 : vector<16x32xf32>
    %331 = vector.broadcast %310 : vector<16x1xf32> to vector<16x32xf32>
    %332 = arith.mulf %331, %330 : vector<16x32xf32>
    %333 = vector.broadcast %8 : vector<1x32xf32> to vector<16x32xf32>
    %334 = arith.addf %332, %333 : vector<16x32xf32>
    %cst_96 = arith.constant 0.000000e+00 : f32
    %335 = vector.broadcast %cst_96 : f32 to vector<16x32xf32>
    %336 = arith.maximumf %334, %335 : vector<16x32xf32>
    %cst_97 = arith.constant dense<0.000000e+00> : vector<16xf32>
    %337 = vector.multi_reduction <add>, %336, %cst_97 [1] : vector<16x32xf32> to vector<16xf32>
    %338 = vector.shape_cast %337 : vector<16xf32> to vector<16x1xf32>
    %339 = arith.mulf %336, %336 : vector<16x32xf32>
    %cst_98 = arith.constant dense<0.000000e+00> : vector<16xf32>
    %340 = vector.multi_reduction <add>, %339, %cst_98 [1] : vector<16x32xf32> to vector<16xf32>
    %341 = vector.shape_cast %340 : vector<16xf32> to vector<16x1xf32>
    %cst_99 = arith.constant 3.125000e-02 : f32
    %342 = vector.broadcast %cst_99 : f32 to vector<16x1xf32>
    %343 = arith.mulf %338, %342 : vector<16x1xf32>
    %cst_100 = arith.constant 3.125000e-02 : f32
    %344 = vector.broadcast %cst_100 : f32 to vector<16x1xf32>
    %345 = arith.mulf %341, %344 : vector<16x1xf32>
    %346 = arith.mulf %343, %343 : vector<16x1xf32>
    %347 = arith.subf %345, %346 : vector<16x1xf32>
    %348 = vector.broadcast %343 : vector<16x1xf32> to vector<16x32xf32>
    %349 = arith.subf %336, %348 : vector<16x32xf32>
    %cst_101 = arith.constant 9.99999974E-6 : f32
    %350 = vector.broadcast %cst_101 : f32 to vector<16x1xf32>
    %351 = arith.addf %347, %350 : vector<16x1xf32>
    %352 = math.rsqrt %351 : vector<16x1xf32>
    %353 = vector.broadcast %352 : vector<16x1xf32> to vector<16x32xf32>
    %354 = arith.mulf %349, %353 : vector<16x32xf32>
    %355 = vector.broadcast %10 : vector<1x32xf32> to vector<16x32xf32>
    %356 = arith.mulf %354, %355 : vector<16x32xf32>
    %357 = vector.broadcast %11 : vector<1x32xf32> to vector<16x32xf32>
    %358 = arith.addf %356, %357 : vector<16x32xf32>
    %cst_102 = arith.constant dense<0.000000e+00> : vector<16x32xf32>
    %359 = tpu.matmul %358, %21, %cst_102 {dimension_numbers = #tpu.dot_dimension_numbers<[1], [0], [0], [1], [0, 0, 1, 1], [], []>} : vector<16x32xf32>, vector<32x32xf32>, vector<16x32xf32> -> vector<16x32xf32>
    %360 = vector.broadcast %12 : vector<1x32xf32> to vector<16x32xf32>
    %361 = arith.addf %359, %360 : vector<16x32xf32>
    %cst_103 = arith.constant 0.000000e+00 : f32
    %362 = vector.broadcast %cst_103 : f32 to vector<16x32xf32>
    %363 = arith.maximumf %361, %362 : vector<16x32xf32>
    %cst_104 = arith.constant dense<0.000000e+00> : vector<16xf32>
    %364 = vector.multi_reduction <add>, %363, %cst_104 [1] : vector<16x32xf32> to vector<16xf32>
    %365 = vector.shape_cast %364 : vector<16xf32> to vector<16x1xf32>
    %366 = arith.mulf %363, %363 : vector<16x32xf32>
    %cst_105 = arith.constant dense<0.000000e+00> : vector<16xf32>
    %367 = vector.multi_reduction <add>, %366, %cst_105 [1] : vector<16x32xf32> to vector<16xf32>
    %368 = vector.shape_cast %367 : vector<16xf32> to vector<16x1xf32>
    %cst_106 = arith.constant 3.125000e-02 : f32
    %369 = vector.broadcast %cst_106 : f32 to vector<16x1xf32>
    %370 = arith.mulf %365, %369 : vector<16x1xf32>
    %cst_107 = arith.constant 3.125000e-02 : f32
    %371 = vector.broadcast %cst_107 : f32 to vector<16x1xf32>
    %372 = arith.mulf %368, %371 : vector<16x1xf32>
    %373 = arith.mulf %370, %370 : vector<16x1xf32>
    %374 = arith.subf %372, %373 : vector<16x1xf32>
    %375 = vector.broadcast %370 : vector<16x1xf32> to vector<16x32xf32>
    %376 = arith.subf %363, %375 : vector<16x32xf32>
    %cst_108 = arith.constant 9.99999974E-6 : f32
    %377 = vector.broadcast %cst_108 : f32 to vector<16x1xf32>
    %378 = arith.addf %374, %377 : vector<16x1xf32>
    %379 = math.rsqrt %378 : vector<16x1xf32>
    %380 = vector.broadcast %379 : vector<16x1xf32> to vector<16x32xf32>
    %381 = arith.mulf %376, %380 : vector<16x32xf32>
    %382 = vector.broadcast %13 : vector<1x32xf32> to vector<16x32xf32>
    %383 = arith.mulf %381, %382 : vector<16x32xf32>
    %384 = vector.broadcast %14 : vector<1x32xf32> to vector<16x32xf32>
    %385 = arith.addf %383, %384 : vector<16x32xf32>
    %cst_109 = arith.constant dense<0.000000e+00> : vector<16x4xf32>
    %386 = tpu.matmul %385, %22, %cst_109 {dimension_numbers = #tpu.dot_dimension_numbers<[1], [0], [0], [1], [0, 0, 1, 1], [], []>} : vector<16x32xf32>, vector<32x4xf32>, vector<16x4xf32> -> vector<16x4xf32>
    %387 = vector.broadcast %15 : vector<1x4xf32> to vector<16x4xf32>
    %388 = arith.addf %386, %387 : vector<16x4xf32>
    %cst_110 = arith.constant 0.0637693331 : f32
    %389 = vector.broadcast %cst_110 : f32 to vector<16x4xf32>
    %390 = arith.mulf %389, %388 : vector<16x4xf32>
    %391 = arith.subf %294, %390 : vector<16x4xf32>
    %cst_111 = arith.constant 1.00901484 : f32
    %392 = vector.broadcast %cst_111 : f32 to vector<16x4xf32>
    %393 = arith.mulf %391, %392 : vector<16x4xf32>
    %cst_112 = arith.constant 0.899999976 : f32
    %394 = vector.broadcast %cst_112 : f32 to vector<16x4xf32>
    %395 = arith.mulf %394, %393 : vector<16x4xf32>
    %c8_i32_113 = arith.constant 8 : i32
    %396 = tpu.dynamic_rotate %393 by %c8_i32_113 dim 0 : vector<16x4xf32>, i32 -> vector<16x4xf32>
    %cst_114 = arith.constant 1.000000e-01 : f32
    %397 = vector.broadcast %cst_114 : f32 to vector<16x4xf32>
    %398 = arith.mulf %397, %396 : vector<16x4xf32>
    %399 = arith.addf %395, %398 : vector<16x4xf32>
    %cst_115 = arith.constant dense<0.000000e+00> : vector<16xf32>
    %400 = vector.multi_reduction <add>, %399, %cst_115 [1] : vector<16x4xf32> to vector<16xf32>
    %401 = vector.shape_cast %400 : vector<16xf32> to vector<16x1xf32>
    %402 = arith.mulf %399, %399 : vector<16x4xf32>
    %cst_116 = arith.constant dense<0.000000e+00> : vector<16xf32>
    %403 = vector.multi_reduction <add>, %402, %cst_116 [1] : vector<16x4xf32> to vector<16xf32>
    %404 = vector.shape_cast %403 : vector<16xf32> to vector<16x1xf32>
    %405 = arith.addf %161, %401 : vector<16x1xf32>
    %cst_117 = arith.constant 0.0147058824 : f32
    %406 = vector.broadcast %cst_117 : f32 to vector<16x1xf32>
    %407 = arith.mulf %405, %406 : vector<16x1xf32>
    %408 = arith.addf %163, %404 : vector<16x1xf32>
    %cst_118 = arith.constant 0.0147058824 : f32
    %409 = vector.broadcast %cst_118 : f32 to vector<16x1xf32>
    %410 = arith.mulf %408, %409 : vector<16x1xf32>
    %411 = arith.mulf %407, %407 : vector<16x1xf32>
    %412 = arith.subf %410, %411 : vector<16x1xf32>
    %cst_119 = arith.constant 9.99999974E-6 : f32
    %413 = vector.broadcast %cst_119 : f32 to vector<16x1xf32>
    %414 = arith.addf %412, %413 : vector<16x1xf32>
    %415 = math.rsqrt %414 : vector<16x1xf32>
    %416 = vector.extract_strided_slice %399 {offsets = [0, 0], sizes = [16, 1], strides = [1, 1]} : vector<16x4xf32> to vector<16x1xf32>
    %417 = vector.broadcast %416 : vector<16x1xf32> to vector<16x32xf32>
    %418 = arith.mulf %417, %180 : vector<16x32xf32>
    %419 = arith.addf %159, %418 : vector<16x32xf32>
    %420 = vector.extract_strided_slice %399 {offsets = [0, 1], sizes = [16, 1], strides = [1, 1]} : vector<16x4xf32> to vector<16x1xf32>
    %421 = vector.broadcast %420 : vector<16x1xf32> to vector<16x32xf32>
    %422 = arith.mulf %421, %183 : vector<16x32xf32>
    %423 = arith.addf %419, %422 : vector<16x32xf32>
    %424 = vector.extract_strided_slice %399 {offsets = [0, 2], sizes = [16, 1], strides = [1, 1]} : vector<16x4xf32> to vector<16x1xf32>
    %425 = vector.broadcast %424 : vector<16x1xf32> to vector<16x32xf32>
    %426 = arith.mulf %425, %186 : vector<16x32xf32>
    %427 = arith.addf %423, %426 : vector<16x32xf32>
    %428 = vector.extract_strided_slice %399 {offsets = [0, 3], sizes = [16, 1], strides = [1, 1]} : vector<16x4xf32> to vector<16x1xf32>
    %429 = vector.broadcast %428 : vector<16x1xf32> to vector<16x32xf32>
    %430 = arith.mulf %429, %189 : vector<16x32xf32>
    %431 = arith.addf %427, %430 : vector<16x32xf32>
    %432 = vector.broadcast %407 : vector<16x1xf32> to vector<16x32xf32>
    %433 = vector.broadcast %9 : vector<1x32xf32> to vector<16x32xf32>
    %434 = arith.mulf %432, %433 : vector<16x32xf32>
    %435 = arith.subf %431, %434 : vector<16x32xf32>
    %436 = vector.broadcast %415 : vector<16x1xf32> to vector<16x32xf32>
    %437 = arith.mulf %436, %435 : vector<16x32xf32>
    %438 = vector.broadcast %8 : vector<1x32xf32> to vector<16x32xf32>
    %439 = arith.addf %437, %438 : vector<16x32xf32>
    %cst_120 = arith.constant 0.000000e+00 : f32
    %440 = vector.broadcast %cst_120 : f32 to vector<16x32xf32>
    %441 = arith.maximumf %439, %440 : vector<16x32xf32>
    %cst_121 = arith.constant dense<0.000000e+00> : vector<16xf32>
    %442 = vector.multi_reduction <add>, %441, %cst_121 [1] : vector<16x32xf32> to vector<16xf32>
    %443 = vector.shape_cast %442 : vector<16xf32> to vector<16x1xf32>
    %444 = arith.mulf %441, %441 : vector<16x32xf32>
    %cst_122 = arith.constant dense<0.000000e+00> : vector<16xf32>
    %445 = vector.multi_reduction <add>, %444, %cst_122 [1] : vector<16x32xf32> to vector<16xf32>
    %446 = vector.shape_cast %445 : vector<16xf32> to vector<16x1xf32>
    %cst_123 = arith.constant 3.125000e-02 : f32
    %447 = vector.broadcast %cst_123 : f32 to vector<16x1xf32>
    %448 = arith.mulf %443, %447 : vector<16x1xf32>
    %cst_124 = arith.constant 3.125000e-02 : f32
    %449 = vector.broadcast %cst_124 : f32 to vector<16x1xf32>
    %450 = arith.mulf %446, %449 : vector<16x1xf32>
    %451 = arith.mulf %448, %448 : vector<16x1xf32>
    %452 = arith.subf %450, %451 : vector<16x1xf32>
    %453 = vector.broadcast %448 : vector<16x1xf32> to vector<16x32xf32>
    %454 = arith.subf %441, %453 : vector<16x32xf32>
    %cst_125 = arith.constant 9.99999974E-6 : f32
    %455 = vector.broadcast %cst_125 : f32 to vector<16x1xf32>
    %456 = arith.addf %452, %455 : vector<16x1xf32>
    %457 = math.rsqrt %456 : vector<16x1xf32>
    %458 = vector.broadcast %457 : vector<16x1xf32> to vector<16x32xf32>
    %459 = arith.mulf %454, %458 : vector<16x32xf32>
    %460 = vector.broadcast %10 : vector<1x32xf32> to vector<16x32xf32>
    %461 = arith.mulf %459, %460 : vector<16x32xf32>
    %462 = vector.broadcast %11 : vector<1x32xf32> to vector<16x32xf32>
    %463 = arith.addf %461, %462 : vector<16x32xf32>
    %cst_126 = arith.constant dense<0.000000e+00> : vector<16x32xf32>
    %464 = tpu.matmul %463, %21, %cst_126 {dimension_numbers = #tpu.dot_dimension_numbers<[1], [0], [0], [1], [0, 0, 1, 1], [], []>} : vector<16x32xf32>, vector<32x32xf32>, vector<16x32xf32> -> vector<16x32xf32>
    %465 = vector.broadcast %12 : vector<1x32xf32> to vector<16x32xf32>
    %466 = arith.addf %464, %465 : vector<16x32xf32>
    %cst_127 = arith.constant 0.000000e+00 : f32
    %467 = vector.broadcast %cst_127 : f32 to vector<16x32xf32>
    %468 = arith.maximumf %466, %467 : vector<16x32xf32>
    %cst_128 = arith.constant dense<0.000000e+00> : vector<16xf32>
    %469 = vector.multi_reduction <add>, %468, %cst_128 [1] : vector<16x32xf32> to vector<16xf32>
    %470 = vector.shape_cast %469 : vector<16xf32> to vector<16x1xf32>
    %471 = arith.mulf %468, %468 : vector<16x32xf32>
    %cst_129 = arith.constant dense<0.000000e+00> : vector<16xf32>
    %472 = vector.multi_reduction <add>, %471, %cst_129 [1] : vector<16x32xf32> to vector<16xf32>
    %473 = vector.shape_cast %472 : vector<16xf32> to vector<16x1xf32>
    %cst_130 = arith.constant 3.125000e-02 : f32
    %474 = vector.broadcast %cst_130 : f32 to vector<16x1xf32>
    %475 = arith.mulf %470, %474 : vector<16x1xf32>
    %cst_131 = arith.constant 3.125000e-02 : f32
    %476 = vector.broadcast %cst_131 : f32 to vector<16x1xf32>
    %477 = arith.mulf %473, %476 : vector<16x1xf32>
    %478 = arith.mulf %475, %475 : vector<16x1xf32>
    %479 = arith.subf %477, %478 : vector<16x1xf32>
    %480 = vector.broadcast %475 : vector<16x1xf32> to vector<16x32xf32>
    %481 = arith.subf %468, %480 : vector<16x32xf32>
    %cst_132 = arith.constant 9.99999974E-6 : f32
    %482 = vector.broadcast %cst_132 : f32 to vector<16x1xf32>
    %483 = arith.addf %479, %482 : vector<16x1xf32>
    %484 = math.rsqrt %483 : vector<16x1xf32>
    %485 = vector.broadcast %484 : vector<16x1xf32> to vector<16x32xf32>
    %486 = arith.mulf %481, %485 : vector<16x32xf32>
    %487 = vector.broadcast %13 : vector<1x32xf32> to vector<16x32xf32>
    %488 = arith.mulf %486, %487 : vector<16x32xf32>
    %489 = vector.broadcast %14 : vector<1x32xf32> to vector<16x32xf32>
    %490 = arith.addf %488, %489 : vector<16x32xf32>
    %cst_133 = arith.constant dense<0.000000e+00> : vector<16x4xf32>
    %491 = tpu.matmul %490, %22, %cst_133 {dimension_numbers = #tpu.dot_dimension_numbers<[1], [0], [0], [1], [0, 0, 1, 1], [], []>} : vector<16x32xf32>, vector<32x4xf32>, vector<16x4xf32> -> vector<16x4xf32>
    %492 = vector.broadcast %15 : vector<1x4xf32> to vector<16x4xf32>
    %493 = arith.addf %491, %492 : vector<16x4xf32>
    %cst_134 = arith.constant 0.0630131065 : f32
    %494 = vector.broadcast %cst_134 : f32 to vector<16x4xf32>
    %495 = arith.mulf %494, %493 : vector<16x4xf32>
    %496 = arith.subf %399, %495 : vector<16x4xf32>
    %cst_135 = arith.constant 1.00788105 : f32
    %497 = vector.broadcast %cst_135 : f32 to vector<16x4xf32>
    %498 = arith.mulf %496, %497 : vector<16x4xf32>
    %cst_136 = arith.constant 0.899999976 : f32
    %499 = vector.broadcast %cst_136 : f32 to vector<16x4xf32>
    %500 = arith.mulf %499, %498 : vector<16x4xf32>
    %c8_i32_137 = arith.constant 8 : i32
    %501 = tpu.dynamic_rotate %498 by %c8_i32_137 dim 0 : vector<16x4xf32>, i32 -> vector<16x4xf32>
    %cst_138 = arith.constant 1.000000e-01 : f32
    %502 = vector.broadcast %cst_138 : f32 to vector<16x4xf32>
    %503 = arith.mulf %502, %501 : vector<16x4xf32>
    %504 = arith.addf %500, %503 : vector<16x4xf32>
    %cst_139 = arith.constant dense<0.000000e+00> : vector<16xf32>
    %505 = vector.multi_reduction <add>, %504, %cst_139 [1] : vector<16x4xf32> to vector<16xf32>
    %506 = vector.shape_cast %505 : vector<16xf32> to vector<16x1xf32>
    %507 = arith.mulf %504, %504 : vector<16x4xf32>
    %cst_140 = arith.constant dense<0.000000e+00> : vector<16xf32>
    %508 = vector.multi_reduction <add>, %507, %cst_140 [1] : vector<16x4xf32> to vector<16xf32>
    %509 = vector.shape_cast %508 : vector<16xf32> to vector<16x1xf32>
    %510 = arith.addf %154, %506 : vector<16x1xf32>
    %cst_141 = arith.constant 0.0147058824 : f32
    %511 = vector.broadcast %cst_141 : f32 to vector<16x1xf32>
    %512 = arith.mulf %510, %511 : vector<16x1xf32>
    %513 = arith.addf %156, %509 : vector<16x1xf32>
    %cst_142 = arith.constant 0.0147058824 : f32
    %514 = vector.broadcast %cst_142 : f32 to vector<16x1xf32>
    %515 = arith.mulf %513, %514 : vector<16x1xf32>
    %516 = arith.mulf %512, %512 : vector<16x1xf32>
    %517 = arith.subf %515, %516 : vector<16x1xf32>
    %cst_143 = arith.constant 9.99999974E-6 : f32
    %518 = vector.broadcast %cst_143 : f32 to vector<16x1xf32>
    %519 = arith.addf %517, %518 : vector<16x1xf32>
    %520 = math.rsqrt %519 : vector<16x1xf32>
    %521 = vector.extract_strided_slice %504 {offsets = [0, 0], sizes = [16, 1], strides = [1, 1]} : vector<16x4xf32> to vector<16x1xf32>
    %522 = vector.broadcast %521 : vector<16x1xf32> to vector<16x32xf32>
    %523 = arith.mulf %522, %180 : vector<16x32xf32>
    %524 = arith.addf %152, %523 : vector<16x32xf32>
    %525 = vector.extract_strided_slice %504 {offsets = [0, 1], sizes = [16, 1], strides = [1, 1]} : vector<16x4xf32> to vector<16x1xf32>
    %526 = vector.broadcast %525 : vector<16x1xf32> to vector<16x32xf32>
    %527 = arith.mulf %526, %183 : vector<16x32xf32>
    %528 = arith.addf %524, %527 : vector<16x32xf32>
    %529 = vector.extract_strided_slice %504 {offsets = [0, 2], sizes = [16, 1], strides = [1, 1]} : vector<16x4xf32> to vector<16x1xf32>
    %530 = vector.broadcast %529 : vector<16x1xf32> to vector<16x32xf32>
    %531 = arith.mulf %530, %186 : vector<16x32xf32>
    %532 = arith.addf %528, %531 : vector<16x32xf32>
    %533 = vector.extract_strided_slice %504 {offsets = [0, 3], sizes = [16, 1], strides = [1, 1]} : vector<16x4xf32> to vector<16x1xf32>
    %534 = vector.broadcast %533 : vector<16x1xf32> to vector<16x32xf32>
    %535 = arith.mulf %534, %189 : vector<16x32xf32>
    %536 = arith.addf %532, %535 : vector<16x32xf32>
    %537 = vector.broadcast %512 : vector<16x1xf32> to vector<16x32xf32>
    %538 = vector.broadcast %9 : vector<1x32xf32> to vector<16x32xf32>
    %539 = arith.mulf %537, %538 : vector<16x32xf32>
    %540 = arith.subf %536, %539 : vector<16x32xf32>
    %541 = vector.broadcast %520 : vector<16x1xf32> to vector<16x32xf32>
    %542 = arith.mulf %541, %540 : vector<16x32xf32>
    %543 = vector.broadcast %8 : vector<1x32xf32> to vector<16x32xf32>
    %544 = arith.addf %542, %543 : vector<16x32xf32>
    %cst_144 = arith.constant 0.000000e+00 : f32
    %545 = vector.broadcast %cst_144 : f32 to vector<16x32xf32>
    %546 = arith.maximumf %544, %545 : vector<16x32xf32>
    %cst_145 = arith.constant dense<0.000000e+00> : vector<16xf32>
    %547 = vector.multi_reduction <add>, %546, %cst_145 [1] : vector<16x32xf32> to vector<16xf32>
    %548 = vector.shape_cast %547 : vector<16xf32> to vector<16x1xf32>
    %549 = arith.mulf %546, %546 : vector<16x32xf32>
    %cst_146 = arith.constant dense<0.000000e+00> : vector<16xf32>
    %550 = vector.multi_reduction <add>, %549, %cst_146 [1] : vector<16x32xf32> to vector<16xf32>
    %551 = vector.shape_cast %550 : vector<16xf32> to vector<16x1xf32>
    %cst_147 = arith.constant 3.125000e-02 : f32
    %552 = vector.broadcast %cst_147 : f32 to vector<16x1xf32>
    %553 = arith.mulf %548, %552 : vector<16x1xf32>
    %cst_148 = arith.constant 3.125000e-02 : f32
    %554 = vector.broadcast %cst_148 : f32 to vector<16x1xf32>
    %555 = arith.mulf %551, %554 : vector<16x1xf32>
    %556 = arith.mulf %553, %553 : vector<16x1xf32>
    %557 = arith.subf %555, %556 : vector<16x1xf32>
    %558 = vector.broadcast %553 : vector<16x1xf32> to vector<16x32xf32>
    %559 = arith.subf %546, %558 : vector<16x32xf32>
    %cst_149 = arith.constant 9.99999974E-6 : f32
    %560 = vector.broadcast %cst_149 : f32 to vector<16x1xf32>
    %561 = arith.addf %557, %560 : vector<16x1xf32>
    %562 = math.rsqrt %561 : vector<16x1xf32>
    %563 = vector.broadcast %562 : vector<16x1xf32> to vector<16x32xf32>
    %564 = arith.mulf %559, %563 : vector<16x32xf32>
    %565 = vector.broadcast %10 : vector<1x32xf32> to vector<16x32xf32>
    %566 = arith.mulf %564, %565 : vector<16x32xf32>
    %567 = vector.broadcast %11 : vector<1x32xf32> to vector<16x32xf32>
    %568 = arith.addf %566, %567 : vector<16x32xf32>
    %cst_150 = arith.constant dense<0.000000e+00> : vector<16x32xf32>
    %569 = tpu.matmul %568, %21, %cst_150 {dimension_numbers = #tpu.dot_dimension_numbers<[1], [0], [0], [1], [0, 0, 1, 1], [], []>} : vector<16x32xf32>, vector<32x32xf32>, vector<16x32xf32> -> vector<16x32xf32>
    %570 = vector.broadcast %12 : vector<1x32xf32> to vector<16x32xf32>
    %571 = arith.addf %569, %570 : vector<16x32xf32>
    %cst_151 = arith.constant 0.000000e+00 : f32
    %572 = vector.broadcast %cst_151 : f32 to vector<16x32xf32>
    %573 = arith.maximumf %571, %572 : vector<16x32xf32>
    %cst_152 = arith.constant dense<0.000000e+00> : vector<16xf32>
    %574 = vector.multi_reduction <add>, %573, %cst_152 [1] : vector<16x32xf32> to vector<16xf32>
    %575 = vector.shape_cast %574 : vector<16xf32> to vector<16x1xf32>
    %576 = arith.mulf %573, %573 : vector<16x32xf32>
    %cst_153 = arith.constant dense<0.000000e+00> : vector<16xf32>
    %577 = vector.multi_reduction <add>, %576, %cst_153 [1] : vector<16x32xf32> to vector<16xf32>
    %578 = vector.shape_cast %577 : vector<16xf32> to vector<16x1xf32>
    %cst_154 = arith.constant 3.125000e-02 : f32
    %579 = vector.broadcast %cst_154 : f32 to vector<16x1xf32>
    %580 = arith.mulf %575, %579 : vector<16x1xf32>
    %cst_155 = arith.constant 3.125000e-02 : f32
    %581 = vector.broadcast %cst_155 : f32 to vector<16x1xf32>
    %582 = arith.mulf %578, %581 : vector<16x1xf32>
    %583 = arith.mulf %580, %580 : vector<16x1xf32>
    %584 = arith.subf %582, %583 : vector<16x1xf32>
    %585 = vector.broadcast %580 : vector<16x1xf32> to vector<16x32xf32>
    %586 = arith.subf %573, %585 : vector<16x32xf32>
    %cst_156 = arith.constant 9.99999974E-6 : f32
    %587 = vector.broadcast %cst_156 : f32 to vector<16x1xf32>
    %588 = arith.addf %584, %587 : vector<16x1xf32>
    %589 = math.rsqrt %588 : vector<16x1xf32>
    %590 = vector.broadcast %589 : vector<16x1xf32> to vector<16x32xf32>
    %591 = arith.mulf %586, %590 : vector<16x32xf32>
    %592 = vector.broadcast %13 : vector<1x32xf32> to vector<16x32xf32>
    %593 = arith.mulf %591, %592 : vector<16x32xf32>
    %594 = vector.broadcast %14 : vector<1x32xf32> to vector<16x32xf32>
    %595 = arith.addf %593, %594 : vector<16x32xf32>
    %cst_157 = arith.constant dense<0.000000e+00> : vector<16x4xf32>
    %596 = tpu.matmul %595, %22, %cst_157 {dimension_numbers = #tpu.dot_dimension_numbers<[1], [0], [0], [1], [0, 0, 1, 1], [], []>} : vector<16x32xf32>, vector<32x4xf32>, vector<16x4xf32> -> vector<16x4xf32>
    %597 = vector.broadcast %15 : vector<1x4xf32> to vector<16x4xf32>
    %598 = arith.addf %596, %597 : vector<16x4xf32>
    %cst_158 = arith.constant 0.06214834 : f32
    %599 = vector.broadcast %cst_158 : f32 to vector<16x4xf32>
    %600 = arith.mulf %599, %598 : vector<16x4xf32>
    %601 = arith.subf %504, %600 : vector<16x4xf32>
    %cst_159 = arith.constant 1.00675106 : f32
    %602 = vector.broadcast %cst_159 : f32 to vector<16x4xf32>
    %603 = arith.mulf %601, %602 : vector<16x4xf32>
    %cst_160 = arith.constant 0.899999976 : f32
    %604 = vector.broadcast %cst_160 : f32 to vector<16x4xf32>
    %605 = arith.mulf %604, %603 : vector<16x4xf32>
    %c8_i32_161 = arith.constant 8 : i32
    %606 = tpu.dynamic_rotate %603 by %c8_i32_161 dim 0 : vector<16x4xf32>, i32 -> vector<16x4xf32>
    %cst_162 = arith.constant 1.000000e-01 : f32
    %607 = vector.broadcast %cst_162 : f32 to vector<16x4xf32>
    %608 = arith.mulf %607, %606 : vector<16x4xf32>
    %609 = arith.addf %605, %608 : vector<16x4xf32>
    %cst_163 = arith.constant dense<0.000000e+00> : vector<16xf32>
    %610 = vector.multi_reduction <add>, %609, %cst_163 [1] : vector<16x4xf32> to vector<16xf32>
    %611 = vector.shape_cast %610 : vector<16xf32> to vector<16x1xf32>
    %612 = arith.mulf %609, %609 : vector<16x4xf32>
    %cst_164 = arith.constant dense<0.000000e+00> : vector<16xf32>
    %613 = vector.multi_reduction <add>, %612, %cst_164 [1] : vector<16x4xf32> to vector<16xf32>
    %614 = vector.shape_cast %613 : vector<16xf32> to vector<16x1xf32>
    %615 = arith.addf %147, %611 : vector<16x1xf32>
    %cst_165 = arith.constant 0.0147058824 : f32
    %616 = vector.broadcast %cst_165 : f32 to vector<16x1xf32>
    %617 = arith.mulf %615, %616 : vector<16x1xf32>
    %618 = arith.addf %149, %614 : vector<16x1xf32>
    %cst_166 = arith.constant 0.0147058824 : f32
    %619 = vector.broadcast %cst_166 : f32 to vector<16x1xf32>
    %620 = arith.mulf %618, %619 : vector<16x1xf32>
    %621 = arith.mulf %617, %617 : vector<16x1xf32>
    %622 = arith.subf %620, %621 : vector<16x1xf32>
    %cst_167 = arith.constant 9.99999974E-6 : f32
    %623 = vector.broadcast %cst_167 : f32 to vector<16x1xf32>
    %624 = arith.addf %622, %623 : vector<16x1xf32>
    %625 = math.rsqrt %624 : vector<16x1xf32>
    %626 = vector.extract_strided_slice %609 {offsets = [0, 0], sizes = [16, 1], strides = [1, 1]} : vector<16x4xf32> to vector<16x1xf32>
    %627 = vector.broadcast %626 : vector<16x1xf32> to vector<16x32xf32>
    %628 = arith.mulf %627, %180 : vector<16x32xf32>
    %629 = arith.addf %145, %628 : vector<16x32xf32>
    %630 = vector.extract_strided_slice %609 {offsets = [0, 1], sizes = [16, 1], strides = [1, 1]} : vector<16x4xf32> to vector<16x1xf32>
    %631 = vector.broadcast %630 : vector<16x1xf32> to vector<16x32xf32>
    %632 = arith.mulf %631, %183 : vector<16x32xf32>
    %633 = arith.addf %629, %632 : vector<16x32xf32>
    %634 = vector.extract_strided_slice %609 {offsets = [0, 2], sizes = [16, 1], strides = [1, 1]} : vector<16x4xf32> to vector<16x1xf32>
    %635 = vector.broadcast %634 : vector<16x1xf32> to vector<16x32xf32>
    %636 = arith.mulf %635, %186 : vector<16x32xf32>
    %637 = arith.addf %633, %636 : vector<16x32xf32>
    %638 = vector.extract_strided_slice %609 {offsets = [0, 3], sizes = [16, 1], strides = [1, 1]} : vector<16x4xf32> to vector<16x1xf32>
    %639 = vector.broadcast %638 : vector<16x1xf32> to vector<16x32xf32>
    %640 = arith.mulf %639, %189 : vector<16x32xf32>
    %641 = arith.addf %637, %640 : vector<16x32xf32>
    %642 = vector.broadcast %617 : vector<16x1xf32> to vector<16x32xf32>
    %643 = vector.broadcast %9 : vector<1x32xf32> to vector<16x32xf32>
    %644 = arith.mulf %642, %643 : vector<16x32xf32>
    %645 = arith.subf %641, %644 : vector<16x32xf32>
    %646 = vector.broadcast %625 : vector<16x1xf32> to vector<16x32xf32>
    %647 = arith.mulf %646, %645 : vector<16x32xf32>
    %648 = vector.broadcast %8 : vector<1x32xf32> to vector<16x32xf32>
    %649 = arith.addf %647, %648 : vector<16x32xf32>
    %cst_168 = arith.constant 0.000000e+00 : f32
    %650 = vector.broadcast %cst_168 : f32 to vector<16x32xf32>
    %651 = arith.maximumf %649, %650 : vector<16x32xf32>
    %cst_169 = arith.constant dense<0.000000e+00> : vector<16xf32>
    %652 = vector.multi_reduction <add>, %651, %cst_169 [1] : vector<16x32xf32> to vector<16xf32>
    %653 = vector.shape_cast %652 : vector<16xf32> to vector<16x1xf32>
    %654 = arith.mulf %651, %651 : vector<16x32xf32>
    %cst_170 = arith.constant dense<0.000000e+00> : vector<16xf32>
    %655 = vector.multi_reduction <add>, %654, %cst_170 [1] : vector<16x32xf32> to vector<16xf32>
    %656 = vector.shape_cast %655 : vector<16xf32> to vector<16x1xf32>
    %cst_171 = arith.constant 3.125000e-02 : f32
    %657 = vector.broadcast %cst_171 : f32 to vector<16x1xf32>
    %658 = arith.mulf %653, %657 : vector<16x1xf32>
    %cst_172 = arith.constant 3.125000e-02 : f32
    %659 = vector.broadcast %cst_172 : f32 to vector<16x1xf32>
    %660 = arith.mulf %656, %659 : vector<16x1xf32>
    %661 = arith.mulf %658, %658 : vector<16x1xf32>
    %662 = arith.subf %660, %661 : vector<16x1xf32>
    %663 = vector.broadcast %658 : vector<16x1xf32> to vector<16x32xf32>
    %664 = arith.subf %651, %663 : vector<16x32xf32>
    %cst_173 = arith.constant 9.99999974E-6 : f32
    %665 = vector.broadcast %cst_173 : f32 to vector<16x1xf32>
    %666 = arith.addf %662, %665 : vector<16x1xf32>
    %667 = math.rsqrt %666 : vector<16x1xf32>
    %668 = vector.broadcast %667 : vector<16x1xf32> to vector<16x32xf32>
    %669 = arith.mulf %664, %668 : vector<16x32xf32>
    %670 = vector.broadcast %10 : vector<1x32xf32> to vector<16x32xf32>
    %671 = arith.mulf %669, %670 : vector<16x32xf32>
    %672 = vector.broadcast %11 : vector<1x32xf32> to vector<16x32xf32>
    %673 = arith.addf %671, %672 : vector<16x32xf32>
    %cst_174 = arith.constant dense<0.000000e+00> : vector<16x32xf32>
    %674 = tpu.matmul %673, %21, %cst_174 {dimension_numbers = #tpu.dot_dimension_numbers<[1], [0], [0], [1], [0, 0, 1, 1], [], []>} : vector<16x32xf32>, vector<32x32xf32>, vector<16x32xf32> -> vector<16x32xf32>
    %675 = vector.broadcast %12 : vector<1x32xf32> to vector<16x32xf32>
    %676 = arith.addf %674, %675 : vector<16x32xf32>
    %cst_175 = arith.constant 0.000000e+00 : f32
    %677 = vector.broadcast %cst_175 : f32 to vector<16x32xf32>
    %678 = arith.maximumf %676, %677 : vector<16x32xf32>
    %cst_176 = arith.constant dense<0.000000e+00> : vector<16xf32>
    %679 = vector.multi_reduction <add>, %678, %cst_176 [1] : vector<16x32xf32> to vector<16xf32>
    %680 = vector.shape_cast %679 : vector<16xf32> to vector<16x1xf32>
    %681 = arith.mulf %678, %678 : vector<16x32xf32>
    %cst_177 = arith.constant dense<0.000000e+00> : vector<16xf32>
    %682 = vector.multi_reduction <add>, %681, %cst_177 [1] : vector<16x32xf32> to vector<16xf32>
    %683 = vector.shape_cast %682 : vector<16xf32> to vector<16x1xf32>
    %cst_178 = arith.constant 3.125000e-02 : f32
    %684 = vector.broadcast %cst_178 : f32 to vector<16x1xf32>
    %685 = arith.mulf %680, %684 : vector<16x1xf32>
    %cst_179 = arith.constant 3.125000e-02 : f32
    %686 = vector.broadcast %cst_179 : f32 to vector<16x1xf32>
    %687 = arith.mulf %683, %686 : vector<16x1xf32>
    %688 = arith.mulf %685, %685 : vector<16x1xf32>
    %689 = arith.subf %687, %688 : vector<16x1xf32>
    %690 = vector.broadcast %685 : vector<16x1xf32> to vector<16x32xf32>
    %691 = arith.subf %678, %690 : vector<16x32xf32>
    %cst_180 = arith.constant 9.99999974E-6 : f32
    %692 = vector.broadcast %cst_180 : f32 to vector<16x1xf32>
    %693 = arith.addf %689, %692 : vector<16x1xf32>
    %694 = math.rsqrt %693 : vector<16x1xf32>
    %695 = vector.broadcast %694 : vector<16x1xf32> to vector<16x32xf32>
    %696 = arith.mulf %691, %695 : vector<16x32xf32>
    %697 = vector.broadcast %13 : vector<1x32xf32> to vector<16x32xf32>
    %698 = arith.mulf %696, %697 : vector<16x32xf32>
    %699 = vector.broadcast %14 : vector<1x32xf32> to vector<16x32xf32>
    %700 = arith.addf %698, %699 : vector<16x32xf32>
    %cst_181 = arith.constant dense<0.000000e+00> : vector<16x4xf32>
    %701 = tpu.matmul %700, %22, %cst_181 {dimension_numbers = #tpu.dot_dimension_numbers<[1], [0], [0], [1], [0, 0, 1, 1], [], []>} : vector<16x32xf32>, vector<32x4xf32>, vector<16x4xf32> -> vector<16x4xf32>
    %702 = vector.broadcast %15 : vector<1x4xf32> to vector<16x4xf32>
    %703 = arith.addf %701, %702 : vector<16x4xf32>
    %cst_182 = arith.constant 0.061098136 : f32
    %704 = vector.broadcast %cst_182 : f32 to vector<16x4xf32>
    %705 = arith.mulf %704, %703 : vector<16x4xf32>
    %706 = arith.subf %609, %705 : vector<16x4xf32>
    %cst_183 = arith.constant 1.00562489 : f32
    %707 = vector.broadcast %cst_183 : f32 to vector<16x4xf32>
    %708 = arith.mulf %706, %707 : vector<16x4xf32>
    %cst_184 = arith.constant 0.899999976 : f32
    %709 = vector.broadcast %cst_184 : f32 to vector<16x4xf32>
    %710 = arith.mulf %709, %708 : vector<16x4xf32>
    %c8_i32_185 = arith.constant 8 : i32
    %711 = tpu.dynamic_rotate %708 by %c8_i32_185 dim 0 : vector<16x4xf32>, i32 -> vector<16x4xf32>
    %cst_186 = arith.constant 1.000000e-01 : f32
    %712 = vector.broadcast %cst_186 : f32 to vector<16x4xf32>
    %713 = arith.mulf %712, %711 : vector<16x4xf32>
    %714 = arith.addf %710, %713 : vector<16x4xf32>
    %cst_187 = arith.constant dense<0.000000e+00> : vector<16xf32>
    %715 = vector.multi_reduction <add>, %714, %cst_187 [1] : vector<16x4xf32> to vector<16xf32>
    %716 = vector.shape_cast %715 : vector<16xf32> to vector<16x1xf32>
    %717 = arith.mulf %714, %714 : vector<16x4xf32>
    %cst_188 = arith.constant dense<0.000000e+00> : vector<16xf32>
    %718 = vector.multi_reduction <add>, %717, %cst_188 [1] : vector<16x4xf32> to vector<16xf32>
    %719 = vector.shape_cast %718 : vector<16xf32> to vector<16x1xf32>
    %720 = arith.addf %140, %716 : vector<16x1xf32>
    %cst_189 = arith.constant 0.0147058824 : f32
    %721 = vector.broadcast %cst_189 : f32 to vector<16x1xf32>
    %722 = arith.mulf %720, %721 : vector<16x1xf32>
    %723 = arith.addf %142, %719 : vector<16x1xf32>
    %cst_190 = arith.constant 0.0147058824 : f32
    %724 = vector.broadcast %cst_190 : f32 to vector<16x1xf32>
    %725 = arith.mulf %723, %724 : vector<16x1xf32>
    %726 = arith.mulf %722, %722 : vector<16x1xf32>
    %727 = arith.subf %725, %726 : vector<16x1xf32>
    %cst_191 = arith.constant 9.99999974E-6 : f32
    %728 = vector.broadcast %cst_191 : f32 to vector<16x1xf32>
    %729 = arith.addf %727, %728 : vector<16x1xf32>
    %730 = math.rsqrt %729 : vector<16x1xf32>
    %731 = vector.extract_strided_slice %714 {offsets = [0, 0], sizes = [16, 1], strides = [1, 1]} : vector<16x4xf32> to vector<16x1xf32>
    %732 = vector.broadcast %731 : vector<16x1xf32> to vector<16x32xf32>
    %733 = arith.mulf %732, %180 : vector<16x32xf32>
    %734 = arith.addf %138, %733 : vector<16x32xf32>
    %735 = vector.extract_strided_slice %714 {offsets = [0, 1], sizes = [16, 1], strides = [1, 1]} : vector<16x4xf32> to vector<16x1xf32>
    %736 = vector.broadcast %735 : vector<16x1xf32> to vector<16x32xf32>
    %737 = arith.mulf %736, %183 : vector<16x32xf32>
    %738 = arith.addf %734, %737 : vector<16x32xf32>
    %739 = vector.extract_strided_slice %714 {offsets = [0, 2], sizes = [16, 1], strides = [1, 1]} : vector<16x4xf32> to vector<16x1xf32>
    %740 = vector.broadcast %739 : vector<16x1xf32> to vector<16x32xf32>
    %741 = arith.mulf %740, %186 : vector<16x32xf32>
    %742 = arith.addf %738, %741 : vector<16x32xf32>
    %743 = vector.extract_strided_slice %714 {offsets = [0, 3], sizes = [16, 1], strides = [1, 1]} : vector<16x4xf32> to vector<16x1xf32>
    %744 = vector.broadcast %743 : vector<16x1xf32> to vector<16x32xf32>
    %745 = arith.mulf %744, %189 : vector<16x32xf32>
    %746 = arith.addf %742, %745 : vector<16x32xf32>
    %747 = vector.broadcast %722 : vector<16x1xf32> to vector<16x32xf32>
    %748 = vector.broadcast %9 : vector<1x32xf32> to vector<16x32xf32>
    %749 = arith.mulf %747, %748 : vector<16x32xf32>
    %750 = arith.subf %746, %749 : vector<16x32xf32>
    %751 = vector.broadcast %730 : vector<16x1xf32> to vector<16x32xf32>
    %752 = arith.mulf %751, %750 : vector<16x32xf32>
    %753 = vector.broadcast %8 : vector<1x32xf32> to vector<16x32xf32>
    %754 = arith.addf %752, %753 : vector<16x32xf32>
    %cst_192 = arith.constant 0.000000e+00 : f32
    %755 = vector.broadcast %cst_192 : f32 to vector<16x32xf32>
    %756 = arith.maximumf %754, %755 : vector<16x32xf32>
    %cst_193 = arith.constant dense<0.000000e+00> : vector<16xf32>
    %757 = vector.multi_reduction <add>, %756, %cst_193 [1] : vector<16x32xf32> to vector<16xf32>
    %758 = vector.shape_cast %757 : vector<16xf32> to vector<16x1xf32>
    %759 = arith.mulf %756, %756 : vector<16x32xf32>
    %cst_194 = arith.constant dense<0.000000e+00> : vector<16xf32>
    %760 = vector.multi_reduction <add>, %759, %cst_194 [1] : vector<16x32xf32> to vector<16xf32>
    %761 = vector.shape_cast %760 : vector<16xf32> to vector<16x1xf32>
    %cst_195 = arith.constant 3.125000e-02 : f32
    %762 = vector.broadcast %cst_195 : f32 to vector<16x1xf32>
    %763 = arith.mulf %758, %762 : vector<16x1xf32>
    %cst_196 = arith.constant 3.125000e-02 : f32
    %764 = vector.broadcast %cst_196 : f32 to vector<16x1xf32>
    %765 = arith.mulf %761, %764 : vector<16x1xf32>
    %766 = arith.mulf %763, %763 : vector<16x1xf32>
    %767 = arith.subf %765, %766 : vector<16x1xf32>
    %768 = vector.broadcast %763 : vector<16x1xf32> to vector<16x32xf32>
    %769 = arith.subf %756, %768 : vector<16x32xf32>
    %cst_197 = arith.constant 9.99999974E-6 : f32
    %770 = vector.broadcast %cst_197 : f32 to vector<16x1xf32>
    %771 = arith.addf %767, %770 : vector<16x1xf32>
    %772 = math.rsqrt %771 : vector<16x1xf32>
    %773 = vector.broadcast %772 : vector<16x1xf32> to vector<16x32xf32>
    %774 = arith.mulf %769, %773 : vector<16x32xf32>
    %775 = vector.broadcast %10 : vector<1x32xf32> to vector<16x32xf32>
    %776 = arith.mulf %774, %775 : vector<16x32xf32>
    %777 = vector.broadcast %11 : vector<1x32xf32> to vector<16x32xf32>
    %778 = arith.addf %776, %777 : vector<16x32xf32>
    %cst_198 = arith.constant dense<0.000000e+00> : vector<16x32xf32>
    %779 = tpu.matmul %778, %21, %cst_198 {dimension_numbers = #tpu.dot_dimension_numbers<[1], [0], [0], [1], [0, 0, 1, 1], [], []>} : vector<16x32xf32>, vector<32x32xf32>, vector<16x32xf32> -> vector<16x32xf32>
    %780 = vector.broadcast %12 : vector<1x32xf32> to vector<16x32xf32>
    %781 = arith.addf %779, %780 : vector<16x32xf32>
    %cst_199 = arith.constant 0.000000e+00 : f32
    %782 = vector.broadcast %cst_199 : f32 to vector<16x32xf32>
    %783 = arith.maximumf %781, %782 : vector<16x32xf32>
    %cst_200 = arith.constant dense<0.000000e+00> : vector<16xf32>
    %784 = vector.multi_reduction <add>, %783, %cst_200 [1] : vector<16x32xf32> to vector<16xf32>
    %785 = vector.shape_cast %784 : vector<16xf32> to vector<16x1xf32>
    %786 = arith.mulf %783, %783 : vector<16x32xf32>
    %cst_201 = arith.constant dense<0.000000e+00> : vector<16xf32>
    %787 = vector.multi_reduction <add>, %786, %cst_201 [1] : vector<16x32xf32> to vector<16xf32>
    %788 = vector.shape_cast %787 : vector<16xf32> to vector<16x1xf32>
    %cst_202 = arith.constant 3.125000e-02 : f32
    %789 = vector.broadcast %cst_202 : f32 to vector<16x1xf32>
    %790 = arith.mulf %785, %789 : vector<16x1xf32>
    %cst_203 = arith.constant 3.125000e-02 : f32
    %791 = vector.broadcast %cst_203 : f32 to vector<16x1xf32>
    %792 = arith.mulf %788, %791 : vector<16x1xf32>
    %793 = arith.mulf %790, %790 : vector<16x1xf32>
    %794 = arith.subf %792, %793 : vector<16x1xf32>
    %795 = vector.broadcast %790 : vector<16x1xf32> to vector<16x32xf32>
    %796 = arith.subf %783, %795 : vector<16x32xf32>
    %cst_204 = arith.constant 9.99999974E-6 : f32
    %797 = vector.broadcast %cst_204 : f32 to vector<16x1xf32>
    %798 = arith.addf %794, %797 : vector<16x1xf32>
    %799 = math.rsqrt %798 : vector<16x1xf32>
    %800 = vector.broadcast %799 : vector<16x1xf32> to vector<16x32xf32>
    %801 = arith.mulf %796, %800 : vector<16x32xf32>
    %802 = vector.broadcast %13 : vector<1x32xf32> to vector<16x32xf32>
    %803 = arith.mulf %801, %802 : vector<16x32xf32>
    %804 = vector.broadcast %14 : vector<1x32xf32> to vector<16x32xf32>
    %805 = arith.addf %803, %804 : vector<16x32xf32>
    %cst_205 = arith.constant dense<0.000000e+00> : vector<16x4xf32>
    %806 = tpu.matmul %805, %22, %cst_205 {dimension_numbers = #tpu.dot_dimension_numbers<[1], [0], [0], [1], [0, 0, 1, 1], [], []>} : vector<16x32xf32>, vector<32x4xf32>, vector<16x4xf32> -> vector<16x4xf32>
    %807 = vector.broadcast %15 : vector<1x4xf32> to vector<16x4xf32>
    %808 = arith.addf %806, %807 : vector<16x4xf32>
    %cst_206 = arith.constant 0.0597203784 : f32
    %809 = vector.broadcast %cst_206 : f32 to vector<16x4xf32>
    %810 = arith.mulf %809, %808 : vector<16x4xf32>
    %811 = arith.subf %714, %810 : vector<16x4xf32>
    %cst_207 = arith.constant 1.00450242 : f32
    %812 = vector.broadcast %cst_207 : f32 to vector<16x4xf32>
    %813 = arith.mulf %811, %812 : vector<16x4xf32>
    %cst_208 = arith.constant 0.899999976 : f32
    %814 = vector.broadcast %cst_208 : f32 to vector<16x4xf32>
    %815 = arith.mulf %814, %813 : vector<16x4xf32>
    %c8_i32_209 = arith.constant 8 : i32
    %816 = tpu.dynamic_rotate %813 by %c8_i32_209 dim 0 : vector<16x4xf32>, i32 -> vector<16x4xf32>
    %cst_210 = arith.constant 1.000000e-01 : f32
    %817 = vector.broadcast %cst_210 : f32 to vector<16x4xf32>
    %818 = arith.mulf %817, %816 : vector<16x4xf32>
    %819 = arith.addf %815, %818 : vector<16x4xf32>
    %cst_211 = arith.constant dense<0.000000e+00> : vector<16xf32>
    %820 = vector.multi_reduction <add>, %819, %cst_211 [1] : vector<16x4xf32> to vector<16xf32>
    %821 = vector.shape_cast %820 : vector<16xf32> to vector<16x1xf32>
    %822 = arith.mulf %819, %819 : vector<16x4xf32>
    %cst_212 = arith.constant dense<0.000000e+00> : vector<16xf32>
    %823 = vector.multi_reduction <add>, %822, %cst_212 [1] : vector<16x4xf32> to vector<16xf32>
    %824 = vector.shape_cast %823 : vector<16xf32> to vector<16x1xf32>
    %825 = arith.addf %133, %821 : vector<16x1xf32>
    %cst_213 = arith.constant 0.0147058824 : f32
    %826 = vector.broadcast %cst_213 : f32 to vector<16x1xf32>
    %827 = arith.mulf %825, %826 : vector<16x1xf32>
    %828 = arith.addf %135, %824 : vector<16x1xf32>
    %cst_214 = arith.constant 0.0147058824 : f32
    %829 = vector.broadcast %cst_214 : f32 to vector<16x1xf32>
    %830 = arith.mulf %828, %829 : vector<16x1xf32>
    %831 = arith.mulf %827, %827 : vector<16x1xf32>
    %832 = arith.subf %830, %831 : vector<16x1xf32>
    %cst_215 = arith.constant 9.99999974E-6 : f32
    %833 = vector.broadcast %cst_215 : f32 to vector<16x1xf32>
    %834 = arith.addf %832, %833 : vector<16x1xf32>
    %835 = math.rsqrt %834 : vector<16x1xf32>
    %836 = vector.extract_strided_slice %819 {offsets = [0, 0], sizes = [16, 1], strides = [1, 1]} : vector<16x4xf32> to vector<16x1xf32>
    %837 = vector.broadcast %836 : vector<16x1xf32> to vector<16x32xf32>
    %838 = arith.mulf %837, %180 : vector<16x32xf32>
    %839 = arith.addf %131, %838 : vector<16x32xf32>
    %840 = vector.extract_strided_slice %819 {offsets = [0, 1], sizes = [16, 1], strides = [1, 1]} : vector<16x4xf32> to vector<16x1xf32>
    %841 = vector.broadcast %840 : vector<16x1xf32> to vector<16x32xf32>
    %842 = arith.mulf %841, %183 : vector<16x32xf32>
    %843 = arith.addf %839, %842 : vector<16x32xf32>
    %844 = vector.extract_strided_slice %819 {offsets = [0, 2], sizes = [16, 1], strides = [1, 1]} : vector<16x4xf32> to vector<16x1xf32>
    %845 = vector.broadcast %844 : vector<16x1xf32> to vector<16x32xf32>
    %846 = arith.mulf %845, %186 : vector<16x32xf32>
    %847 = arith.addf %843, %846 : vector<16x32xf32>
    %848 = vector.extract_strided_slice %819 {offsets = [0, 3], sizes = [16, 1], strides = [1, 1]} : vector<16x4xf32> to vector<16x1xf32>
    %849 = vector.broadcast %848 : vector<16x1xf32> to vector<16x32xf32>
    %850 = arith.mulf %849, %189 : vector<16x32xf32>
    %851 = arith.addf %847, %850 : vector<16x32xf32>
    %852 = vector.broadcast %827 : vector<16x1xf32> to vector<16x32xf32>
    %853 = vector.broadcast %9 : vector<1x32xf32> to vector<16x32xf32>
    %854 = arith.mulf %852, %853 : vector<16x32xf32>
    %855 = arith.subf %851, %854 : vector<16x32xf32>
    %856 = vector.broadcast %835 : vector<16x1xf32> to vector<16x32xf32>
    %857 = arith.mulf %856, %855 : vector<16x32xf32>
    %858 = vector.broadcast %8 : vector<1x32xf32> to vector<16x32xf32>
    %859 = arith.addf %857, %858 : vector<16x32xf32>
    %cst_216 = arith.constant 0.000000e+00 : f32
    %860 = vector.broadcast %cst_216 : f32 to vector<16x32xf32>
    %861 = arith.maximumf %859, %860 : vector<16x32xf32>
    %cst_217 = arith.constant dense<0.000000e+00> : vector<16xf32>
    %862 = vector.multi_reduction <add>, %861, %cst_217 [1] : vector<16x32xf32> to vector<16xf32>
    %863 = vector.shape_cast %862 : vector<16xf32> to vector<16x1xf32>
    %864 = arith.mulf %861, %861 : vector<16x32xf32>
    %cst_218 = arith.constant dense<0.000000e+00> : vector<16xf32>
    %865 = vector.multi_reduction <add>, %864, %cst_218 [1] : vector<16x32xf32> to vector<16xf32>
    %866 = vector.shape_cast %865 : vector<16xf32> to vector<16x1xf32>
    %cst_219 = arith.constant 3.125000e-02 : f32
    %867 = vector.broadcast %cst_219 : f32 to vector<16x1xf32>
    %868 = arith.mulf %863, %867 : vector<16x1xf32>
    %cst_220 = arith.constant 3.125000e-02 : f32
    %869 = vector.broadcast %cst_220 : f32 to vector<16x1xf32>
    %870 = arith.mulf %866, %869 : vector<16x1xf32>
    %871 = arith.mulf %868, %868 : vector<16x1xf32>
    %872 = arith.subf %870, %871 : vector<16x1xf32>
    %873 = vector.broadcast %868 : vector<16x1xf32> to vector<16x32xf32>
    %874 = arith.subf %861, %873 : vector<16x32xf32>
    %cst_221 = arith.constant 9.99999974E-6 : f32
    %875 = vector.broadcast %cst_221 : f32 to vector<16x1xf32>
    %876 = arith.addf %872, %875 : vector<16x1xf32>
    %877 = math.rsqrt %876 : vector<16x1xf32>
    %878 = vector.broadcast %877 : vector<16x1xf32> to vector<16x32xf32>
    %879 = arith.mulf %874, %878 : vector<16x32xf32>
    %880 = vector.broadcast %10 : vector<1x32xf32> to vector<16x32xf32>
    %881 = arith.mulf %879, %880 : vector<16x32xf32>
    %882 = vector.broadcast %11 : vector<1x32xf32> to vector<16x32xf32>
    %883 = arith.addf %881, %882 : vector<16x32xf32>
    %cst_222 = arith.constant dense<0.000000e+00> : vector<16x32xf32>
    %884 = tpu.matmul %883, %21, %cst_222 {dimension_numbers = #tpu.dot_dimension_numbers<[1], [0], [0], [1], [0, 0, 1, 1], [], []>} : vector<16x32xf32>, vector<32x32xf32>, vector<16x32xf32> -> vector<16x32xf32>
    %885 = vector.broadcast %12 : vector<1x32xf32> to vector<16x32xf32>
    %886 = arith.addf %884, %885 : vector<16x32xf32>
    %cst_223 = arith.constant 0.000000e+00 : f32
    %887 = vector.broadcast %cst_223 : f32 to vector<16x32xf32>
    %888 = arith.maximumf %886, %887 : vector<16x32xf32>
    %cst_224 = arith.constant dense<0.000000e+00> : vector<16xf32>
    %889 = vector.multi_reduction <add>, %888, %cst_224 [1] : vector<16x32xf32> to vector<16xf32>
    %890 = vector.shape_cast %889 : vector<16xf32> to vector<16x1xf32>
    %891 = arith.mulf %888, %888 : vector<16x32xf32>
    %cst_225 = arith.constant dense<0.000000e+00> : vector<16xf32>
    %892 = vector.multi_reduction <add>, %891, %cst_225 [1] : vector<16x32xf32> to vector<16xf32>
    %893 = vector.shape_cast %892 : vector<16xf32> to vector<16x1xf32>
    %cst_226 = arith.constant 3.125000e-02 : f32
    %894 = vector.broadcast %cst_226 : f32 to vector<16x1xf32>
    %895 = arith.mulf %890, %894 : vector<16x1xf32>
    %cst_227 = arith.constant 3.125000e-02 : f32
    %896 = vector.broadcast %cst_227 : f32 to vector<16x1xf32>
    %897 = arith.mulf %893, %896 : vector<16x1xf32>
    %898 = arith.mulf %895, %895 : vector<16x1xf32>
    %899 = arith.subf %897, %898 : vector<16x1xf32>
    %900 = vector.broadcast %895 : vector<16x1xf32> to vector<16x32xf32>
    %901 = arith.subf %888, %900 : vector<16x32xf32>
    %cst_228 = arith.constant 9.99999974E-6 : f32
    %902 = vector.broadcast %cst_228 : f32 to vector<16x1xf32>
    %903 = arith.addf %899, %902 : vector<16x1xf32>
    %904 = math.rsqrt %903 : vector<16x1xf32>
    %905 = vector.broadcast %904 : vector<16x1xf32> to vector<16x32xf32>
    %906 = arith.mulf %901, %905 : vector<16x32xf32>
    %907 = vector.broadcast %13 : vector<1x32xf32> to vector<16x32xf32>
    %908 = arith.mulf %906, %907 : vector<16x32xf32>
    %909 = vector.broadcast %14 : vector<1x32xf32> to vector<16x32xf32>
    %910 = arith.addf %908, %909 : vector<16x32xf32>
    %cst_229 = arith.constant dense<0.000000e+00> : vector<16x4xf32>
    %911 = tpu.matmul %910, %22, %cst_229 {dimension_numbers = #tpu.dot_dimension_numbers<[1], [0], [0], [1], [0, 0, 1, 1], [], []>} : vector<16x32xf32>, vector<32x4xf32>, vector<16x4xf32> -> vector<16x4xf32>
    %912 = vector.broadcast %15 : vector<1x4xf32> to vector<16x4xf32>
    %913 = arith.addf %911, %912 : vector<16x4xf32>
    %cst_230 = arith.constant 0.0577189028 : f32
    %914 = vector.broadcast %cst_230 : f32 to vector<16x4xf32>
    %915 = arith.mulf %914, %913 : vector<16x4xf32>
    %916 = arith.subf %819, %915 : vector<16x4xf32>
    %cst_231 = arith.constant 1.00338376 : f32
    %917 = vector.broadcast %cst_231 : f32 to vector<16x4xf32>
    %918 = arith.mulf %916, %917 : vector<16x4xf32>
    %cst_232 = arith.constant 0.899999976 : f32
    %919 = vector.broadcast %cst_232 : f32 to vector<16x4xf32>
    %920 = arith.mulf %919, %918 : vector<16x4xf32>
    %c8_i32_233 = arith.constant 8 : i32
    %921 = tpu.dynamic_rotate %918 by %c8_i32_233 dim 0 : vector<16x4xf32>, i32 -> vector<16x4xf32>
    %cst_234 = arith.constant 1.000000e-01 : f32
    %922 = vector.broadcast %cst_234 : f32 to vector<16x4xf32>
    %923 = arith.mulf %922, %921 : vector<16x4xf32>
    %924 = arith.addf %920, %923 : vector<16x4xf32>
    %cst_235 = arith.constant dense<0.000000e+00> : vector<16xf32>
    %925 = vector.multi_reduction <add>, %924, %cst_235 [1] : vector<16x4xf32> to vector<16xf32>
    %926 = vector.shape_cast %925 : vector<16xf32> to vector<16x1xf32>
    %927 = arith.mulf %924, %924 : vector<16x4xf32>
    %cst_236 = arith.constant dense<0.000000e+00> : vector<16xf32>
    %928 = vector.multi_reduction <add>, %927, %cst_236 [1] : vector<16x4xf32> to vector<16xf32>
    %929 = vector.shape_cast %928 : vector<16xf32> to vector<16x1xf32>
    %930 = arith.addf %126, %926 : vector<16x1xf32>
    %cst_237 = arith.constant 0.0147058824 : f32
    %931 = vector.broadcast %cst_237 : f32 to vector<16x1xf32>
    %932 = arith.mulf %930, %931 : vector<16x1xf32>
    %933 = arith.addf %128, %929 : vector<16x1xf32>
    %cst_238 = arith.constant 0.0147058824 : f32
    %934 = vector.broadcast %cst_238 : f32 to vector<16x1xf32>
    %935 = arith.mulf %933, %934 : vector<16x1xf32>
    %936 = arith.mulf %932, %932 : vector<16x1xf32>
    %937 = arith.subf %935, %936 : vector<16x1xf32>
    %cst_239 = arith.constant 9.99999974E-6 : f32
    %938 = vector.broadcast %cst_239 : f32 to vector<16x1xf32>
    %939 = arith.addf %937, %938 : vector<16x1xf32>
    %940 = math.rsqrt %939 : vector<16x1xf32>
    %941 = vector.extract_strided_slice %924 {offsets = [0, 0], sizes = [16, 1], strides = [1, 1]} : vector<16x4xf32> to vector<16x1xf32>
    %942 = vector.broadcast %941 : vector<16x1xf32> to vector<16x32xf32>
    %943 = arith.mulf %942, %180 : vector<16x32xf32>
    %944 = arith.addf %124, %943 : vector<16x32xf32>
    %945 = vector.extract_strided_slice %924 {offsets = [0, 1], sizes = [16, 1], strides = [1, 1]} : vector<16x4xf32> to vector<16x1xf32>
    %946 = vector.broadcast %945 : vector<16x1xf32> to vector<16x32xf32>
    %947 = arith.mulf %946, %183 : vector<16x32xf32>
    %948 = arith.addf %944, %947 : vector<16x32xf32>
    %949 = vector.extract_strided_slice %924 {offsets = [0, 2], sizes = [16, 1], strides = [1, 1]} : vector<16x4xf32> to vector<16x1xf32>
    %950 = vector.broadcast %949 : vector<16x1xf32> to vector<16x32xf32>
    %951 = arith.mulf %950, %186 : vector<16x32xf32>
    %952 = arith.addf %948, %951 : vector<16x32xf32>
    %953 = vector.extract_strided_slice %924 {offsets = [0, 3], sizes = [16, 1], strides = [1, 1]} : vector<16x4xf32> to vector<16x1xf32>
    %954 = vector.broadcast %953 : vector<16x1xf32> to vector<16x32xf32>
    %955 = arith.mulf %954, %189 : vector<16x32xf32>
    %956 = arith.addf %952, %955 : vector<16x32xf32>
    %957 = vector.broadcast %932 : vector<16x1xf32> to vector<16x32xf32>
    %958 = vector.broadcast %9 : vector<1x32xf32> to vector<16x32xf32>
    %959 = arith.mulf %957, %958 : vector<16x32xf32>
    %960 = arith.subf %956, %959 : vector<16x32xf32>
    %961 = vector.broadcast %940 : vector<16x1xf32> to vector<16x32xf32>
    %962 = arith.mulf %961, %960 : vector<16x32xf32>
    %963 = vector.broadcast %8 : vector<1x32xf32> to vector<16x32xf32>
    %964 = arith.addf %962, %963 : vector<16x32xf32>
    %cst_240 = arith.constant 0.000000e+00 : f32
    %965 = vector.broadcast %cst_240 : f32 to vector<16x32xf32>
    %966 = arith.maximumf %964, %965 : vector<16x32xf32>
    %cst_241 = arith.constant dense<0.000000e+00> : vector<16xf32>
    %967 = vector.multi_reduction <add>, %966, %cst_241 [1] : vector<16x32xf32> to vector<16xf32>
    %968 = vector.shape_cast %967 : vector<16xf32> to vector<16x1xf32>
    %969 = arith.mulf %966, %966 : vector<16x32xf32>
    %cst_242 = arith.constant dense<0.000000e+00> : vector<16xf32>
    %970 = vector.multi_reduction <add>, %969, %cst_242 [1] : vector<16x32xf32> to vector<16xf32>
    %971 = vector.shape_cast %970 : vector<16xf32> to vector<16x1xf32>
    %cst_243 = arith.constant 3.125000e-02 : f32
    %972 = vector.broadcast %cst_243 : f32 to vector<16x1xf32>
    %973 = arith.mulf %968, %972 : vector<16x1xf32>
    %cst_244 = arith.constant 3.125000e-02 : f32
    %974 = vector.broadcast %cst_244 : f32 to vector<16x1xf32>
    %975 = arith.mulf %971, %974 : vector<16x1xf32>
    %976 = arith.mulf %973, %973 : vector<16x1xf32>
    %977 = arith.subf %975, %976 : vector<16x1xf32>
    %978 = vector.broadcast %973 : vector<16x1xf32> to vector<16x32xf32>
    %979 = arith.subf %966, %978 : vector<16x32xf32>
    %cst_245 = arith.constant 9.99999974E-6 : f32
    %980 = vector.broadcast %cst_245 : f32 to vector<16x1xf32>
    %981 = arith.addf %977, %980 : vector<16x1xf32>
    %982 = math.rsqrt %981 : vector<16x1xf32>
    %983 = vector.broadcast %982 : vector<16x1xf32> to vector<16x32xf32>
    %984 = arith.mulf %979, %983 : vector<16x32xf32>
    %985 = vector.broadcast %10 : vector<1x32xf32> to vector<16x32xf32>
    %986 = arith.mulf %984, %985 : vector<16x32xf32>
    %987 = vector.broadcast %11 : vector<1x32xf32> to vector<16x32xf32>
    %988 = arith.addf %986, %987 : vector<16x32xf32>
    %cst_246 = arith.constant dense<0.000000e+00> : vector<16x32xf32>
    %989 = tpu.matmul %988, %21, %cst_246 {dimension_numbers = #tpu.dot_dimension_numbers<[1], [0], [0], [1], [0, 0, 1, 1], [], []>} : vector<16x32xf32>, vector<32x32xf32>, vector<16x32xf32> -> vector<16x32xf32>
    %990 = vector.broadcast %12 : vector<1x32xf32> to vector<16x32xf32>
    %991 = arith.addf %989, %990 : vector<16x32xf32>
    %cst_247 = arith.constant 0.000000e+00 : f32
    %992 = vector.broadcast %cst_247 : f32 to vector<16x32xf32>
    %993 = arith.maximumf %991, %992 : vector<16x32xf32>
    %cst_248 = arith.constant dense<0.000000e+00> : vector<16xf32>
    %994 = vector.multi_reduction <add>, %993, %cst_248 [1] : vector<16x32xf32> to vector<16xf32>
    %995 = vector.shape_cast %994 : vector<16xf32> to vector<16x1xf32>
    %996 = arith.mulf %993, %993 : vector<16x32xf32>
    %cst_249 = arith.constant dense<0.000000e+00> : vector<16xf32>
    %997 = vector.multi_reduction <add>, %996, %cst_249 [1] : vector<16x32xf32> to vector<16xf32>
    %998 = vector.shape_cast %997 : vector<16xf32> to vector<16x1xf32>
    %cst_250 = arith.constant 3.125000e-02 : f32
    %999 = vector.broadcast %cst_250 : f32 to vector<16x1xf32>
    %1000 = arith.mulf %995, %999 : vector<16x1xf32>
    %cst_251 = arith.constant 3.125000e-02 : f32
    %1001 = vector.broadcast %cst_251 : f32 to vector<16x1xf32>
    %1002 = arith.mulf %998, %1001 : vector<16x1xf32>
    %1003 = arith.mulf %1000, %1000 : vector<16x1xf32>
    %1004 = arith.subf %1002, %1003 : vector<16x1xf32>
    %1005 = vector.broadcast %1000 : vector<16x1xf32> to vector<16x32xf32>
    %1006 = arith.subf %993, %1005 : vector<16x32xf32>
    %cst_252 = arith.constant 9.99999974E-6 : f32
    %1007 = vector.broadcast %cst_252 : f32 to vector<16x1xf32>
    %1008 = arith.addf %1004, %1007 : vector<16x1xf32>
    %1009 = math.rsqrt %1008 : vector<16x1xf32>
    %1010 = vector.broadcast %1009 : vector<16x1xf32> to vector<16x32xf32>
    %1011 = arith.mulf %1006, %1010 : vector<16x32xf32>
    %1012 = vector.broadcast %13 : vector<1x32xf32> to vector<16x32xf32>
    %1013 = arith.mulf %1011, %1012 : vector<16x32xf32>
    %1014 = vector.broadcast %14 : vector<1x32xf32> to vector<16x32xf32>
    %1015 = arith.addf %1013, %1014 : vector<16x32xf32>
    %cst_253 = arith.constant dense<0.000000e+00> : vector<16x4xf32>
    %1016 = tpu.matmul %1015, %22, %cst_253 {dimension_numbers = #tpu.dot_dimension_numbers<[1], [0], [0], [1], [0, 0, 1, 1], [], []>} : vector<16x32xf32>, vector<32x4xf32>, vector<16x4xf32> -> vector<16x4xf32>
    %1017 = vector.broadcast %15 : vector<1x4xf32> to vector<16x4xf32>
    %1018 = arith.addf %1016, %1017 : vector<16x4xf32>
    %cst_254 = arith.constant 0.0543538444 : f32
    %1019 = vector.broadcast %cst_254 : f32 to vector<16x4xf32>
    %1020 = arith.mulf %1019, %1018 : vector<16x4xf32>
    %1021 = arith.subf %924, %1020 : vector<16x4xf32>
    %cst_255 = arith.constant 1.00226879 : f32
    %1022 = vector.broadcast %cst_255 : f32 to vector<16x4xf32>
    %1023 = arith.mulf %1021, %1022 : vector<16x4xf32>
    %cst_256 = arith.constant 0.899999976 : f32
    %1024 = vector.broadcast %cst_256 : f32 to vector<16x4xf32>
    %1025 = arith.mulf %1024, %1023 : vector<16x4xf32>
    %c8_i32_257 = arith.constant 8 : i32
    %1026 = tpu.dynamic_rotate %1023 by %c8_i32_257 dim 0 : vector<16x4xf32>, i32 -> vector<16x4xf32>
    %cst_258 = arith.constant 1.000000e-01 : f32
    %1027 = vector.broadcast %cst_258 : f32 to vector<16x4xf32>
    %1028 = arith.mulf %1027, %1026 : vector<16x4xf32>
    %1029 = arith.addf %1025, %1028 : vector<16x4xf32>
    %cst_259 = arith.constant dense<0.000000e+00> : vector<16xf32>
    %1030 = vector.multi_reduction <add>, %1029, %cst_259 [1] : vector<16x4xf32> to vector<16xf32>
    %1031 = vector.shape_cast %1030 : vector<16xf32> to vector<16x1xf32>
    %1032 = arith.mulf %1029, %1029 : vector<16x4xf32>
    %cst_260 = arith.constant dense<0.000000e+00> : vector<16xf32>
    %1033 = vector.multi_reduction <add>, %1032, %cst_260 [1] : vector<16x4xf32> to vector<16xf32>
    %1034 = vector.shape_cast %1033 : vector<16xf32> to vector<16x1xf32>
    %1035 = arith.addf %119, %1031 : vector<16x1xf32>
    %cst_261 = arith.constant 0.0147058824 : f32
    %1036 = vector.broadcast %cst_261 : f32 to vector<16x1xf32>
    %1037 = arith.mulf %1035, %1036 : vector<16x1xf32>
    %1038 = arith.addf %121, %1034 : vector<16x1xf32>
    %cst_262 = arith.constant 0.0147058824 : f32
    %1039 = vector.broadcast %cst_262 : f32 to vector<16x1xf32>
    %1040 = arith.mulf %1038, %1039 : vector<16x1xf32>
    %1041 = arith.mulf %1037, %1037 : vector<16x1xf32>
    %1042 = arith.subf %1040, %1041 : vector<16x1xf32>
    %cst_263 = arith.constant 9.99999974E-6 : f32
    %1043 = vector.broadcast %cst_263 : f32 to vector<16x1xf32>
    %1044 = arith.addf %1042, %1043 : vector<16x1xf32>
    %1045 = math.rsqrt %1044 : vector<16x1xf32>
    %1046 = vector.extract_strided_slice %1029 {offsets = [0, 0], sizes = [16, 1], strides = [1, 1]} : vector<16x4xf32> to vector<16x1xf32>
    %1047 = vector.broadcast %1046 : vector<16x1xf32> to vector<16x32xf32>
    %1048 = arith.mulf %1047, %180 : vector<16x32xf32>
    %1049 = arith.addf %117, %1048 : vector<16x32xf32>
    %1050 = vector.extract_strided_slice %1029 {offsets = [0, 1], sizes = [16, 1], strides = [1, 1]} : vector<16x4xf32> to vector<16x1xf32>
    %1051 = vector.broadcast %1050 : vector<16x1xf32> to vector<16x32xf32>
    %1052 = arith.mulf %1051, %183 : vector<16x32xf32>
    %1053 = arith.addf %1049, %1052 : vector<16x32xf32>
    %1054 = vector.extract_strided_slice %1029 {offsets = [0, 2], sizes = [16, 1], strides = [1, 1]} : vector<16x4xf32> to vector<16x1xf32>
    %1055 = vector.broadcast %1054 : vector<16x1xf32> to vector<16x32xf32>
    %1056 = arith.mulf %1055, %186 : vector<16x32xf32>
    %1057 = arith.addf %1053, %1056 : vector<16x32xf32>
    %1058 = vector.extract_strided_slice %1029 {offsets = [0, 3], sizes = [16, 1], strides = [1, 1]} : vector<16x4xf32> to vector<16x1xf32>
    %1059 = vector.broadcast %1058 : vector<16x1xf32> to vector<16x32xf32>
    %1060 = arith.mulf %1059, %189 : vector<16x32xf32>
    %1061 = arith.addf %1057, %1060 : vector<16x32xf32>
    %1062 = vector.broadcast %1037 : vector<16x1xf32> to vector<16x32xf32>
    %1063 = vector.broadcast %9 : vector<1x32xf32> to vector<16x32xf32>
    %1064 = arith.mulf %1062, %1063 : vector<16x32xf32>
    %1065 = arith.subf %1061, %1064 : vector<16x32xf32>
    %1066 = vector.broadcast %1045 : vector<16x1xf32> to vector<16x32xf32>
    %1067 = arith.mulf %1066, %1065 : vector<16x32xf32>
    %1068 = vector.broadcast %8 : vector<1x32xf32> to vector<16x32xf32>
    %1069 = arith.addf %1067, %1068 : vector<16x32xf32>
    %cst_264 = arith.constant 0.000000e+00 : f32
    %1070 = vector.broadcast %cst_264 : f32 to vector<16x32xf32>
    %1071 = arith.maximumf %1069, %1070 : vector<16x32xf32>
    %cst_265 = arith.constant dense<0.000000e+00> : vector<16xf32>
    %1072 = vector.multi_reduction <add>, %1071, %cst_265 [1] : vector<16x32xf32> to vector<16xf32>
    %1073 = vector.shape_cast %1072 : vector<16xf32> to vector<16x1xf32>
    %1074 = arith.mulf %1071, %1071 : vector<16x32xf32>
    %cst_266 = arith.constant dense<0.000000e+00> : vector<16xf32>
    %1075 = vector.multi_reduction <add>, %1074, %cst_266 [1] : vector<16x32xf32> to vector<16xf32>
    %1076 = vector.shape_cast %1075 : vector<16xf32> to vector<16x1xf32>
    %cst_267 = arith.constant 3.125000e-02 : f32
    %1077 = vector.broadcast %cst_267 : f32 to vector<16x1xf32>
    %1078 = arith.mulf %1073, %1077 : vector<16x1xf32>
    %cst_268 = arith.constant 3.125000e-02 : f32
    %1079 = vector.broadcast %cst_268 : f32 to vector<16x1xf32>
    %1080 = arith.mulf %1076, %1079 : vector<16x1xf32>
    %1081 = arith.mulf %1078, %1078 : vector<16x1xf32>
    %1082 = arith.subf %1080, %1081 : vector<16x1xf32>
    %1083 = vector.broadcast %1078 : vector<16x1xf32> to vector<16x32xf32>
    %1084 = arith.subf %1071, %1083 : vector<16x32xf32>
    %cst_269 = arith.constant 9.99999974E-6 : f32
    %1085 = vector.broadcast %cst_269 : f32 to vector<16x1xf32>
    %1086 = arith.addf %1082, %1085 : vector<16x1xf32>
    %1087 = math.rsqrt %1086 : vector<16x1xf32>
    %1088 = vector.broadcast %1087 : vector<16x1xf32> to vector<16x32xf32>
    %1089 = arith.mulf %1084, %1088 : vector<16x32xf32>
    %1090 = vector.broadcast %10 : vector<1x32xf32> to vector<16x32xf32>
    %1091 = arith.mulf %1089, %1090 : vector<16x32xf32>
    %1092 = vector.broadcast %11 : vector<1x32xf32> to vector<16x32xf32>
    %1093 = arith.addf %1091, %1092 : vector<16x32xf32>
    %cst_270 = arith.constant dense<0.000000e+00> : vector<16x32xf32>
    %1094 = tpu.matmul %1093, %21, %cst_270 {dimension_numbers = #tpu.dot_dimension_numbers<[1], [0], [0], [1], [0, 0, 1, 1], [], []>} : vector<16x32xf32>, vector<32x32xf32>, vector<16x32xf32> -> vector<16x32xf32>
    %1095 = vector.broadcast %12 : vector<1x32xf32> to vector<16x32xf32>
    %1096 = arith.addf %1094, %1095 : vector<16x32xf32>
    %cst_271 = arith.constant 0.000000e+00 : f32
    %1097 = vector.broadcast %cst_271 : f32 to vector<16x32xf32>
    %1098 = arith.maximumf %1096, %1097 : vector<16x32xf32>
    %cst_272 = arith.constant dense<0.000000e+00> : vector<16xf32>
    %1099 = vector.multi_reduction <add>, %1098, %cst_272 [1] : vector<16x32xf32> to vector<16xf32>
    %1100 = vector.shape_cast %1099 : vector<16xf32> to vector<16x1xf32>
    %1101 = arith.mulf %1098, %1098 : vector<16x32xf32>
    %cst_273 = arith.constant dense<0.000000e+00> : vector<16xf32>
    %1102 = vector.multi_reduction <add>, %1101, %cst_273 [1] : vector<16x32xf32> to vector<16xf32>
    %1103 = vector.shape_cast %1102 : vector<16xf32> to vector<16x1xf32>
    %cst_274 = arith.constant 3.125000e-02 : f32
    %1104 = vector.broadcast %cst_274 : f32 to vector<16x1xf32>
    %1105 = arith.mulf %1100, %1104 : vector<16x1xf32>
    %cst_275 = arith.constant 3.125000e-02 : f32
    %1106 = vector.broadcast %cst_275 : f32 to vector<16x1xf32>
    %1107 = arith.mulf %1103, %1106 : vector<16x1xf32>
    %1108 = arith.mulf %1105, %1105 : vector<16x1xf32>
    %1109 = arith.subf %1107, %1108 : vector<16x1xf32>
    %1110 = vector.broadcast %1105 : vector<16x1xf32> to vector<16x32xf32>
    %1111 = arith.subf %1098, %1110 : vector<16x32xf32>
    %cst_276 = arith.constant 9.99999974E-6 : f32
    %1112 = vector.broadcast %cst_276 : f32 to vector<16x1xf32>
    %1113 = arith.addf %1109, %1112 : vector<16x1xf32>
    %1114 = math.rsqrt %1113 : vector<16x1xf32>
    %1115 = vector.broadcast %1114 : vector<16x1xf32> to vector<16x32xf32>
    %1116 = arith.mulf %1111, %1115 : vector<16x32xf32>
    %1117 = vector.broadcast %13 : vector<1x32xf32> to vector<16x32xf32>
    %1118 = arith.mulf %1116, %1117 : vector<16x32xf32>
    %1119 = vector.broadcast %14 : vector<1x32xf32> to vector<16x32xf32>
    %1120 = arith.addf %1118, %1119 : vector<16x32xf32>
    %cst_277 = arith.constant dense<0.000000e+00> : vector<16x4xf32>
    %1121 = tpu.matmul %1120, %22, %cst_277 {dimension_numbers = #tpu.dot_dimension_numbers<[1], [0], [0], [1], [0, 0, 1, 1], [], []>} : vector<16x32xf32>, vector<32x4xf32>, vector<16x4xf32> -> vector<16x4xf32>
    %1122 = vector.broadcast %15 : vector<1x4xf32> to vector<16x4xf32>
    %1123 = arith.addf %1121, %1122 : vector<16x4xf32>
    %cst_278 = arith.constant 0.0470687076 : f32
    %1124 = vector.broadcast %cst_278 : f32 to vector<16x4xf32>
    %1125 = arith.mulf %1124, %1123 : vector<16x4xf32>
    %1126 = arith.subf %1029, %1125 : vector<16x4xf32>
    %cst_279 = arith.constant 1.00115752 : f32
    %1127 = vector.broadcast %cst_279 : f32 to vector<16x4xf32>
    %1128 = arith.mulf %1126, %1127 : vector<16x4xf32>
    %cst_280 = arith.constant 0.899999976 : f32
    %1129 = vector.broadcast %cst_280 : f32 to vector<16x4xf32>
    %1130 = arith.mulf %1129, %1128 : vector<16x4xf32>
    %c8_i32_281 = arith.constant 8 : i32
    %1131 = tpu.dynamic_rotate %1128 by %c8_i32_281 dim 0 : vector<16x4xf32>, i32 -> vector<16x4xf32>
    %cst_282 = arith.constant 1.000000e-01 : f32
    %1132 = vector.broadcast %cst_282 : f32 to vector<16x4xf32>
    %1133 = arith.mulf %1132, %1131 : vector<16x4xf32>
    %1134 = arith.addf %1130, %1133 : vector<16x4xf32>
    %cst_283 = arith.constant dense<0.000000e+00> : vector<16xf32>
    %1135 = vector.multi_reduction <add>, %1134, %cst_283 [1] : vector<16x4xf32> to vector<16xf32>
    %1136 = vector.shape_cast %1135 : vector<16xf32> to vector<16x1xf32>
    %1137 = arith.mulf %1134, %1134 : vector<16x4xf32>
    %cst_284 = arith.constant dense<0.000000e+00> : vector<16xf32>
    %1138 = vector.multi_reduction <add>, %1137, %cst_284 [1] : vector<16x4xf32> to vector<16xf32>
    %1139 = vector.shape_cast %1138 : vector<16xf32> to vector<16x1xf32>
    %1140 = arith.addf %112, %1136 : vector<16x1xf32>
    %cst_285 = arith.constant 0.0147058824 : f32
    %1141 = vector.broadcast %cst_285 : f32 to vector<16x1xf32>
    %1142 = arith.mulf %1140, %1141 : vector<16x1xf32>
    %1143 = arith.addf %114, %1139 : vector<16x1xf32>
    %cst_286 = arith.constant 0.0147058824 : f32
    %1144 = vector.broadcast %cst_286 : f32 to vector<16x1xf32>
    %1145 = arith.mulf %1143, %1144 : vector<16x1xf32>
    %1146 = arith.mulf %1142, %1142 : vector<16x1xf32>
    %1147 = arith.subf %1145, %1146 : vector<16x1xf32>
    %cst_287 = arith.constant 9.99999974E-6 : f32
    %1148 = vector.broadcast %cst_287 : f32 to vector<16x1xf32>
    %1149 = arith.addf %1147, %1148 : vector<16x1xf32>
    %1150 = math.rsqrt %1149 : vector<16x1xf32>
    %1151 = vector.extract_strided_slice %1134 {offsets = [0, 0], sizes = [16, 1], strides = [1, 1]} : vector<16x4xf32> to vector<16x1xf32>
    %1152 = vector.broadcast %1151 : vector<16x1xf32> to vector<16x32xf32>
    %1153 = arith.mulf %1152, %180 : vector<16x32xf32>
    %1154 = arith.addf %110, %1153 : vector<16x32xf32>
    %1155 = vector.extract_strided_slice %1134 {offsets = [0, 1], sizes = [16, 1], strides = [1, 1]} : vector<16x4xf32> to vector<16x1xf32>
    %1156 = vector.broadcast %1155 : vector<16x1xf32> to vector<16x32xf32>
    %1157 = arith.mulf %1156, %183 : vector<16x32xf32>
    %1158 = arith.addf %1154, %1157 : vector<16x32xf32>
    %1159 = vector.extract_strided_slice %1134 {offsets = [0, 2], sizes = [16, 1], strides = [1, 1]} : vector<16x4xf32> to vector<16x1xf32>
    %1160 = vector.broadcast %1159 : vector<16x1xf32> to vector<16x32xf32>
    %1161 = arith.mulf %1160, %186 : vector<16x32xf32>
    %1162 = arith.addf %1158, %1161 : vector<16x32xf32>
    %1163 = vector.extract_strided_slice %1134 {offsets = [0, 3], sizes = [16, 1], strides = [1, 1]} : vector<16x4xf32> to vector<16x1xf32>
    %1164 = vector.broadcast %1163 : vector<16x1xf32> to vector<16x32xf32>
    %1165 = arith.mulf %1164, %189 : vector<16x32xf32>
    %1166 = arith.addf %1162, %1165 : vector<16x32xf32>
    %1167 = vector.broadcast %1142 : vector<16x1xf32> to vector<16x32xf32>
    %1168 = vector.broadcast %9 : vector<1x32xf32> to vector<16x32xf32>
    %1169 = arith.mulf %1167, %1168 : vector<16x32xf32>
    %1170 = arith.subf %1166, %1169 : vector<16x32xf32>
    %1171 = vector.broadcast %1150 : vector<16x1xf32> to vector<16x32xf32>
    %1172 = arith.mulf %1171, %1170 : vector<16x32xf32>
    %1173 = vector.broadcast %8 : vector<1x32xf32> to vector<16x32xf32>
    %1174 = arith.addf %1172, %1173 : vector<16x32xf32>
    %cst_288 = arith.constant 0.000000e+00 : f32
    %1175 = vector.broadcast %cst_288 : f32 to vector<16x32xf32>
    %1176 = arith.maximumf %1174, %1175 : vector<16x32xf32>
    %cst_289 = arith.constant dense<0.000000e+00> : vector<16xf32>
    %1177 = vector.multi_reduction <add>, %1176, %cst_289 [1] : vector<16x32xf32> to vector<16xf32>
    %1178 = vector.shape_cast %1177 : vector<16xf32> to vector<16x1xf32>
    %1179 = arith.mulf %1176, %1176 : vector<16x32xf32>
    %cst_290 = arith.constant dense<0.000000e+00> : vector<16xf32>
    %1180 = vector.multi_reduction <add>, %1179, %cst_290 [1] : vector<16x32xf32> to vector<16xf32>
    %1181 = vector.shape_cast %1180 : vector<16xf32> to vector<16x1xf32>
    %cst_291 = arith.constant 3.125000e-02 : f32
    %1182 = vector.broadcast %cst_291 : f32 to vector<16x1xf32>
    %1183 = arith.mulf %1178, %1182 : vector<16x1xf32>
    %cst_292 = arith.constant 3.125000e-02 : f32
    %1184 = vector.broadcast %cst_292 : f32 to vector<16x1xf32>
    %1185 = arith.mulf %1181, %1184 : vector<16x1xf32>
    %1186 = arith.mulf %1183, %1183 : vector<16x1xf32>
    %1187 = arith.subf %1185, %1186 : vector<16x1xf32>
    %1188 = vector.broadcast %1183 : vector<16x1xf32> to vector<16x32xf32>
    %1189 = arith.subf %1176, %1188 : vector<16x32xf32>
    %cst_293 = arith.constant 9.99999974E-6 : f32
    %1190 = vector.broadcast %cst_293 : f32 to vector<16x1xf32>
    %1191 = arith.addf %1187, %1190 : vector<16x1xf32>
    %1192 = math.rsqrt %1191 : vector<16x1xf32>
    %1193 = vector.broadcast %1192 : vector<16x1xf32> to vector<16x32xf32>
    %1194 = arith.mulf %1189, %1193 : vector<16x32xf32>
    %1195 = vector.broadcast %10 : vector<1x32xf32> to vector<16x32xf32>
    %1196 = arith.mulf %1194, %1195 : vector<16x32xf32>
    %1197 = vector.broadcast %11 : vector<1x32xf32> to vector<16x32xf32>
    %1198 = arith.addf %1196, %1197 : vector<16x32xf32>
    %cst_294 = arith.constant dense<0.000000e+00> : vector<16x32xf32>
    %1199 = tpu.matmul %1198, %21, %cst_294 {dimension_numbers = #tpu.dot_dimension_numbers<[1], [0], [0], [1], [0, 0, 1, 1], [], []>} : vector<16x32xf32>, vector<32x32xf32>, vector<16x32xf32> -> vector<16x32xf32>
    %1200 = vector.broadcast %12 : vector<1x32xf32> to vector<16x32xf32>
    %1201 = arith.addf %1199, %1200 : vector<16x32xf32>
    %cst_295 = arith.constant 0.000000e+00 : f32
    %1202 = vector.broadcast %cst_295 : f32 to vector<16x32xf32>
    %1203 = arith.maximumf %1201, %1202 : vector<16x32xf32>
    %cst_296 = arith.constant dense<0.000000e+00> : vector<16xf32>
    %1204 = vector.multi_reduction <add>, %1203, %cst_296 [1] : vector<16x32xf32> to vector<16xf32>
    %1205 = vector.shape_cast %1204 : vector<16xf32> to vector<16x1xf32>
    %1206 = arith.mulf %1203, %1203 : vector<16x32xf32>
    %cst_297 = arith.constant dense<0.000000e+00> : vector<16xf32>
    %1207 = vector.multi_reduction <add>, %1206, %cst_297 [1] : vector<16x32xf32> to vector<16xf32>
    %1208 = vector.shape_cast %1207 : vector<16xf32> to vector<16x1xf32>
    %cst_298 = arith.constant 3.125000e-02 : f32
    %1209 = vector.broadcast %cst_298 : f32 to vector<16x1xf32>
    %1210 = arith.mulf %1205, %1209 : vector<16x1xf32>
    %cst_299 = arith.constant 3.125000e-02 : f32
    %1211 = vector.broadcast %cst_299 : f32 to vector<16x1xf32>
    %1212 = arith.mulf %1208, %1211 : vector<16x1xf32>
    %1213 = arith.mulf %1210, %1210 : vector<16x1xf32>
    %1214 = arith.subf %1212, %1213 : vector<16x1xf32>
    %1215 = vector.broadcast %1210 : vector<16x1xf32> to vector<16x32xf32>
    %1216 = arith.subf %1203, %1215 : vector<16x32xf32>
    %cst_300 = arith.constant 9.99999974E-6 : f32
    %1217 = vector.broadcast %cst_300 : f32 to vector<16x1xf32>
    %1218 = arith.addf %1214, %1217 : vector<16x1xf32>
    %1219 = math.rsqrt %1218 : vector<16x1xf32>
    %1220 = vector.broadcast %1219 : vector<16x1xf32> to vector<16x32xf32>
    %1221 = arith.mulf %1216, %1220 : vector<16x32xf32>
    %1222 = vector.broadcast %13 : vector<1x32xf32> to vector<16x32xf32>
    %1223 = arith.mulf %1221, %1222 : vector<16x32xf32>
    %1224 = vector.broadcast %14 : vector<1x32xf32> to vector<16x32xf32>
    %1225 = arith.addf %1223, %1224 : vector<16x32xf32>
    %cst_301 = arith.constant dense<0.000000e+00> : vector<16x4xf32>
    %1226 = tpu.matmul %1225, %22, %cst_301 {dimension_numbers = #tpu.dot_dimension_numbers<[1], [0], [0], [1], [0, 0, 1, 1], [], []>} : vector<16x32xf32>, vector<32x4xf32>, vector<16x4xf32> -> vector<16x4xf32>
    %1227 = vector.broadcast %15 : vector<1x4xf32> to vector<16x4xf32>
    %1228 = arith.addf %1226, %1227 : vector<16x4xf32>
    %cst_302 = arith.constant 0.00999916996 : f32
    %1229 = vector.broadcast %cst_302 : f32 to vector<16x4xf32>
    %1230 = arith.mulf %1229, %1228 : vector<16x4xf32>
    %1231 = arith.subf %1134, %1230 : vector<16x4xf32>
    %cst_303 = arith.constant 1.00005007 : f32
    %1232 = vector.broadcast %cst_303 : f32 to vector<16x4xf32>
    %1233 = arith.mulf %1231, %1232 : vector<16x4xf32>
    %cst_304 = arith.constant 0.899999976 : f32
    %1234 = vector.broadcast %cst_304 : f32 to vector<16x4xf32>
    %1235 = arith.mulf %1234, %1233 : vector<16x4xf32>
    %c8_i32_305 = arith.constant 8 : i32
    %1236 = tpu.dynamic_rotate %1233 by %c8_i32_305 dim 0 : vector<16x4xf32>, i32 -> vector<16x4xf32>
    %cst_306 = arith.constant 1.000000e-01 : f32
    %1237 = vector.broadcast %cst_306 : f32 to vector<16x4xf32>
    %1238 = arith.mulf %1237, %1236 : vector<16x4xf32>
    %1239 = arith.addf %1235, %1238 : vector<16x4xf32>
    %1240 = vector.extract_strided_slice %1239 {offsets = [0, 0], sizes = [8, 4], strides = [1, 1]} : vector<16x4xf32> to vector<8x4xf32>
    %1241 = vector.extract_strided_slice %1239 {offsets = [8, 0], sizes = [8, 4], strides = [1, 1]} : vector<16x4xf32> to vector<8x4xf32>
    %1242 = arith.addf %1240, %1241 : vector<8x4xf32>
    %cst_307 = arith.constant 5.000000e-01 : f32
    %1243 = vector.broadcast %cst_307 : f32 to vector<8x4xf32>
    %1244 = arith.mulf %1243, %1242 : vector<8x4xf32>
    %1245 = arith.mulf %24, %24 : vector<16x4xf32>
    %cst_308 = arith.constant dense<0.000000e+00> : vector<16xf32>
    %1246 = vector.multi_reduction <add>, %1245, %cst_308 [1] : vector<16x4xf32> to vector<16xf32>
    %1247 = vector.shape_cast %1246 : vector<16xf32> to vector<16x1xf32>
    %1248 = vector.extract_strided_slice %1247 {offsets = [0, 0], sizes = [8, 1], strides = [1, 1]} : vector<16x1xf32> to vector<8x1xf32>
    %1249 = vector.extract_strided_slice %1247 {offsets = [8, 0], sizes = [8, 1], strides = [1, 1]} : vector<16x1xf32> to vector<8x1xf32>
    %1250 = arith.addf %1248, %1249 : vector<8x1xf32>
    %cst_309 = arith.constant -5.000000e-01 : f32
    %1251 = vector.broadcast %cst_309 : f32 to vector<8x1xf32>
    %1252 = arith.mulf %1251, %1250 : vector<8x1xf32>
    %cst_310 = arith.constant 7.35150814 : f32
    %1253 = vector.broadcast %cst_310 : f32 to vector<8x1xf32>
    %1254 = arith.subf %1252, %1253 : vector<8x1xf32>
    %cst_311 = arith.constant 2.77258873 : f32
    %1255 = vector.broadcast %cst_311 : f32 to vector<8x1xf32>
    %1256 = arith.subf %1254, %1255 : vector<8x1xf32>
    %cst_312 = arith.constant 0.000000e+00 : f32
    %1257 = vector.broadcast %cst_312 : f32 to vector<8x123xf32>
    %1258 = tpu.concatenate %1244, %1256, %1257 in 1 : vector<8x4xf32>, vector<8x1xf32>, vector<8x123xf32> -> vector<8x128xf32>
    %c0_313 = arith.constant 0 : index
    %c0_314 = arith.constant 0 : index
    %1259 = vector.load %arg2[%c0_313, %c0_314] : memref<8x128xf32, #tpu.memory_space<vmem>>, vector<8x128xf32>
    tpu.vector_store %arg2[%c0_313, %c0_314], %1258 {strides = array<i32>} : memref<8x128xf32, #tpu.memory_space<vmem>>, vector<8x128xf32>,
    return
  }
}

</mosaic_0001>

<bundles_post_ra>
// kernel: diffusion_policy_forward.1
= control target key start
LH: loop header
LB: loop body
LE: loop exit
PB: predicated region body
PF: predicated region fallthrough
CT: control target
= control target key end

     0   :  { %vm51_vm0 = vcmask 130048   ;;  %vm105_vm4 = vcmask 261120   ;;  %vm265_vm8 = vcmask 31744   ;;  %v3446_v63 = vmov 1   ;;  %s4707_s1 = inlined_call_operand.vmem [shape: f32[184,128], index: 1, kind: input, shape index: {}]   ;;  %s4708_s0 = inlined_call_operand.vmem [shape: f32[184,128], index: 0, kind: input, shape index: {}]   ;;  %s4709_s2 = inlined_call_operand.vmem [shape: f32[8,128], index: 2, kind: output, shape index: {}]  }
   0x1   :  { %v48_v0 = vld [vmem:[%s4707_s1] sm:$0xff]  ;;  %v30_v4 = vld [vmem:[%s4708_s0 + $0x28] sm:$0xff]  ;;  %v32_v35 = vld [vmem:[%s4708_s0 + $0x38] sm:$0xff]  ;;  %3183 = vset.pattern.permute.xlu1 %v3446_v63 }
   0x2   :  { %v52_v1 = vsel %vm51_vm0, %v48_v0, 0.0  ;;  %v55_v2 = vmul.f32 %v48_v0, %v48_v0  ;;  %v29_v5 = vld [vmem:[%s4708_s0 + $0x20] sm:$0xff]  ;;  %98 = vmatpush.msra.mxu0 %v30_v4  ;;  %v34_v33 = vld [vmem:[%s4708_s0 + $0x48] sm:$0xff]  ;;  %v31_v37 = vld [vmem:[%s4708_s0 + $0x30] sm:$0xff] }
   0x3   :  { %53 = vadd.xlane.f32.xlu0 %v52_v1  ;;  %v3261_v20 = vld [vmem:[%s4708_s0] ss:$0 sm:$0xff]  ;;  %v3262_v23 = vld [vmem:[%s4708_s0 + $0x1] ss:$0 sm:$0xff]  ;;  %v3263_v26 = vld [vmem:[%s4708_s0 + $0x2] ss:$0 sm:$0xff]  ;;  %150 = vmatpush.msra.mxu1 %v34_v33 }
   0x4   :  { %v56_v3 = vsel %vm51_vm0, %v55_v2, 0.0  ;;  %99 = vmatpush.msra.mxu0 %v29_v5  ;;  %v33_v34 = vld [vmem:[%s4708_s0 + $0x40] sm:$0xff]  ;;  %v3510_v57 = vld [vmem:[%s4707_s1 + $0x10] sm:$0xff]  ;;  %v3517_v59 = vld [vmem:[%s4707_s1 + $0x8] sm:$0xff] }
   0x5   :  { %151 = vmatpush.msra.mxu1 %v33_v34  ;;  %v3264_v51 = vld [vmem:[%s4708_s0 + $0x3] ss:$0 sm:$0xff]  ;;  %v3265_v54 = vld [vmem:[%s4708_s0 + $0x4] ss:$0 sm:$0xff]  ;;  %v269_v58 = vsel %vm265_vm8, %v3510_v57, 0.0  ;;  %v272_v60 = vmul.f32 %v3517_v59, %v3517_v59  ;;  %v3449_v34 = vmov 3  }
   0x6   :  { %v3266_v62 = vld [vmem:[%s4708_s0 + $0x5] ss:$0 sm:$0xff] }
   0x7   :  { %152 = vmatpush.msra.mxu1 %v32_v35  ;;  %v274_v61 = vsel %vm265_vm8, %v272_v60, 0.0 }
   0x9   :  { %153 = vmatpush.msra.mxu1 %v31_v37 }
   0xb   :  { %57 = vadd.xlane.f32.xlu0 %v56_v3 }
  0x13   :  { %275 = vadd.xlane.f32.xlu0 %v274_v61 }
  0x76   :  { %v54_v6 = vpop.xlane.xlu0 %53 }
  0x77   :  { %v59_v7 = vmul.f32 0.0625, %v54_v6 }
  0x79   :  { %v61_v9 = vmul.f32 %v59_v7, %v59_v7  ;;  %v63_v19 = vsub.f32 %v48_v0, %v59_v7  ;;  %v3447_v0 = vmov 0   ;;  %v266_v7 = vsel %vm265_vm8, %v3517_v59, 0.0 }
  0x7a   :  { %3182 = vset.pattern.permute.xlu0 %v3447_v0 }
  0x7b   :  { %316 = vperm.xlu0 %3182, %v3517_v59  }
  0x7e   :  { %v58_v8 = vpop.xlane.xlu0 %57 }
  0x7f   :  { %v60_v10 = vmul.f32 0.0625, %v58_v8  ;;  %v273_v8 = vmul.f32 %v3510_v57, %v3510_v57 }
  0x81   :  { %v62_v11 = vsub.f32 %v60_v10, %v61_v9  ;;  %v277_v9 = vsel %vm265_vm8, %v273_v8, 0.0  ;;  %v38_v10 = vld [vmem:[%s4708_s0 + $0x68] sm:$0xff] }
  0x82   :  { %202 = vmatpush.msra.mxu2 %v38_v10  ;;  %3174 = vmatpush.msra.mxu3 %v38_v10 }
  0x83   :  { %v64_v12 = vadd.f32 1e-05, %v62_v11  ;;  %3189 = vset.pattern.permute.xlu0 %v3449_v34 }
  0x85   :  { %3277 = vrsqrt.f32 %v64_v12  ;;  %vm71_vm2 = vweird.f32 %v64_v12 }
  0x8b   :  { %v3278_v13 = vpop.eup %3277 }
  0x8c   :  { %v66_v14 = vmul.f32 %v3278_v13, %v64_v12  ;;  %vm72_vm1 = vweird.f32 %v3278_v13  ;;  %v37_v12 = vld [vmem:[%s4708_s0 + $0x60] sm:$0xff] }
  0x8d   :  { %vm73_vm3 = vmor %vm71_vm2, %vm72_vm1  ;;  %203 = vmatpush.msra.mxu2 %v37_v12  ;;  %3175 = vmatpush.msra.mxu3 %v37_v12 }
  0x8e   :  { %v67_v15 = vmul.f32 %v3278_v13, %v66_v14  ;;  %v35_v14 = vld [vmem:[%s4708_s0 + $0x50] sm:$0xff] }
  0x90   :  { %v68_v16 = vmul.f32 0.5, %v67_v15 }
  0x92   :  { %v69_v17 = vsub.f32 1.5, %v68_v16 }
  0x94   :  { %v70_v18 = vmul.f32 %v3278_v13, %v69_v17 }
  0x96   :  { %v74_v21 = vsel %vm73_vm3, %v3278_v13, %v70_v18  ;;  %v36_v13 = vld [vmem:[%s4708_s0 + $0x58] sm:$0xff] }
  0x97   :  { %v75_v22 = vmul.f32 %v74_v21, %v63_v19  ;;  %204 = vmatpush.msra.mxu2 %v36_v13  ;;  %3176 = vmatpush.msra.mxu3 %v36_v13 }
  0x99   :  { %v77_v24 = vmul.f32 %v3261_v20, %v75_v22  ;;  %205 = vmatpush.msra.mxu2 %v35_v14  ;;  %3177 = vmatpush.msra.mxu3 %v35_v14  ;;  %v3448_v20 = vmov 2  }
  0x9a   :  { %3184 = vset.pattern.permute.xlu2 %v3448_v20 }
  0x9b   :  { %v79_v25 = vadd.f32 %v3262_v23, %v77_v24 }
  0x9d   :  { %3128 = vmatmul.msk.f32.vlgmr.msra.gmra.mxu0 %vm51_vm0, %v79_v25 }
 0x11a   :  { %v101_v27 = vpop.f32.mrf.mxu0 }
 0x11b   :  { %v102_v28 = vadd.f32 %v3263_v26, %v101_v27 }
 0x11d   :  { %v104_v29 = vmax.f32 %v102_v28, 0.0 }
 0x11f   :  { %v106_v30 = vsel %vm105_vm4, %v104_v29, 0.0  ;;  %v109_v31 = vmul.f32 %v104_v29, %v104_v29 }
 0x120   :  { %107 = vadd.xlane.f32.xlu1 %v106_v30 }
 0x121   :  { %v110_v32 = vsel %vm105_vm4, %v109_v31, 0.0 }
 0x128   :  { %111 = vadd.xlane.f32.xlu1 %v110_v32  ;;  %v3268_v32 = vld [vmem:[%s4708_s0 + $0x7] ss:$0 sm:$0xff] }
 0x130   :  { %270 = vadd.xlane.f32.xlu1 %v269_v58 }
 0x149   :  { %329 = vperm.xlu1 %3183, %v3517_v59  }
 0x151   :  { %3186 = vset.pattern.permute.xlu1 %v3447_v0 }
 0x152   :  { %321 = vperm.xlu1 %3186, %v3510_v57  }
 0x15a   :  { %3188 = vset.pattern.permute.xlu1 %v3448_v20 }
 0x193   :  { %v108_v36 = vpop.xlane.xlu1 %107 }
 0x194   :  { %v113_v38 = vmul.f32 0.03125, %v108_v36 }
 0x196   :  { %v115_v40 = vmul.f32 %v113_v38, %v113_v38  ;;  %v117_v50 = vsub.f32 %v104_v29, %v113_v38  ;;  %v3267_v29 = vld [vmem:[%s4708_s0 + $0x6] ss:$0 sm:$0xff] }
 0x19b   :  { %v112_v39 = vpop.xlane.xlu1 %111 }
 0x19c   :  { %v114_v41 = vmul.f32 0.03125, %v112_v39 }
 0x19e   :  { %v116_v42 = vsub.f32 %v114_v41, %v115_v40  ;;  %v3572_v41 = vpop.xlane.xlu0 %275 }
 0x1a0   :  { %v118_v43 = vadd.f32 1e-05, %v116_v42 }
 0x1a2   :  { %3279 = vrsqrt.f32 %v118_v43  ;;  %vm125_vm6 = vweird.f32 %v118_v43 }
 0x1a3   :  { %v271_v39 = vpop.xlane.xlu1 %270 }
 0x1a8   :  { %v3280_v44 = vpop.eup %3279 }
 0x1a9   :  { %v120_v45 = vmul.f32 %v3280_v44, %v118_v43  ;;  %vm126_vm5 = vweird.f32 %v3280_v44 }
 0x1aa   :  { %vm127_vm7 = vmor %vm125_vm6, %vm126_vm5 }
 0x1ab   :  { %v121_v46 = vmul.f32 %v3280_v44, %v120_v45 }
 0x1ad   :  { %v122_v47 = vmul.f32 0.5, %v121_v46 }
 0x1af   :  { %v123_v48 = vsub.f32 1.5, %v122_v47 }
 0x1b1   :  { %v124_v49 = vmul.f32 %v3280_v44, %v123_v48 }
 0x1b3   :  { %v128_v52 = vsel %vm127_vm7, %v3280_v44, %v124_v49  ;;  %v317_v44 = vpop.permute.xlu0 %316 }
 0x1b4   :  { %v129_v53 = vmul.f32 %v128_v52, %v117_v50 }
 0x1b6   :  { %v131_v55 = vmul.f32 %v3264_v51, %v129_v53 }
 0x1b8   :  { %v133_v56 = vadd.f32 %v3265_v54, %v131_v55 }
 0x1ba   :  { %3129 = vmatmul.msk.f32.vlgmr.msra.gmra.mxu1 %vm105_vm4, %v133_v56 }
 0x1bb   :  { %v330_v42 = vpop.permute.xlu1 %329 }
 0x1c4   :  { %v322_v45 = vpop.permute.xlu1 %321 }
 0x237   :  { %v155_v1 = vpop.f32.mrf.mxu1 }
 0x238   :  { %v156_v2 = vadd.f32 %v3266_v62, %v155_v1 }
 0x23a   :  { %v158_v3 = vmax.f32 %v156_v2, 0.0  ;;  %v3592_v2 = vld [vmem:[%s4708_s0 + $0x18] sm:$0x3] }
 0x23b   :  { %v257_v8 = vperm.slane %v3592_v2, 1 }
 0x23c   :  { %v159_v4 = vsel %vm105_vm4, %v158_v3, 0.0  ;;  %v162_v5 = vmul.f32 %v158_v3, %v158_v3 }
 0x23d   :  { %160 = vadd.xlane.f32.xlu2 %v159_v4 }
 0x23e   :  { %v163_v6 = vsel %vm105_vm4, %v162_v5, 0.0  ;;  %v39_v5 = vld [vmem:[%s4708_s0 + $0x70] sm:$0xf] }
 0x23f   :  { %v3600_v10 = vperm.slane %v39_v5, 1 }
 0x245   :  { %164 = vadd.xlane.f32.xlu2 %v163_v6 }
 0x24d   :  { %267 = vadd.xlane.f32.xlu2 %v266_v7  ;;  %v3597_v7 = vperm.slane %v39_v5, 0 }
 0x24f   :  { %v324_v13 = vmul.f32 %v317_v44, %v3597_v7 }
 0x255   :  { %278 = vadd.xlane.f32.xlu2 %v277_v9 }
 0x26d   :  { %341 = vperm.xlu2 %3184, %v3517_v59  }
 0x275   :  { %3185 = vset.pattern.permute.xlu2 %v3449_v34 }
 0x276   :  { %353 = vperm.xlu2 %3185, %v3517_v59  }
 0x27e   :  { %3187 = vset.pattern.permute.xlu2 %v3446_v63 }
 0x27f   :  { %333 = vperm.xlu2 %3187, %v3510_v57  }
 0x2b0   :  { %v161_v11 = vpop.xlane.xlu2 %160 }
 0x2b1   :  { %v166_v15 = vmul.f32 0.03125, %v161_v11 }
 0x2b3   :  { %v168_v17 = vmul.f32 %v166_v15, %v166_v15  ;;  %v170_v28 = vsub.f32 %v158_v3, %v166_v15  ;;  %v3608_v15 = vperm.slane %v39_v5, 2 }
 0x2b8   :  { %v165_v16 = vpop.xlane.xlu2 %164 }
 0x2b9   :  { %v167_v18 = vmul.f32 0.03125, %v165_v16 }
 0x2bb   :  { %v169_v19 = vsub.f32 %v167_v18, %v168_v17 }
 0x2bd   :  { %v171_v21 = vadd.f32 1e-05, %v169_v19  ;;  %v336_v19 = vmul.f32 %v330_v42, %v3600_v10 }
 0x2bf   :  { %3281 = vrsqrt.f32 %v171_v21  ;;  %vm178_vm10 = vweird.f32 %v171_v21 }
 0x2c0   :  { %v268_v40 = vpop.xlane.xlu2 %267 }
 0x2c5   :  { %v3282_v22 = vpop.eup %3281 }
 0x2c6   :  { %v173_v23 = vmul.f32 %v3282_v22, %v171_v21  ;;  %vm179_vm9 = vweird.f32 %v3282_v22 }
 0x2c7   :  { %vm180_vm11 = vmor %vm178_vm10, %vm179_vm9 }
 0x2c8   :  { %v174_v24 = vmul.f32 %v3282_v22, %v173_v23  ;;  %v3574_v43 = vpop.xlane.xlu2 %278  ;;  %v325_v23 = vmul.f32 %v322_v45, %v3597_v7 }
 0x2ca   :  { %v175_v25 = vmul.f32 0.5, %v174_v24  ;;  %v3613_v24 = vperm.slane %v39_v5, 3 }
 0x2cc   :  { %v176_v26 = vsub.f32 1.5, %v175_v25 }
 0x2ce   :  { %v177_v27 = vmul.f32 %v3282_v22, %v176_v26 }
 0x2d0   :  { %v181_v30 = vsel %vm180_vm11, %v3282_v22, %v177_v27  ;;  %v342_v46 = vpop.permute.xlu2 %341 }
 0x2d1   :  { %v182_v31 = vmul.f32 %v181_v30, %v170_v28  ;;  %v348_v26 = vmul.f32 %v342_v46, %v3608_v15 }
 0x2d3   :  { %v184_v33 = vmul.f32 %v3267_v29, %v182_v31 }
 0x2d5   :  { %v186_v35 = vadd.f32 %v3268_v32, %v184_v33 }
 0x2d7   :  { %3130 = vmatmul.msk.f32.vlgmr.msra.gmra.mxu2 %vm105_vm4, %v186_v35  ;;  %3131 = vmatmul.msk.f32.vlgmr.msra.gmra.mxu3 %vm105_vm4, %v186_v35  ;;  %v213_v36 = vsel %vm105_vm4, %v186_v35, 0.0  ;;  %v216_v37 = vmul.f32 %v186_v35, %v186_v35 }
 0x2d8   :  { %214 = vadd.xlane.f32.xlu0 %v213_v36  ;;  %v354_v1 = vpop.permute.xlu2 %353  ;;  %v3621_v36 = vld [vmem:[%s4708_s0 + $0x9] ss:$0 sm:$0xff] }
 0x2d9   :  { %v217_v38 = vsel %vm105_vm4, %v216_v37, 0.0  ;;  %v360_v35 = vmul.f32 %v354_v1, %v3613_v24 }
 0x2da   :  { %218 = vadd.xlane.f32.xlu1 %v217_v38 }
 0x2e0   :  { %v334_v21 = vpop.permute.xlu2 %333 }
 0x2e1   :  { %v337_v30 = vmul.f32 %v334_v21, %v3600_v10  ;;  %v3652_v21 = vld [vmem:[%s4708_s0 + $0x90] sm:$0xff] }
 0x2e2   :  { %449 = vmatpush.msrb.mxu3 %v3652_v21  ;;  %736 = vmatpush.msrb.mxu1 %v3652_v21 }
 0x2ec   :  { %357 = vperm.xlu0 %3189, %v3510_v57  }
 0x2f3   :  { %345 = vperm.xlu1 %3188, %v3510_v57  }
 0x2f4   :  { %3191 = vset.pattern.permute.xlu0 %v3448_v20 }
 0x2fb   :  { %3190 = vset.pattern.permute.xlu1 %v3447_v0 }
 0x34b   :  { %v3576_v47 = vpop.xlane.xlu0 %214 }
 0x34c   :  { %v260_v48 = vadd.f32 12.601303, %v3576_v47 }
 0x34d   :  { %v219_v49 = vpop.xlane.xlu1 %218 }
 0x34e   :  { %v3579_v50 = vadd.f32 16.0, %v219_v49  ;;  %v280_v51 = vadd.f32 %v268_v40, %v260_v48  ;;  %v281_v52 = vadd.f32 %v271_v39, %v260_v48 }
 0x350   :  { %v3581_v53 = vmul.f32 0.014705882, %v281_v52  ;;  %v285_v54 = vadd.f32 %v3574_v43, %v3579_v50  ;;  %v282_v55 = vmul.f32 0.014705882, %v280_v51  ;;  %v284_v56 = vadd.f32 %v3572_v41, %v3579_v50 }
 0x352   :  { %v287_v58 = vmul.f32 0.014705882, %v285_v54  ;;  %v289_v60 = vmul.f32 %v3581_v53, %v3581_v53  ;;  %v286_v61 = vmul.f32 0.014705882, %v284_v56  ;;  %v288_v62 = vmul.f32 %v282_v55, %v282_v55 }
 0x353   :  { %v365_v51 = vmul.f32 %v3621_v36, %v282_v55 }
 0x354   :  { %v291_v3 = vsub.f32 %v287_v58, %v289_v60  ;;  %v290_v4 = vsub.f32 %v286_v61, %v288_v62  ;;  %v3629_v60 = vld [vmem:[%s4708_s0 + $0x8] ss:$0 sm:$0xff]  ;;  %v366_v62 = vmul.f32 %v3621_v36, %v3581_v53 }
 0x356   :  { %v293_v6 = vadd.f32 1e-05, %v291_v3  ;;  %v292_v9 = vadd.f32 1e-05, %v290_v4 }
 0x358   :  { %3283 = vrsqrt.f32 %v293_v6  ;;  %vm300_vm13 = vweird.f32 %v292_v9  ;;  %vm310_vm0 = vweird.f32 %v293_v6 }
 0x359   :  { %3285 = vrsqrt.f32 %v292_v9 }
 0x35a   :  { %v3602_v11 = vpop.f32.mrf.mxu2  ;;  %v3604_v12 = vpop.f32.mrf.mxu3 }
 0x35b   :  { %v258_v14 = vadd.f32 %v257_v8, %v3602_v11  ;;  %v259_v16 = vadd.f32 %v257_v8, %v3604_v12 }
 0x35d   :  { %v326_v17 = vadd.f32 %v324_v13, %v258_v14  ;;  %v327_v29 = vadd.f32 %v325_v23, %v259_v16  ;;  %v3665_v23 = vld [vmem:[%s4708_s0 + $0x80] sm:$0xff] }
 0x35e   :  { %v3284_v18 = vpop.eup %3283  ;;  %v358_v37 = vpop.permute.xlu0 %357 }
 0x35f   :  { %v3286_v22 = vpop.eup %3285  ;;  %v305_v25 = vmul.f32 %v3284_v18, %v293_v6  ;;  %v338_v28 = vadd.f32 %v336_v19, %v326_v17  ;;  %v339_v40 = vadd.f32 %v337_v30, %v327_v29  ;;  %v361_v48 = vmul.f32 %v358_v37, %v3613_v24 }
 0x360   :  { %v295_v27 = vmul.f32 %v3286_v22, %v292_v9  ;;  %vm301_vm12 = vweird.f32 %v3286_v22  ;;  %vm311_vm14 = vweird.f32 %v3284_v18 }
 0x361   :  { %v306_v31 = vmul.f32 %v3284_v18, %v305_v25  ;;  %v350_v33 = vadd.f32 %v348_v26, %v338_v28  ;;  %vm302_vm15 = vmor %vm300_vm13, %vm301_vm12  ;;  %v3671_v25 = vld [vmem:[%s4708_s0 + $0x78] sm:$0xff] }
 0x362   :  { %v296_v32 = vmul.f32 %v3286_v22, %v295_v27  ;;  %vm312_vm1 = vmor %vm310_vm0, %vm311_vm14 }
 0x363   :  { %v307_v38 = vmul.f32 0.5, %v306_v31  ;;  %v362_v45 = vadd.f32 %v360_v35, %v350_v33 }
 0x364   :  { %v297_v39 = vmul.f32 0.5, %v296_v32 }
 0x365   :  { %v346_v42 = vpop.permute.xlu1 %345  ;;  %v308_v44 = vsub.f32 1.5, %v307_v38  ;;  %v367_v58 = vsub.f32 %v362_v45, %v365_v51 }
 0x366   :  { %v349_v46 = vmul.f32 %v346_v42, %v3608_v15  ;;  %v298_v49 = vsub.f32 1.5, %v297_v39 }
 0x367   :  { %v309_v56 = vmul.f32 %v3284_v18, %v308_v44 }
 0x368   :  { %v351_v52 = vadd.f32 %v349_v46, %v339_v40  ;;  %v299_v54 = vmul.f32 %v3286_v22, %v298_v49 }
 0x369   :  { %v313_v4 = vsel %vm312_vm1, %v3284_v18, %v309_v56 }
 0x36a   :  { %v363_v61 = vadd.f32 %v361_v48, %v351_v52  ;;  %v303_v1 = vsel %vm302_vm15, %v3286_v22, %v299_v54  ;;  %v3659_v22 = vld [vmem:[%s4708_s0 + $0x88] sm:$0xff] }
 0x36b   :  { %v369_v3 = vmul.f32 %v367_v58, %v303_v1  ;;  %450 = vmatpush.msrb.mxu3 %v3659_v22  ;;  %737 = vmatpush.msrb.mxu1 %v3659_v22 }
 0x36c   :  { %v368_v55 = vsub.f32 %v363_v61, %v366_v62  ;;  %v3689_v61 = vld [vmem:[%s4708_s0 + $0xa] ss:$0 sm:$0xff] }
 0x36d   :  { %v372_v5 = vadd.f32 %v3629_v60, %v369_v3  ;;  %451 = vmatpush.msrb.mxu3 %v3665_v23  ;;  %738 = vmatpush.msrb.mxu1 %v3665_v23 }
 0x36e   :  { %v370_v8 = vmul.f32 %v368_v55, %v313_v4  ;;  %v3694_v55 = vld [vmem:[%s4708_s0 + $0xb] ss:$0 sm:$0xff] }
 0x36f   :  { %v3634_v9 = vmax.f32 %v372_v5, 0.0  ;;  %452 = vmatpush.msrb.mxu3 %v3671_v25  ;;  %739 = vmatpush.msrb.mxu1 %v3671_v25 }
 0x370   :  { %v373_v13 = vadd.f32 %v3629_v60, %v370_v8 }
 0x371   :  { %v376_v14 = vsel %vm105_vm4, %v3634_v9, 0.0  ;;  %v382_v16 = vmul.f32 %v3634_v9, %v3634_v9  ;;  %1020 = vmatpush.msra.mxu3 %v3652_v21  ;;  %1304 = vmatpush.msra.mxu1 %v3652_v21 }
 0x372   :  { %377 = vadd.xlane.f32.xlu2 %v376_v14  ;;  %v3641_v53 = vmax.f32 %v373_v13, 0.0 }
 0x373   :  { %v384_v6 = vsel %vm105_vm4, %v382_v16, 0.0  ;;  %1021 = vmatpush.msra.mxu3 %v3659_v22  ;;  %1305 = vmatpush.msra.mxu1 %v3659_v22 }
 0x374   :  { %385 = vadd.xlane.f32.xlu1 %v384_v6  ;;  %v379_v17 = vsel %vm105_vm4, %v3641_v53, 0.0  ;;  %v383_v18 = vmul.f32 %v3641_v53, %v3641_v53 }
 0x375   :  { %380 = vadd.xlane.f32.xlu0 %v379_v17  ;;  %1022 = vmatpush.msra.mxu3 %v3665_v23 }
 0x376   :  { %v387_v19 = vsel %vm105_vm4, %v383_v18, 0.0  ;;  %1306 = vmatpush.msra.mxu1 %v3665_v23 }
 0x377   :  { %1023 = vmatpush.msra.mxu3 %v3671_v25 }
 0x378   :  { %1307 = vmatpush.msra.mxu1 %v3671_v25 }
 0x37a   :  { %388 = vadd.xlane.f32.xlu2 %v387_v19 }
 0x3e5   :  { %v378_v26 = vpop.xlane.xlu2 %377 }
 0x3e6   :  { %v390_v27 = vmul.f32 0.03125, %v378_v26 }
 0x3e7   :  { %v386_v28 = vpop.xlane.xlu1 %385 }
 0x3e8   :  { %v394_v29 = vmul.f32 %v390_v27, %v390_v27  ;;  %v392_v30 = vmul.f32 0.03125, %v386_v28  ;;  %v381_v31 = vpop.xlane.xlu0 %380  ;;  %v398_v58 = vsub.f32 %v3634_v9, %v390_v27 }
 0x3e9   :  { %v391_v33 = vmul.f32 0.03125, %v381_v31 }
 0x3ea   :  { %v396_v32 = vsub.f32 %v392_v30, %v394_v29 }
 0x3eb   :  { %v395_v38 = vmul.f32 %v391_v33, %v391_v33  ;;  %v399_v9 = vsub.f32 %v3641_v53, %v391_v33  ;;  %v3710_v53 = vld [vmem:[%s4708_s0 + $0xc] ss:$0 sm:$0xff] }
 0x3ec   :  { %v400_v35 = vadd.f32 1e-05, %v396_v32 }
 0x3ed   :  { %v389_v37 = vpop.xlane.xlu2 %388 }
 0x3ee   :  { %3287 = vrsqrt.f32 %v400_v35  ;;  %v393_v39 = vmul.f32 0.03125, %v389_v37  ;;  %vm408_vm3 = vweird.f32 %v400_v35 }
 0x3f0   :  { %v397_v40 = vsub.f32 %v393_v39, %v395_v38  ;;  %v3731_v38 = vld [vmem:[%s4708_s0 + $0xb0] sm:$0xff]  ;;  %v3738_v39 = vld [vmem:[%s4708_s0 + $0xa8] sm:$0xff] }
 0x3f1   :  { %535 = vmatpush.msrb.mxu0 %v3731_v38  ;;  %819 = vmatpush.msrb.mxu2 %v3731_v38 }
 0x3f2   :  { %v401_v42 = vadd.f32 1e-05, %v397_v40  ;;  %v3745_v40 = vld [vmem:[%s4708_s0 + $0xa0] sm:$0xff] }
 0x3f3   :  { %536 = vmatpush.msrb.mxu0 %v3738_v39  ;;  %820 = vmatpush.msrb.mxu2 %v3738_v39 }
 0x3f4   :  { %v3288_v44 = vpop.eup %3287  ;;  %3289 = vrsqrt.f32 %v401_v42  ;;  %vm418_vm7 = vweird.f32 %v401_v42 }
 0x3f5   :  { %v403_v45 = vmul.f32 %v3288_v44, %v400_v35  ;;  %vm409_vm2 = vweird.f32 %v3288_v44  ;;  %537 = vmatpush.msrb.mxu0 %v3745_v40  ;;  %821 = vmatpush.msrb.mxu2 %v3745_v40 }
 0x3f6   :  { %vm410_vm5 = vmor %vm408_vm3, %vm409_vm2 }
 0x3f7   :  { %v404_v46 = vmul.f32 %v3288_v44, %v403_v45 }
 0x3f9   :  { %v405_v48 = vmul.f32 0.5, %v404_v46 }
 0x3fa   :  { %v3290_v49 = vpop.eup %3289 }
 0x3fb   :  { %v406_v51 = vsub.f32 1.5, %v405_v48  ;;  %v413_v52 = vmul.f32 %v3290_v49, %v401_v42  ;;  %vm419_vm6 = vweird.f32 %v3290_v49  ;;  %v3751_v42 = vld [vmem:[%s4708_s0 + $0x98] sm:$0xff] }
 0x3fc   :  { %vm420_vm9 = vmor %vm418_vm7, %vm419_vm6  ;;  %538 = vmatpush.msrb.mxu0 %v3751_v42  ;;  %822 = vmatpush.msrb.mxu2 %v3751_v42 }
 0x3fd   :  { %v407_v54 = vmul.f32 %v3288_v44, %v406_v51  ;;  %v414_v56 = vmul.f32 %v3290_v49, %v413_v52 }
 0x3fe   :  { %1103 = vmatpush.msra.mxu0 %v3731_v38  ;;  %1387 = vmatpush.msra.mxu2 %v3731_v38 }
 0x3ff   :  { %v411_v62 = vsel %vm410_vm5, %v3288_v44, %v407_v54  ;;  %v415_v1 = vmul.f32 0.5, %v414_v56 }
 0x400   :  { %v422_v3 = vmul.f32 %v411_v62, %v398_v58  ;;  %1104 = vmatpush.msra.mxu0 %v3738_v39  ;;  %1388 = vmatpush.msra.mxu2 %v3738_v39 }
 0x401   :  { %v416_v4 = vsub.f32 1.5, %v415_v1 }
 0x402   :  { %v425_v5 = vmul.f32 %v3689_v61, %v422_v3  ;;  %1105 = vmatpush.msra.mxu0 %v3745_v40  ;;  %1389 = vmatpush.msra.mxu2 %v3745_v40 }
 0x403   :  { %v417_v8 = vmul.f32 %v3290_v49, %v416_v4 }
 0x404   :  { %v428_v13 = vadd.f32 %v3694_v55, %v425_v5  ;;  %1106 = vmatpush.msra.mxu0 %v3751_v42  ;;  %1390 = vmatpush.msra.mxu2 %v3751_v42 }
 0x405   :  { %v421_v14 = vsel %vm420_vm9, %v3290_v49, %v417_v8 }
 0x406   :  { %3132 = vmatmul.msk.f32.vlgmr.msrb.gmra.mxu3 %vm105_vm4, %v428_v13  ;;  %v423_v16 = vmul.f32 %v421_v14, %v399_v9 }
 0x407   :  { %1588 = vmatpush.msrb.mxu3 %v3652_v21 }
 0x408   :  { %v426_v6 = vmul.f32 %v3689_v61, %v423_v16 }
 0x409   :  { %1589 = vmatpush.msrb.mxu3 %v3659_v22 }
 0x40a   :  { %v429_v17 = vadd.f32 %v3694_v55, %v426_v6 }
 0x40b   :  { %1590 = vmatpush.msrb.mxu3 %v3665_v23 }
 0x40d   :  { %1591 = vmatpush.msrb.mxu3 %v3671_v25 }
 0x40e   :  { %3133 = vmatmul.msk.f32.gmra.mxu3 %vm105_vm4, %v429_v17 }
 0x489   :  { %v454_v18 = vpop.f32.mrf.mxu3 }
 0x48a   :  { %v455_v19 = vadd.f32 %v3710_v53, %v454_v18 }
 0x48c   :  { %v3713_v26 = vmax.f32 %v455_v19, 0.0  ;;  %v3768_v19 = vld [vmem:[%s4708_s0 + $0xd] ss:$0 sm:$0xff] }
 0x48e   :  { %v462_v27 = vsel %vm105_vm4, %v3713_v26, 0.0  ;;  %v468_v28 = vmul.f32 %v3713_v26, %v3713_v26 }
 0x48f   :  { %463 = vadd.xlane.f32.xlu1 %v462_v27 }
 0x490   :  { %v470_v29 = vsel %vm105_vm4, %v468_v28, 0.0 }
 0x491   :  { %v457_v30 = vpop.f32.mrf.mxu3  ;;  %471 = vadd.xlane.f32.xlu2 %v470_v29 }
 0x492   :  { %v458_v31 = vadd.f32 %v3710_v53, %v457_v30  ;;  %v3773_v30 = vld [vmem:[%s4708_s0 + $0xe] ss:$0 sm:$0xff] }
 0x494   :  { %v3721_v32 = vmax.f32 %v458_v31, 0.0 }
 0x496   :  { %v465_v33 = vsel %vm105_vm4, %v3721_v32, 0.0  ;;  %v469_v35 = vmul.f32 %v3721_v32, %v3721_v32 }
 0x497   :  { %466 = vadd.xlane.f32.xlu1 %v465_v33 }
 0x498   :  { %v473_v37 = vsel %vm105_vm4, %v469_v35, 0.0 }
 0x499   :  { %474 = vadd.xlane.f32.xlu2 %v473_v37 }
 0x502   :  { %v464_v44 = vpop.xlane.xlu1 %463 }
 0x503   :  { %v476_v45 = vmul.f32 0.03125, %v464_v44 }
 0x504   :  { %v472_v46 = vpop.xlane.xlu2 %471 }
 0x505   :  { %v480_v48 = vmul.f32 %v476_v45, %v476_v45  ;;  %v478_v49 = vmul.f32 0.03125, %v472_v46  ;;  %v484_v18 = vsub.f32 %v3713_v26, %v476_v45 }
 0x507   :  { %v482_v51 = vsub.f32 %v478_v49, %v480_v48 }
 0x509   :  { %v486_v52 = vadd.f32 1e-05, %v482_v51 }
 0x50a   :  { %v467_v54 = vpop.xlane.xlu1 %466 }
 0x50b   :  { %3291 = vrsqrt.f32 %v486_v52  ;;  %v477_v56 = vmul.f32 0.03125, %v467_v54  ;;  %vm494_vm11 = vweird.f32 %v486_v52 }
 0x50c   :  { %v475_v58 = vpop.xlane.xlu2 %474 }
 0x50d   :  { %v481_v62 = vmul.f32 %v477_v56, %v477_v56  ;;  %v479_v1 = vmul.f32 0.03125, %v475_v58  ;;  %v485_v44 = vsub.f32 %v3721_v32, %v477_v56  ;;  %v3789_v32 = vld [vmem:[%s4708_s0 + $0xf] ss:$0 sm:$0xff] }
 0x50f   :  { %v483_v3 = vsub.f32 %v479_v1, %v481_v62 }
 0x511   :  { %v3292_v4 = vpop.eup %3291  ;;  %v487_v5 = vadd.f32 1e-05, %v483_v3 }
 0x512   :  { %v489_v8 = vmul.f32 %v3292_v4, %v486_v52  ;;  %vm495_vm10 = vweird.f32 %v3292_v4 }
 0x513   :  { %3293 = vrsqrt.f32 %v487_v5  ;;  %vm496_vm12 = vmor %vm494_vm11, %vm495_vm10  ;;  %vm504_vm14 = vweird.f32 %v487_v5 }
 0x514   :  { %v490_v9 = vmul.f32 %v3292_v4, %v489_v8 }
 0x516   :  { %v491_v13 = vmul.f32 0.5, %v490_v9 }
 0x518   :  { %v492_v14 = vsub.f32 1.5, %v491_v13 }
 0x519   :  { %v3294_v16 = vpop.eup %3293 }
 0x51a   :  { %v493_v6 = vmul.f32 %v3292_v4, %v492_v14  ;;  %v499_v17 = vmul.f32 %v3294_v16, %v487_v5  ;;  %vm505_vm13 = vweird.f32 %v3294_v16 }
 0x51b   :  { %vm506_vm15 = vmor %vm504_vm14, %vm505_vm13 }
 0x51c   :  { %v497_v27 = vsel %vm496_vm12, %v3292_v4, %v493_v6  ;;  %v500_v28 = vmul.f32 %v3294_v16, %v499_v17 }
 0x51d   :  { %v508_v29 = vmul.f32 %v497_v27, %v484_v18 }
 0x51e   :  { %v501_v31 = vmul.f32 0.5, %v500_v28 }
 0x51f   :  { %v511_v33 = vmul.f32 %v3768_v19, %v508_v29 }
 0x520   :  { %v502_v35 = vsub.f32 1.5, %v501_v31 }
 0x521   :  { %v514_v26 = vadd.f32 %v3773_v30, %v511_v33 }
 0x522   :  { %v503_v37 = vmul.f32 %v3294_v16, %v502_v35  ;;  %v256_v35 = vadd.f32 13.92301, %v3576_v47 }
 0x523   :  { %3134 = vmatmul.msk.f32.vlgmr.msrb.gmra.mxu0 %vm105_vm4, %v514_v26 }
 0x524   :  { %v507_v45 = vsel %vm506_vm15, %v3294_v16, %v503_v37  ;;  %1671 = vmatpush.msrb.mxu0 %v3731_v38 }
 0x525   :  { %v509_v46 = vmul.f32 %v507_v45, %v485_v44 }
 0x526   :  { %1672 = vmatpush.msrb.mxu0 %v3738_v39 }
 0x527   :  { %v512_v48 = vmul.f32 %v3768_v19, %v509_v46 }
 0x528   :  { %1673 = vmatpush.msrb.mxu0 %v3745_v40 }
 0x529   :  { %v515_v49 = vadd.f32 %v3773_v30, %v512_v48 }
 0x52a   :  { %1674 = vmatpush.msrb.mxu0 %v3751_v42 }
 0x52b   :  { %3135 = vmatmul.msk.f32.gmra.mxu0 %vm105_vm4, %v515_v49 }
 0x5a0   :  { %v540_v51 = vpop.f32.mrf.mxu0 }
 0x5a1   :  { %v541_v52 = vadd.f32 %v3789_v32, %v540_v51 }
 0x5a3   :  { %v546_v54 = vmul.f32 0.064462304, %v541_v52 }
 0x5a5   :  { %v548_v58 = vsub.f32 %v3517_v59, %v546_v54 }
 0x5a7   :  { %v550_v3 = vmul.f32 1.0101526, %v548_v58 }
 0x5a8   :  { %v543_v56 = vpop.f32.mrf.mxu0 }
 0x5a9   :  { %v544_v62 = vadd.f32 %v3789_v32, %v543_v56  ;;  %v552_v8 = vmul.f32 0.9, %v550_v3  ;;  %v555_v14 = vmul.f32 0.1, %v550_v3 }
 0x5ab   :  { %v547_v1 = vmul.f32 0.064462304, %v544_v62 }
 0x5ad   :  { %v549_v4 = vsub.f32 %v3510_v57, %v547_v1 }
 0x5af   :  { %v551_v5 = vmul.f32 1.0101526, %v549_v4 }
 0x5b1   :  { %v553_v9 = vmul.f32 0.9, %v551_v5  ;;  %v554_v13 = vmul.f32 0.1, %v551_v5  ;;  %v253_v5 = vperm.slane %v3592_v2, 0 }
 0x5b3   :  { %v3795_v16 = vadd.f32 %v554_v13, %v552_v8  ;;  %v3797_v6 = vadd.f32 %v555_v14, %v553_v9 }
 0x5b5   :  { %621 = vperm.xlu2 %3187, %v3795_v16   ;;  %608 = vperm.xlu1 %3190, %v3795_v16   ;;  %v558_v59 = vsel %vm265_vm8, %v3795_v16, 0.0  ;;  %v565_v57 = vmul.f32 %v3797_v6, %v3797_v6  ;;  %v564_v18 = vmul.f32 %v3795_v16, %v3795_v16  ;;  %v561_v27 = vsel %vm265_vm8, %v3797_v6, 0.0 }
 0x5b6   :  { %559 = vadd.xlane.f32.xlu0 %v558_v59  ;;  %v254_v59 = vadd.f32 %v253_v5, %v3602_v11 }
 0x5b7   :  { %v569_v17 = vsel %vm265_vm8, %v565_v57, 0.0  ;;  %v566_v28 = vsel %vm265_vm8, %v564_v18, 0.0 }
 0x5bd   :  { %3193 = vset.pattern.permute.xlu2 %v3447_v0  ;;  %3192 = vset.pattern.permute.xlu1 %v3449_v34 }
 0x5be   :  { %570 = vadd.xlane.f32.xlu0 %v569_v17 }
 0x5d2   :  { %633 = vperm.xlu0 %3191, %v3795_v16  }
 0x5da   :  { %3198 = vset.pattern.permute.xlu0 %v3446_v63 }
 0x5de   :  { %562 = vadd.xlane.f32.xlu2 %v561_v27 }
 0x5df   :  { %567 = vadd.xlane.f32.xlu1 %v566_v28 }
 0x5f6   :  { %613 = vperm.xlu2 %3193, %v3797_v6  }
 0x5f8   :  { %645 = vperm.xlu1 %3192, %v3795_v16  }
 0x5fe   :  { %3195 = vset.pattern.permute.xlu2 %v3448_v20 }
 0x5ff   :  { %637 = vperm.xlu2 %3195, %v3797_v6  }
 0x600   :  { %3194 = vset.pattern.permute.xlu1 %v3446_v63 }
 0x601   :  { %625 = vperm.xlu1 %3194, %v3797_v6  }
 0x607   :  { %3197 = vset.pattern.permute.xlu2 %v3447_v0 }
 0x609   :  { %3196 = vset.pattern.permute.xlu1 %v3449_v34 }
 0x60a   :  { %649 = vperm.xlu1 %3196, %v3797_v6  }
 0x60f   :  { %v622_v29 = vpop.permute.xlu2 %621 }
 0x610   :  { %v628_v28 = vmul.f32 %v622_v29, %v3600_v10 }
 0x612   :  { %3199 = vset.pattern.permute.xlu1 %v3448_v20 }
 0x627   :  { %v609_v31 = vpop.permute.xlu1 %608 }
 0x628   :  { %v616_v9 = vmul.f32 %v609_v31, %v3597_v7 }
 0x629   :  { %v560_v33 = vpop.xlane.xlu0 %559 }
 0x62a   :  { %v572_v26 = vadd.f32 %v560_v33, %v256_v35  ;;  %v618_v18 = vadd.f32 %v616_v9, %v254_v59 }
 0x62c   :  { %v574_v37 = vmul.f32 0.014705882, %v572_v26  ;;  %v630_v26 = vadd.f32 %v628_v28, %v618_v18 }
 0x62e   :  { %v580_v51 = vmul.f32 %v574_v37, %v574_v37 }
 0x631   :  { %v571_v49 = vpop.xlane.xlu0 %570 }
 0x632   :  { %v577_v56 = vadd.f32 %v571_v49, %v3579_v50 }
 0x634   :  { %v579_v3 = vmul.f32 0.014705882, %v577_v56 }
 0x644   :  { %v634_v57 = vpop.permute.xlu0 %633 }
 0x645   :  { %v640_v33 = vmul.f32 %v634_v57, %v3608_v15 }
 0x651   :  { %v563_v44 = vpop.xlane.xlu2 %562 }
 0x652   :  { %v573_v45 = vadd.f32 %v563_v44, %v256_v35  ;;  %v568_v46 = vpop.xlane.xlu1 %567 }
 0x653   :  { %v576_v48 = vadd.f32 %v568_v46, %v3579_v50 }
 0x654   :  { %v575_v52 = vmul.f32 0.014705882, %v573_v45  ;;  %v642_v45 = vadd.f32 %v640_v33, %v630_v26 }
 0x655   :  { %v578_v54 = vmul.f32 0.014705882, %v576_v48  ;;  %v656_v48 = vmul.f32 %v3621_v36, %v574_v37 }
 0x656   :  { %v581_v62 = vmul.f32 %v575_v52, %v575_v52 }
 0x657   :  { %v582_v58 = vsub.f32 %v578_v54, %v580_v51 }
 0x658   :  { %v583_v4 = vsub.f32 %v579_v3, %v581_v62 }
 0x659   :  { %v584_v1 = vadd.f32 1e-05, %v582_v58  ;;  %v614_v54 = vpop.permute.xlu2 %613 }
 0x65a   :  { %v585_v13 = vadd.f32 1e-05, %v583_v4  ;;  %v617_v3 = vmul.f32 %v614_v54, %v3597_v7 }
 0x65b   :  { %3295 = vrsqrt.f32 %v584_v1  ;;  %vm592_vm1 = vweird.f32 %v584_v1 }
 0x65c   :  { %3297 = vrsqrt.f32 %v585_v13  ;;  %vm602_vm5 = vweird.f32 %v585_v13 }
 0x661   :  { %v3296_v8 = vpop.eup %3295 }
 0x662   :  { %v587_v14 = vmul.f32 %v3296_v8, %v584_v1  ;;  %v3298_v2 = vpop.eup %3297  ;;  %vm593_vm0 = vweird.f32 %v3296_v8 }
 0x663   :  { %v597_v51 = vmul.f32 %v3298_v2, %v585_v13  ;;  %vm594_vm2 = vmor %vm592_vm1, %vm593_vm0  ;;  %vm603_vm3 = vweird.f32 %v3298_v2 }
 0x664   :  { %v588_v17 = vmul.f32 %v3296_v8, %v587_v14  ;;  %v255_v14 = vadd.f32 %v253_v5, %v3604_v12  ;;  %vm604_vm6 = vmor %vm602_vm5, %vm603_vm3 }
 0x665   :  { %v598_v62 = vmul.f32 %v3298_v2, %v597_v51 }
 0x666   :  { %v589_v27 = vmul.f32 0.5, %v588_v17  ;;  %v619_v17 = vadd.f32 %v617_v3, %v255_v14 }
 0x667   :  { %v599_v37 = vmul.f32 0.5, %v598_v62 }
 0x668   :  { %v590_v35 = vsub.f32 1.5, %v589_v27  ;;  %v638_v27 = vpop.permute.xlu2 %637 }
 0x669   :  { %v600_v33 = vsub.f32 1.5, %v599_v37 }
 0x66a   :  { %v646_v44 = vpop.permute.xlu1 %645  ;;  %v591_v46 = vmul.f32 %v3296_v8, %v590_v35  ;;  %v641_v35 = vmul.f32 %v638_v27, %v3608_v15 }
 0x66b   :  { %v652_v31 = vmul.f32 %v646_v44, %v3613_v24 }
 0x66c   :  { %v595_v29 = vsel %vm594_vm2, %v3296_v8, %v591_v46 }
 0x66d   :  { %v654_v49 = vadd.f32 %v652_v31, %v642_v45  ;;  %v601_v45 = vmul.f32 %v3298_v2, %v600_v33  ;;  %v657_v31 = vmul.f32 %v3621_v36, %v575_v52 }
 0x66f   :  { %v658_v56 = vsub.f32 %v654_v49, %v656_v48  ;;  %v605_v49 = vsel %vm604_vm6, %v3298_v2, %v601_v45 }
 0x671   :  { %v660_v58 = vmul.f32 %v658_v56, %v595_v29 }
 0x673   :  { %v626_v4 = vpop.permute.xlu1 %625  ;;  %v662_v9 = vadd.f32 %v3629_v60, %v660_v58 }
 0x674   :  { %v629_v59 = vmul.f32 %v626_v4, %v3600_v10 }
 0x675   :  { %v664_v57 = vmax.f32 %v662_v9, 0.0 }
 0x676   :  { %v631_v8 = vadd.f32 %v629_v59, %v619_v17 }
 0x677   :  { %v666_v1 = vsel %vm105_vm4, %v664_v57, 0.0  ;;  %v672_v18 = vmul.f32 %v664_v57, %v664_v57 }
 0x678   :  { %667 = vadd.xlane.f32.xlu2 %v666_v1  ;;  %v643_v44 = vadd.f32 %v641_v35, %v631_v8 }
 0x679   :  { %v674_v28 = vsel %vm105_vm4, %v672_v18, 0.0 }
 0x67a   :  { %675 = vadd.xlane.f32.xlu0 %v674_v28 }
 0x67c   :  { %v650_v26 = vpop.permute.xlu1 %649 }
 0x67d   :  { %v653_v5 = vmul.f32 %v650_v26, %v3613_v24 }
 0x67f   :  { %v655_v46 = vadd.f32 %v653_v5, %v643_v44 }
 0x681   :  { %v659_v48 = vsub.f32 %v655_v46, %v657_v31 }
 0x683   :  { %v661_v51 = vmul.f32 %v659_v48, %v605_v49 }
 0x685   :  { %v663_v54 = vadd.f32 %v3629_v60, %v661_v51 }
 0x687   :  { %v665_v56 = vmax.f32 %v663_v54, 0.0 }
 0x689   :  { %v669_v29 = vsel %vm105_vm4, %v665_v56, 0.0  ;;  %v673_v58 = vmul.f32 %v665_v56, %v665_v56 }
 0x68a   :  { %670 = vadd.xlane.f32.xlu1 %v669_v29 }
 0x68b   :  { %v677_v62 = vsel %vm105_vm4, %v673_v58, 0.0 }
 0x68c   :  { %678 = vadd.xlane.f32.xlu2 %v677_v62 }
 0x6eb   :  { %v668_v3 = vpop.xlane.xlu2 %667 }
 0x6ec   :  { %v680_v4 = vmul.f32 0.03125, %v668_v3 }
 0x6ed   :  { %v676_v9 = vpop.xlane.xlu0 %675 }
 0x6ee   :  { %v684_v36 = vmul.f32 %v680_v4, %v680_v4  ;;  %v682_v52 = vmul.f32 0.03125, %v676_v9  ;;  %v688_v26 = vsub.f32 %v664_v57, %v680_v4 }
 0x6f0   :  { %v686_v13 = vsub.f32 %v682_v52, %v684_v36 }
 0x6f2   :  { %v690_v14 = vadd.f32 1e-05, %v686_v13 }
 0x6f4   :  { %3299 = vrsqrt.f32 %v690_v14  ;;  %vm698_vm9 = vweird.f32 %v690_v14 }
 0x6fa   :  { %v3300_v2 = vpop.eup %3299 }
 0x6fb   :  { %v693_v59 = vmul.f32 %v3300_v2, %v690_v14  ;;  %vm699_vm7 = vweird.f32 %v3300_v2 }
 0x6fc   :  { %vm700_vm10 = vmor %vm698_vm9, %vm699_vm7 }
 0x6fd   :  { %v694_v37 = vmul.f32 %v3300_v2, %v693_v59  ;;  %v671_v60 = vpop.xlane.xlu1 %670 }
 0x6fe   :  { %v681_v17 = vmul.f32 0.03125, %v671_v60 }
 0x6ff   :  { %v695_v1 = vmul.f32 0.5, %v694_v37  ;;  %v679_v18 = vpop.xlane.xlu2 %678 }
 0x700   :  { %v685_v27 = vmul.f32 %v681_v17, %v681_v17  ;;  %v683_v8 = vmul.f32 0.03125, %v679_v18  ;;  %v689_v58 = vsub.f32 %v665_v56, %v681_v17 }
 0x701   :  { %v696_v28 = vsub.f32 1.5, %v695_v1 }
 0x702   :  { %v687_v33 = vsub.f32 %v683_v8, %v685_v27 }
 0x703   :  { %v697_v35 = vmul.f32 %v3300_v2, %v696_v28 }
 0x704   :  { %v691_v44 = vadd.f32 1e-05, %v687_v33 }
 0x705   :  { %v701_v5 = vsel %vm700_vm10, %v3300_v2, %v697_v35 }
 0x706   :  { %3301 = vrsqrt.f32 %v691_v44  ;;  %v712_v45 = vmul.f32 %v701_v5, %v688_v26  ;;  %vm708_vm12 = vweird.f32 %v691_v44 }
 0x708   :  { %v714_v31 = vmul.f32 %v3689_v61, %v712_v45 }
 0x70a   :  { %v716_v46 = vadd.f32 %v3694_v55, %v714_v31 }
 0x70c   :  { %v3302_v48 = vpop.eup %3301  ;;  %3136 = vmatmul.msk.f32.vlgmr.msrb.gmra.mxu1 %vm105_vm4, %v716_v46 }
 0x70d   :  { %v703_v49 = vmul.f32 %v3302_v48, %v691_v44  ;;  %1872 = vmatpush.msrb.mxu1 %v3652_v21  ;;  %vm709_vm11 = vweird.f32 %v3302_v48 }
 0x70e   :  { %vm710_vm13 = vmor %vm708_vm12, %vm709_vm11 }
 0x70f   :  { %v704_v51 = vmul.f32 %v3302_v48, %v703_v49  ;;  %1873 = vmatpush.msrb.mxu1 %v3659_v22 }
 0x711   :  { %v705_v54 = vmul.f32 0.5, %v704_v51  ;;  %1874 = vmatpush.msrb.mxu1 %v3665_v23 }
 0x713   :  { %v706_v57 = vsub.f32 1.5, %v705_v54  ;;  %1875 = vmatpush.msrb.mxu1 %v3671_v25 }
 0x715   :  { %v707_v29 = vmul.f32 %v3302_v48, %v706_v57 }
 0x717   :  { %v711_v62 = vsel %vm710_vm13, %v3302_v48, %v707_v29 }
 0x718   :  { %v713_v3 = vmul.f32 %v711_v62, %v689_v58 }
 0x71a   :  { %v715_v4 = vmul.f32 %v3689_v61, %v713_v3 }
 0x71c   :  { %v717_v21 = vadd.f32 %v3694_v55, %v715_v4 }
 0x71e   :  { %3137 = vmatmul.msk.f32.gmra.mxu1 %vm105_vm4, %v717_v21 }
 0x789   :  { %v741_v22 = vpop.f32.mrf.mxu1 }
 0x78a   :  { %v742_v9 = vadd.f32 %v3710_v53, %v741_v22 }
 0x78c   :  { %v747_v23 = vmax.f32 %v742_v9, 0.0 }
 0x78e   :  { %v749_v36 = vsel %vm105_vm4, %v747_v23, 0.0  ;;  %v755_v52 = vmul.f32 %v747_v23, %v747_v23 }
 0x78f   :  { %750 = vadd.xlane.f32.xlu0 %v749_v36 }
 0x790   :  { %v757_v25 = vsel %vm105_vm4, %v755_v52, 0.0 }
 0x791   :  { %758 = vadd.xlane.f32.xlu1 %v757_v25 }
 0x79b   :  { %v744_v56 = vpop.f32.mrf.mxu1 }
 0x79c   :  { %v745_v13 = vadd.f32 %v3710_v53, %v744_v56 }
 0x79e   :  { %v748_v14 = vmax.f32 %v745_v13, 0.0 }
 0x7a0   :  { %v752_v61 = vsel %vm105_vm4, %v748_v14, 0.0  ;;  %v756_v55 = vmul.f32 %v748_v14, %v748_v14 }
 0x7a1   :  { %753 = vadd.xlane.f32.xlu2 %v752_v61 }
 0x7a2   :  { %v760_v2 = vsel %vm105_vm4, %v756_v55, 0.0 }
 0x7a3   :  { %761 = vadd.xlane.f32.xlu0 %v760_v2 }
 0x802   :  { %v751_v59 = vpop.xlane.xlu0 %750 }
 0x803   :  { %v763_v37 = vmul.f32 0.03125, %v751_v59 }
 0x804   :  { %v759_v60 = vpop.xlane.xlu1 %758 }
 0x805   :  { %v767_v17 = vmul.f32 %v763_v37, %v763_v37  ;;  %v765_v1 = vmul.f32 0.03125, %v759_v60  ;;  %v771_v49 = vsub.f32 %v747_v23, %v763_v37 }
 0x807   :  { %v769_v18 = vsub.f32 %v765_v1, %v767_v17 }
 0x809   :  { %v773_v27 = vadd.f32 1e-05, %v769_v18 }
 0x80b   :  { %3303 = vrsqrt.f32 %v773_v27  ;;  %vm781_vm15 = vweird.f32 %v773_v27 }
 0x811   :  { %v3304_v8 = vpop.eup %3303 }
 0x812   :  { %v776_v28 = vmul.f32 %v3304_v8, %v773_v27  ;;  %vm782_vm14 = vweird.f32 %v3304_v8 }
 0x813   :  { %vm783_vm0 = vmor %vm781_vm15, %vm782_vm14 }
 0x814   :  { %v777_v33 = vmul.f32 %v3304_v8, %v776_v28  ;;  %v754_v53 = vpop.xlane.xlu2 %753 }
 0x815   :  { %v764_v35 = vmul.f32 0.03125, %v754_v53 }
 0x816   :  { %v778_v26 = vmul.f32 0.5, %v777_v33  ;;  %v762_v44 = vpop.xlane.xlu0 %761 }
 0x817   :  { %v768_v5 = vmul.f32 %v764_v35, %v764_v35  ;;  %v766_v45 = vmul.f32 0.03125, %v762_v44  ;;  %v772_v23 = vsub.f32 %v748_v14, %v764_v35 }
 0x818   :  { %v779_v31 = vsub.f32 1.5, %v778_v26 }
 0x819   :  { %v770_v46 = vsub.f32 %v766_v45, %v768_v5  ;;  %v252_v45 = vadd.f32 14.793599, %v3576_v47 }
 0x81a   :  { %v780_v48 = vmul.f32 %v3304_v8, %v779_v31 }
 0x81b   :  { %v774_v51 = vadd.f32 1e-05, %v770_v46 }
 0x81c   :  { %v784_v54 = vsel %vm783_vm0, %v3304_v8, %v780_v48 }
 0x81d   :  { %3305 = vrsqrt.f32 %v774_v51  ;;  %v795_v57 = vmul.f32 %v784_v54, %v771_v49  ;;  %vm791_vm2 = vweird.f32 %v774_v51 }
 0x81f   :  { %v797_v29 = vmul.f32 %v3768_v19, %v795_v57 }
 0x821   :  { %v799_v58 = vadd.f32 %v3773_v30, %v797_v29 }
 0x823   :  { %v3306_v62 = vpop.eup %3305  ;;  %3138 = vmatmul.msk.f32.vlgmr.msrb.gmra.mxu2 %vm105_vm4, %v799_v58  ;;  %v3914_v58 = vld [vmem:[%s4708_s0 + $0x10] sm:$0xff] }
 0x824   :  { %v786_v3 = vmul.f32 %v3306_v62, %v774_v51  ;;  %1955 = vmatpush.msrb.mxu2 %v3731_v38  ;;  %vm792_vm1 = vweird.f32 %v3306_v62 }
 0x825   :  { %vm793_vm3 = vmor %vm791_vm2, %vm792_vm1 }
 0x826   :  { %v787_v4 = vmul.f32 %v3306_v62, %v786_v3  ;;  %1956 = vmatpush.msrb.mxu2 %v3738_v39  ;;  %v249_v3 = vperm.slane %v3914_v58, 7 }
 0x828   :  { %v788_v21 = vmul.f32 0.5, %v787_v4  ;;  %1957 = vmatpush.msrb.mxu2 %v3745_v40 }
 0x82a   :  { %v789_v22 = vsub.f32 1.5, %v788_v21  ;;  %1958 = vmatpush.msrb.mxu2 %v3751_v42 }
 0x82c   :  { %v790_v9 = vmul.f32 %v3306_v62, %v789_v22 }
 0x82e   :  { %v794_v36 = vsel %vm793_vm3, %v3306_v62, %v790_v9 }
 0x82f   :  { %v796_v52 = vmul.f32 %v794_v36, %v772_v23  ;;  %v250_v23 = vadd.f32 %v249_v3, %v3602_v11 }
 0x831   :  { %v798_v25 = vmul.f32 %v3768_v19, %v796_v52 }
 0x833   :  { %v800_v38 = vadd.f32 %v3773_v30, %v798_v25 }
 0x835   :  { %3139 = vmatmul.msk.f32.gmra.mxu2 %vm105_vm4, %v800_v38 }
 0x8a6   :  { %v824_v39 = vpop.f32.mrf.mxu2 }
 0x8a7   :  { %v825_v56 = vadd.f32 %v3789_v32, %v824_v39 }
 0x8a9   :  { %v830_v40 = vmul.f32 0.06376933, %v825_v56 }
 0x8ab   :  { %v832_v13 = vsub.f32 %v3795_v16, %v830_v40 }
 0x8ad   :  { %v834_v14 = vmul.f32 1.0090148, %v832_v13 }
 0x8af   :  { %v836_v37 = vmul.f32 0.9, %v834_v14  ;;  %v839_v60 = vmul.f32 0.1, %v834_v14 }
 0x8b8   :  { %v827_v61 = vpop.f32.mrf.mxu2 }
 0x8b9   :  { %v828_v42 = vadd.f32 %v3789_v32, %v827_v61 }
 0x8bb   :  { %v831_v55 = vmul.f32 0.06376933, %v828_v42 }
 0x8bd   :  { %v833_v2 = vsub.f32 %v3797_v6, %v831_v55 }
 0x8bf   :  { %v835_v59 = vmul.f32 1.0090148, %v833_v2 }
 0x8c1   :  { %v837_v17 = vmul.f32 0.9, %v835_v59  ;;  %v838_v1 = vmul.f32 0.1, %v835_v59 }
 0x8c3   :  { %v3877_v18 = vadd.f32 %v838_v1, %v836_v37  ;;  %v3879_v27 = vadd.f32 %v839_v60, %v837_v17 }
 0x8c5   :  { %892 = vperm.xlu2 %3197, %v3877_v18   ;;  %v842_v16 = vsel %vm265_vm8, %v3877_v18, 0.0  ;;  %v845_v8 = vsel %vm265_vm8, %v3879_v27, 0.0  ;;  %v848_v6 = vmul.f32 %v3877_v18, %v3877_v18  ;;  %v849_v33 = vmul.f32 %v3879_v27, %v3879_v27 }
 0x8c6   :  { %843 = vadd.xlane.f32.xlu1 %v842_v16  ;;  %846 = vadd.xlane.f32.xlu0 %v845_v8  ;;  %v3926_v16 = vld [vmem:[%s4708_s0 + $0x9] ss:$0 sm:$0xff] }
 0x8c7   :  { %v850_v28 = vsel %vm265_vm8, %v848_v6, 0.0  ;;  %v853_v53 = vsel %vm265_vm8, %v849_v33, 0.0 }
 0x8cd   :  { %3200 = vset.pattern.permute.xlu2 %v3449_v34 }
 0x8ce   :  { %929 = vperm.xlu2 %3200, %v3877_v18  }
 0x8d6   :  { %3202 = vset.pattern.permute.xlu2 %v3446_v63 }
 0x8d7   :  { %909 = vperm.xlu2 %3202, %v3879_v27  }
 0x8da   :  { %905 = vperm.xlu0 %3198, %v3877_v18  }
 0x8df   :  { %917 = vperm.xlu1 %3199, %v3877_v18   ;;  %3204 = vset.pattern.permute.xlu2 %v3449_v34 }
 0x8e2   :  { %3205 = vset.pattern.permute.xlu0 %v3447_v0 }
 0x8e7   :  { %3201 = vset.pattern.permute.xlu1 %v3447_v0 }
 0x8e8   :  { %897 = vperm.xlu1 %3201, %v3879_v27  }
 0x8f0   :  { %3203 = vset.pattern.permute.xlu1 %v3448_v20 }
 0x900   :  { %851 = vadd.xlane.f32.xlu2 %v850_v28 }
 0x912   :  { %854 = vadd.xlane.f32.xlu1 %v853_v53 }
 0x918   :  { %933 = vperm.xlu2 %3204, %v3879_v27  }
 0x91f   :  { %v893_v35 = vpop.permute.xlu2 %892 }
 0x920   :  { %3207 = vset.pattern.permute.xlu2 %v3448_v20  ;;  %v900_v22 = vmul.f32 %v893_v35, %v3597_v7 }
 0x922   :  { %v902_v52 = vadd.f32 %v900_v22, %v250_v23 }
 0x928   :  { %v930_v26 = vpop.permute.xlu2 %929 }
 0x929   :  { %v936_v14 = vmul.f32 %v930_v26, %v3613_v24 }
 0x92b   :  { %921 = vperm.xlu1 %3203, %v3879_v27  }
 0x931   :  { %v3907_v44 = vpop.permute.xlu2 %909 }
 0x932   :  { %v913_v22 = vmul.f32 %v3907_v44, %v3600_v10 }
 0x933   :  { %3206 = vset.pattern.permute.xlu1 %v3446_v63 }
 0x939   :  { %v844_v5 = vpop.xlane.xlu1 %843  ;;  %v847_v48 = vpop.xlane.xlu0 %846 }
 0x93a   :  { %v856_v31 = vadd.f32 %v844_v5, %v252_v45  ;;  %v857_v25 = vadd.f32 %v847_v48, %v252_v45  ;;  %v3932_v5 = vld [vmem:[%s4708_s0 + $0x8] ss:$0 sm:$0xff] }
 0x93c   :  { %v858_v46 = vmul.f32 0.014705882, %v856_v31  ;;  %v859_v13 = vmul.f32 0.014705882, %v857_v25 }
 0x93e   :  { %v864_v57 = vmul.f32 %v858_v46, %v858_v46  ;;  %v865_v37 = vmul.f32 %v859_v13, %v859_v13  ;;  %v940_v8 = vmul.f32 %v3926_v16, %v858_v46 }
 0x94c   :  { %v906_v21 = vpop.permute.xlu0 %905 }
 0x94d   :  { %v912_v36 = vmul.f32 %v906_v21, %v3600_v10 }
 0x94f   :  { %v914_v56 = vadd.f32 %v912_v36, %v902_v52 }
 0x951   :  { %v918_v49 = vpop.permute.xlu1 %917 }
 0x952   :  { %v924_v38 = vmul.f32 %v918_v49, %v3608_v15 }
 0x954   :  { %v926_v61 = vadd.f32 %v924_v38, %v914_v56 }
 0x956   :  { %v938_v60 = vadd.f32 %v936_v14, %v926_v61 }
 0x958   :  { %v942_v33 = vsub.f32 %v938_v60, %v940_v8 }
 0x95a   :  { %v898_v9 = vpop.permute.xlu1 %897 }
 0x973   :  { %v852_v51 = vpop.xlane.xlu2 %851 }
 0x974   :  { %v860_v54 = vadd.f32 %v852_v51, %v3579_v50 }
 0x976   :  { %v862_v29 = vmul.f32 0.014705882, %v860_v54  ;;  %v901_v54 = vmul.f32 %v898_v9, %v3597_v7 }
 0x978   :  { %v866_v62 = vsub.f32 %v862_v29, %v864_v57 }
 0x97a   :  { %v868_v4 = vadd.f32 1e-05, %v866_v62  ;;  %v251_v62 = vadd.f32 %v249_v3, %v3604_v12 }
 0x97b   :  { %v934_v23 = vpop.permute.xlu2 %933 }
 0x97c   :  { %3307 = vrsqrt.f32 %v868_v4  ;;  %vm876_vm6 = vweird.f32 %v868_v4  ;;  %v903_v21 = vadd.f32 %v901_v54, %v251_v62 }
 0x97e   :  { %v915_v25 = vadd.f32 %v913_v22, %v903_v21  ;;  %v3950_v22 = vld [vmem:[%s4708_s0 + $0xa] ss:$0 sm:$0xff] }
 0x982   :  { %v3308_v39 = vpop.eup %3307 }
 0x983   :  { %v871_v40 = vmul.f32 %v3308_v39, %v868_v4  ;;  %vm877_vm5 = vweird.f32 %v3308_v39 }
 0x984   :  { %vm878_vm7 = vmor %vm876_vm6, %vm877_vm5 }
 0x985   :  { %v872_v42 = vmul.f32 %v3308_v39, %v871_v40  ;;  %v855_v55 = vpop.xlane.xlu1 %854  ;;  %v941_v40 = vmul.f32 %v3926_v16, %v859_v13 }
 0x986   :  { %v861_v2 = vadd.f32 %v855_v55, %v3579_v50 }
 0x987   :  { %v873_v59 = vmul.f32 0.5, %v872_v42 }
 0x988   :  { %v863_v17 = vmul.f32 0.014705882, %v861_v2 }
 0x989   :  { %v874_v1 = vsub.f32 1.5, %v873_v59 }
 0x98a   :  { %v867_v6 = vsub.f32 %v863_v17, %v865_v37 }
 0x98b   :  { %v875_v28 = vmul.f32 %v3308_v39, %v874_v1 }
 0x98c   :  { %v869_v53 = vadd.f32 1e-05, %v867_v6 }
 0x98d   :  { %v879_v35 = vsel %vm878_vm7, %v3308_v39, %v875_v28  ;;  %v937_v39 = vmul.f32 %v934_v23, %v3613_v24 }
 0x98e   :  { %3309 = vrsqrt.f32 %v869_v53  ;;  %v944_v26 = vmul.f32 %v942_v33, %v879_v35  ;;  %vm886_vm10 = vweird.f32 %v869_v53 }
 0x990   :  { %v946_v45 = vadd.f32 %v3932_v5, %v944_v26 }
 0x992   :  { %v948_v31 = vmax.f32 %v946_v45, 0.0 }
 0x994   :  { %v3310_v48 = vpop.eup %3309  ;;  %v950_v46 = vsel %vm105_vm4, %v948_v31, 0.0  ;;  %v956_v49 = vmul.f32 %v948_v31, %v948_v31 }
 0x995   :  { %v881_v51 = vmul.f32 %v3310_v48, %v869_v53  ;;  %951 = vadd.xlane.f32.xlu0 %v950_v46  ;;  %vm887_vm9 = vweird.f32 %v3310_v48 }
 0x996   :  { %v958_v57 = vsel %vm105_vm4, %v956_v49, 0.0  ;;  %vm888_vm11 = vmor %vm886_vm10, %vm887_vm9 }
 0x997   :  { %v882_v29 = vmul.f32 %v3310_v48, %v881_v51  ;;  %959 = vadd.xlane.f32.xlu1 %v958_v57 }
 0x999   :  { %v883_v4 = vmul.f32 0.5, %v882_v29 }
 0x99b   :  { %v884_v36 = vsub.f32 1.5, %v883_v4 }
 0x99d   :  { %v922_v52 = vpop.permute.xlu1 %921  ;;  %v885_v56 = vmul.f32 %v3310_v48, %v884_v36 }
 0x99e   :  { %v925_v38 = vmul.f32 %v922_v52, %v3608_v15 }
 0x99f   :  { %v889_v42 = vsel %vm888_vm11, %v3310_v48, %v885_v56 }
 0x9a0   :  { %v927_v9 = vadd.f32 %v925_v38, %v915_v25  ;;  %v3963_v25 = vld [vmem:[%s4708_s0 + $0x90] sm:$0xff]  ;;  %v3969_v38 = vld [vmem:[%s4708_s0 + $0x88] sm:$0xff] }
 0x9a2   :  { %v939_v61 = vadd.f32 %v937_v39, %v927_v9  ;;  %v3975_v39 = vld [vmem:[%s4708_s0 + $0x80] sm:$0xff] }
 0x9a4   :  { %v943_v3 = vsub.f32 %v939_v61, %v941_v40  ;;  %v3981_v40 = vld [vmem:[%s4708_s0 + $0x78] sm:$0xff] }
 0x9a6   :  { %v945_v55 = vmul.f32 %v943_v3, %v889_v42 }
 0x9a8   :  { %v947_v44 = vadd.f32 %v3932_v5, %v945_v55 }
 0x9aa   :  { %v949_v14 = vmax.f32 %v947_v44, 0.0 }
 0x9ac   :  { %v953_v2 = vsel %vm105_vm4, %v949_v14, 0.0  ;;  %v957_v59 = vmul.f32 %v949_v14, %v949_v14 }
 0x9ad   :  { %954 = vadd.xlane.f32.xlu2 %v953_v2 }
 0x9ae   :  { %v961_v37 = vsel %vm105_vm4, %v957_v59, 0.0 }
 0x9af   :  { %962 = vadd.xlane.f32.xlu0 %v961_v37 }
 0xa08   :  { %v952_v60 = vpop.xlane.xlu0 %951 }
 0xa09   :  { %v964_v17 = vmul.f32 0.03125, %v952_v60 }
 0xa0a   :  { %v960_v1 = vpop.xlane.xlu1 %959 }
 0xa0b   :  { %v968_v13 = vmul.f32 %v964_v17, %v964_v17  ;;  %v966_v8 = vmul.f32 0.03125, %v960_v1  ;;  %v972_v49 = vsub.f32 %v948_v31, %v964_v17  ;;  %v3956_v31 = vld [vmem:[%s4708_s0 + $0xb] ss:$0 sm:$0xff]  ;;  %v3990_v1 = vld [vmem:[%s4708_s0 + $0xc] ss:$0 sm:$0xff] }
 0xa0d   :  { %v970_v6 = vsub.f32 %v966_v8, %v968_v13 }
 0xa0f   :  { %v974_v28 = vadd.f32 1e-05, %v970_v6 }
 0xa11   :  { %3311 = vrsqrt.f32 %v974_v28  ;;  %vm982_vm13 = vweird.f32 %v974_v28 }
 0xa17   :  { %v3312_v33 = vpop.eup %3311 }
 0xa18   :  { %v977_v53 = vmul.f32 %v3312_v33, %v974_v28  ;;  %vm983_vm12 = vweird.f32 %v3312_v33 }
 0xa19   :  { %vm984_vm14 = vmor %vm982_vm13, %vm983_vm12 }
 0xa1a   :  { %v978_v35 = vmul.f32 %v3312_v33, %v977_v53 }
 0xa1c   :  { %v979_v26 = vmul.f32 0.5, %v978_v35 }
 0xa1e   :  { %v980_v45 = vsub.f32 1.5, %v979_v26 }
 0xa20   :  { %v981_v48 = vmul.f32 %v3312_v33, %v980_v45  ;;  %v955_v46 = vpop.xlane.xlu2 %954 }
 0xa21   :  { %v965_v51 = vmul.f32 0.03125, %v955_v46 }
 0xa22   :  { %v985_v54 = vsel %vm984_vm14, %v3312_v33, %v981_v48  ;;  %v963_v57 = vpop.xlane.xlu0 %962 }
 0xa23   :  { %v996_v29 = vmul.f32 %v985_v54, %v972_v49  ;;  %v969_v62 = vmul.f32 %v965_v51, %v965_v51  ;;  %v967_v4 = vmul.f32 0.03125, %v963_v57  ;;  %v973_v44 = vsub.f32 %v949_v14, %v965_v51 }
 0xa25   :  { %v971_v21 = vsub.f32 %v967_v4, %v969_v62  ;;  %v998_v23 = vmul.f32 %v3950_v22, %v996_v29 }
 0xa27   :  { %v975_v36 = vadd.f32 1e-05, %v971_v21  ;;  %v1000_v52 = vadd.f32 %v3956_v31, %v998_v23 }
 0xa29   :  { %3313 = vrsqrt.f32 %v975_v36  ;;  %3140 = vmatmul.msk.f32.vlgmr.msra.gmra.mxu3 %vm105_vm4, %v1000_v52  ;;  %vm992_vm0 = vweird.f32 %v975_v36 }
 0xa2a   :  { %2156 = vmatpush.msra.mxu3 %v3963_v25 }
 0xa2c   :  { %2157 = vmatpush.msra.mxu3 %v3969_v38 }
 0xa2e   :  { %2158 = vmatpush.msra.mxu3 %v3975_v39 }
 0xa2f   :  { %v3314_v9 = vpop.eup %3313 }
 0xa30   :  { %v987_v56 = vmul.f32 %v3314_v9, %v975_v36  ;;  %2159 = vmatpush.msra.mxu3 %v3981_v40  ;;  %vm993_vm15 = vweird.f32 %v3314_v9 }
 0xa31   :  { %vm994_vm1 = vmor %vm992_vm0, %vm993_vm15 }
 0xa32   :  { %v988_v61 = vmul.f32 %v3314_v9, %v987_v56 }
 0xa34   :  { %v989_v3 = vmul.f32 0.5, %v988_v61 }
 0xa36   :  { %v990_v42 = vsub.f32 1.5, %v989_v3 }
 0xa38   :  { %v991_v55 = vmul.f32 %v3314_v9, %v990_v42 }
 0xa3a   :  { %v995_v2 = vsel %vm994_vm1, %v3314_v9, %v991_v55 }
 0xa3b   :  { %v997_v59 = vmul.f32 %v995_v2, %v973_v44 }
 0xa3d   :  { %v999_v37 = vmul.f32 %v3950_v22, %v997_v59 }
 0xa3f   :  { %v1001_v60 = vadd.f32 %v3956_v31, %v999_v37 }
 0xa41   :  { %3141 = vmatmul.msk.f32.gmra.mxu3 %vm105_vm4, %v1001_v60 }
 0xaac   :  { %v1025_v17 = vpop.f32.mrf.mxu3 }
 0xaad   :  { %v1026_v13 = vadd.f32 %v3990_v1, %v1025_v17 }
 0xaaf   :  { %v1031_v8 = vmax.f32 %v1026_v13, 0.0 }
 0xab1   :  { %v1033_v14 = vsel %vm105_vm4, %v1031_v8, 0.0  ;;  %v1039_v6 = vmul.f32 %v1031_v8, %v1031_v8 }
 0xab2   :  { %1034 = vadd.xlane.f32.xlu1 %v1033_v14  ;;  %v4010_v14 = vld [vmem:[%s4708_s0 + $0xa8] sm:$0xff] }
 0xab3   :  { %v1041_v28 = vsel %vm105_vm4, %v1039_v6, 0.0 }
 0xab4   :  { %1042 = vadd.xlane.f32.xlu2 %v1041_v28  ;;  %v4022_v28 = vld [vmem:[%s4708_s0 + $0x98] sm:$0xff] }
 0xac4   :  { %v1028_v33 = vpop.f32.mrf.mxu3 }
 0xac5   :  { %v1029_v53 = vadd.f32 %v3990_v1, %v1028_v33 }
 0xac7   :  { %v1032_v35 = vmax.f32 %v1029_v53, 0.0 }
 0xac9   :  { %v1036_v26 = vsel %vm105_vm4, %v1032_v35, 0.0  ;;  %v1040_v45 = vmul.f32 %v1032_v35, %v1032_v35 }
 0xaca   :  { %1037 = vadd.xlane.f32.xlu0 %v1036_v26 }
 0xacb   :  { %v1044_v48 = vsel %vm105_vm4, %v1040_v45, 0.0 }
 0xacc   :  { %1045 = vadd.xlane.f32.xlu1 %v1044_v48 }
 0xb25   :  { %v1035_v46 = vpop.xlane.xlu1 %1034 }
 0xb26   :  { %v1047_v49 = vmul.f32 0.03125, %v1035_v46 }
 0xb27   :  { %v1043_v51 = vpop.xlane.xlu2 %1042 }
 0xb28   :  { %v1051_v54 = vmul.f32 %v1047_v49, %v1047_v49  ;;  %v1049_v57 = vmul.f32 0.03125, %v1043_v51  ;;  %v1055_v61 = vsub.f32 %v1031_v8, %v1047_v49  ;;  %v4004_v8 = vld [vmem:[%s4708_s0 + $0xb0] sm:$0xff]  ;;  %v4028_v51 = vld [vmem:[%s4708_s0 + $0xd] ss:$0 sm:$0xff] }
 0xb2a   :  { %v1053_v29 = vsub.f32 %v1049_v57, %v1051_v54  ;;  %v4034_v57 = vld [vmem:[%s4708_s0 + $0xe] ss:$0 sm:$0xff] }
 0xb2c   :  { %v1057_v62 = vadd.f32 1e-05, %v1053_v29 }
 0xb2e   :  { %3315 = vrsqrt.f32 %v1057_v62  ;;  %vm1065_vm3 = vweird.f32 %v1057_v62 }
 0xb34   :  { %v3316_v4 = vpop.eup %3315 }
 0xb35   :  { %v1060_v21 = vmul.f32 %v3316_v4, %v1057_v62  ;;  %vm1066_vm2 = vweird.f32 %v3316_v4 }
 0xb36   :  { %vm1067_vm5 = vmor %vm1065_vm3, %vm1066_vm2 }
 0xb37   :  { %v1061_v23 = vmul.f32 %v3316_v4, %v1060_v21 }
 0xb39   :  { %v1062_v36 = vmul.f32 0.5, %v1061_v23 }
 0xb3b   :  { %v1063_v52 = vsub.f32 1.5, %v1062_v36 }
 0xb3d   :  { %v1064_v9 = vmul.f32 %v3316_v4, %v1063_v52  ;;  %v1038_v56 = vpop.xlane.xlu0 %1037 }
 0xb3e   :  { %v1048_v3 = vmul.f32 0.03125, %v1038_v56 }
 0xb3f   :  { %v1068_v42 = vsel %vm1067_vm5, %v3316_v4, %v1064_v9  ;;  %v1046_v55 = vpop.xlane.xlu1 %1045 }
 0xb40   :  { %v1079_v44 = vmul.f32 %v1068_v42, %v1055_v61  ;;  %v1052_v2 = vmul.f32 %v1048_v3, %v1048_v3  ;;  %v1050_v59 = vmul.f32 0.03125, %v1046_v55  ;;  %v1056_v48 = vsub.f32 %v1032_v35, %v1048_v3 }
 0xb42   :  { %v1054_v37 = vsub.f32 %v1050_v59, %v1052_v2  ;;  %v1081_v60 = vmul.f32 %v3768_v19, %v1079_v44  ;;  %v4016_v19 = vld [vmem:[%s4708_s0 + $0xa0] sm:$0xff] }
 0xb44   :  { %v1058_v17 = vadd.f32 1e-05, %v1054_v37  ;;  %v1083_v13 = vadd.f32 %v3773_v30, %v1081_v60 }
 0xb46   :  { %3317 = vrsqrt.f32 %v1058_v17  ;;  %3142 = vmatmul.msk.f32.vlgmr.msra.gmra.mxu0 %vm105_vm4, %v1083_v13  ;;  %vm1075_vm7 = vweird.f32 %v1058_v17 }
 0xb47   :  { %2239 = vmatpush.msra.mxu0 %v4004_v8 }
 0xb49   :  { %2240 = vmatpush.msra.mxu0 %v4010_v14 }
 0xb4b   :  { %2241 = vmatpush.msra.mxu0 %v4016_v19 }
 0xb4c   :  { %v3318_v30 = vpop.eup %3317 }
 0xb4d   :  { %v1070_v6 = vmul.f32 %v3318_v30, %v1058_v17  ;;  %2242 = vmatpush.msra.mxu0 %v4022_v28  ;;  %vm1076_vm6 = vweird.f32 %v3318_v30 }
 0xb4e   :  { %vm1077_vm9 = vmor %vm1075_vm7, %vm1076_vm6 }
 0xb4f   :  { %v1071_v33 = vmul.f32 %v3318_v30, %v1070_v6 }
 0xb51   :  { %v1072_v53 = vmul.f32 0.5, %v1071_v33  ;;  %v245_v33 = vperm.slane %v3914_v58, 6 }
 0xb53   :  { %v1073_v26 = vsub.f32 1.5, %v1072_v53 }
 0xb55   :  { %v1074_v45 = vmul.f32 %v3318_v30, %v1073_v26 }
 0xb57   :  { %v1078_v46 = vsel %vm1077_vm9, %v3318_v30, %v1074_v45  ;;  %v246_v45 = vadd.f32 %v245_v33, %v3602_v11 }
 0xb58   :  { %v1080_v49 = vmul.f32 %v1078_v46, %v1056_v48 }
 0xb5a   :  { %v1082_v54 = vmul.f32 %v4028_v51, %v1080_v49 }
 0xb5c   :  { %v1084_v29 = vadd.f32 %v4034_v57, %v1082_v54 }
 0xb5e   :  { %3143 = vmatmul.msk.f32.gmra.mxu0 %vm105_vm4, %v1084_v29 }
 0xbc3   :  { %v1108_v35 = vpop.f32.mrf.mxu0 }
 0xbc4   :  { %v1109_v62 = vadd.f32 %v3789_v32, %v1108_v35  ;;  %v248_v35 = vadd.f32 14.683437, %v3576_v47 }
 0xbc6   :  { %v1114_v4 = vmul.f32 0.06301311, %v1109_v62 }
 0xbc8   :  { %v1116_v23 = vsub.f32 %v3877_v18, %v1114_v4 }
 0xbca   :  { %v1118_v9 = vmul.f32 1.007881, %v1116_v23 }
 0xbcc   :  { %v1120_v3 = vmul.f32 0.9, %v1118_v9  ;;  %v1123_v2 = vmul.f32 0.1, %v1118_v9 }
 0xbdb   :  { %v1111_v21 = vpop.f32.mrf.mxu0 }
 0xbdc   :  { %v1112_v36 = vadd.f32 %v3789_v32, %v1111_v21 }
 0xbde   :  { %v1115_v52 = vmul.f32 0.06301311, %v1112_v36 }
 0xbe0   :  { %v1117_v56 = vsub.f32 %v3879_v27, %v1115_v52 }
 0xbe2   :  { %v1119_v61 = vmul.f32 1.007881, %v1117_v56 }
 0xbe4   :  { %v1122_v42 = vmul.f32 0.1, %v1119_v61  ;;  %v1121_v44 = vmul.f32 0.9, %v1119_v61 }
 0xbe6   :  { %v4042_v55 = vadd.f32 %v1122_v42, %v1120_v3  ;;  %v4047_v18 = vadd.f32 %v1123_v2, %v1121_v44 }
 0xbe8   :  { %1201 = vperm.xlu2 %3207, %v4042_v55   ;;  %1189 = vperm.xlu1 %3206, %v4042_v55   ;;  %v1132_v32 = vmul.f32 %v4042_v55, %v4042_v55  ;;  %v1126_v59 = vsel %vm265_vm8, %v4042_v55, 0.0  ;;  %v1129_v37 = vsel %vm265_vm8, %v4047_v18, 0.0  ;;  %v1133_v60 = vmul.f32 %v4047_v18, %v4047_v18 }
 0xbe9   :  { %1176 = vperm.xlu0 %3205, %v4042_v55  }
 0xbea   :  { %v1134_v27 = vsel %vm265_vm8, %v1132_v32, 0.0  ;;  %v1137_v17 = vsel %vm265_vm8, %v1133_v60, 0.0 }
 0xbf0   :  { %3209 = vset.pattern.permute.xlu2 %v3447_v0  ;;  %3208 = vset.pattern.permute.xlu1 %v3449_v34 }
 0xbf1   :  { %1213 = vperm.xlu1 %3208, %v4042_v55   ;;  %1181 = vperm.xlu2 %3209, %v4047_v18  }
 0xbf2   :  { %3212 = vset.pattern.permute.xlu0 %v3449_v34 }
 0xbf9   :  { %3210 = vset.pattern.permute.xlu1 %v3446_v63  ;;  %3211 = vset.pattern.permute.xlu2 %v3448_v20 }
 0xc13   :  { %1135 = vadd.xlane.f32.xlu0 %v1134_v27 }
 0xc1a   :  { %1127 = vadd.xlane.f32.xlu2 %v1126_v59 }
 0xc1b   :  { %1130 = vadd.xlane.f32.xlu1 %v1129_v37 }
 0xc22   :  { %1138 = vadd.xlane.f32.xlu2 %v1137_v17 }
 0xc27   :  { %1217 = vperm.xlu0 %3212, %v4047_v18  }
 0xc2f   :  { %3214 = vset.pattern.permute.xlu0 %v3446_v63 }
 0xc34   :  { %1193 = vperm.xlu1 %3210, %v4047_v18  }
 0xc3a   :  { %1205 = vperm.xlu2 %3211, %v4047_v18  }
 0xc3c   :  { %3215 = vset.pattern.permute.xlu1 %v3448_v20 }
 0xc42   :  { %3213 = vset.pattern.permute.xlu2 %v3447_v0  ;;  %v1202_v13 = vpop.permute.xlu2 %1201 }
 0xc43   :  { %v1208_v4 = vmul.f32 %v1202_v13, %v3608_v15 }
 0xc4b   :  { %v1182_v26 = vpop.permute.xlu2 %1181 }
 0xc5a   :  { %v1190_v30 = vpop.permute.xlu1 %1189 }
 0xc5b   :  { %v1177_v6 = vpop.permute.xlu0 %1176  ;;  %v1196_v49 = vmul.f32 %v1190_v30, %v3600_v10 }
 0xc5c   :  { %v1184_v53 = vmul.f32 %v1177_v6, %v3597_v7 }
 0xc5e   :  { %v1186_v46 = vadd.f32 %v1184_v53, %v246_v45 }
 0xc60   :  { %v1198_v29 = vadd.f32 %v1196_v49, %v1186_v46  ;;  %v1185_v49 = vmul.f32 %v1182_v26, %v3597_v7 }
 0xc62   :  { %v1210_v9 = vadd.f32 %v1208_v4, %v1198_v29 }
 0xc63   :  { %v1214_v48 = vpop.permute.xlu1 %1213 }
 0xc64   :  { %v1220_v21 = vmul.f32 %v1214_v48, %v3613_v24 }
 0xc66   :  { %v1222_v3 = vadd.f32 %v1220_v21, %v1210_v9 }
 0xc86   :  { %v1136_v54 = vpop.xlane.xlu0 %1135 }
 0xc87   :  { %v1144_v23 = vadd.f32 %v1136_v54, %v3579_v50 }
 0xc89   :  { %v1146_v42 = vmul.f32 0.014705882, %v1144_v23 }
 0xc8d   :  { %v1128_v62 = vpop.xlane.xlu2 %1127 }
 0xc8e   :  { %v1140_v36 = vadd.f32 %v1128_v62, %v248_v35  ;;  %v1131_v52 = vpop.xlane.xlu1 %1130 }
 0xc8f   :  { %v1141_v61 = vadd.f32 %v1131_v52, %v248_v35  ;;  %v247_v35 = vadd.f32 %v245_v33, %v3604_v12 }
 0xc90   :  { %v1142_v56 = vmul.f32 0.014705882, %v1140_v36 }
 0xc91   :  { %v1143_v59 = vmul.f32 0.014705882, %v1141_v61  ;;  %v1187_v21 = vadd.f32 %v1185_v49, %v247_v35 }
 0xc92   :  { %v1148_v44 = vmul.f32 %v1142_v56, %v1142_v56  ;;  %v1224_v2 = vmul.f32 %v3926_v16, %v1142_v56 }
 0xc93   :  { %v1149_v13 = vmul.f32 %v1143_v59, %v1143_v59 }
 0xc94   :  { %v1150_v32 = vsub.f32 %v1146_v42, %v1148_v44  ;;  %v1226_v27 = vsub.f32 %v1222_v3, %v1224_v2 }
 0xc95   :  { %v1139_v37 = vpop.xlane.xlu2 %1138 }
 0xc96   :  { %v1152_v60 = vadd.f32 1e-05, %v1150_v32  ;;  %v1145_v17 = vadd.f32 %v1139_v37, %v3579_v50 }
 0xc98   :  { %3319 = vrsqrt.f32 %v1152_v60  ;;  %v1147_v30 = vmul.f32 0.014705882, %v1145_v17  ;;  %vm1160_vm11 = vweird.f32 %v1152_v60 }
 0xc99   :  { %v1218_v61 = vpop.permute.xlu0 %1217 }
 0xc9a   :  { %v1151_v6 = vsub.f32 %v1147_v30, %v1149_v13  ;;  %v1221_v32 = vmul.f32 %v1218_v61, %v3613_v24 }
 0xc9c   :  { %v1153_v53 = vadd.f32 1e-05, %v1151_v6 }
 0xc9d   :  { %v1206_v23 = vpop.permute.xlu2 %1205 }
 0xc9e   :  { %v3320_v45 = vpop.eup %3319  ;;  %3321 = vrsqrt.f32 %v1153_v53  ;;  %v1209_v26 = vmul.f32 %v1206_v23, %v3608_v15  ;;  %vm1170_vm14 = vweird.f32 %v1153_v53 }
 0xc9f   :  { %v1155_v48 = vmul.f32 %v3320_v45, %v1152_v60  ;;  %vm1161_vm10 = vweird.f32 %v3320_v45  ;;  %v1225_v60 = vmul.f32 %v3926_v16, %v1143_v59 }
 0xca0   :  { %vm1162_vm12 = vmor %vm1160_vm11, %vm1161_vm10 }
 0xca1   :  { %v1156_v46 = vmul.f32 %v3320_v45, %v1155_v48 }
 0xca3   :  { %v1157_v54 = vmul.f32 0.5, %v1156_v46 }
 0xca4   :  { %v3322_v29 = vpop.eup %3321 }
 0xca5   :  { %v1158_v62 = vsub.f32 1.5, %v1157_v54  ;;  %v1165_v4 = vmul.f32 %v3322_v29, %v1153_v53  ;;  %vm1171_vm13 = vweird.f32 %v3322_v29 }
 0xca6   :  { %v1194_v36 = vpop.permute.xlu1 %1193  ;;  %vm1172_vm15 = vmor %vm1170_vm14, %vm1171_vm13 }
 0xca7   :  { %v1166_v52 = vmul.f32 %v3322_v29, %v1165_v4  ;;  %v1197_v9 = vmul.f32 %v1194_v36, %v3600_v10  ;;  %v1159_v56 = vmul.f32 %v3320_v45, %v1158_v62 }
 0xca9   :  { %v1167_v3 = vmul.f32 0.5, %v1166_v52  ;;  %v1199_v42 = vadd.f32 %v1197_v9, %v1187_v21  ;;  %v1163_v44 = vsel %vm1162_vm12, %v3320_v45, %v1159_v56 }
 0xcaa   :  { %v1228_v2 = vmul.f32 %v1226_v27, %v1163_v44 }
 0xcab   :  { %v1168_v33 = vsub.f32 1.5, %v1167_v3  ;;  %v1211_v37 = vadd.f32 %v1209_v26, %v1199_v42 }
 0xcac   :  { %v1230_v17 = vadd.f32 %v3932_v5, %v1228_v2 }
 0xcad   :  { %v1223_v13 = vadd.f32 %v1221_v32, %v1211_v37  ;;  %v1169_v30 = vmul.f32 %v3322_v29, %v1168_v33 }
 0xcae   :  { %v1232_v6 = vmax.f32 %v1230_v17, 0.0 }
 0xcaf   :  { %v1227_v48 = vsub.f32 %v1223_v13, %v1225_v60  ;;  %v1173_v46 = vsel %vm1172_vm15, %v3322_v29, %v1169_v30 }
 0xcb0   :  { %v1234_v49 = vsel %vm105_vm4, %v1232_v6, 0.0  ;;  %v1240_v45 = vmul.f32 %v1232_v6, %v1232_v6 }
 0xcb1   :  { %1235 = vadd.xlane.f32.xlu1 %v1234_v49  ;;  %v1229_v27 = vmul.f32 %v1227_v48, %v1173_v46 }
 0xcb2   :  { %v1242_v54 = vsel %vm105_vm4, %v1240_v45, 0.0 }
 0xcb3   :  { %1243 = vadd.xlane.f32.xlu2 %v1242_v54  ;;  %v1231_v35 = vadd.f32 %v3932_v5, %v1229_v27 }
 0xcb5   :  { %v1233_v62 = vmax.f32 %v1231_v35, 0.0 }
 0xcb7   :  { %v1237_v59 = vsel %vm105_vm4, %v1233_v62, 0.0  ;;  %v1241_v53 = vmul.f32 %v1233_v62, %v1233_v62 }
 0xcb8   :  { %1238 = vadd.xlane.f32.xlu0 %v1237_v59 }
 0xcb9   :  { %v1245_v4 = vsel %vm105_vm4, %v1241_v53, 0.0 }
 0xcba   :  { %1246 = vadd.xlane.f32.xlu1 %v1245_v4 }
 0xd24   :  { %v1236_v21 = vpop.xlane.xlu1 %1235 }
 0xd25   :  { %v1248_v29 = vmul.f32 0.03125, %v1236_v21 }
 0xd26   :  { %v1244_v23 = vpop.xlane.xlu2 %1243 }
 0xd27   :  { %v1252_v36 = vmul.f32 %v1248_v29, %v1248_v29  ;;  %v1250_v52 = vmul.f32 0.03125, %v1244_v23  ;;  %v1256_v49 = vsub.f32 %v1232_v6, %v1248_v29 }
 0xd29   :  { %v1254_v9 = vsub.f32 %v1250_v52, %v1252_v36 }
 0xd2b   :  { %v1258_v56 = vadd.f32 1e-05, %v1254_v9  ;;  %v1239_v61 = vpop.xlane.xlu0 %1238 }
 0xd2c   :  { %v1249_v3 = vmul.f32 0.03125, %v1239_v61 }
 0xd2d   :  { %3323 = vrsqrt.f32 %v1258_v56  ;;  %v1247_v26 = vpop.xlane.xlu1 %1246  ;;  %vm1266_vm1 = vweird.f32 %v1258_v56 }
 0xd2e   :  { %v1253_v42 = vmul.f32 %v1249_v3, %v1249_v3  ;;  %v1251_v44 = vmul.f32 0.03125, %v1247_v26  ;;  %v1257_v23 = vsub.f32 %v1233_v62, %v1249_v3 }
 0xd30   :  { %v1255_v2 = vsub.f32 %v1251_v44, %v1253_v42 }
 0xd32   :  { %v1259_v33 = vadd.f32 1e-05, %v1255_v2 }
 0xd33   :  { %v3324_v32 = vpop.eup %3323 }
 0xd34   :  { %v1261_v37 = vmul.f32 %v3324_v32, %v1258_v56  ;;  %3325 = vrsqrt.f32 %v1259_v33  ;;  %vm1267_vm0 = vweird.f32 %v3324_v32  ;;  %vm1276_vm5 = vweird.f32 %v1259_v33 }
 0xd35   :  { %vm1268_vm2 = vmor %vm1266_vm1, %vm1267_vm0 }
 0xd36   :  { %v1262_v17 = vmul.f32 %v3324_v32, %v1261_v37 }
 0xd38   :  { %v1263_v60 = vmul.f32 0.5, %v1262_v17 }
 0xd3a   :  { %v3326_v13 = vpop.eup %3325  ;;  %v1264_v30 = vsub.f32 1.5, %v1263_v60 }
 0xd3b   :  { %v1271_v48 = vmul.f32 %v3326_v13, %v1259_v33  ;;  %vm1277_vm3 = vweird.f32 %v3326_v13 }
 0xd3c   :  { %v1265_v46 = vmul.f32 %v3324_v32, %v1264_v30  ;;  %vm1278_vm6 = vmor %vm1276_vm5, %vm1277_vm3 }
 0xd3d   :  { %v1272_v45 = vmul.f32 %v3326_v13, %v1271_v48 }
 0xd3e   :  { %v1269_v27 = vsel %vm1268_vm2, %v3324_v32, %v1265_v46 }
 0xd3f   :  { %v1280_v54 = vmul.f32 %v1269_v27, %v1256_v49  ;;  %v1273_v35 = vmul.f32 0.5, %v1272_v45 }
 0xd41   :  { %v1282_v59 = vmul.f32 %v3950_v22, %v1280_v54  ;;  %v1274_v53 = vsub.f32 1.5, %v1273_v35 }
 0xd43   :  { %v1275_v4 = vmul.f32 %v3326_v13, %v1274_v53  ;;  %v1284_v21 = vadd.f32 %v3956_v31, %v1282_v59 }
 0xd45   :  { %3144 = vmatmul.msk.f32.vlgmr.msra.gmra.mxu1 %vm105_vm4, %v1284_v21  ;;  %v1279_v36 = vsel %vm1278_vm6, %v3326_v13, %v1275_v4 }
 0xd46   :  { %v1281_v52 = vmul.f32 %v1279_v36, %v1257_v23  ;;  %2440 = vmatpush.msra.mxu1 %v3963_v25 }
 0xd48   :  { %v1283_v6 = vmul.f32 %v3950_v22, %v1281_v52  ;;  %2441 = vmatpush.msra.mxu1 %v3969_v38 }
 0xd4a   :  { %v1285_v29 = vadd.f32 %v3956_v31, %v1283_v6  ;;  %2442 = vmatpush.msra.mxu1 %v3975_v39 }
 0xd4c   :  { %2443 = vmatpush.msra.mxu1 %v3981_v40 }
 0xd4d   :  { %3145 = vmatmul.msk.f32.gmra.mxu1 %vm105_vm4, %v1285_v29 }
 0xdc2   :  { %v1309_v62 = vpop.f32.mrf.mxu1 }
 0xdc3   :  { %v1310_v9 = vadd.f32 %v3990_v1, %v1309_v62 }
 0xdc5   :  { %v1315_v56 = vmax.f32 %v1310_v9, 0.0 }
 0xdc7   :  { %v1317_v61 = vsel %vm105_vm4, %v1315_v56, 0.0  ;;  %v1323_v3 = vmul.f32 %v1315_v56, %v1315_v56 }
 0xdc8   :  { %1318 = vadd.xlane.f32.xlu2 %v1317_v61 }
 0xdc9   :  { %v1325_v26 = vsel %vm105_vm4, %v1323_v3, 0.0 }
 0xdca   :  { %1326 = vadd.xlane.f32.xlu1 %v1325_v26  ;;  %v1312_v42 = vpop.f32.mrf.mxu1 }
 0xdcb   :  { %v1313_v44 = vadd.f32 %v3990_v1, %v1312_v42 }
 0xdcd   :  { %v1316_v2 = vmax.f32 %v1313_v44, 0.0 }
 0xdcf   :  { %v1320_v33 = vsel %vm105_vm4, %v1316_v2, 0.0  ;;  %v1324_v32 = vmul.f32 %v1316_v2, %v1316_v2 }
 0xdd0   :  { %1321 = vadd.xlane.f32.xlu2 %v1320_v33 }
 0xdd1   :  { %v1328_v37 = vsel %vm105_vm4, %v1324_v32, 0.0 }
 0xdd2   :  { %1329 = vadd.xlane.f32.xlu0 %v1328_v37 }
 0xe3b   :  { %v1319_v17 = vpop.xlane.xlu2 %1318 }
 0xe3c   :  { %v1331_v60 = vmul.f32 0.03125, %v1319_v17 }
 0xe3d   :  { %v1327_v13 = vpop.xlane.xlu1 %1326 }
 0xe3e   :  { %v1335_v30 = vmul.f32 %v1331_v60, %v1331_v60  ;;  %v1333_v48 = vmul.f32 0.03125, %v1327_v13  ;;  %v1339_v61 = vsub.f32 %v1315_v56, %v1331_v60 }
 0xe40   :  { %v1337_v46 = vsub.f32 %v1333_v48, %v1335_v30 }
 0xe42   :  { %v1341_v49 = vadd.f32 1e-05, %v1337_v46  ;;  %v4123_v46 = vld [vmem:[%s4708_s0 + $0xf] ss:$0 sm:$0xff] }
 0xe43   :  { %v1322_v45 = vpop.xlane.xlu2 %1321 }
 0xe44   :  { %3327 = vrsqrt.f32 %v1341_v49  ;;  %v1332_v27 = vmul.f32 0.03125, %v1322_v45  ;;  %vm1349_vm9 = vweird.f32 %v1341_v49 }
 0xe45   :  { %v1330_v54 = vpop.xlane.xlu0 %1329 }
 0xe46   :  { %v1336_v35 = vmul.f32 %v1332_v27, %v1332_v27  ;;  %v1334_v59 = vmul.f32 0.03125, %v1330_v54  ;;  %v1340_v13 = vsub.f32 %v1316_v2, %v1332_v27 }
 0xe48   :  { %v1338_v53 = vsub.f32 %v1334_v59, %v1336_v35 }
 0xe4a   :  { %v3328_v4 = vpop.eup %3327  ;;  %v1342_v21 = vadd.f32 1e-05, %v1338_v53 }
 0xe4b   :  { %v1344_v23 = vmul.f32 %v3328_v4, %v1341_v49  ;;  %vm1350_vm7 = vweird.f32 %v3328_v4 }
 0xe4c   :  { %3329 = vrsqrt.f32 %v1342_v21  ;;  %vm1351_vm10 = vmor %vm1349_vm9, %vm1350_vm7  ;;  %vm1359_vm12 = vweird.f32 %v1342_v21 }
 0xe4d   :  { %v1345_v36 = vmul.f32 %v3328_v4, %v1344_v23 }
 0xe4f   :  { %v1346_v52 = vmul.f32 0.5, %v1345_v36 }
 0xe51   :  { %v1347_v6 = vsub.f32 1.5, %v1346_v52 }
 0xe52   :  { %v3330_v29 = vpop.eup %3329 }
 0xe53   :  { %v1348_v62 = vmul.f32 %v3328_v4, %v1347_v6  ;;  %v1354_v9 = vmul.f32 %v3330_v29, %v1342_v21  ;;  %vm1360_vm11 = vweird.f32 %v3330_v29 }
 0xe54   :  { %vm1361_vm13 = vmor %vm1359_vm12, %vm1360_vm11 }
 0xe55   :  { %v1352_v3 = vsel %vm1351_vm10, %v3328_v4, %v1348_v62  ;;  %v1355_v26 = vmul.f32 %v3330_v29, %v1354_v9 }
 0xe56   :  { %v1363_v42 = vmul.f32 %v1352_v3, %v1339_v61 }
 0xe57   :  { %v1356_v44 = vmul.f32 0.5, %v1355_v26 }
 0xe58   :  { %v1365_v33 = vmul.f32 %v4028_v51, %v1363_v42 }
 0xe59   :  { %v1357_v32 = vsub.f32 1.5, %v1356_v44 }
 0xe5a   :  { %v1367_v37 = vadd.f32 %v4034_v57, %v1365_v33 }
 0xe5b   :  { %v1358_v17 = vmul.f32 %v3330_v29, %v1357_v32  ;;  %v241_v32 = vperm.slane %v3914_v58, 5 }
 0xe5c   :  { %3146 = vmatmul.msk.f32.vlgmr.msra.gmra.mxu2 %vm105_vm4, %v1367_v37 }
 0xe5d   :  { %v1362_v30 = vsel %vm1361_vm13, %v3330_v29, %v1358_v17  ;;  %2523 = vmatpush.msra.mxu2 %v4004_v8  ;;  %v244_v17 = vadd.f32 14.145121, %v3576_v47 }
 0xe5e   :  { %v1364_v56 = vmul.f32 %v1362_v30, %v1340_v13  ;;  %v242_v30 = vadd.f32 %v241_v32, %v3602_v11 }
 0xe5f   :  { %2524 = vmatpush.msra.mxu2 %v4010_v14 }
 0xe60   :  { %v1366_v60 = vmul.f32 %v4028_v51, %v1364_v56 }
 0xe61   :  { %2525 = vmatpush.msra.mxu2 %v4016_v19 }
 0xe62   :  { %v1368_v48 = vadd.f32 %v4034_v57, %v1366_v60 }
 0xe63   :  { %2526 = vmatpush.msra.mxu2 %v4022_v28 }
 0xe64   :  { %3147 = vmatmul.msk.f32.gmra.mxu2 %vm105_vm4, %v1368_v48 }
 0xedf   :  { %v1392_v2 = vpop.f32.mrf.mxu2 }
 0xee0   :  { %v1393_v49 = vadd.f32 %v4123_v46, %v1392_v2 }
 0xee2   :  { %v1398_v45 = vmul.f32 0.06214834, %v1393_v49 }
 0xee4   :  { %v1400_v27 = vsub.f32 %v4042_v55, %v1398_v45 }
 0xee6   :  { %v1402_v53 = vmul.f32 1.0067511, %v1400_v27 }
 0xee7   :  { %v1395_v54 = vpop.f32.mrf.mxu2 }
 0xee8   :  { %v1396_v35 = vadd.f32 %v4123_v46, %v1395_v54  ;;  %v1404_v23 = vmul.f32 0.9, %v1402_v53  ;;  %v1407_v36 = vmul.f32 0.1, %v1402_v53 }
 0xeea   :  { %v1399_v59 = vmul.f32 0.06214834, %v1396_v35 }
 0xeec   :  { %v1401_v4 = vsub.f32 %v4047_v18, %v1399_v59 }
 0xeee   :  { %v1403_v21 = vmul.f32 1.0067511, %v1401_v4 }
 0xef0   :  { %v1405_v52 = vmul.f32 0.9, %v1403_v21  ;;  %v1406_v6 = vmul.f32 0.1, %v1403_v21 }
 0xef2   :  { %v4129_v29 = vadd.f32 %v1406_v6, %v1404_v23  ;;  %v4131_v62 = vadd.f32 %v1407_v36, %v1405_v52 }
 0xef4   :  { %1460 = vperm.xlu2 %3213, %v4129_v29   ;;  %v1413_v55 = vsel %vm265_vm8, %v4131_v62, 0.0  ;;  %v1410_v9 = vsel %vm265_vm8, %v4129_v29, 0.0  ;;  %v1416_v18 = vmul.f32 %v4129_v29, %v4129_v29  ;;  %v1417_v3 = vmul.f32 %v4131_v62, %v4131_v62 }
 0xef5   :  { %1414 = vadd.xlane.f32.xlu0 %v1413_v55  ;;  %1411 = vadd.xlane.f32.xlu1 %v1410_v9 }
 0xef6   :  { %v1418_v61 = vsel %vm265_vm8, %v1416_v18, 0.0  ;;  %v1421_v26 = vsel %vm265_vm8, %v1417_v3, 0.0 }
 0xefc   :  { %3216 = vset.pattern.permute.xlu2 %v3449_v34 }
 0xefd   :  { %1497 = vperm.xlu2 %3216, %v4129_v29  }
 0xf05   :  { %3217 = vset.pattern.permute.xlu2 %v3447_v0 }
 0xf06   :  { %1465 = vperm.xlu2 %3217, %v4131_v62  }
 0xf09   :  { %1473 = vperm.xlu0 %3214, %v4129_v29  }
 0xf0e   :  { %1485 = vperm.xlu1 %3215, %v4129_v29   ;;  %3219 = vset.pattern.permute.xlu2 %v3448_v20 }
 0xf11   :  { %3221 = vset.pattern.permute.xlu0 %v3447_v0 }
 0xf16   :  { %3218 = vset.pattern.permute.xlu1 %v3446_v63 }
 0xf17   :  { %1477 = vperm.xlu1 %3218, %v4131_v62  }
 0xf1f   :  { %3220 = vset.pattern.permute.xlu1 %v3449_v34 }
 0xf2f   :  { %1419 = vadd.xlane.f32.xlu2 %v1418_v61 }
 0xf41   :  { %1422 = vadd.xlane.f32.xlu1 %v1421_v26 }
 0xf47   :  { %1489 = vperm.xlu2 %3219, %v4131_v62  }
 0xf4e   :  { %v1461_v44 = vpop.permute.xlu2 %1460 }
 0xf4f   :  { %3222 = vset.pattern.permute.xlu2 %v3446_v63  ;;  %v1468_v37 = vmul.f32 %v1461_v44, %v3597_v7 }
 0xf51   :  { %v1470_v48 = vadd.f32 %v1468_v37, %v242_v30 }
 0xf57   :  { %v1498_v2 = vpop.permute.xlu2 %1497 }
 0xf58   :  { %v1504_v35 = vmul.f32 %v1498_v2, %v3613_v24 }
 0xf5a   :  { %1501 = vperm.xlu1 %3220, %v4131_v62  }
 0xf60   :  { %v1466_v21 = vpop.permute.xlu2 %1465 }
 0xf62   :  { %3223 = vset.pattern.permute.xlu1 %v3448_v20 }
 0xf68   :  { %v1415_v42 = vpop.xlane.xlu0 %1414  ;;  %v1412_v33 = vpop.xlane.xlu1 %1411 }
 0xf69   :  { %v1424_v56 = vadd.f32 %v1412_v33, %v244_v17  ;;  %v1425_v61 = vadd.f32 %v1415_v42, %v244_v17 }
 0xf6b   :  { %v1426_v45 = vmul.f32 0.014705882, %v1424_v56  ;;  %v1427_v44 = vmul.f32 0.014705882, %v1425_v61 }
 0xf6d   :  { %v1508_v59 = vmul.f32 %v3926_v16, %v1426_v45  ;;  %v1432_v52 = vmul.f32 %v1426_v45, %v1426_v45  ;;  %v1433_v30 = vmul.f32 %v1427_v44, %v1427_v44 }
 0xf7b   :  { %v1474_v13 = vpop.permute.xlu0 %1473 }
 0xf7c   :  { %v1480_v60 = vmul.f32 %v1474_v13, %v3600_v10 }
 0xf7e   :  { %v1482_v27 = vadd.f32 %v1480_v60, %v1470_v48 }
 0xf80   :  { %v1486_v49 = vpop.permute.xlu1 %1485 }
 0xf81   :  { %v1492_v54 = vmul.f32 %v1486_v49, %v3608_v15 }
 0xf83   :  { %v1494_v58 = vadd.f32 %v1492_v54, %v1482_v27 }
 0xf85   :  { %v1506_v53 = vadd.f32 %v1504_v35, %v1494_v58 }
 0xf87   :  { %v1510_v4 = vsub.f32 %v1506_v53, %v1508_v59  ;;  %v1469_v53 = vmul.f32 %v1466_v21, %v3597_v7 }
 0xf89   :  { %v1478_v18 = vpop.permute.xlu1 %1477 }
 0xfa2   :  { %v1420_v23 = vpop.xlane.xlu2 %1419 }
 0xfa3   :  { %v1428_v36 = vadd.f32 %v1420_v23, %v3579_v50 }
 0xfa5   :  { %v1430_v6 = vmul.f32 0.014705882, %v1428_v36 }
 0xfa7   :  { %v1434_v55 = vsub.f32 %v1430_v6, %v1432_v52 }
 0xfa9   :  { %v1436_v9 = vadd.f32 1e-05, %v1434_v55 }
 0xfaa   :  { %v1490_v36 = vpop.permute.xlu2 %1489 }
 0xfab   :  { %3331 = vrsqrt.f32 %v1436_v9  ;;  %vm1444_vm15 = vweird.f32 %v1436_v9 }
 0xfb1   :  { %v3332_v3 = vpop.eup %3331 }
 0xfb2   :  { %v1439_v26 = vmul.f32 %v3332_v3, %v1436_v9  ;;  %vm1445_vm14 = vweird.f32 %v3332_v3  ;;  %v1493_v9 = vmul.f32 %v1490_v36, %v3608_v15 }
 0xfb3   :  { %vm1446_vm0 = vmor %vm1444_vm15, %vm1445_vm14 }
 0xfb4   :  { %v1440_v33 = vmul.f32 %v3332_v3, %v1439_v26  ;;  %v1423_v37 = vpop.xlane.xlu1 %1422 }
 0xfb5   :  { %v1429_v16 = vadd.f32 %v1423_v37, %v3579_v50 }
 0xfb6   :  { %v1441_v13 = vmul.f32 0.5, %v1440_v33 }
 0xfb7   :  { %v1431_v56 = vmul.f32 0.014705882, %v1429_v16  ;;  %v4185_v16 = vld [vmem:[%s4708_s0 + $0x9] ss:$0 sm:$0xff] }
 0xfb8   :  { %v1442_v60 = vsub.f32 1.5, %v1441_v13 }
 0xfb9   :  { %v1435_v48 = vsub.f32 %v1431_v56, %v1433_v30 }
 0xfba   :  { %v1443_v2 = vmul.f32 %v3332_v3, %v1442_v60  ;;  %v4191_v60 = vld [vmem:[%s4708_s0 + $0x8] ss:$0 sm:$0xff] }
 0xfbb   :  { %v1437_v49 = vadd.f32 1e-05, %v1435_v48 }
 0xfbc   :  { %v1447_v45 = vsel %vm1446_vm0, %v3332_v3, %v1443_v2 }
 0xfbd   :  { %3333 = vrsqrt.f32 %v1437_v49  ;;  %v1512_v42 = vmul.f32 %v1510_v4, %v1447_v45  ;;  %v1481_v4 = vmul.f32 %v1478_v18, %v3600_v10  ;;  %vm1454_vm2 = vweird.f32 %v1437_v49 }
 0xfbf   :  { %v1514_v17 = vadd.f32 %v3932_v5, %v1512_v42  ;;  %v243_v5 = vadd.f32 %v241_v32, %v3604_v12  ;;  %v1509_v32 = vmul.f32 %v4185_v16, %v1427_v44 }
 0xfc1   :  { %v4170_v27 = vmax.f32 %v1514_v17, 0.0  ;;  %v1471_v55 = vadd.f32 %v1469_v53, %v243_v5 }
 0xfc3   :  { %v3334_v54 = vpop.eup %3333  ;;  %v1518_v35 = vsel %vm105_vm4, %v4170_v27, 0.0  ;;  %v1524_v58 = vmul.f32 %v4170_v27, %v4170_v27  ;;  %v1483_v3 = vadd.f32 %v1481_v4, %v1471_v55 }
 0xfc4   :  { %v1449_v59 = vmul.f32 %v3334_v54, %v1437_v49  ;;  %1519 = vadd.xlane.f32.xlu0 %v1518_v35  ;;  %vm1455_vm1 = vweird.f32 %v3334_v54 }
 0xfc5   :  { %v1526_v23 = vsel %vm105_vm4, %v1524_v58, 0.0  ;;  %v1495_v33 = vadd.f32 %v1493_v9, %v1483_v3  ;;  %vm1456_vm3 = vmor %vm1454_vm2, %vm1455_vm1 }
 0xfc6   :  { %v1450_v52 = vmul.f32 %v3334_v54, %v1449_v59  ;;  %1527 = vadd.xlane.f32.xlu2 %v1526_v23 }
 0xfc8   :  { %v1451_v6 = vmul.f32 0.5, %v1450_v52 }
 0xfca   :  { %v1452_v61 = vsub.f32 1.5, %v1451_v6 }
 0xfcc   :  { %v1502_v26 = vpop.permute.xlu1 %1501  ;;  %v1453_v21 = vmul.f32 %v3334_v54, %v1452_v61 }
 0xfcd   :  { %v1505_v37 = vmul.f32 %v1502_v26, %v3613_v24 }
 0xfce   :  { %v1457_v30 = vsel %vm1456_vm3, %v3334_v54, %v1453_v21 }
 0xfcf   :  { %v1507_v18 = vadd.f32 %v1505_v37, %v1495_v33 }
 0xfd1   :  { %v1511_v13 = vsub.f32 %v1507_v18, %v1509_v32 }
 0xfd3   :  { %v1513_v56 = vmul.f32 %v1511_v13, %v1457_v30 }
 0xfd5   :  { %v1515_v48 = vadd.f32 %v4191_v60, %v1513_v56 }
 0xfd7   :  { %v1517_v2 = vmax.f32 %v1515_v48, 0.0 }
 0xfd9   :  { %v1521_v45 = vsel %vm105_vm4, %v1517_v2, 0.0  ;;  %v1525_v42 = vmul.f32 %v1517_v2, %v1517_v2 }
 0xfda   :  { %1522 = vadd.xlane.f32.xlu1 %v1521_v45 }
 0xfdb   :  { %v1529_v44 = vsel %vm105_vm4, %v1525_v42, 0.0 }
 0xfdc   :  { %1530 = vadd.xlane.f32.xlu0 %v1529_v44 }
0x1037   :  { %v1520_v49 = vpop.xlane.xlu0 %1519 }
0x1038   :  { %v1532_v17 = vmul.f32 0.03125, %v1520_v49 }
0x1039   :  { %v1528_v35 = vpop.xlane.xlu2 %1527 }
0x103a   :  { %v1536_v54 = vmul.f32 %v1532_v17, %v1532_v17  ;;  %v1534_v58 = vmul.f32 0.03125, %v1528_v35  ;;  %v1540_v3 = vsub.f32 %v4170_v27, %v1532_v17 }
0x103c   :  { %v1538_v59 = vsub.f32 %v1534_v58, %v1536_v54 }
0x103e   :  { %v1542_v53 = vadd.f32 1e-05, %v1538_v59 }
0x1040   :  { %3335 = vrsqrt.f32 %v1542_v53  ;;  %vm1550_vm6 = vweird.f32 %v1542_v53 }
0x1046   :  { %v3336_v23 = vpop.eup %3335 }
0x1047   :  { %v1545_v36 = vmul.f32 %v3336_v23, %v1542_v53  ;;  %vm1551_vm5 = vweird.f32 %v3336_v23 }
0x1048   :  { %vm1552_vm7 = vmor %vm1550_vm6, %vm1551_vm5 }
0x1049   :  { %v1546_v52 = vmul.f32 %v3336_v23, %v1545_v36 }
0x104b   :  { %v1547_v5 = vmul.f32 0.5, %v1546_v52 }
0x104d   :  { %v1548_v4 = vsub.f32 1.5, %v1547_v5  ;;  %v1523_v6 = vpop.xlane.xlu1 %1522 }
0x104e   :  { %v1533_v55 = vmul.f32 0.03125, %v1523_v6 }
0x104f   :  { %v1549_v9 = vmul.f32 %v3336_v23, %v1548_v4  ;;  %v1531_v61 = vpop.xlane.xlu0 %1530 }
0x1050   :  { %v1537_v26 = vmul.f32 %v1533_v55, %v1533_v55  ;;  %v1535_v33 = vmul.f32 0.03125, %v1531_v61  ;;  %v1541_v44 = vsub.f32 %v1517_v2, %v1533_v55 }
0x1051   :  { %v1553_v37 = vsel %vm1552_vm7, %v3336_v23, %v1549_v9 }
0x1052   :  { %v1564_v21 = vmul.f32 %v1553_v37, %v1540_v3  ;;  %v1539_v32 = vsub.f32 %v1535_v33, %v1537_v26 }
0x1054   :  { %v1566_v18 = vmul.f32 %v3950_v22, %v1564_v21  ;;  %v1543_v13 = vadd.f32 1e-05, %v1539_v32 }
0x1056   :  { %3337 = vrsqrt.f32 %v1543_v13  ;;  %v1568_v30 = vadd.f32 %v3956_v31, %v1566_v18  ;;  %vm1560_vm10 = vweird.f32 %v1543_v13 }
0x1058   :  { %3148 = vmatmul.msk.f32.vlgmr.msrb.gmra.mxu3 %vm105_vm4, %v1568_v30 }
0x1059   :  { %2724 = vmatpush.msrb.mxu3 %v3963_v25  ;;  %v4207_v25 = vld [vmem:[%s4708_s0 + $0xa] ss:$0 sm:$0xff] }
0x105b   :  { %2725 = vmatpush.msrb.mxu3 %v3969_v38 }
0x105c   :  { %v3338_v56 = vpop.eup %3337 }
0x105d   :  { %v1555_v27 = vmul.f32 %v3338_v56, %v1543_v13  ;;  %2726 = vmatpush.msrb.mxu3 %v3975_v39  ;;  %vm1561_vm9 = vweird.f32 %v3338_v56  ;;  %v4213_v39 = vld [vmem:[%s4708_s0 + $0xb] ss:$0 sm:$0xff] }
0x105e   :  { %vm1562_vm11 = vmor %vm1560_vm10, %vm1561_vm9 }
0x105f   :  { %v1556_v48 = vmul.f32 %v3338_v56, %v1555_v27  ;;  %2727 = vmatpush.msrb.mxu3 %v3981_v40 }
0x1061   :  { %v1557_v45 = vmul.f32 0.5, %v1556_v48 }
0x1063   :  { %v1558_v42 = vsub.f32 1.5, %v1557_v45 }
0x1065   :  { %v1559_v22 = vmul.f32 %v3338_v56, %v1558_v42 }
0x1067   :  { %v1563_v31 = vsel %vm1562_vm11, %v3338_v56, %v1559_v22 }
0x1068   :  { %v1565_v49 = vmul.f32 %v1563_v31, %v1541_v44 }
0x106a   :  { %v1567_v38 = vmul.f32 %v4207_v25, %v1565_v49 }
0x106c   :  { %v1569_v40 = vadd.f32 %v4213_v39, %v1567_v38 }
0x106e   :  { %3149 = vmatmul.msk.f32.gmra.mxu3 %vm105_vm4, %v1569_v40 }
0x10db   :  { %v1593_v2 = vpop.f32.mrf.mxu3 }
0x10dc   :  { %v1594_v17 = vadd.f32 %v3990_v1, %v1593_v2 }
0x10de   :  { %v1599_v35 = vmax.f32 %v1594_v17, 0.0 }
0x10e0   :  { %v1601_v54 = vsel %vm105_vm4, %v1599_v35, 0.0  ;;  %v1607_v58 = vmul.f32 %v1599_v35, %v1599_v35 }
0x10e1   :  { %1602 = vadd.xlane.f32.xlu2 %v1601_v54 }
0x10e2   :  { %v1609_v59 = vsel %vm105_vm4, %v1607_v58, 0.0 }
0x10e3   :  { %1610 = vadd.xlane.f32.xlu1 %v1609_v59 }
0x10f1   :  { %v1596_v53 = vpop.f32.mrf.mxu3 }
0x10f2   :  { %v1597_v23 = vadd.f32 %v3990_v1, %v1596_v53 }
0x10f4   :  { %v1600_v36 = vmax.f32 %v1597_v23, 0.0 }
0x10f6   :  { %v1604_v52 = vsel %vm105_vm4, %v1600_v36, 0.0  ;;  %v1608_v5 = vmul.f32 %v1600_v36, %v1600_v36 }
0x10f7   :  { %1605 = vadd.xlane.f32.xlu0 %v1604_v52 }
0x10f8   :  { %v1612_v4 = vsel %vm105_vm4, %v1608_v5, 0.0 }
0x10f9   :  { %1613 = vadd.xlane.f32.xlu2 %v1612_v4 }
0x1154   :  { %v1603_v6 = vpop.xlane.xlu2 %1602 }
0x1155   :  { %v1615_v55 = vmul.f32 0.03125, %v1603_v6 }
0x1156   :  { %v1611_v9 = vpop.xlane.xlu1 %1610 }
0x1157   :  { %v1619_v61 = vmul.f32 %v1615_v55, %v1615_v55  ;;  %v1617_v3 = vmul.f32 0.03125, %v1611_v9  ;;  %v1623_v48 = vsub.f32 %v1599_v35, %v1615_v55 }
0x1159   :  { %v1621_v26 = vsub.f32 %v1617_v3, %v1619_v61 }
0x115b   :  { %v1625_v33 = vadd.f32 1e-05, %v1621_v26 }
0x115d   :  { %3339 = vrsqrt.f32 %v1625_v33  ;;  %vm1633_vm13 = vweird.f32 %v1625_v33 }
0x1163   :  { %v3340_v37 = vpop.eup %3339 }
0x1164   :  { %v1628_v21 = vmul.f32 %v3340_v37, %v1625_v33  ;;  %vm1634_vm12 = vweird.f32 %v3340_v37 }
0x1165   :  { %vm1635_vm14 = vmor %vm1633_vm13, %vm1634_vm12 }
0x1166   :  { %v1629_v32 = vmul.f32 %v3340_v37, %v1628_v21 }
0x1168   :  { %v1630_v1 = vmul.f32 0.5, %v1629_v32 }
0x116a   :  { %v1631_v18 = vsub.f32 1.5, %v1630_v1  ;;  %v1606_v13 = vpop.xlane.xlu0 %1605 }
0x116b   :  { %v1616_v30 = vmul.f32 0.03125, %v1606_v13 }
0x116c   :  { %v1632_v56 = vmul.f32 %v3340_v37, %v1631_v18  ;;  %v1614_v27 = vpop.xlane.xlu2 %1613 }
0x116d   :  { %v1620_v45 = vmul.f32 %v1616_v30, %v1616_v30  ;;  %v1618_v42 = vmul.f32 0.03125, %v1614_v27  ;;  %v1624_v53 = vsub.f32 %v1600_v36, %v1616_v30 }
0x116e   :  { %v1636_v22 = vsel %vm1635_vm14, %v3340_v37, %v1632_v56 }
0x116f   :  { %v1647_v44 = vmul.f32 %v1636_v22, %v1623_v48  ;;  %v1622_v31 = vsub.f32 %v1618_v42, %v1620_v45  ;;  %v4270_v48 = vld [vmem:[%s4708_s0 + $0x10] sm:$0xff] }
0x1170   :  { %v237_v45 = vperm.slane %v4270_v48, 4 }
0x1171   :  { %v1649_v49 = vmul.f32 %v4028_v51, %v1647_v44  ;;  %v1626_v38 = vadd.f32 1e-05, %v1622_v31 }
0x1172   :  { %v238_v22 = vadd.f32 %v237_v45, %v3602_v11 }
0x1173   :  { %3341 = vrsqrt.f32 %v1626_v38  ;;  %v1651_v40 = vadd.f32 %v4034_v57, %v1649_v49  ;;  %vm1643_vm0 = vweird.f32 %v1626_v38 }
0x1175   :  { %3150 = vmatmul.msk.f32.vlgmr.msrb.gmra.mxu0 %vm105_vm4, %v1651_v40 }
0x1176   :  { %2807 = vmatpush.msrb.mxu0 %v4004_v8 }
0x1178   :  { %2808 = vmatpush.msrb.mxu0 %v4010_v14 }
0x1179   :  { %v3342_v2 = vpop.eup %3341 }
0x117a   :  { %v1638_v17 = vmul.f32 %v3342_v2, %v1626_v38  ;;  %2809 = vmatpush.msrb.mxu0 %v4016_v19  ;;  %vm1644_vm15 = vweird.f32 %v3342_v2 }
0x117b   :  { %vm1645_vm1 = vmor %vm1643_vm0, %vm1644_vm15 }
0x117c   :  { %v1639_v35 = vmul.f32 %v3342_v2, %v1638_v17  ;;  %2810 = vmatpush.msrb.mxu0 %v4022_v28 }
0x117e   :  { %v1640_v54 = vmul.f32 0.5, %v1639_v35  ;;  %v240_v35 = vadd.f32 14.2236, %v3576_v47 }
0x1180   :  { %v1641_v58 = vsub.f32 1.5, %v1640_v54 }
0x1182   :  { %v1642_v59 = vmul.f32 %v3342_v2, %v1641_v58 }
0x1184   :  { %v1646_v23 = vsel %vm1645_vm1, %v3342_v2, %v1642_v59 }
0x1185   :  { %v1648_v52 = vmul.f32 %v1646_v23, %v1624_v53 }
0x1187   :  { %v1650_v8 = vmul.f32 %v4028_v51, %v1648_v52 }
0x1189   :  { %v1652_v14 = vadd.f32 %v4034_v57, %v1650_v8 }
0x118b   :  { %3151 = vmatmul.msk.f32.gmra.mxu0 %vm105_vm4, %v1652_v14 }
0x11f2   :  { %v1676_v5 = vpop.f32.mrf.mxu0 }
0x11f3   :  { %v1677_v19 = vadd.f32 %v4123_v46, %v1676_v5 }
0x11f5   :  { %v1682_v4 = vmul.f32 0.061098136, %v1677_v19 }
0x11f7   :  { %v1684_v6 = vsub.f32 %v4129_v29, %v1682_v4 }
0x11f9   :  { %v1686_v36 = vmul.f32 1.0056249, %v1684_v6 }
0x11fb   :  { %v1688_v26 = vmul.f32 0.9, %v1686_v36  ;;  %v1691_v37 = vmul.f32 0.1, %v1686_v36 }
0x1208   :  { %v1679_v28 = vpop.f32.mrf.mxu0 }
0x1209   :  { %v1680_v55 = vadd.f32 %v4123_v46, %v1679_v28 }
0x120b   :  { %v1683_v9 = vmul.f32 0.061098136, %v1680_v55 }
0x120d   :  { %v1685_v61 = vsub.f32 %v4131_v62, %v1683_v9 }
0x120f   :  { %v1687_v3 = vmul.f32 1.0056249, %v1685_v61 }
0x1211   :  { %v1690_v51 = vmul.f32 0.1, %v1687_v3  ;;  %v1689_v57 = vmul.f32 0.9, %v1687_v3 }
0x1213   :  { %v4237_v33 = vadd.f32 %v1690_v51, %v1688_v26  ;;  %v4242_v29 = vadd.f32 %v1691_v37, %v1689_v57 }
0x1215   :  { %1769 = vperm.xlu1 %3223, %v4237_v33   ;;  %1757 = vperm.xlu2 %3222, %v4237_v33   ;;  %v1700_v62 = vmul.f32 %v4237_v33, %v4237_v33  ;;  %v1697_v32 = vsel %vm265_vm8, %v4242_v29, 0.0  ;;  %v1694_v1 = vsel %vm265_vm8, %v4237_v33, 0.0  ;;  %v1701_v18 = vmul.f32 %v4242_v29, %v4242_v29 }
0x1216   :  { %1744 = vperm.xlu0 %3221, %v4237_v33  }
0x1217   :  { %v1702_v21 = vsel %vm265_vm8, %v1700_v62, 0.0  ;;  %v1705_v13 = vsel %vm265_vm8, %v1701_v18, 0.0 }
0x121d   :  { %3225 = vset.pattern.permute.xlu1 %v3447_v0  ;;  %3224 = vset.pattern.permute.xlu2 %v3449_v34 }
0x121e   :  { %1749 = vperm.xlu1 %3225, %v4242_v29   ;;  %1781 = vperm.xlu2 %3224, %v4237_v33  }
0x121f   :  { %3228 = vset.pattern.permute.xlu0 %v3449_v34 }
0x1226   :  { %3226 = vset.pattern.permute.xlu2 %v3446_v63  ;;  %3227 = vset.pattern.permute.xlu1 %v3448_v20 }
0x1240   :  { %1703 = vadd.xlane.f32.xlu0 %v1702_v21 }
0x1247   :  { %1698 = vadd.xlane.f32.xlu2 %v1697_v32 }
0x1248   :  { %1695 = vadd.xlane.f32.xlu1 %v1694_v1 }
0x1250   :  { %1706 = vadd.xlane.f32.xlu1 %v1705_v13 }
0x1254   :  { %1785 = vperm.xlu0 %3228, %v4242_v29  }
0x125c   :  { %3230 = vset.pattern.permute.xlu0 %v3446_v63 }
0x125f   :  { %1761 = vperm.xlu2 %3226, %v4242_v29  }
0x1267   :  { %3231 = vset.pattern.permute.xlu2 %v3448_v20 }
0x1269   :  { %1773 = vperm.xlu1 %3227, %v4242_v29  }
0x126f   :  { %v1758_v30 = vpop.permute.xlu2 %1757 }
0x1270   :  { %v1764_v38 = vmul.f32 %v1758_v30, %v3600_v10 }
0x1271   :  { %3229 = vset.pattern.permute.xlu1 %v3447_v0 }
0x1278   :  { %v1782_v44 = vpop.permute.xlu2 %1781 }
0x1279   :  { %v1788_v52 = vmul.f32 %v1782_v44, %v3613_v24 }
0x1287   :  { %v1770_v56 = vpop.permute.xlu1 %1769 }
0x1288   :  { %v1745_v27 = vpop.permute.xlu0 %1744  ;;  %v1776_v17 = vmul.f32 %v1770_v56, %v3608_v15 }
0x1289   :  { %v1752_v42 = vmul.f32 %v1745_v27, %v3597_v7 }
0x128b   :  { %v1754_v49 = vadd.f32 %v1752_v42, %v238_v22 }
0x128d   :  { %v1766_v40 = vadd.f32 %v1764_v38, %v1754_v49  ;;  %v239_v38 = vadd.f32 %v237_v45, %v3604_v12 }
0x128f   :  { %v1778_v59 = vadd.f32 %v1776_v17, %v1766_v40 }
0x1290   :  { %v1750_v31 = vpop.permute.xlu1 %1749 }
0x1291   :  { %v1790_v19 = vadd.f32 %v1788_v52, %v1778_v59  ;;  %v1753_v22 = vmul.f32 %v1750_v31, %v3597_v7 }
0x1293   :  { %v1755_v17 = vadd.f32 %v1753_v22, %v239_v38 }
0x12b3   :  { %v1704_v2 = vpop.xlane.xlu0 %1703 }
0x12b4   :  { %v1712_v53 = vadd.f32 %v1704_v2, %v3579_v50 }
0x12b6   :  { %v1714_v5 = vmul.f32 0.014705882, %v1712_v53 }
0x12ba   :  { %v1699_v54 = vpop.xlane.xlu2 %1698 }
0x12bb   :  { %v1696_v58 = vpop.xlane.xlu1 %1695  ;;  %v1709_v8 = vadd.f32 %v1699_v54, %v240_v35 }
0x12bc   :  { %v1708_v23 = vadd.f32 %v1696_v58, %v240_v35 }
0x12bd   :  { %v1711_v6 = vmul.f32 0.014705882, %v1709_v8 }
0x12be   :  { %v1710_v14 = vmul.f32 0.014705882, %v1708_v23 }
0x12bf   :  { %v1717_v26 = vmul.f32 %v1711_v6, %v1711_v6 }
0x12c0   :  { %v1716_v4 = vmul.f32 %v1710_v14, %v1710_v14  ;;  %v1792_v28 = vmul.f32 %v4185_v16, %v1710_v14 }
0x12c2   :  { %v1718_v55 = vsub.f32 %v1714_v5, %v1716_v4  ;;  %v1794_v9 = vsub.f32 %v1790_v19, %v1792_v28  ;;  %v1762_v27 = vpop.permute.xlu2 %1761  ;;  %v1793_v19 = vmul.f32 %v4185_v16, %v1711_v6 }
0x12c3   :  { %v1707_v36 = vpop.xlane.xlu1 %1706  ;;  %v1765_v2 = vmul.f32 %v1762_v27, %v3600_v10 }
0x12c4   :  { %v1720_v61 = vadd.f32 1e-05, %v1718_v55  ;;  %v1713_v3 = vadd.f32 %v1707_v36, %v3579_v50 }
0x12c5   :  { %v1767_v53 = vadd.f32 %v1765_v2, %v1755_v17 }
0x12c6   :  { %3343 = vrsqrt.f32 %v1720_v61  ;;  %v1715_v51 = vmul.f32 0.014705882, %v1713_v3  ;;  %vm1728_vm3 = vweird.f32 %v1720_v61  ;;  %v1786_v58 = vpop.permute.xlu0 %1785 }
0x12c7   :  { %v1789_v31 = vmul.f32 %v1786_v58, %v3613_v24 }
0x12c8   :  { %v1719_v57 = vsub.f32 %v1715_v51, %v1717_v26 }
0x12ca   :  { %v1721_v37 = vadd.f32 1e-05, %v1719_v57 }
0x12cc   :  { %v3344_v62 = vpop.eup %3343  ;;  %3345 = vrsqrt.f32 %v1721_v37  ;;  %vm1738_vm7 = vweird.f32 %v1721_v37 }
0x12cd   :  { %v1723_v21 = vmul.f32 %v3344_v62, %v1720_v61  ;;  %vm1729_vm2 = vweird.f32 %v3344_v62 }
0x12ce   :  { %vm1730_vm5 = vmor %vm1728_vm3, %vm1729_vm2 }
0x12cf   :  { %v1724_v32 = vmul.f32 %v3344_v62, %v1723_v21 }
0x12d1   :  { %v1725_v1 = vmul.f32 0.5, %v1724_v32 }
0x12d2   :  { %v3346_v18 = vpop.eup %3345 }
0x12d3   :  { %v1726_v13 = vsub.f32 1.5, %v1725_v1  ;;  %v1733_v30 = vmul.f32 %v3346_v18, %v1721_v37  ;;  %vm1739_vm6 = vweird.f32 %v3346_v18 }
0x12d4   :  { %vm1740_vm9 = vmor %vm1738_vm7, %vm1739_vm6 }
0x12d5   :  { %v1727_v56 = vmul.f32 %v3344_v62, %v1726_v13  ;;  %v1734_v42 = vmul.f32 %v3346_v18, %v1733_v30 }
0x12d7   :  { %v1731_v44 = vsel %vm1730_vm5, %v3344_v62, %v1727_v56  ;;  %v1735_v49 = vmul.f32 0.5, %v1734_v42 }
0x12d8   :  { %v1796_v40 = vmul.f32 %v1794_v9, %v1731_v44 }
0x12d9   :  { %v1736_v54 = vsub.f32 1.5, %v1735_v49 }
0x12da   :  { %v1798_v35 = vadd.f32 %v4191_v60, %v1796_v40 }
0x12db   :  { %v1774_v59 = vpop.permute.xlu1 %1773  ;;  %v1737_v45 = vmul.f32 %v3346_v18, %v1736_v54 }
0x12dc   :  { %v1777_v23 = vmul.f32 %v1774_v59, %v3608_v15  ;;  %v1800_v52 = vmax.f32 %v1798_v35, 0.0 }
0x12dd   :  { %v1741_v9 = vsel %vm1740_vm9, %v3346_v18, %v1737_v45 }
0x12de   :  { %v1779_v8 = vadd.f32 %v1777_v23, %v1767_v53  ;;  %v1802_v14 = vsel %vm105_vm4, %v1800_v52, 0.0  ;;  %v1808_v5 = vmul.f32 %v1800_v52, %v1800_v52 }
0x12df   :  { %1803 = vadd.xlane.f32.xlu2 %v1802_v14 }
0x12e0   :  { %v1791_v4 = vadd.f32 %v1789_v31, %v1779_v8  ;;  %v1810_v28 = vsel %vm105_vm4, %v1808_v5, 0.0 }
0x12e1   :  { %1811 = vadd.xlane.f32.xlu1 %v1810_v28 }
0x12e2   :  { %v1795_v55 = vsub.f32 %v1791_v4, %v1793_v19  ;;  %v3424_v19 = vld [vmem:[%s4708_s0 + $0x90] sm:$0xff]  ;;  %v3425_v4 = vld [vmem:[%s4708_s0 + $0x88] sm:$0xff] }
0x12e4   :  { %v1797_v36 = vmul.f32 %v1795_v55, %v1741_v9  ;;  %v3426_v9 = vld [vmem:[%s4708_s0 + $0x80] sm:$0xff] }
0x12e6   :  { %v1799_v61 = vadd.f32 %v4191_v60, %v1797_v36 }
0x12e8   :  { %v1801_v3 = vmax.f32 %v1799_v61, 0.0  ;;  %v3427_v61 = vld [vmem:[%s4708_s0 + $0x78] sm:$0xff] }
0x12ea   :  { %v1805_v26 = vsel %vm105_vm4, %v1801_v3, 0.0  ;;  %v1809_v51 = vmul.f32 %v1801_v3, %v1801_v3 }
0x12eb   :  { %1806 = vadd.xlane.f32.xlu0 %v1805_v26 }
0x12ec   :  { %v1813_v57 = vsel %vm105_vm4, %v1809_v51, 0.0 }
0x12ed   :  { %1814 = vadd.xlane.f32.xlu2 %v1813_v57  ;;  %v4315_v57 = vld [vmem:[%s4708_s0 + $0xc] ss:$0 sm:$0xff] }
0x1352   :  { %v1804_v6 = vpop.xlane.xlu2 %1803 }
0x1353   :  { %v1816_v62 = vmul.f32 0.03125, %v1804_v6 }
0x1354   :  { %v1812_v21 = vpop.xlane.xlu1 %1811 }
0x1355   :  { %v1820_v32 = vmul.f32 %v1816_v62, %v1816_v62  ;;  %v1818_v37 = vmul.f32 0.03125, %v1812_v21  ;;  %v1824_v54 = vsub.f32 %v1800_v52, %v1816_v62 }
0x1357   :  { %v1822_v1 = vsub.f32 %v1818_v37, %v1820_v32 }
0x1359   :  { %v1826_v13 = vadd.f32 1e-05, %v1822_v1 }
0x135b   :  { %3347 = vrsqrt.f32 %v1826_v13  ;;  %vm1834_vm11 = vweird.f32 %v1826_v13 }
0x135e   :  { %v1807_v18 = vpop.xlane.xlu0 %1806 }
0x135f   :  { %v1817_v30 = vmul.f32 0.03125, %v1807_v18 }
0x1360   :  { %v1815_v56 = vpop.xlane.xlu2 %1814 }
0x1361   :  { %v3348_v27 = vpop.eup %3347  ;;  %v1821_v42 = vmul.f32 %v1817_v30, %v1817_v30  ;;  %v1819_v22 = vmul.f32 0.03125, %v1815_v56  ;;  %v1825_v28 = vsub.f32 %v1801_v3, %v1817_v30 }
0x1362   :  { %v1829_v44 = vmul.f32 %v3348_v27, %v1826_v13  ;;  %vm1835_vm10 = vweird.f32 %v3348_v27 }
0x1363   :  { %v1823_v49 = vsub.f32 %v1819_v22, %v1821_v42  ;;  %vm1836_vm12 = vmor %vm1834_vm11, %vm1835_vm10 }
0x1364   :  { %v1830_v38 = vmul.f32 %v3348_v27, %v1829_v44 }
0x1365   :  { %v1827_v40 = vadd.f32 1e-05, %v1823_v49 }
0x1366   :  { %v1831_v2 = vmul.f32 0.5, %v1830_v38 }
0x1367   :  { %3349 = vrsqrt.f32 %v1827_v40  ;;  %vm1844_vm14 = vweird.f32 %v1827_v40 }
0x1368   :  { %v1832_v17 = vsub.f32 1.5, %v1831_v2 }
0x136a   :  { %v1833_v35 = vmul.f32 %v3348_v27, %v1832_v17 }
0x136c   :  { %v1837_v58 = vsel %vm1836_vm12, %v3348_v27, %v1833_v35 }
0x136d   :  { %v3350_v59 = vpop.eup %3349  ;;  %v1848_v53 = vmul.f32 %v1837_v58, %v1824_v54 }
0x136e   :  { %v1839_v23 = vmul.f32 %v3350_v59, %v1827_v40  ;;  %vm1845_vm13 = vweird.f32 %v3350_v59 }
0x136f   :  { %v1850_v31 = vmul.f32 %v4207_v25, %v1848_v53  ;;  %vm1846_vm15 = vmor %vm1844_vm14, %vm1845_vm13 }
0x1370   :  { %v1840_v8 = vmul.f32 %v3350_v59, %v1839_v23 }
0x1371   :  { %v1852_v14 = vadd.f32 %v4213_v39, %v1850_v31 }
0x1372   :  { %v1841_v5 = vmul.f32 0.5, %v1840_v8 }
0x1373   :  { %3152 = vmatmul.msk.f32.vlgmr.msrb.gmra.mxu1 %vm105_vm4, %v1852_v14 }
0x1374   :  { %v1842_v45 = vsub.f32 1.5, %v1841_v5  ;;  %3008 = vmatpush.msrb.mxu1 %v3424_v19 }
0x1376   :  { %v1843_v52 = vmul.f32 %v3350_v59, %v1842_v45  ;;  %3009 = vmatpush.msrb.mxu1 %v3425_v4 }
0x1378   :  { %v1847_v55 = vsel %vm1846_vm15, %v3350_v59, %v1843_v52  ;;  %3010 = vmatpush.msrb.mxu1 %v3426_v9 }
0x1379   :  { %v1849_v36 = vmul.f32 %v1847_v55, %v1825_v28 }
0x137a   :  { %3011 = vmatpush.msrb.mxu1 %v3427_v61 }
0x137b   :  { %v1851_v26 = vmul.f32 %v4207_v25, %v1849_v36  ;;  %v4326_v36 = vld [vmem:[%s4708_s0 + $0xd] ss:$0 sm:$0xff] }
0x137d   :  { %v1853_v51 = vadd.f32 %v4213_v39, %v1851_v26 }
0x137f   :  { %3153 = vmatmul.msk.f32.gmra.mxu1 %vm105_vm4, %v1853_v51  ;;  %v4332_v51 = vld [vmem:[%s4708_s0 + $0xe] ss:$0 sm:$0xff] }
0x13f0   :  { %v1877_v3 = vpop.f32.mrf.mxu1 }
0x13f1   :  { %v1878_v6 = vadd.f32 %v4315_v57, %v1877_v3 }
0x13f3   :  { %v1883_v62 = vmax.f32 %v1878_v6, 0.0 }
0x13f5   :  { %v1885_v21 = vsel %vm105_vm4, %v1883_v62, 0.0  ;;  %v1891_v32 = vmul.f32 %v1883_v62, %v1883_v62 }
0x13f6   :  { %1886 = vadd.xlane.f32.xlu1 %v1885_v21  ;;  %v3431_v21 = vld [vmem:[%s4708_s0 + $0xb0] sm:$0xff] }
0x13f7   :  { %v1893_v37 = vsel %vm105_vm4, %v1891_v32, 0.0 }
0x13f8   :  { %1894 = vadd.xlane.f32.xlu2 %v1893_v37  ;;  %v3432_v37 = vld [vmem:[%s4708_s0 + $0xa8] sm:$0xff] }
0x13fc   :  { %v1880_v1 = vpop.f32.mrf.mxu1 }
0x13fd   :  { %v1881_v13 = vadd.f32 %v4315_v57, %v1880_v1 }
0x13ff   :  { %v1884_v18 = vmax.f32 %v1881_v13, 0.0 }
0x1401   :  { %v1888_v30 = vsel %vm105_vm4, %v1884_v18, 0.0  ;;  %v1892_v56 = vmul.f32 %v1884_v18, %v1884_v18 }
0x1402   :  { %1889 = vadd.xlane.f32.xlu1 %v1888_v30  ;;  %v3433_v30 = vld [vmem:[%s4708_s0 + $0xa0] sm:$0xff] }
0x1403   :  { %v1896_v27 = vsel %vm105_vm4, %v1892_v56, 0.0 }
0x1404   :  { %1897 = vadd.xlane.f32.xlu0 %v1896_v27  ;;  %v3434_v27 = vld [vmem:[%s4708_s0 + $0x98] sm:$0xff] }
0x1469   :  { %v1887_v42 = vpop.xlane.xlu1 %1886 }
0x146a   :  { %v1899_v22 = vmul.f32 0.03125, %v1887_v42 }
0x146b   :  { %v1895_v44 = vpop.xlane.xlu2 %1894 }
0x146c   :  { %v1903_v49 = vmul.f32 %v1899_v22, %v1899_v22  ;;  %v1901_v38 = vmul.f32 0.03125, %v1895_v44  ;;  %v1907_v52 = vsub.f32 %v1883_v62, %v1899_v22 }
0x146e   :  { %v1905_v40 = vsub.f32 %v1901_v38, %v1903_v49 }
0x1470   :  { %v1909_v2 = vadd.f32 1e-05, %v1905_v40 }
0x1472   :  { %3351 = vrsqrt.f32 %v1909_v2  ;;  %vm1917_vm1 = vweird.f32 %v1909_v2 }
0x1475   :  { %v1890_v17 = vpop.xlane.xlu1 %1889 }
0x1476   :  { %v1900_v35 = vmul.f32 0.03125, %v1890_v17 }
0x1477   :  { %v1898_v54 = vpop.xlane.xlu0 %1897 }
0x1478   :  { %v3352_v58 = vpop.eup %3351  ;;  %v1904_v59 = vmul.f32 %v1900_v35, %v1900_v35  ;;  %v1902_v53 = vmul.f32 0.03125, %v1898_v54  ;;  %v1908_v1 = vsub.f32 %v1884_v18, %v1900_v35 }
0x1479   :  { %v1912_v23 = vmul.f32 %v3352_v58, %v1909_v2  ;;  %vm1918_vm0 = vweird.f32 %v3352_v58 }
0x147a   :  { %v1906_v31 = vsub.f32 %v1902_v53, %v1904_v59  ;;  %vm1919_vm2 = vmor %vm1917_vm1, %vm1918_vm0 }
0x147b   :  { %v1913_v8 = vmul.f32 %v3352_v58, %v1912_v23 }
0x147c   :  { %v1910_v14 = vadd.f32 1e-05, %v1906_v31 }
0x147d   :  { %v1914_v5 = vmul.f32 0.5, %v1913_v8 }
0x147e   :  { %3353 = vrsqrt.f32 %v1910_v14  ;;  %vm1927_vm5 = vweird.f32 %v1910_v14 }
0x147f   :  { %v1915_v45 = vsub.f32 1.5, %v1914_v5 }
0x1481   :  { %v1916_v19 = vmul.f32 %v3352_v58, %v1915_v45 }
0x1483   :  { %v1920_v4 = vsel %vm1919_vm2, %v3352_v58, %v1916_v19 }
0x1484   :  { %v3354_v28 = vpop.eup %3353  ;;  %v1931_v55 = vmul.f32 %v1920_v4, %v1907_v52 }
0x1485   :  { %v1922_v9 = vmul.f32 %v3354_v28, %v1910_v14  ;;  %vm1928_vm3 = vweird.f32 %v3354_v28 }
0x1486   :  { %v1933_v61 = vmul.f32 %v4326_v36, %v1931_v55  ;;  %vm1929_vm6 = vmor %vm1927_vm5, %vm1928_vm3  ;;  %v233_v55 = vperm.slane %v4270_v48, 3 }
0x1487   :  { %v1923_v26 = vmul.f32 %v3354_v28, %v1922_v9 }
0x1488   :  { %v1935_v3 = vadd.f32 %v4332_v51, %v1933_v61  ;;  %v236_v61 = vadd.f32 15.362421, %v3576_v47 }
0x1489   :  { %v1924_v6 = vmul.f32 0.5, %v1923_v26  ;;  %v234_v26 = vadd.f32 %v233_v55, %v3602_v11 }
0x148a   :  { %3154 = vmatmul.msk.f32.vlgmr.msrb.gmra.mxu2 %vm105_vm4, %v1935_v3 }
0x148b   :  { %v1925_v62 = vsub.f32 1.5, %v1924_v6  ;;  %3091 = vmatpush.msrb.mxu2 %v3431_v21 }
0x148d   :  { %v1926_v32 = vmul.f32 %v3354_v28, %v1925_v62  ;;  %3092 = vmatpush.msrb.mxu2 %v3432_v37 }
0x148f   :  { %v1930_v13 = vsel %vm1929_vm6, %v3354_v28, %v1926_v32  ;;  %3093 = vmatpush.msrb.mxu2 %v3433_v30 }
0x1490   :  { %v1932_v56 = vmul.f32 %v1930_v13, %v1908_v1 }
0x1491   :  { %3094 = vmatpush.msrb.mxu2 %v3434_v27 }
0x1492   :  { %v1934_v42 = vmul.f32 %v4326_v36, %v1932_v56 }
0x1494   :  { %v1936_v22 = vadd.f32 %v4332_v51, %v1934_v42 }
0x1496   :  { %3155 = vmatmul.msk.f32.gmra.mxu2 %vm105_vm4, %v1936_v22 }
0x150d   :  { %v1960_v18 = vpop.f32.mrf.mxu2 }
0x150e   :  { %v1961_v44 = vadd.f32 %v4123_v46, %v1960_v18 }
0x1510   :  { %v1966_v49 = vmul.f32 0.05972038, %v1961_v44 }
0x1512   :  { %v1968_v38 = vsub.f32 %v4237_v33, %v1966_v49 }
0x1514   :  { %v1970_v35 = vmul.f32 1.0045024, %v1968_v38 }
0x1516   :  { %v1972_v59 = vmul.f32 0.9, %v1970_v35  ;;  %v1975_v53 = vmul.f32 0.1, %v1970_v35 }
0x1519   :  { %v1963_v40 = vpop.f32.mrf.mxu2 }
0x151a   :  { %v1964_v2 = vadd.f32 %v4123_v46, %v1963_v40 }
0x151c   :  { %v1967_v17 = vmul.f32 0.05972038, %v1964_v2 }
0x151e   :  { %v1969_v54 = vsub.f32 %v4242_v29, %v1967_v17 }
0x1520   :  { %v1971_v58 = vmul.f32 1.0045024, %v1969_v54 }
0x1522   :  { %v1973_v23 = vmul.f32 0.9, %v1971_v58  ;;  %v1974_v31 = vmul.f32 0.1, %v1971_v58 }
0x1524   :  { %v4355_v8 = vadd.f32 %v1974_v31, %v1972_v59  ;;  %v4357_v14 = vadd.f32 %v1975_v53, %v1973_v23 }
0x1526   :  { %2028 = vperm.xlu1 %3229, %v4355_v8   ;;  %v1978_v33 = vsel %vm265_vm8, %v4355_v8, 0.0  ;;  %v1981_v46 = vsel %vm265_vm8, %v4357_v14, 0.0  ;;  %v1984_v29 = vmul.f32 %v4355_v8, %v4355_v8  ;;  %v1985_v45 = vmul.f32 %v4357_v14, %v4357_v14 }
0x1527   :  { %1979 = vadd.xlane.f32.xlu2 %v1978_v33  ;;  %1982 = vadd.xlane.f32.xlu0 %v1981_v46 }
0x1528   :  { %v1986_v5 = vsel %vm265_vm8, %v1984_v29, 0.0  ;;  %v1989_v19 = vsel %vm265_vm8, %v1985_v45, 0.0  ;;  %v235_v29 = vadd.f32 %v233_v55, %v3604_v12 }
0x152e   :  { %3232 = vset.pattern.permute.xlu1 %v3449_v34 }
0x152f   :  { %2065 = vperm.xlu1 %3232, %v4355_v8  }
0x1537   :  { %3234 = vset.pattern.permute.xlu1 %v3446_v63 }
0x1538   :  { %2045 = vperm.xlu1 %3234, %v4357_v14  }
0x153b   :  { %2041 = vperm.xlu0 %3230, %v4355_v8  }
0x153f   :  { %2053 = vperm.xlu2 %3231, %v4355_v8  }
0x1540   :  { %3236 = vset.pattern.permute.xlu1 %v3449_v34 }
0x1543   :  { %3237 = vset.pattern.permute.xlu0 %v3447_v0 }
0x1547   :  { %3233 = vset.pattern.permute.xlu2 %v3447_v0 }
0x1548   :  { %2033 = vperm.xlu2 %3233, %v4357_v14  }
0x1550   :  { %3235 = vset.pattern.permute.xlu2 %v3448_v20 }
0x1562   :  { %1987 = vadd.xlane.f32.xlu1 %v1986_v5 }
0x1571   :  { %1990 = vadd.xlane.f32.xlu2 %v1989_v19 }
0x157b   :  { %2069 = vperm.xlu1 %3236, %v4357_v14  }
0x1583   :  { %3239 = vset.pattern.permute.xlu1 %v3448_v20 }
0x1589   :  { %2057 = vperm.xlu2 %3235, %v4357_v14  }
0x1591   :  { %3238 = vset.pattern.permute.xlu2 %v3446_v63 }
0x1598   :  { %v2029_v4 = vpop.permute.xlu1 %2028 }
0x1599   :  { %v2036_v9 = vmul.f32 %v2029_v4, %v3597_v7 }
0x159a   :  { %v1980_v52 = vpop.xlane.xlu2 %1979  ;;  %v1983_v28 = vpop.xlane.xlu0 %1982 }
0x159b   :  { %v1992_v3 = vadd.f32 %v1980_v52, %v236_v61  ;;  %v2038_v21 = vadd.f32 %v2036_v9, %v234_v26  ;;  %v1993_v58 = vadd.f32 %v1983_v28, %v236_v61 }
0x159d   :  { %v1994_v1 = vmul.f32 0.014705882, %v1992_v3  ;;  %v1995_v59 = vmul.f32 0.014705882, %v1993_v58 }
0x159f   :  { %v2076_v42 = vmul.f32 %v4185_v16, %v1994_v1  ;;  %v2000_v40 = vmul.f32 %v1994_v1, %v1994_v1  ;;  %v2001_v5 = vmul.f32 %v1995_v59, %v1995_v59 }
0x15a1   :  { %v2066_v37 = vpop.permute.xlu1 %2065 }
0x15a2   :  { %v2054_v6 = vpop.permute.xlu2 %2053  ;;  %v2072_v56 = vmul.f32 %v2066_v37, %v3613_v24 }
0x15a3   :  { %v2060_v13 = vmul.f32 %v2054_v6, %v3608_v15 }
0x15aa   :  { %v2046_v44 = vpop.permute.xlu1 %2045  ;;  %v2034_v35 = vpop.permute.xlu2 %2033 }
0x15ab   :  { %v2037_v23 = vmul.f32 %v2034_v35, %v3597_v7  ;;  %v2049_v26 = vmul.f32 %v2046_v44, %v3600_v10 }
0x15ad   :  { %v2042_v62 = vpop.permute.xlu0 %2041  ;;  %v2039_v52 = vadd.f32 %v2037_v23, %v235_v29 }
0x15ae   :  { %v2048_v32 = vmul.f32 %v2042_v62, %v3600_v10 }
0x15af   :  { %v2051_v61 = vadd.f32 %v2049_v26, %v2039_v52 }
0x15b0   :  { %v2050_v30 = vadd.f32 %v2048_v32, %v2038_v21 }
0x15b2   :  { %v2062_v27 = vadd.f32 %v2060_v13, %v2050_v30  ;;  %v2077_v30 = vmul.f32 %v4185_v16, %v1995_v59 }
0x15b4   :  { %v2074_v22 = vadd.f32 %v2072_v56, %v2062_v27 }
0x15b6   :  { %v2078_v18 = vsub.f32 %v2074_v22, %v2076_v42 }
0x15d5   :  { %v1988_v49 = vpop.xlane.xlu1 %1987 }
0x15d6   :  { %v1996_v38 = vadd.f32 %v1988_v49, %v3579_v50 }
0x15d8   :  { %v1998_v2 = vmul.f32 0.014705882, %v1996_v38 }
0x15da   :  { %v2002_v17 = vsub.f32 %v1998_v2, %v2000_v40 }
0x15dc   :  { %v2004_v54 = vadd.f32 1e-05, %v2002_v17 }
0x15de   :  { %3355 = vrsqrt.f32 %v2004_v54  ;;  %vm2012_vm9 = vweird.f32 %v2004_v54 }
0x15e4   :  { %v3356_v53 = vpop.eup %3355  ;;  %v1991_v31 = vpop.xlane.xlu2 %1990 }
0x15e5   :  { %v2007_v33 = vmul.f32 %v3356_v53, %v2004_v54  ;;  %v1997_v46 = vadd.f32 %v1991_v31, %v3579_v50  ;;  %vm2013_vm7 = vweird.f32 %v3356_v53 }
0x15e6   :  { %vm2014_vm10 = vmor %vm2012_vm9, %vm2013_vm7 }
0x15e7   :  { %v2008_v45 = vmul.f32 %v3356_v53, %v2007_v33  ;;  %v1999_v19 = vmul.f32 0.014705882, %v1997_v46 }
0x15e9   :  { %v2009_v4 = vmul.f32 0.5, %v2008_v45  ;;  %v2003_v9 = vsub.f32 %v1999_v19, %v2001_v5 }
0x15eb   :  { %v2010_v3 = vsub.f32 1.5, %v2009_v4  ;;  %v2005_v28 = vadd.f32 1e-05, %v2003_v9 }
0x15ec   :  { %v2058_v6 = vpop.permute.xlu2 %2057 }
0x15ed   :  { %3357 = vrsqrt.f32 %v2005_v28  ;;  %v2061_v62 = vmul.f32 %v2058_v6, %v3608_v15  ;;  %v2070_v21 = vpop.permute.xlu1 %2069  ;;  %v2011_v32 = vmul.f32 %v3356_v53, %v2010_v3  ;;  %vm2022_vm12 = vweird.f32 %v2005_v28 }
0x15ee   :  { %v2073_v55 = vmul.f32 %v2070_v21, %v3613_v24 }
0x15ef   :  { %v2063_v37 = vadd.f32 %v2061_v62, %v2051_v61  ;;  %v2015_v1 = vsel %vm2014_vm10, %v3356_v53, %v2011_v32 }
0x15f0   :  { %v2080_v13 = vmul.f32 %v2078_v18, %v2015_v1 }
0x15f1   :  { %v2075_v56 = vadd.f32 %v2073_v55, %v2063_v37 }
0x15f2   :  { %v2082_v27 = vadd.f32 %v4191_v60, %v2080_v13 }
0x15f3   :  { %v3358_v42 = vpop.eup %3357  ;;  %v2079_v22 = vsub.f32 %v2075_v56, %v2077_v30 }
0x15f4   :  { %v2017_v44 = vmul.f32 %v3358_v42, %v2005_v28  ;;  %v2084_v49 = vmax.f32 %v2082_v27, 0.0  ;;  %vm2023_vm11 = vweird.f32 %v3358_v42 }
0x15f5   :  { %vm2024_vm13 = vmor %vm2022_vm12, %vm2023_vm11 }
0x15f6   :  { %v2018_v38 = vmul.f32 %v3358_v42, %v2017_v44  ;;  %v2086_v40 = vsel %vm105_vm4, %v2084_v49, 0.0  ;;  %v2092_v2 = vmul.f32 %v2084_v49, %v2084_v49 }
0x15f7   :  { %2087 = vadd.xlane.f32.xlu0 %v2086_v40 }
0x15f8   :  { %v2019_v17 = vmul.f32 0.5, %v2018_v38  ;;  %v2094_v35 = vsel %vm105_vm4, %v2092_v2, 0.0 }
0x15f9   :  { %2095 = vadd.xlane.f32.xlu2 %v2094_v35 }
0x15fa   :  { %v2020_v54 = vsub.f32 1.5, %v2019_v17 }
0x15fc   :  { %v2021_v16 = vmul.f32 %v3358_v42, %v2020_v54 }
0x15fe   :  { %v2025_v18 = vsel %vm2024_vm13, %v3358_v42, %v2021_v16 }
0x15ff   :  { %v2081_v58 = vmul.f32 %v2079_v22, %v2025_v18 }
0x1601   :  { %v2083_v59 = vadd.f32 %v4191_v60, %v2081_v58 }
0x1603   :  { %v2085_v53 = vmax.f32 %v2083_v59, 0.0 }
0x1605   :  { %v2089_v23 = vsel %vm105_vm4, %v2085_v53, 0.0  ;;  %v2093_v31 = vmul.f32 %v2085_v53, %v2085_v53 }
0x1606   :  { %2090 = vadd.xlane.f32.xlu1 %v2089_v23 }
0x1607   :  { %v2097_v33 = vsel %vm105_vm4, %v2093_v31, 0.0 }
0x1608   :  { %2098 = vadd.xlane.f32.xlu0 %v2097_v33 }
0x166a   :  { %v2088_v46 = vpop.xlane.xlu0 %2087 }
0x166b   :  { %v2100_v29 = vmul.f32 0.03125, %v2088_v46 }
0x166c   :  { %v2096_v5 = vpop.xlane.xlu2 %2095 }
0x166d   :  { %v2104_v45 = vmul.f32 %v2100_v29, %v2100_v29  ;;  %v2102_v19 = vmul.f32 0.03125, %v2096_v5  ;;  %v2108_v13 = vsub.f32 %v2084_v49, %v2100_v29 }
0x166f   :  { %v2106_v52 = vsub.f32 %v2102_v19, %v2104_v45 }
0x1671   :  { %v2110_v4 = vadd.f32 1e-05, %v2106_v52 }
0x1673   :  { %3359 = vrsqrt.f32 %v2110_v4  ;;  %vm2118_vm15 = vweird.f32 %v2110_v4 }
0x1679   :  { %v3360_v9 = vpop.eup %3359  ;;  %v2091_v26 = vpop.xlane.xlu1 %2090 }
0x167a   :  { %v2113_v3 = vmul.f32 %v3360_v9, %v2110_v4  ;;  %v2101_v60 = vmul.f32 0.03125, %v2091_v26  ;;  %vm2119_vm14 = vweird.f32 %v3360_v9 }
0x167b   :  { %v2099_v28 = vpop.xlane.xlu0 %2098  ;;  %vm2120_vm0 = vmor %vm2118_vm15, %vm2119_vm14 }
0x167c   :  { %v2114_v61 = vmul.f32 %v3360_v9, %v2113_v3  ;;  %v2105_v6 = vmul.f32 %v2101_v60, %v2101_v60  ;;  %v2103_v62 = vmul.f32 0.03125, %v2099_v28  ;;  %v2109_v35 = vsub.f32 %v2085_v53, %v2101_v60 }
0x167e   :  { %v2115_v21 = vmul.f32 0.5, %v2114_v61  ;;  %v2107_v32 = vsub.f32 %v2103_v62, %v2105_v6 }
0x1680   :  { %v2116_v55 = vsub.f32 1.5, %v2115_v21  ;;  %v2111_v37 = vadd.f32 1e-05, %v2107_v32 }
0x1682   :  { %v2117_v1 = vmul.f32 %v3360_v9, %v2116_v55  ;;  %3361 = vrsqrt.f32 %v2111_v37  ;;  %vm2128_vm2 = vweird.f32 %v2111_v37 }
0x1684   :  { %v2121_v30 = vsel %vm2120_vm0, %v3360_v9, %v2117_v1 }
0x1685   :  { %v2132_v56 = vmul.f32 %v2121_v30, %v2108_v13 }
0x1687   :  { %v2134_v27 = vmul.f32 %v4207_v25, %v2132_v56 }
0x1688   :  { %v3362_v42 = vpop.eup %3361 }
0x1689   :  { %v2123_v22 = vmul.f32 %v3362_v42, %v2111_v37  ;;  %v2136_v44 = vadd.f32 %v4213_v39, %v2134_v27  ;;  %vm2129_vm1 = vweird.f32 %v3362_v42 }
0x168a   :  { %vm2130_vm3 = vmor %vm2128_vm2, %vm2129_vm1 }
0x168b   :  { %v2124_v38 = vmul.f32 %v3362_v42, %v2123_v22  ;;  %3156 = vmatmul.msk.f32.vlgmr.msra.gmra.mxu3 %vm105_vm4, %v2136_v44 }
0x168d   :  { %v2125_v40 = vmul.f32 0.5, %v2124_v38 }
0x168f   :  { %v2126_v2 = vsub.f32 1.5, %v2125_v40 }
0x1691   :  { %v2127_v17 = vmul.f32 %v3362_v42, %v2126_v2 }
0x1693   :  { %v2131_v49 = vsel %vm2130_vm3, %v3362_v42, %v2127_v17 }
0x1694   :  { %v2133_v54 = vmul.f32 %v2131_v49, %v2109_v35 }
0x1696   :  { %v2135_v16 = vmul.f32 %v4207_v25, %v2133_v54 }
0x1698   :  { %v2137_v18 = vadd.f32 %v4213_v39, %v2135_v16 }
0x169a   :  { %3157 = vmatmul.msk.f32.gmra.mxu3 %vm105_vm4, %v2137_v18 }
0x170e   :  { %v2161_v58 = vpop.f32.mrf.mxu3 }
0x170f   :  { %v2162_v59 = vadd.f32 %v4315_v57, %v2161_v58 }
0x1711   :  { %v2167_v23 = vmax.f32 %v2162_v59, 0.0 }
0x1713   :  { %v2169_v31 = vsel %vm105_vm4, %v2167_v23, 0.0  ;;  %v2175_v33 = vmul.f32 %v2167_v23, %v2167_v23 }
0x1714   :  { %2170 = vadd.xlane.f32.xlu2 %v2169_v31 }
0x1715   :  { %v2177_v46 = vsel %vm105_vm4, %v2175_v33, 0.0 }
0x1716   :  { %2178 = vadd.xlane.f32.xlu1 %v2177_v46  ;;  %v4428_v46 = vld [vmem:[%s4708_s0 + $0xf] ss:$0 sm:$0xff] }
0x171d   :  { %v2164_v53 = vpop.f32.mrf.mxu3 }
0x171e   :  { %v2165_v29 = vadd.f32 %v4315_v57, %v2164_v53 }
0x1720   :  { %v2168_v5 = vmax.f32 %v2165_v29, 0.0 }
0x1722   :  { %v2172_v25 = vsel %vm105_vm4, %v2168_v5, 0.0  ;;  %v2176_v39 = vmul.f32 %v2168_v5, %v2168_v5 }
0x1723   :  { %2173 = vadd.xlane.f32.xlu0 %v2172_v25 }
0x1724   :  { %v2180_v45 = vsel %vm105_vm4, %v2176_v39, 0.0 }
0x1725   :  { %2181 = vadd.xlane.f32.xlu2 %v2180_v45 }
0x1787   :  { %v2171_v19 = vpop.xlane.xlu2 %2170 }
0x1788   :  { %v2183_v52 = vmul.f32 0.03125, %v2171_v19 }
0x1789   :  { %v2179_v4 = vpop.xlane.xlu1 %2178 }
0x178a   :  { %v2187_v9 = vmul.f32 %v2183_v52, %v2183_v52  ;;  %v2185_v26 = vmul.f32 0.03125, %v2179_v4  ;;  %v2191_v42 = vsub.f32 %v2167_v23, %v2183_v52 }
0x178c   :  { %v2189_v3 = vsub.f32 %v2185_v26, %v2187_v9 }
0x178e   :  { %v2193_v60 = vadd.f32 1e-05, %v2189_v3 }
0x1790   :  { %3363 = vrsqrt.f32 %v2193_v60  ;;  %vm2201_vm6 = vweird.f32 %v2193_v60 }
0x1796   :  { %v3364_v28 = vpop.eup %3363  ;;  %v2174_v61 = vpop.xlane.xlu0 %2173 }
0x1797   :  { %v2196_v6 = vmul.f32 %v3364_v28, %v2193_v60  ;;  %v2184_v62 = vmul.f32 0.03125, %v2174_v61  ;;  %vm2202_vm5 = vweird.f32 %v3364_v28 }
0x1798   :  { %v2182_v21 = vpop.xlane.xlu2 %2181  ;;  %vm2203_vm7 = vmor %vm2201_vm6, %vm2202_vm5 }
0x1799   :  { %v2197_v32 = vmul.f32 %v3364_v28, %v2196_v6  ;;  %v2188_v55 = vmul.f32 %v2184_v62, %v2184_v62  ;;  %v2186_v37 = vmul.f32 0.03125, %v2182_v21  ;;  %v2192_v18 = vsub.f32 %v2168_v5, %v2184_v62 }
0x179b   :  { %v2198_v1 = vmul.f32 0.5, %v2197_v32  ;;  %v2190_v13 = vsub.f32 %v2186_v37, %v2188_v55 }
0x179d   :  { %v2199_v30 = vsub.f32 1.5, %v2198_v1  ;;  %v2194_v56 = vadd.f32 1e-05, %v2190_v13  ;;  %v229_v13 = vperm.slane %v4270_v48, 2 }
0x179f   :  { %v2200_v27 = vmul.f32 %v3364_v28, %v2199_v30  ;;  %3365 = vrsqrt.f32 %v2194_v56  ;;  %vm2211_vm10 = vweird.f32 %v2194_v56 }
0x17a1   :  { %v2204_v22 = vsel %vm2203_vm7, %v3364_v28, %v2200_v27 }
0x17a2   :  { %v2215_v44 = vmul.f32 %v2204_v22, %v2191_v42 }
0x17a4   :  { %v2217_v38 = vmul.f32 %v4326_v36, %v2215_v44 }
0x17a5   :  { %v3366_v40 = vpop.eup %3365 }
0x17a6   :  { %v2206_v2 = vmul.f32 %v3366_v40, %v2194_v56  ;;  %v2219_v17 = vadd.f32 %v4332_v51, %v2217_v38  ;;  %vm2212_vm9 = vweird.f32 %v3366_v40  ;;  %v230_v56 = vadd.f32 %v229_v13, %v3602_v11 }
0x17a7   :  { %vm2213_vm11 = vmor %vm2211_vm10, %vm2212_vm9 }
0x17a8   :  { %v2207_v35 = vmul.f32 %v3366_v40, %v2206_v2  ;;  %3158 = vmatmul.msk.f32.vlgmr.msra.gmra.mxu0 %vm105_vm4, %v2219_v17  ;;  %v232_v17 = vadd.f32 16.84533, %v3576_v47 }
0x17aa   :  { %v2208_v49 = vmul.f32 0.5, %v2207_v35 }
0x17ac   :  { %v2209_v54 = vsub.f32 1.5, %v2208_v49 }
0x17ae   :  { %v2210_v16 = vmul.f32 %v3366_v40, %v2209_v54 }
0x17b0   :  { %v2214_v58 = vsel %vm2213_vm11, %v3366_v40, %v2210_v16 }
0x17b1   :  { %v2216_v59 = vmul.f32 %v2214_v58, %v2192_v18 }
0x17b3   :  { %v2218_v23 = vmul.f32 %v4326_v36, %v2216_v59 }
0x17b5   :  { %v2220_v31 = vadd.f32 %v4332_v51, %v2218_v23 }
0x17b7   :  { %3159 = vmatmul.msk.f32.gmra.mxu0 %vm105_vm4, %v2220_v31 }
0x1825   :  { %v2244_v33 = vpop.f32.mrf.mxu0 }
0x1826   :  { %v2245_v53 = vadd.f32 %v4428_v46, %v2244_v33 }
0x1828   :  { %v2250_v29 = vmul.f32 0.057718903, %v2245_v53  ;;  %v4475_v53 = vld [vmem:[%s4708_s0 + $0x9] ss:$0 sm:$0xff] }
0x182a   :  { %v2252_v5 = vsub.f32 %v4355_v8, %v2250_v29 }
0x182c   :  { %v2254_v19 = vmul.f32 1.0033838, %v2252_v5 }
0x182e   :  { %v2256_v9 = vmul.f32 0.9, %v2254_v19  ;;  %v2259_v28 = vmul.f32 0.1, %v2254_v19 }
0x1834   :  { %v2247_v25 = vpop.f32.mrf.mxu0 }
0x1835   :  { %v2248_v39 = vadd.f32 %v4428_v46, %v2247_v25 }
0x1837   :  { %v2251_v45 = vmul.f32 0.057718903, %v2248_v39 }
0x1839   :  { %v2253_v52 = vsub.f32 %v4357_v14, %v2251_v45 }
0x183b   :  { %v2255_v4 = vmul.f32 1.0033838, %v2253_v52 }
0x183d   :  { %v2258_v26 = vmul.f32 0.1, %v2255_v4  ;;  %v2257_v60 = vmul.f32 0.9, %v2255_v4 }
0x183f   :  { %v4434_v3 = vadd.f32 %v2258_v26, %v2256_v9  ;;  %v4439_v8 = vadd.f32 %v2259_v28, %v2257_v60 }
0x1841   :  { %2337 = vperm.xlu1 %3239, %v4434_v3   ;;  %2325 = vperm.xlu2 %3238, %v4434_v3   ;;  %v2268_v14 = vmul.f32 %v4434_v3, %v4434_v3  ;;  %v2265_v6 = vsel %vm265_vm8, %v4439_v8, 0.0  ;;  %v2262_v62 = vsel %vm265_vm8, %v4434_v3, 0.0  ;;  %v2269_v21 = vmul.f32 %v4439_v8, %v4439_v8 }
0x1842   :  { %2312 = vperm.xlu0 %3237, %v4434_v3  }
0x1843   :  { %v2270_v61 = vsel %vm265_vm8, %v2268_v14, 0.0  ;;  %v2273_v32 = vsel %vm265_vm8, %v2269_v21, 0.0 }
0x1849   :  { %3241 = vset.pattern.permute.xlu1 %v3447_v0  ;;  %3240 = vset.pattern.permute.xlu2 %v3449_v34 }
0x184a   :  { %2349 = vperm.xlu2 %3240, %v4434_v3   ;;  %2317 = vperm.xlu1 %3241, %v4439_v8  }
0x184b   :  { %3243 = vset.pattern.permute.xlu0 %v3448_v20 }
0x1852   :  { %3242 = vset.pattern.permute.xlu2 %v3446_v63  ;;  %3244 = vset.pattern.permute.xlu1 %v3449_v34 }
0x186c   :  { %2271 = vadd.xlane.f32.xlu0 %v2270_v61 }
0x1873   :  { %2266 = vadd.xlane.f32.xlu2 %v2265_v6 }
0x1874   :  { %2263 = vadd.xlane.f32.xlu1 %v2262_v62 }
0x187c   :  { %2274 = vadd.xlane.f32.xlu1 %v2273_v32 }
0x1880   :  { %2341 = vperm.xlu0 %3243, %v4439_v8  }
0x1888   :  { %3245 = vset.pattern.permute.xlu0 %v3447_v0 }
0x188b   :  { %2329 = vperm.xlu2 %3242, %v4439_v8  }
0x1893   :  { %3247 = vset.pattern.permute.xlu2 %v3448_v20 }
0x1895   :  { %2353 = vperm.xlu1 %3244, %v4439_v8  }
0x189b   :  { %v2326_v55 = vpop.permute.xlu2 %2325 }
0x189c   :  { %v2332_v44 = vmul.f32 %v2326_v55, %v3600_v10 }
0x189d   :  { %3246 = vset.pattern.permute.xlu1 %v3446_v63 }
0x18a4   :  { %v2350_v27 = vpop.permute.xlu2 %2349 }
0x18a5   :  { %v2356_v18 = vmul.f32 %v2350_v27, %v3613_v24 }
0x18b3   :  { %v2338_v37 = vpop.permute.xlu1 %2337 }
0x18b4   :  { %v2313_v1 = vpop.permute.xlu0 %2312  ;;  %v2344_v2 = vmul.f32 %v2338_v37, %v3608_v15 }
0x18b5   :  { %v2320_v30 = vmul.f32 %v2313_v1, %v3597_v7  ;;  %v231_v1 = vadd.f32 %v229_v13, %v3604_v12 }
0x18b7   :  { %v2322_v22 = vadd.f32 %v2320_v30, %v230_v56 }
0x18b9   :  { %v2334_v38 = vadd.f32 %v2332_v44, %v2322_v22 }
0x18bb   :  { %v2346_v54 = vadd.f32 %v2344_v2, %v2334_v38 }
0x18bc   :  { %v2318_v42 = vpop.permute.xlu1 %2317 }
0x18bd   :  { %v2358_v31 = vadd.f32 %v2356_v18, %v2346_v54  ;;  %v2321_v32 = vmul.f32 %v2318_v42, %v3597_v7 }
0x18bf   :  { %v2323_v44 = vadd.f32 %v2321_v32, %v231_v1 }
0x18df   :  { %v2272_v40 = vpop.xlane.xlu0 %2271 }
0x18e0   :  { %v2280_v48 = vadd.f32 %v2272_v40, %v3579_v50 }
0x18e2   :  { %v2282_v23 = vmul.f32 0.014705882, %v2280_v48 }
0x18e6   :  { %v2267_v35 = vpop.xlane.xlu2 %2266 }
0x18e7   :  { %v2264_v49 = vpop.xlane.xlu1 %2263  ;;  %v2277_v58 = vadd.f32 %v2267_v35, %v232_v17 }
0x18e8   :  { %v2276_v16 = vadd.f32 %v2264_v49, %v232_v17  ;;  %v4486_v49 = vld [vmem:[%s4708_s0 + $0x8] ss:$0 sm:$0xff] }
0x18e9   :  { %v2279_v25 = vmul.f32 0.014705882, %v2277_v58 }
0x18ea   :  { %v2278_v59 = vmul.f32 0.014705882, %v2276_v16 }
0x18eb   :  { %v2285_v4 = vmul.f32 %v2279_v25, %v2279_v25 }
0x18ec   :  { %v2284_v33 = vmul.f32 %v2278_v59, %v2278_v59  ;;  %v2360_v29 = vmul.f32 %v4475_v53, %v2278_v59  ;;  %v2361_v59 = vmul.f32 %v4475_v53, %v2279_v25 }
0x18ee   :  { %v2286_v5 = vsub.f32 %v2282_v23, %v2284_v33  ;;  %v2362_v39 = vsub.f32 %v2358_v31, %v2360_v29  ;;  %v2330_v62 = vpop.permute.xlu2 %2329 }
0x18ef   :  { %v2275_v45 = vpop.xlane.xlu1 %2274  ;;  %v2333_v30 = vmul.f32 %v2330_v62, %v3600_v10 }
0x18f0   :  { %v2288_v19 = vadd.f32 1e-05, %v2286_v5  ;;  %v2281_v52 = vadd.f32 %v2275_v45, %v3579_v50 }
0x18f1   :  { %v2335_v17 = vadd.f32 %v2333_v30, %v2323_v44 }
0x18f2   :  { %3367 = vrsqrt.f32 %v2288_v19  ;;  %v2283_v9 = vmul.f32 0.014705882, %v2281_v52  ;;  %vm2296_vm13 = vweird.f32 %v2288_v19  ;;  %v2342_v22 = vpop.permute.xlu0 %2341 }
0x18f3   :  { %v2345_v35 = vmul.f32 %v2342_v22, %v3608_v15 }
0x18f4   :  { %v2287_v26 = vsub.f32 %v2283_v9, %v2285_v4 }
0x18f5   :  { %v2347_v48 = vadd.f32 %v2345_v35, %v2335_v17 }
0x18f6   :  { %v2289_v60 = vadd.f32 1e-05, %v2287_v26 }
0x18f8   :  { %v3368_v28 = vpop.eup %3367  ;;  %3369 = vrsqrt.f32 %v2289_v60  ;;  %vm2306_vm0 = vweird.f32 %v2289_v60 }
0x18f9   :  { %v2291_v14 = vmul.f32 %v3368_v28, %v2288_v19  ;;  %vm2297_vm12 = vweird.f32 %v3368_v28 }
0x18fa   :  { %vm2298_vm14 = vmor %vm2296_vm13, %vm2297_vm12 }
0x18fb   :  { %v2292_v61 = vmul.f32 %v3368_v28, %v2291_v14 }
0x18fd   :  { %v2293_v6 = vmul.f32 0.5, %v2292_v61 }
0x18fe   :  { %v3370_v21 = vpop.eup %3369 }
0x18ff   :  { %v2294_v55 = vsub.f32 1.5, %v2293_v6  ;;  %v2301_v37 = vmul.f32 %v3370_v21, %v2289_v60  ;;  %vm2307_vm15 = vweird.f32 %v3370_v21 }
0x1900   :  { %vm2308_vm1 = vmor %vm2306_vm0, %vm2307_vm15 }
0x1901   :  { %v2295_v56 = vmul.f32 %v3368_v28, %v2294_v55  ;;  %v2302_v27 = vmul.f32 %v3370_v21, %v2301_v37 }
0x1903   :  { %v2299_v38 = vsel %vm2298_vm14, %v3368_v28, %v2295_v56  ;;  %v2303_v40 = vmul.f32 0.5, %v2302_v27 }
0x1904   :  { %v2364_v2 = vmul.f32 %v2362_v39, %v2299_v38 }
0x1905   :  { %v2304_v42 = vsub.f32 1.5, %v2303_v40 }
0x1906   :  { %v2366_v13 = vadd.f32 %v4486_v49, %v2364_v2 }
0x1907   :  { %v2354_v54 = vpop.permute.xlu1 %2353  ;;  %v2305_v58 = vmul.f32 %v3370_v21, %v2304_v42 }
0x1908   :  { %v2357_v16 = vmul.f32 %v2354_v54, %v3613_v24  ;;  %v2368_v18 = vmax.f32 %v2366_v13, 0.0 }
0x1909   :  { %v2309_v39 = vsel %vm2308_vm1, %v3370_v21, %v2305_v58 }
0x190a   :  { %v2359_v23 = vadd.f32 %v2357_v16, %v2347_v48  ;;  %v2370_v31 = vsel %vm105_vm4, %v2368_v18, 0.0  ;;  %v2376_v33 = vmul.f32 %v2368_v18, %v2368_v18  ;;  %v4499_v16 = vld [vmem:[%s4708_s0 + $0xa] ss:$0 sm:$0xff] }
0x190b   :  { %2371 = vadd.xlane.f32.xlu2 %v2370_v31 }
0x190c   :  { %v2363_v29 = vsub.f32 %v2359_v23, %v2361_v59  ;;  %v2378_v5 = vsel %vm105_vm4, %v2376_v33, 0.0  ;;  %v4505_v23 = vld [vmem:[%s4708_s0 + $0xb] ss:$0 sm:$0xff] }
0x190d   :  { %2379 = vadd.xlane.f32.xlu1 %v2378_v5 }
0x190e   :  { %v2365_v45 = vmul.f32 %v2363_v29, %v2309_v39 }
0x1910   :  { %v2367_v19 = vadd.f32 %v4486_v49, %v2365_v45 }
0x1912   :  { %v2369_v52 = vmax.f32 %v2367_v19, 0.0 }
0x1914   :  { %v2373_v4 = vsel %vm105_vm4, %v2369_v52, 0.0  ;;  %v2377_v9 = vmul.f32 %v2369_v52, %v2369_v52 }
0x1915   :  { %2374 = vadd.xlane.f32.xlu0 %v2373_v4 }
0x1916   :  { %v2381_v25 = vsel %vm105_vm4, %v2377_v9, 0.0 }
0x1917   :  { %2382 = vadd.xlane.f32.xlu2 %v2381_v25 }
0x197e   :  { %v2372_v26 = vpop.xlane.xlu2 %2371 }
0x197f   :  { %v2384_v60 = vmul.f32 0.03125, %v2372_v26 }
0x1980   :  { %v2380_v28 = vpop.xlane.xlu1 %2379 }
0x1981   :  { %v2388_v14 = vmul.f32 %v2384_v60, %v2384_v60  ;;  %v2386_v61 = vmul.f32 0.03125, %v2380_v28  ;;  %v2392_v35 = vsub.f32 %v2368_v18, %v2384_v60 }
0x1983   :  { %v2390_v6 = vsub.f32 %v2386_v61, %v2388_v14 }
0x1985   :  { %v2394_v62 = vadd.f32 1e-05, %v2390_v6 }
0x1987   :  { %3371 = vrsqrt.f32 %v2394_v62  ;;  %vm2402_vm3 = vweird.f32 %v2394_v62 }
0x1988   :  { %v2375_v21 = vpop.xlane.xlu0 %2374 }
0x1989   :  { %v2385_v32 = vmul.f32 0.03125, %v2375_v21 }
0x198a   :  { %v2383_v55 = vpop.xlane.xlu2 %2382 }
0x198b   :  { %v2389_v37 = vmul.f32 %v2385_v32, %v2385_v32  ;;  %v2387_v1 = vmul.f32 0.03125, %v2383_v55  ;;  %v2393_v29 = vsub.f32 %v2369_v52, %v2385_v32 }
0x198d   :  { %v3372_v30 = vpop.eup %3371  ;;  %v2391_v56 = vsub.f32 %v2387_v1, %v2389_v37 }
0x198e   :  { %v2397_v27 = vmul.f32 %v3372_v30, %v2394_v62  ;;  %vm2403_vm2 = vweird.f32 %v3372_v30 }
0x198f   :  { %v2395_v22 = vadd.f32 1e-05, %v2391_v56  ;;  %vm2404_vm5 = vmor %vm2402_vm3, %vm2403_vm2 }
0x1990   :  { %v2398_v44 = vmul.f32 %v3372_v30, %v2397_v27 }
0x1991   :  { %3373 = vrsqrt.f32 %v2395_v22  ;;  %vm2412_vm7 = vweird.f32 %v2395_v22 }
0x1992   :  { %v2399_v38 = vmul.f32 0.5, %v2398_v44 }
0x1994   :  { %v2400_v40 = vsub.f32 1.5, %v2399_v38 }
0x1996   :  { %v2401_v2 = vmul.f32 %v3372_v30, %v2400_v40 }
0x1997   :  { %v3374_v17 = vpop.eup %3373 }
0x1998   :  { %v2405_v42 = vsel %vm2404_vm5, %v3372_v30, %v2401_v2  ;;  %v2407_v13 = vmul.f32 %v3374_v17, %v2395_v22  ;;  %vm2413_vm6 = vweird.f32 %v3374_v17 }
0x1999   :  { %v2416_v54 = vmul.f32 %v2405_v42, %v2392_v35  ;;  %vm2414_vm9 = vmor %vm2412_vm7, %vm2413_vm6 }
0x199a   :  { %v2408_v48 = vmul.f32 %v3374_v17, %v2407_v13 }
0x199b   :  { %v2418_v58 = vmul.f32 %v4499_v16, %v2416_v54 }
0x199c   :  { %v2409_v59 = vmul.f32 0.5, %v2408_v48 }
0x199d   :  { %v2420_v18 = vadd.f32 %v4505_v23, %v2418_v58 }
0x199e   :  { %v2410_v31 = vsub.f32 1.5, %v2409_v59 }
0x199f   :  { %3160 = vmatmul.msk.f32.vlgmr.msra.gmra.mxu1 %vm105_vm4, %v2420_v18 }
0x19a0   :  { %v2411_v33 = vmul.f32 %v3374_v17, %v2410_v31 }
0x19a2   :  { %v2415_v5 = vsel %vm2414_vm9, %v3374_v17, %v2411_v33 }
0x19a3   :  { %v2417_v39 = vmul.f32 %v2415_v5, %v2393_v29 }
0x19a5   :  { %v2419_v45 = vmul.f32 %v4499_v16, %v2417_v39 }
0x19a7   :  { %v2421_v19 = vadd.f32 %v4505_v23, %v2419_v45 }
0x19a9   :  { %3161 = vmatmul.msk.f32.gmra.mxu1 %vm105_vm4, %v2421_v19 }
0x1a1c   :  { %v2445_v4 = vpop.f32.mrf.mxu1 }
0x1a1d   :  { %v2446_v9 = vadd.f32 %v4315_v57, %v2445_v4 }
0x1a1f   :  { %v2451_v25 = vmax.f32 %v2446_v9, 0.0 }
0x1a21   :  { %v2453_v26 = vsel %vm105_vm4, %v2451_v25, 0.0  ;;  %v2459_v60 = vmul.f32 %v2451_v25, %v2451_v25 }
0x1a22   :  { %2454 = vadd.xlane.f32.xlu1 %v2453_v26 }
0x1a23   :  { %v2461_v28 = vsel %vm105_vm4, %v2459_v60, 0.0 }
0x1a24   :  { %2462 = vadd.xlane.f32.xlu2 %v2461_v28 }
0x1a26   :  { %v2448_v52 = vpop.f32.mrf.mxu1 }
0x1a27   :  { %v2449_v14 = vadd.f32 %v4315_v57, %v2448_v52 }
0x1a29   :  { %v2452_v61 = vmax.f32 %v2449_v14, 0.0 }
0x1a2b   :  { %v2456_v6 = vsel %vm105_vm4, %v2452_v61, 0.0  ;;  %v2460_v62 = vmul.f32 %v2452_v61, %v2452_v61 }
0x1a2c   :  { %2457 = vadd.xlane.f32.xlu0 %v2456_v6 }
0x1a2d   :  { %v2464_v21 = vsel %vm105_vm4, %v2460_v62, 0.0 }
0x1a2e   :  { %2465 = vadd.xlane.f32.xlu1 %v2464_v21 }
0x1a95   :  { %v2455_v32 = vpop.xlane.xlu1 %2454 }
0x1a96   :  { %v2467_v55 = vmul.f32 0.03125, %v2455_v32 }
0x1a97   :  { %v2463_v37 = vpop.xlane.xlu2 %2462 }
0x1a98   :  { %v2471_v1 = vmul.f32 %v2467_v55, %v2467_v55  ;;  %v2469_v30 = vmul.f32 0.03125, %v2463_v37  ;;  %v2475_v18 = vsub.f32 %v2451_v25, %v2467_v55 }
0x1a9a   :  { %v2473_v56 = vsub.f32 %v2469_v30, %v2471_v1 }
0x1a9c   :  { %v2477_v27 = vadd.f32 1e-05, %v2473_v56 }
0x1a9e   :  { %3375 = vrsqrt.f32 %v2477_v27  ;;  %vm2485_vm11 = vweird.f32 %v2477_v27 }
0x1a9f   :  { %v2458_v22 = vpop.xlane.xlu0 %2457 }
0x1aa0   :  { %v2468_v44 = vmul.f32 0.03125, %v2458_v22 }
0x1aa1   :  { %v2466_v38 = vpop.xlane.xlu1 %2465 }
0x1aa2   :  { %v2472_v57 = vmul.f32 %v2468_v44, %v2468_v44  ;;  %v2470_v40 = vmul.f32 0.03125, %v2466_v38  ;;  %v2476_v26 = vsub.f32 %v2452_v61, %v2468_v44 }
0x1aa4   :  { %v3376_v2 = vpop.eup %3375  ;;  %v2474_v17 = vsub.f32 %v2470_v40, %v2472_v57 }
0x1aa5   :  { %v2480_v35 = vmul.f32 %v3376_v2, %v2477_v27  ;;  %vm2486_vm10 = vweird.f32 %v3376_v2 }
0x1aa6   :  { %v2478_v42 = vadd.f32 1e-05, %v2474_v17  ;;  %vm2487_vm12 = vmor %vm2485_vm11, %vm2486_vm10 }
0x1aa7   :  { %v2481_v13 = vmul.f32 %v3376_v2, %v2480_v35 }
0x1aa8   :  { %3377 = vrsqrt.f32 %v2478_v42  ;;  %vm2495_vm14 = vweird.f32 %v2478_v42 }
0x1aa9   :  { %v2482_v54 = vmul.f32 0.5, %v2481_v13  ;;  %v4560_v13 = vld [vmem:[%s4708_s0 + $0x10] sm:$0xff] }
0x1aab   :  { %v2483_v48 = vsub.f32 1.5, %v2482_v54  ;;  %v225_v54 = vperm.slane %v4560_v13, 1 }
0x1aad   :  { %v2484_v58 = vmul.f32 %v3376_v2, %v2483_v48 }
0x1aae   :  { %v3378_v59 = vpop.eup %3377 }
0x1aaf   :  { %v2488_v31 = vsel %vm2487_vm12, %v3376_v2, %v2484_v58  ;;  %v2490_v33 = vmul.f32 %v3378_v59, %v2478_v42  ;;  %vm2496_vm13 = vweird.f32 %v3378_v59  ;;  %v226_v58 = vadd.f32 %v225_v54, %v3602_v11 }
0x1ab0   :  { %v2499_v29 = vmul.f32 %v2488_v31, %v2475_v18  ;;  %vm2497_vm15 = vmor %vm2495_vm14, %vm2496_vm13 }
0x1ab1   :  { %v2491_v5 = vmul.f32 %v3378_v59, %v2490_v33 }
0x1ab2   :  { %v2501_v39 = vmul.f32 %v4326_v36, %v2499_v29 }
0x1ab3   :  { %v2492_v45 = vmul.f32 0.5, %v2491_v5 }
0x1ab4   :  { %v2503_v19 = vadd.f32 %v4332_v51, %v2501_v39 }
0x1ab5   :  { %v2493_v4 = vsub.f32 1.5, %v2492_v45  ;;  %v228_v45 = vadd.f32 17.32692, %v3576_v47 }
0x1ab6   :  { %3162 = vmatmul.msk.f32.vlgmr.msra.gmra.mxu2 %vm105_vm4, %v2503_v19 }
0x1ab7   :  { %v2494_v9 = vmul.f32 %v3378_v59, %v2493_v4 }
0x1ab9   :  { %v2498_v60 = vsel %vm2497_vm15, %v3378_v59, %v2494_v9 }
0x1aba   :  { %v2500_v25 = vmul.f32 %v2498_v60, %v2476_v26 }
0x1abc   :  { %v2502_v28 = vmul.f32 %v4326_v36, %v2500_v25 }
0x1abe   :  { %v2504_v52 = vadd.f32 %v4332_v51, %v2502_v28 }
0x1ac0   :  { %3163 = vmatmul.msk.f32.gmra.mxu2 %vm105_vm4, %v2504_v52 }
0x1b39   :  { %v2528_v14 = vpop.f32.mrf.mxu2 }
0x1b3a   :  { %v2529_v6 = vadd.f32 %v4428_v46, %v2528_v14 }
0x1b3c   :  { %v2534_v62 = vmul.f32 0.054353844, %v2529_v6 }
0x1b3e   :  { %v2536_v32 = vsub.f32 %v4434_v3, %v2534_v62 }
0x1b40   :  { %v2538_v61 = vmul.f32 1.0022688, %v2536_v32 }
0x1b42   :  { %v2540_v56 = vmul.f32 0.9, %v2538_v61  ;;  %v2543_v22 = vmul.f32 0.1, %v2538_v61 }
0x1b43   :  { %v2531_v21 = vpop.f32.mrf.mxu2 }
0x1b44   :  { %v2532_v55 = vadd.f32 %v4428_v46, %v2531_v21 }
0x1b46   :  { %v2535_v37 = vmul.f32 0.054353844, %v2532_v55 }
0x1b48   :  { %v2537_v1 = vsub.f32 %v4439_v8, %v2535_v37 }
0x1b4a   :  { %v2539_v30 = vmul.f32 1.0022688, %v2537_v1 }
0x1b4c   :  { %v2542_v36 = vmul.f32 0.1, %v2539_v30  ;;  %v2541_v51 = vmul.f32 0.9, %v2539_v30 }
0x1b4e   :  { %v4528_v27 = vadd.f32 %v2542_v36, %v2540_v56  ;;  %v4533_v3 = vadd.f32 %v2543_v22, %v2541_v51 }
0x1b50   :  { %2621 = vperm.xlu2 %3247, %v4528_v27   ;;  %2609 = vperm.xlu1 %3246, %v4528_v27   ;;  %v2552_v8 = vmul.f32 %v4528_v27, %v4528_v27  ;;  %v2546_v38 = vsel %vm265_vm8, %v4528_v27, 0.0  ;;  %v2549_v57 = vsel %vm265_vm8, %v4533_v3, 0.0  ;;  %v2553_v40 = vmul.f32 %v4533_v3, %v4533_v3 }
0x1b51   :  { %2596 = vperm.xlu0 %3245, %v4528_v27  }
0x1b52   :  { %v2554_v44 = vsel %vm265_vm8, %v2552_v8, 0.0  ;;  %v2557_v2 = vsel %vm265_vm8, %v2553_v40, 0.0 }
0x1b58   :  { %3248 = vset.pattern.permute.xlu2 %v3449_v34  ;;  %3249 = vset.pattern.permute.xlu1 %v3447_v0 }
0x1b59   :  { %2633 = vperm.xlu2 %3248, %v4528_v27   ;;  %2601 = vperm.xlu1 %3249, %v4533_v3  }
0x1b5a   :  { %3252 = vset.pattern.permute.xlu0 %v3449_v34 }
0x1b61   :  { %3251 = vset.pattern.permute.xlu1 %v3448_v20  ;;  %3250 = vset.pattern.permute.xlu2 %v3446_v63 }
0x1b7b   :  { %2555 = vadd.xlane.f32.xlu0 %v2554_v44 }
0x1b82   :  { %2547 = vadd.xlane.f32.xlu2 %v2546_v38 }
0x1b83   :  { %2550 = vadd.xlane.f32.xlu1 %v2549_v57 }
0x1b8a   :  { %2558 = vadd.xlane.f32.xlu2 %v2557_v2  ;;  %v227_v2 = vadd.f32 %v225_v54, %v3604_v12 }
0x1b8f   :  { %2637 = vperm.xlu0 %3252, %v4533_v3  }
0x1b97   :  { %3254 = vset.pattern.permute.xlu0 %v3448_v20 }
0x1b9c   :  { %2625 = vperm.xlu1 %3251, %v4533_v3  }
0x1ba2   :  { %2613 = vperm.xlu2 %3250, %v4533_v3  }
0x1ba4   :  { %3253 = vset.pattern.permute.xlu1 %v3447_v0 }
0x1baa   :  { %v2622_v17 = vpop.permute.xlu2 %2621 }
0x1bab   :  { %v2628_v39 = vmul.f32 %v2622_v17, %v3608_v15 }
0x1bb3   :  { %v2634_v59 = vpop.permute.xlu2 %2633 }
0x1bb4   :  { %v2640_v25 = vmul.f32 %v2634_v59, %v3613_v24 }
0x1bc2   :  { %v2610_v35 = vpop.permute.xlu1 %2609 }
0x1bc3   :  { %v2597_v42 = vpop.permute.xlu0 %2596  ;;  %v2616_v33 = vmul.f32 %v2610_v35, %v3600_v10 }
0x1bc4   :  { %v2604_v48 = vmul.f32 %v2597_v42, %v3597_v7 }
0x1bc6   :  { %v2606_v18 = vadd.f32 %v2604_v48, %v226_v58 }
0x1bc8   :  { %v2618_v29 = vadd.f32 %v2616_v33, %v2606_v18 }
0x1bca   :  { %v2630_v4 = vadd.f32 %v2628_v39, %v2618_v29 }
0x1bcb   :  { %v2602_v31 = vpop.permute.xlu1 %2601 }
0x1bcc   :  { %v2642_v6 = vadd.f32 %v2640_v25, %v2630_v4  ;;  %v2605_v57 = vmul.f32 %v2602_v31, %v3597_v7 }
0x1bce   :  { %v2607_v48 = vadd.f32 %v2605_v57, %v227_v2 }
0x1bee   :  { %v2556_v5 = vpop.xlane.xlu0 %2555 }
0x1bef   :  { %v2564_v9 = vadd.f32 %v2556_v5, %v3579_v50 }
0x1bf1   :  { %v2566_v14 = vmul.f32 0.014705882, %v2564_v9 }
0x1bf5   :  { %v2548_v19 = vpop.xlane.xlu2 %2547 }
0x1bf6   :  { %v2560_v26 = vadd.f32 %v2548_v19, %v228_v45  ;;  %v2551_v60 = vpop.xlane.xlu1 %2550 }
0x1bf7   :  { %v2561_v52 = vadd.f32 %v2551_v60, %v228_v45 }
0x1bf8   :  { %v2562_v28 = vmul.f32 0.014705882, %v2560_v26 }
0x1bf9   :  { %v2563_v37 = vmul.f32 0.014705882, %v2561_v52 }
0x1bfa   :  { %v2568_v62 = vmul.f32 %v2562_v28, %v2562_v28  ;;  %v2644_v21 = vmul.f32 %v4475_v53, %v2562_v28 }
0x1bfb   :  { %v2569_v56 = vmul.f32 %v2563_v37, %v2563_v37  ;;  %v2645_v26 = vmul.f32 %v4475_v53, %v2563_v37 }
0x1bfc   :  { %v2570_v32 = vsub.f32 %v2566_v14, %v2568_v62  ;;  %v2646_v55 = vsub.f32 %v2642_v6, %v2644_v21 }
0x1bfd   :  { %v2559_v61 = vpop.xlane.xlu2 %2558 }
0x1bfe   :  { %v2572_v1 = vadd.f32 1e-05, %v2570_v32  ;;  %v2565_v30 = vadd.f32 %v2559_v61, %v3579_v50 }
0x1c00   :  { %3379 = vrsqrt.f32 %v2572_v1  ;;  %v2567_v36 = vmul.f32 0.014705882, %v2565_v30  ;;  %vm2580_vm1 = vweird.f32 %v2572_v1 }
0x1c01   :  { %v2638_v18 = vpop.permute.xlu0 %2637 }
0x1c02   :  { %v2571_v51 = vsub.f32 %v2567_v36, %v2569_v56  ;;  %v2641_v54 = vmul.f32 %v2638_v18, %v3613_v24 }
0x1c04   :  { %v2573_v22 = vadd.f32 1e-05, %v2571_v51 }
0x1c05   :  { %v2614_v38 = vpop.permute.xlu2 %2613 }
0x1c06   :  { %v3380_v8 = vpop.eup %3379  ;;  %3381 = vrsqrt.f32 %v2573_v22  ;;  %v2617_v35 = vmul.f32 %v2614_v38, %v3600_v10  ;;  %vm2590_vm5 = vweird.f32 %v2573_v22 }
0x1c07   :  { %v2575_v44 = vmul.f32 %v3380_v8, %v2572_v1  ;;  %vm2581_vm0 = vweird.f32 %v3380_v8 }
0x1c08   :  { %v2619_v39 = vadd.f32 %v2617_v35, %v2607_v48  ;;  %vm2582_vm2 = vmor %vm2580_vm1, %vm2581_vm0 }
0x1c09   :  { %v2576_v40 = vmul.f32 %v3380_v8, %v2575_v44 }
0x1c0b   :  { %v2577_v17 = vmul.f32 0.5, %v2576_v40 }
0x1c0c   :  { %v3382_v42 = vpop.eup %3381 }
0x1c0d   :  { %v2578_v58 = vsub.f32 1.5, %v2577_v17  ;;  %v2585_v59 = vmul.f32 %v3382_v42, %v2573_v22  ;;  %vm2591_vm3 = vweird.f32 %v3382_v42 }
0x1c0e   :  { %v2626_v33 = vpop.permute.xlu1 %2625  ;;  %vm2592_vm6 = vmor %vm2590_vm5, %vm2591_vm3 }
0x1c0f   :  { %v2579_v29 = vmul.f32 %v3380_v8, %v2578_v58  ;;  %v2586_v5 = vmul.f32 %v3382_v42, %v2585_v59  ;;  %v2629_v45 = vmul.f32 %v2626_v33, %v3608_v15 }
0x1c11   :  { %v2583_v31 = vsel %vm2582_vm2, %v3380_v8, %v2579_v29  ;;  %v2587_v19 = vmul.f32 0.5, %v2586_v5  ;;  %v2631_v4 = vadd.f32 %v2629_v45, %v2619_v39 }
0x1c12   :  { %v2648_v9 = vmul.f32 %v2646_v55, %v2583_v31 }
0x1c13   :  { %v2588_v60 = vsub.f32 1.5, %v2587_v19  ;;  %v2643_v25 = vadd.f32 %v2641_v54, %v2631_v4 }
0x1c14   :  { %v2650_v28 = vadd.f32 %v4486_v49, %v2648_v9 }
0x1c15   :  { %v2647_v52 = vsub.f32 %v2643_v25, %v2645_v26  ;;  %v2589_v14 = vmul.f32 %v3382_v42, %v2588_v60 }
0x1c16   :  { %v2652_v6 = vmax.f32 %v2650_v28, 0.0 }
0x1c17   :  { %v2593_v62 = vsel %vm2592_vm6, %v3382_v42, %v2589_v14 }
0x1c18   :  { %v2654_v21 = vsel %vm105_vm4, %v2652_v6, 0.0  ;;  %v2660_v32 = vmul.f32 %v2652_v6, %v2652_v6  ;;  %v2649_v61 = vmul.f32 %v2647_v52, %v2593_v62 }
0x1c19   :  { %2655 = vadd.xlane.f32.xlu2 %v2654_v21 }
0x1c1a   :  { %v2662_v55 = vsel %vm105_vm4, %v2660_v32, 0.0  ;;  %v2651_v37 = vadd.f32 %v4486_v49, %v2649_v61 }
0x1c1b   :  { %2663 = vadd.xlane.f32.xlu1 %v2662_v55 }
0x1c1c   :  { %v2653_v1 = vmax.f32 %v2651_v37, 0.0  ;;  %v4593_v37 = vld [vmem:[%s4708_s0 + $0xc] ss:$0 sm:$0xff] }
0x1c1e   :  { %v2657_v30 = vsel %vm105_vm4, %v2653_v1, 0.0  ;;  %v2661_v56 = vmul.f32 %v2653_v1, %v2653_v1 }
0x1c1f   :  { %2658 = vadd.xlane.f32.xlu0 %v2657_v30 }
0x1c20   :  { %v2665_v36 = vsel %vm105_vm4, %v2661_v56, 0.0 }
0x1c21   :  { %2666 = vadd.xlane.f32.xlu2 %v2665_v36 }
0x1c8c   :  { %v2656_v51 = vpop.xlane.xlu2 %2655 }
0x1c8d   :  { %v2668_v22 = vmul.f32 0.03125, %v2656_v51 }
0x1c8e   :  { %v2664_v8 = vpop.xlane.xlu1 %2663 }
0x1c8f   :  { %v2672_v44 = vmul.f32 %v2668_v22, %v2668_v22  ;;  %v2670_v38 = vmul.f32 0.03125, %v2664_v8  ;;  %v2676_v54 = vsub.f32 %v2652_v6, %v2668_v22 }
0x1c91   :  { %v2674_v57 = vsub.f32 %v2670_v38, %v2672_v44 }
0x1c92   :  { %v2659_v40 = vpop.xlane.xlu0 %2658 }
0x1c93   :  { %v2678_v2 = vadd.f32 1e-05, %v2674_v57  ;;  %v2669_v17 = vmul.f32 0.03125, %v2659_v40 }
0x1c94   :  { %v2667_v35 = vpop.xlane.xlu2 %2666 }
0x1c95   :  { %3383 = vrsqrt.f32 %v2678_v2  ;;  %v2673_v42 = vmul.f32 %v2669_v17, %v2669_v17  ;;  %v2671_v48 = vmul.f32 0.03125, %v2667_v35  ;;  %vm2686_vm9 = vweird.f32 %v2678_v2 }
0x1c96   :  { %v2677_v62 = vsub.f32 %v2653_v1, %v2669_v17 }
0x1c97   :  { %v2675_v58 = vsub.f32 %v2671_v48, %v2673_v42 }
0x1c99   :  { %v2679_v59 = vadd.f32 1e-05, %v2675_v58 }
0x1c9b   :  { %v3384_v18 = vpop.eup %3383  ;;  %3385 = vrsqrt.f32 %v2679_v59  ;;  %vm2696_vm12 = vweird.f32 %v2679_v59 }
0x1c9c   :  { %v2681_v33 = vmul.f32 %v3384_v18, %v2678_v2  ;;  %vm2687_vm7 = vweird.f32 %v3384_v18 }
0x1c9d   :  { %vm2688_vm10 = vmor %vm2686_vm9, %vm2687_vm7 }
0x1c9e   :  { %v2682_v29 = vmul.f32 %v3384_v18, %v2681_v33 }
0x1ca0   :  { %v2683_v5 = vmul.f32 0.5, %v2682_v29 }
0x1ca1   :  { %v3386_v39 = vpop.eup %3385 }
0x1ca2   :  { %v2684_v45 = vsub.f32 1.5, %v2683_v5  ;;  %v2691_v31 = vmul.f32 %v3386_v39, %v2679_v59  ;;  %vm2697_vm11 = vweird.f32 %v3386_v39 }
0x1ca3   :  { %vm2698_vm13 = vmor %vm2696_vm12, %vm2697_vm11 }
0x1ca4   :  { %v2685_v19 = vmul.f32 %v3384_v18, %v2684_v45  ;;  %v2692_v4 = vmul.f32 %v3386_v39, %v2691_v31 }
0x1ca6   :  { %v2689_v9 = vsel %vm2688_vm10, %v3384_v18, %v2685_v19  ;;  %v2693_v60 = vmul.f32 0.5, %v2692_v4 }
0x1ca7   :  { %v2700_v26 = vmul.f32 %v2689_v9, %v2676_v54 }
0x1ca8   :  { %v2694_v28 = vsub.f32 1.5, %v2693_v60 }
0x1ca9   :  { %v2702_v25 = vmul.f32 %v4499_v16, %v2700_v26 }
0x1caa   :  { %v2695_v52 = vmul.f32 %v3386_v39, %v2694_v28 }
0x1cab   :  { %v2704_v14 = vadd.f32 %v4505_v23, %v2702_v25 }
0x1cac   :  { %v2699_v21 = vsel %vm2698_vm13, %v3386_v39, %v2695_v52 }
0x1cad   :  { %3164 = vmatmul.msk.f32.vlgmr.msrb.gmra.mxu3 %vm105_vm4, %v2704_v14  ;;  %v2701_v32 = vmul.f32 %v2699_v21, %v2677_v62 }
0x1caf   :  { %v2703_v6 = vmul.f32 %v4499_v16, %v2701_v32 }
0x1cb1   :  { %v2705_v61 = vadd.f32 %v4505_v23, %v2703_v6  ;;  %v4604_v6 = vld [vmem:[%s4708_s0 + $0xd] ss:$0 sm:$0xff] }
0x1cb5   :  { %3165 = vmatmul.msk.f32.gmra.mxu3 %vm105_vm4, %v2705_v61 }
0x1d30   :  { %v2729_v55 = vpop.f32.mrf.mxu3 }
0x1d31   :  { %v2730_v30 = vadd.f32 %v4593_v37, %v2729_v55 }
0x1d33   :  { %v2735_v1 = vmax.f32 %v2730_v30, 0.0  ;;  %v4610_v30 = vld [vmem:[%s4708_s0 + $0xe] ss:$0 sm:$0xff] }
0x1d35   :  { %v2737_v56 = vsel %vm105_vm4, %v2735_v1, 0.0  ;;  %v2743_v36 = vmul.f32 %v2735_v1, %v2735_v1 }
0x1d36   :  { %2738 = vadd.xlane.f32.xlu1 %v2737_v56 }
0x1d37   :  { %v2745_v51 = vsel %vm105_vm4, %v2743_v36, 0.0 }
0x1d38   :  { %2746 = vadd.xlane.f32.xlu2 %v2745_v51  ;;  %v2732_v22 = vpop.f32.mrf.mxu3 }
0x1d39   :  { %v2733_v8 = vadd.f32 %v4593_v37, %v2732_v22 }
0x1d3b   :  { %v2736_v44 = vmax.f32 %v2733_v8, 0.0 }
0x1d3d   :  { %v2740_v38 = vsel %vm105_vm4, %v2736_v44, 0.0  ;;  %v2744_v57 = vmul.f32 %v2736_v44, %v2736_v44 }
0x1d3e   :  { %2741 = vadd.xlane.f32.xlu1 %v2740_v38 }
0x1d3f   :  { %v2748_v40 = vsel %vm105_vm4, %v2744_v57, 0.0 }
0x1d40   :  { %2749 = vadd.xlane.f32.xlu2 %v2748_v40 }
0x1da9   :  { %v2739_v2 = vpop.xlane.xlu1 %2738 }
0x1daa   :  { %v2751_v17 = vmul.f32 0.03125, %v2739_v2 }
0x1dab   :  { %v2747_v35 = vpop.xlane.xlu2 %2746 }
0x1dac   :  { %v2755_v42 = vmul.f32 %v2751_v17, %v2751_v17  ;;  %v2753_v48 = vmul.f32 0.03125, %v2747_v35  ;;  %v2759_v52 = vsub.f32 %v2735_v1, %v2751_v17 }
0x1dae   :  { %v2757_v58 = vsub.f32 %v2753_v48, %v2755_v42 }
0x1db0   :  { %v2761_v59 = vadd.f32 1e-05, %v2757_v58 }
0x1db1   :  { %v2742_v18 = vpop.xlane.xlu1 %2741 }
0x1db2   :  { %3387 = vrsqrt.f32 %v2761_v59  ;;  %v2752_v33 = vmul.f32 0.03125, %v2742_v18  ;;  %vm2769_vm15 = vweird.f32 %v2761_v59 }
0x1db3   :  { %v2750_v29 = vpop.xlane.xlu2 %2749 }
0x1db4   :  { %v2756_v5 = vmul.f32 %v2752_v33, %v2752_v33  ;;  %v2754_v39 = vmul.f32 0.03125, %v2750_v29  ;;  %v2760_v36 = vsub.f32 %v2736_v44, %v2752_v33 }
0x1db6   :  { %v2758_v45 = vsub.f32 %v2754_v39, %v2756_v5 }
0x1db8   :  { %v3388_v31 = vpop.eup %3387  ;;  %v2762_v19 = vadd.f32 1e-05, %v2758_v45 }
0x1db9   :  { %v2764_v54 = vmul.f32 %v3388_v31, %v2761_v59  ;;  %vm2770_vm14 = vweird.f32 %v3388_v31 }
0x1dba   :  { %3389 = vrsqrt.f32 %v2762_v19  ;;  %vm2771_vm0 = vmor %vm2769_vm15, %vm2770_vm14  ;;  %vm2779_vm2 = vweird.f32 %v2762_v19 }
0x1dbb   :  { %v2765_v4 = vmul.f32 %v3388_v31, %v2764_v54 }
0x1dbd   :  { %v2766_v9 = vmul.f32 0.5, %v2765_v4 }
0x1dbf   :  { %v2767_v26 = vsub.f32 1.5, %v2766_v9 }
0x1dc0   :  { %v3390_v60 = vpop.eup %3389 }
0x1dc1   :  { %v2768_v25 = vmul.f32 %v3388_v31, %v2767_v26  ;;  %v2774_v28 = vmul.f32 %v3390_v60, %v2762_v19  ;;  %vm2780_vm1 = vweird.f32 %v3390_v60  ;;  %v223_v26 = vadd.f32 16.0, %v3576_v47 }
0x1dc2   :  { %vm2781_vm3 = vmor %vm2779_vm2, %vm2780_vm1 }
0x1dc3   :  { %v2772_v14 = vsel %vm2771_vm0, %v3388_v31, %v2768_v25  ;;  %v2775_v62 = vmul.f32 %v3390_v60, %v2774_v28 }
0x1dc4   :  { %v2783_v21 = vmul.f32 %v2772_v14, %v2759_v52 }
0x1dc5   :  { %v2776_v32 = vmul.f32 0.5, %v2775_v62 }
0x1dc6   :  { %v2785_v61 = vmul.f32 %v4604_v6, %v2783_v21 }
0x1dc7   :  { %v2777_v55 = vsub.f32 1.5, %v2776_v32 }
0x1dc8   :  { %v2787_v1 = vadd.f32 %v4610_v30, %v2785_v61 }
0x1dc9   :  { %v2778_v56 = vmul.f32 %v3390_v60, %v2777_v55 }
0x1dca   :  { %3166 = vmatmul.msk.f32.vlgmr.msrb.gmra.mxu0 %vm105_vm4, %v2787_v1 }
0x1dcb   :  { %v2782_v51 = vsel %vm2781_vm3, %v3390_v60, %v2778_v56 }
0x1dcc   :  { %v2784_v22 = vmul.f32 %v2782_v51, %v2760_v36  ;;  %v220_v36 = vperm.slane %v4560_v13, 0 }
0x1dce   :  { %v2786_v8 = vmul.f32 %v4604_v6, %v2784_v22 }
0x1dd0   :  { %v2788_v38 = vadd.f32 %v4610_v30, %v2786_v8 }
0x1dd2   :  { %3167 = vmatmul.msk.f32.gmra.mxu0 %vm105_vm4, %v2788_v38 }
0x1e47   :  { %v2812_v57 = vpop.f32.mrf.mxu0 }
0x1e48   :  { %v2813_v40 = vadd.f32 %v4428_v46, %v2812_v57  ;;  %v221_v57 = vadd.f32 %v220_v36, %v3602_v11 }
0x1e4a   :  { %v2818_v2 = vmul.f32 0.047068708, %v2813_v40 }
0x1e4c   :  { %v2820_v35 = vsub.f32 %v4528_v27, %v2818_v2 }
0x1e4e   :  { %v2822_v48 = vmul.f32 1.0011575, %v2820_v35 }
0x1e4f   :  { %v2815_v17 = vpop.f32.mrf.mxu0 }
0x1e50   :  { %v2816_v44 = vadd.f32 %v4428_v46, %v2815_v17  ;;  %v2824_v18 = vmul.f32 0.9, %v2822_v48  ;;  %v2827_v5 = vmul.f32 0.1, %v2822_v48 }
0x1e52   :  { %v2819_v42 = vmul.f32 0.047068708, %v2816_v44 }
0x1e54   :  { %v2821_v58 = vsub.f32 %v4533_v3, %v2819_v42 }
0x1e56   :  { %v2823_v59 = vmul.f32 1.0011575, %v2821_v58 }
0x1e58   :  { %v2825_v33 = vmul.f32 0.9, %v2823_v59  ;;  %v2826_v29 = vmul.f32 0.1, %v2823_v59 }
0x1e5a   :  { %v4621_v39 = vadd.f32 %v2826_v29, %v2824_v18  ;;  %v4623_v45 = vadd.f32 %v2827_v5, %v2825_v33 }
0x1e5c   :  { %2893 = vperm.xlu2 %3250, %v4621_v39   ;;  %2880 = vperm.xlu1 %3253, %v4621_v39   ;;  %v2830_v46 = vsel %vm265_vm8, %v4621_v39, 0.0  ;;  %v2837_v27 = vmul.f32 %v4623_v45, %v4623_v45  ;;  %v2836_v31 = vmul.f32 %v4621_v39, %v4621_v39  ;;  %v2833_v19 = vsel %vm265_vm8, %v4623_v45, 0.0 }
0x1e5d   :  { %2831 = vadd.xlane.f32.xlu0 %v2830_v46 }
0x1e5e   :  { %v2841_v3 = vsel %vm265_vm8, %v2837_v27, 0.0  ;;  %v2838_v54 = vsel %vm265_vm8, %v2836_v31, 0.0 }
0x1e64   :  { %3256 = vset.pattern.permute.xlu2 %v3447_v0  ;;  %3255 = vset.pattern.permute.xlu1 %v3449_v34 }
0x1e65   :  { %2842 = vadd.xlane.f32.xlu0 %v2841_v3 }
0x1e79   :  { %2905 = vperm.xlu0 %3254, %v4621_v39  }
0x1e81   :  { %3260 = vset.pattern.permute.xlu0 %v3449_v34 }
0x1e85   :  { %2834 = vadd.xlane.f32.xlu2 %v2833_v19 }
0x1e86   :  { %2839 = vadd.xlane.f32.xlu1 %v2838_v54 }
0x1e9d   :  { %2885 = vperm.xlu2 %3256, %v4623_v45  }
0x1e9f   :  { %2917 = vperm.xlu1 %3255, %v4621_v39  }
0x1ea5   :  { %3258 = vset.pattern.permute.xlu2 %v3448_v20 }
0x1ea6   :  { %2909 = vperm.xlu2 %3258, %v4623_v45  }
0x1ea7   :  { %3257 = vset.pattern.permute.xlu1 %v3446_v63 }
0x1ea8   :  { %2897 = vperm.xlu1 %3257, %v4623_v45  }
0x1eb0   :  { %3259 = vset.pattern.permute.xlu1 %v3449_v34 }
0x1eb1   :  { %2921 = vperm.xlu1 %3259, %v4623_v45  }
0x1eb6   :  { %v2894_v0 = vpop.permute.xlu2 %2893 }
0x1eb7   :  { %v2900_v35 = vmul.f32 %v2894_v0, %v3600_v10 }
0x1ece   :  { %v2881_v4 = vpop.permute.xlu1 %2880 }
0x1ecf   :  { %v2888_v22 = vmul.f32 %v2881_v4, %v3597_v7 }
0x1ed0   :  { %v2832_v9 = vpop.xlane.xlu0 %2831 }
0x1ed1   :  { %v2844_v60 = vadd.f32 %v2832_v9, %v223_v26  ;;  %v222_v9 = vadd.f32 %v220_v36, %v3604_v12 }
0x1ed3   :  { %v2846_v25 = vmul.f32 0.014705882, %v2844_v60 }
0x1ed5   :  { %v2852_v63 = vmul.f32 %v2846_v25, %v2846_v25  ;;  %v2928_v11 = vmul.f32 %v4475_v53, %v2846_v25 }
0x1ed8   :  { %v2843_v62 = vpop.xlane.xlu0 %2842 }
0x1ed9   :  { %v2849_v34 = vadd.f32 %v2843_v62, %v3579_v50 }
0x1edb   :  { %v2851_v47 = vmul.f32 0.014705882, %v2849_v34 }
0x1eeb   :  { %v2906_v40 = vpop.permute.xlu0 %2905 }
0x1eec   :  { %v2912_v44 = vmul.f32 %v2906_v40, %v3608_v15 }
0x1ef8   :  { %v2835_v28 = vpop.xlane.xlu2 %2834 }
0x1ef9   :  { %v2845_v52 = vadd.f32 %v2835_v28, %v223_v26  ;;  %v2840_v20 = vpop.xlane.xlu1 %2839 }
0x1efa   :  { %v2848_v14 = vadd.f32 %v2840_v20, %v3579_v50  ;;  %v2890_v50 = vadd.f32 %v2888_v22, %v221_v57 }
0x1efb   :  { %v4651_v21 = vmul.f32 0.014705882, %v2845_v52 }
0x1efc   :  { %v2850_v32 = vmul.f32 0.014705882, %v2848_v14  ;;  %v2902_v48 = vadd.f32 %v2900_v35, %v2890_v50 }
0x1efd   :  { %v2853_v55 = vmul.f32 %v4651_v21, %v4651_v21 }
0x1efe   :  { %v2854_v61 = vsub.f32 %v2850_v32, %v2852_v63  ;;  %v2914_v59 = vadd.f32 %v2912_v44, %v2902_v48 }
0x1eff   :  { %v2855_v56 = vsub.f32 %v2851_v47, %v2853_v55 }
0x1f00   :  { %v2856_v1 = vadd.f32 1e-05, %v2854_v61  ;;  %v2886_v46 = vpop.permute.xlu2 %2885  ;;  %v3444_v61 = vld [vmem:[%s4708_s0 + $0x9] ss:$0 sm:$0xff] }
0x1f01   :  { %v2857_v8 = vadd.f32 1e-05, %v2855_v56  ;;  %v2889_v54 = vmul.f32 %v2886_v46, %v3597_v7  ;;  %v2929_v55 = vmul.f32 %v3444_v61, %v4651_v21 }
0x1f02   :  { %3391 = vrsqrt.f32 %v2856_v1  ;;  %vm2864_vm6 = vweird.f32 %v2856_v1 }
0x1f03   :  { %3393 = vrsqrt.f32 %v2857_v8  ;;  %v2891_v25 = vadd.f32 %v2889_v54, %v222_v9  ;;  %vm2874_vm10 = vweird.f32 %v2857_v8 }
0x1f08   :  { %v3392_v51 = vpop.eup %3391  ;;  %v2910_v20 = vpop.permute.xlu2 %2909 }
0x1f09   :  { %v2859_v38 = vmul.f32 %v3392_v51, %v2856_v1  ;;  %v3394_v13 = vpop.eup %3393  ;;  %vm2865_vm5 = vweird.f32 %v3392_v51  ;;  %v2913_v7 = vmul.f32 %v2910_v20, %v3608_v15 }
0x1f0a   :  { %v2869_v5 = vmul.f32 %v3394_v13, %v2857_v8  ;;  %vm2866_vm7 = vmor %vm2864_vm6, %vm2865_vm5  ;;  %vm2875_vm9 = vweird.f32 %v3394_v13 }
0x1f0b   :  { %v2860_v2 = vmul.f32 %v3392_v51, %v2859_v38  ;;  %vm2876_vm11 = vmor %vm2874_vm10, %vm2875_vm9 }
0x1f0c   :  { %v2870_v19 = vmul.f32 %v3394_v13, %v2869_v5 }
0x1f0d   :  { %v2861_v17 = vmul.f32 0.5, %v2860_v2 }
0x1f0e   :  { %v2871_v53 = vmul.f32 0.5, %v2870_v19 }
0x1f0f   :  { %v2862_v42 = vsub.f32 1.5, %v2861_v17 }
0x1f10   :  { %v2872_v63 = vsub.f32 1.5, %v2871_v53 }
0x1f11   :  { %v2918_v58 = vpop.permute.xlu1 %2917  ;;  %v2863_v33 = vmul.f32 %v3392_v51, %v2862_v42 }
0x1f12   :  { %v2924_v18 = vmul.f32 %v2918_v58, %v3613_v24 }
0x1f13   :  { %v2867_v3 = vsel %vm2866_vm7, %v3392_v51, %v2863_v33 }
0x1f14   :  { %v2926_v29 = vadd.f32 %v2924_v18, %v2914_v59 }
0x1f16   :  { %v2930_v27 = vsub.f32 %v2926_v29, %v2928_v11 }
0x1f18   :  { %v2932_v31 = vmul.f32 %v2930_v27, %v2867_v3 }
0x1f1a   :  { %v2898_v0 = vpop.permute.xlu1 %2897  ;;  %v2934_v4 = vadd.f32 %v4486_v49, %v2932_v31 }
0x1f1b   :  { %v2901_v26 = vmul.f32 %v2898_v0, %v3600_v10  ;;  %v2873_v10 = vmul.f32 %v3394_v13, %v2872_v63 }
0x1f1c   :  { %v2936_v60 = vmax.f32 %v2934_v4, 0.0 }
0x1f1d   :  { %v2903_v14 = vadd.f32 %v2901_v26, %v2891_v25  ;;  %v2877_v56 = vsel %vm2876_vm11, %v3394_v13, %v2873_v10 }
0x1f1e   :  { %v2938_v28 = vsel %vm105_vm4, %v2936_v60, 0.0  ;;  %v2944_v52 = vmul.f32 %v2936_v60, %v2936_v60 }
0x1f1f   :  { %2939 = vadd.xlane.f32.xlu2 %v2938_v28  ;;  %v2915_v34 = vadd.f32 %v2913_v7, %v2903_v14 }
0x1f20   :  { %v2946_v62 = vsel %vm105_vm4, %v2944_v52, 0.0 }
0x1f21   :  { %2947 = vadd.xlane.f32.xlu0 %v2946_v62 }
0x1f23   :  { %v2922_v32 = vpop.permute.xlu1 %2921 }
0x1f24   :  { %v2925_v12 = vmul.f32 %v2922_v32, %v3613_v24 }
0x1f26   :  { %v2927_v1 = vadd.f32 %v2925_v12, %v2915_v34 }
0x1f28   :  { %v2931_v47 = vsub.f32 %v2927_v1, %v2929_v55 }
0x1f2a   :  { %v2933_v36 = vmul.f32 %v2931_v47, %v2877_v56 }
0x1f2c   :  { %v2935_v15 = vadd.f32 %v4486_v49, %v2933_v36 }
0x1f2e   :  { %v2937_v51 = vmax.f32 %v2935_v15, 0.0 }
0x1f30   :  { %v2941_v22 = vsel %vm105_vm4, %v2937_v51, 0.0  ;;  %v2945_v24 = vmul.f32 %v2937_v51, %v2937_v51 }
0x1f31   :  { %2942 = vadd.xlane.f32.xlu1 %v2941_v22 }
0x1f32   :  { %v2949_v38 = vsel %vm105_vm4, %v2945_v24, 0.0 }
0x1f33   :  { %2950 = vadd.xlane.f32.xlu2 %v2949_v38 }
0x1f92   :  { %v2940_v57 = vpop.xlane.xlu2 %2939 }
0x1f93   :  { %v2952_v40 = vmul.f32 0.03125, %v2940_v57 }
0x1f94   :  { %v2948_v2 = vpop.xlane.xlu0 %2947 }
0x1f95   :  { %v2956_v21 = vmul.f32 %v2952_v40, %v2952_v40  ;;  %v2954_v50 = vmul.f32 0.03125, %v2948_v2  ;;  %v2960_v5 = vsub.f32 %v2936_v60, %v2952_v40 }
0x1f97   :  { %v2958_v8 = vsub.f32 %v2954_v50, %v2956_v21 }
0x1f99   :  { %v2962_v17 = vadd.f32 1e-05, %v2958_v8 }
0x1f9b   :  { %3395 = vrsqrt.f32 %v2962_v17  ;;  %vm2970_vm13 = vweird.f32 %v2962_v17 }
0x1fa1   :  { %v3396_v35 = vpop.eup %3395 }
0x1fa2   :  { %v2965_v44 = vmul.f32 %v3396_v35, %v2962_v17  ;;  %vm2971_vm12 = vweird.f32 %v3396_v35 }
0x1fa3   :  { %vm2972_vm14 = vmor %vm2970_vm13, %vm2971_vm12 }
0x1fa4   :  { %v2966_v42 = vmul.f32 %v3396_v35, %v2965_v44  ;;  %v2943_v49 = vpop.xlane.xlu1 %2942 }
0x1fa5   :  { %v2953_v48 = vmul.f32 0.03125, %v2943_v49 }
0x1fa6   :  { %v2967_v58 = vmul.f32 0.5, %v2966_v42  ;;  %v2951_v13 = vpop.xlane.xlu2 %2950 }
0x1fa7   :  { %v2957_v59 = vmul.f32 %v2953_v48, %v2953_v48  ;;  %v2955_v18 = vmul.f32 0.03125, %v2951_v13  ;;  %v2961_v60 = vsub.f32 %v2937_v51, %v2953_v48 }
0x1fa8   :  { %v2968_v33 = vsub.f32 1.5, %v2967_v58 }
0x1fa9   :  { %v2959_v11 = vsub.f32 %v2955_v18, %v2957_v59 }
0x1faa   :  { %v2969_v29 = vmul.f32 %v3396_v35, %v2968_v33 }
0x1fab   :  { %v2963_v46 = vadd.f32 1e-05, %v2959_v11 }
0x1fac   :  { %v2973_v27 = vsel %vm2972_vm14, %v3396_v35, %v2969_v29 }
0x1fad   :  { %v2984_v3 = vmul.f32 %v2973_v27, %v2960_v5  ;;  %3397 = vrsqrt.f32 %v2963_v46  ;;  %vm2980_vm0 = vweird.f32 %v2963_v46 }
0x1faf   :  { %v2986_v31 = vmul.f32 %v4499_v16, %v2984_v3 }
0x1fb1   :  { %v2988_v19 = vadd.f32 %v4505_v23, %v2986_v31 }
0x1fb3   :  { %v3398_v54 = vpop.eup %3397  ;;  %3168 = vmatmul.msk.f32.vlgmr.msrb.gmra.mxu1 %vm105_vm4, %v2988_v19 }
0x1fb4   :  { %v2975_v0 = vmul.f32 %v3398_v54, %v2963_v46  ;;  %vm2981_vm15 = vweird.f32 %v3398_v54 }
0x1fb5   :  { %vm2982_vm1 = vmor %vm2980_vm0, %vm2981_vm15 }
0x1fb6   :  { %v2976_v4 = vmul.f32 %v3398_v54, %v2975_v0 }
0x1fb8   :  { %v2977_v9 = vmul.f32 0.5, %v2976_v4  ;;  %v3445_v4 = vld [vmem:[%s4708_s0 + $0xf] ss:$0 sm:$0xff] }
0x1fba   :  { %v2978_v26 = vsub.f32 1.5, %v2977_v9 }
0x1fbc   :  { %v2979_v53 = vmul.f32 %v3398_v54, %v2978_v26 }
0x1fbe   :  { %v2983_v25 = vsel %vm2982_vm1, %v3398_v54, %v2979_v53 }
0x1fbf   :  { %v2985_v28 = vmul.f32 %v2983_v25, %v2961_v60 }
0x1fc1   :  { %v2987_v52 = vmul.f32 %v4499_v16, %v2985_v28  ;;  %v3116_v28 = vadd.f32 %v3574_v43, %v3572_v41 }
0x1fc3   :  { %v2989_v20 = vadd.f32 %v4505_v23, %v2987_v52 }
0x1fc5   :  { %3169 = vmatmul.msk.f32.gmra.mxu1 %vm105_vm4, %v2989_v20  ;;  %v3117_v20 = vmul.f32 -0.5, %v3116_v28 }
0x2030   :  { %v3013_v14 = vpop.f32.mrf.mxu1 }
0x2031   :  { %v3014_v62 = vadd.f32 %v4593_v37, %v3013_v14 }
0x2033   :  { %v3019_v63 = vmax.f32 %v3014_v62, 0.0 }
0x2035   :  { %v3021_v7 = vsel %vm105_vm4, %v3019_v63, 0.0  ;;  %v3027_v32 = vmul.f32 %v3019_v63, %v3019_v63 }
0x2036   :  { %3022 = vadd.xlane.f32.xlu0 %v3021_v7 }
0x2037   :  { %v3029_v34 = vsel %vm105_vm4, %v3027_v32, 0.0 }
0x2038   :  { %3030 = vadd.xlane.f32.xlu1 %v3029_v34  ;;  %v3172_v34 = vadd.f32 -7.351508, %v3117_v20 }
0x2042   :  { %v3016_v12 = vpop.f32.mrf.mxu1 }
0x2043   :  { %v3017_v10 = vadd.f32 %v4593_v37, %v3016_v12 }
0x2045   :  { %v3020_v61 = vmax.f32 %v3017_v10, 0.0 }
0x2047   :  { %v3024_v16 = vsel %vm105_vm4, %v3020_v61, 0.0  ;;  %v3028_v23 = vmul.f32 %v3020_v61, %v3020_v61 }
0x2048   :  { %3025 = vadd.xlane.f32.xlu2 %v3024_v16 }
0x2049   :  { %v3032_v55 = vsel %vm105_vm4, %v3028_v23, 0.0 }
0x204a   :  { %3033 = vadd.xlane.f32.xlu0 %v3032_v55 }
0x20a9   :  { %v3023_v1 = vpop.xlane.xlu0 %3022 }
0x20aa   :  { %v3035_v47 = vmul.f32 0.03125, %v3023_v1 }
0x20ab   :  { %v3031_v56 = vpop.xlane.xlu1 %3030 }
0x20ac   :  { %v3039_v36 = vmul.f32 %v3035_v47, %v3035_v47  ;;  %v3037_v15 = vmul.f32 0.03125, %v3031_v56  ;;  %v3043_v42 = vsub.f32 %v3019_v63, %v3035_v47 }
0x20ae   :  { %v3041_v51 = vsub.f32 %v3037_v15, %v3039_v36 }
0x20b0   :  { %v3045_v22 = vadd.f32 1e-05, %v3041_v51 }
0x20b2   :  { %3399 = vrsqrt.f32 %v3045_v22  ;;  %vm3053_vm3 = vweird.f32 %v3045_v22 }
0x20b8   :  { %v3400_v24 = vpop.eup %3399 }
0x20b9   :  { %v3048_v38 = vmul.f32 %v3400_v24, %v3045_v22  ;;  %vm3054_vm2 = vweird.f32 %v3400_v24 }
0x20ba   :  { %vm3055_vm5 = vmor %vm3053_vm3, %vm3054_vm2 }
0x20bb   :  { %v3049_v57 = vmul.f32 %v3400_v24, %v3048_v38  ;;  %v3026_v37 = vpop.xlane.xlu2 %3025 }
0x20bc   :  { %v3036_v40 = vmul.f32 0.03125, %v3026_v37 }
0x20bd   :  { %v3050_v2 = vmul.f32 0.5, %v3049_v57  ;;  %v3034_v21 = vpop.xlane.xlu0 %3033 }
0x20be   :  { %v3040_v50 = vmul.f32 %v3036_v40, %v3036_v40  ;;  %v3038_v8 = vmul.f32 0.03125, %v3034_v21  ;;  %v3044_v27 = vsub.f32 %v3020_v61, %v3036_v40 }
0x20bf   :  { %v3051_v17 = vsub.f32 1.5, %v3050_v2 }
0x20c0   :  { %v3042_v35 = vsub.f32 %v3038_v8, %v3040_v50 }
0x20c1   :  { %v3052_v44 = vmul.f32 %v3400_v24, %v3051_v17 }
0x20c2   :  { %v3046_v49 = vadd.f32 1e-05, %v3042_v35 }
0x20c3   :  { %v3056_v48 = vsel %vm3055_vm5, %v3400_v24, %v3052_v44 }
0x20c4   :  { %v3067_v58 = vmul.f32 %v3056_v48, %v3043_v42  ;;  %3401 = vrsqrt.f32 %v3046_v49  ;;  %vm3063_vm7 = vweird.f32 %v3046_v49 }
0x20c6   :  { %v3069_v13 = vmul.f32 %v4604_v6, %v3067_v58 }
0x20c8   :  { %v3071_v59 = vadd.f32 %v4610_v30, %v3069_v13 }
0x20ca   :  { %v3402_v18 = vpop.eup %3401  ;;  %3170 = vmatmul.msk.f32.vlgmr.msrb.gmra.mxu2 %vm105_vm4, %v3071_v59 }
0x20cb   :  { %v3058_v33 = vmul.f32 %v3402_v18, %v3046_v49  ;;  %vm3064_vm6 = vweird.f32 %v3402_v18 }
0x20cc   :  { %vm3065_vm9 = vmor %vm3063_vm7, %vm3064_vm6 }
0x20cd   :  { %v3059_v11 = vmul.f32 %v3402_v18, %v3058_v33 }
0x20cf   :  { %v3060_v29 = vmul.f32 0.5, %v3059_v11 }
0x20d1   :  { %v3061_v5 = vsub.f32 1.5, %v3060_v29 }
0x20d3   :  { %v3062_v46 = vmul.f32 %v3402_v18, %v3061_v5 }
0x20d5   :  { %v3066_v3 = vsel %vm3065_vm9, %v3402_v18, %v3062_v46 }
0x20d6   :  { %v3068_v31 = vmul.f32 %v3066_v3, %v3044_v27 }
0x20d8   :  { %v3070_v19 = vmul.f32 %v4604_v6, %v3068_v31 }
0x20da   :  { %v3072_v54 = vadd.f32 %v4610_v30, %v3070_v19 }
0x20dc   :  { %3171 = vmatmul.msk.f32.gmra.mxu2 %vm105_vm4, %v3072_v54  ;;  %vm3121_vm4 = vcmask 39936  }
0x214d   :  { %v3096_v0 = vpop.f32.mrf.mxu2 }
0x214e   :  { %v3097_v9 = vadd.f32 %v3445_v4, %v3096_v0 }
0x2150   :  { %v3102_v26 = vmul.f32 0.00999917, %v3097_v9 }
0x2152   :  { %v3104_v53 = vsub.f32 %v4621_v39, %v3102_v26  ;;  %v3173_v39 = vadd.f32 -2.7725887, %v3172_v34 }
0x2154   :  { %v3106_v6 = vmul.f32 1.0000501, %v3104_v53 }
0x2156   :  { %v3108_v62 = vmul.f32 0.9, %v3106_v6  ;;  %v3111_v63 = vmul.f32 0.1, %v3106_v6 }
0x215f   :  { %v3099_v60 = vpop.f32.mrf.mxu2 }
0x2160   :  { %v3100_v25 = vadd.f32 %v3445_v4, %v3099_v60 }
0x2162   :  { %v3103_v52 = vmul.f32 0.00999917, %v3100_v25 }
0x2164   :  { %v3105_v30 = vsub.f32 %v4623_v45, %v3103_v52 }
0x2166   :  { %v3107_v14 = vmul.f32 1.0000501, %v3105_v30 }
0x2168   :  { %v3109_v7 = vmul.f32 0.9, %v3107_v14  ;;  %v3110_v32 = vmul.f32 0.1, %v3107_v14 }
0x216a   :  { %v3112_v12 = vadd.f32 %v3110_v32, %v3108_v62  ;;  %v3113_v10 = vadd.f32 %v3111_v63, %v3109_v7 }
0x216c   :  { %v3114_v61 = vadd.f32 %v3113_v10, %v3112_v12 }
0x216e   :  { %v3115_v16 = vmul.f32 0.5, %v3114_v61 }
0x2170   :  { %v3120_v23 = vsel %vm265_vm8, %v3115_v16, %v3173_v39 }
0x2171   :  { %v3122_v41 = vsel %vm3121_vm4, %v3120_v23, 0.0 }
0x2172   :  { %3123 = vst [vmem:[%s4709_s2] sm:$0xff] %v3122_v41 }

</bundles_post_ra>
